<compile_context>
chip_gen: v7x
topology: tpu7x:2x2x1
jax: 0.10.0
libtpu: 0.0.40
codegen_flags: <defaults>
</compile_context>

<pallas_src>
import functools

import jax
import jax.numpy as jnp
import numpy as np
from jax.experimental import pallas as pl
from jax.experimental.pallas import tpu as pltpu


# ---------------------------------------------------------------------------
# Fused recurrent kernel for one layer.  grid=(T,); h/c resident in VMEM.
#
# Layouts (all minor dims lane-dense):
#   xg_ref    : (1, B*H, K*W*Cin)   bf16   row-im2col of x_t (vertical pad only)
#   wxb_ref   : (K*W*Cin, 4*W*Chid) bf16   banded conv_x weights
#   whb_ref   : (K*W*Chid, 4*W*Chid) bf16  banded conv_h weights
#   bias_ref  : (1, 4*W*Chid)       f32
#   wci/f/o   : (B*H, W*Chid)       f32    peephole weights, batch-tiled
#   h_out_ref : (B, 1, H, W*Chid)   f32
#   hpad_ref  : (B, H+2p, W*Chid)   f32 scratch (vertically padded h state)
#   c_ref     : (B*H, W*Chid)       f32 scratch (cell state)
#   hcols_ref : (B*H, K*W*Chid)     bf16 scratch (row-band im2col of h)
# ---------------------------------------------------------------------------
def convlstm_step_kernel(xg_ref, wxb_ref, whb_ref, bias_ref,
                         wci_ref, wcf_ref, wco_ref,
                         h_out_ref,
                         hpad_ref, c_ref, hcols_ref,
                         *, B, H, W, Chid, K):
    WC = W * Chid
    pad = K // 2
    t = pl.program_id(0)

    # t == 0 -> reset recurrent state (module's init_hidden: zeros).
    @pl.when(t == 0)
    def _():
        hpad_ref[...] = jnp.zeros_like(hpad_ref)
        c_ref[...] = jnp.zeros_like(c_ref)

    # Row-band "im2col" of the vertically padded hidden state: K lane-aligned,
    # full-lane, sublane-shifted copies with the bf16 cast fused into the write.
    for dy in range(K):
        hcols_ref[:, dy * WC:(dy + 1) * WC] = (
            hpad_ref[:, dy:dy + H, :].reshape(B * H, WC).astype(jnp.bfloat16))

    # gates[b*H+y, g*WC + x*Chid + c] = conv_x(x_t) + conv_h(h_{t-1}) + bias
    # Two banded MXU matmuls, f32 accumulation.
    gates = (jnp.dot(xg_ref[0], wxb_ref[...],
                     preferred_element_type=jnp.float32)
             + jnp.dot(hcols_ref[...], whb_ref[...],
                       preferred_element_type=jnp.float32)
             + bias_ref[...])

    c_cur = c_ref[...]
    # torch split order of the 4*Chid conv channels: xi, xf, xo, xc.
    gi = gates[:, 0 * WC:1 * WC]
    gf = gates[:, 1 * WC:2 * WC]
    go = gates[:, 2 * WC:3 * WC]
    gc = gates[:, 3 * WC:4 * WC]

    i = jax.nn.sigmoid(gi + c_cur * wci_ref[...])
    f = jax.nn.sigmoid(gf + c_cur * wcf_ref[...])
    c_next = f * c_cur + i * jnp.tanh(gc)
    o = jax.nn.sigmoid(go + c_cur * wco_ref[...])   # OLD cell: matches the module
    h_next = o * jnp.tanh(c_next)

    c_ref[...] = c_next
    hpad_ref[:, pad:pad + H, :] = h_next.reshape(B, H, WC)
    h_out_ref[...] = h_next.reshape(B, 1, H, WC).astype(h_out_ref.dtype)


def convlstm_layer(xg, wx_band, wh_band, bias_band, wci_b, wcf_b, wco_b,
                   *, B, H, W, Chid, K):
    T = xg.shape[0]
    BH = B * H
    WC = W * Chid
    KWCx = xg.shape[-1]
    KWCh = K * WC
    Hp = H + 2 * (K // 2)

    kernel = functools.partial(convlstm_step_kernel,
                               B=B, H=H, W=W, Chid=Chid, K=K)

    cost = pl.CostEstimate(
        flops=int(T * 2 * BH * (KWCx + KWCh) * 4 * WC),
        transcendentals=int(T * 5 * BH * WC),
        bytes_accessed=int(xg.size * 2 + B * T * H * WC * 4
                           + (wx_band.size + wh_band.size) * 2
                           + 3 * BH * WC * 4 + 4 * WC * 4))

    return pl.pallas_call(
        kernel,
        out_shape=jax.ShapeDtypeStruct((B, T, H, WC), jnp.float32),
        grid_spec=pltpu.PrefetchScalarGridSpec(
            num_scalar_prefetch=0,
            grid=(T,),
            in_specs=[
                pl.BlockSpec((1, BH, KWCx), lambda t: (t, 0, 0)),
                pl.BlockSpec((KWCx, 4 * WC), lambda t: (0, 0)),   # resident
                pl.BlockSpec((KWCh, 4 * WC), lambda t: (0, 0)),   # resident
                pl.BlockSpec((1, 4 * WC), lambda t: (0, 0)),
                pl.BlockSpec((BH, WC), lambda t: (0, 0)),
                pl.BlockSpec((BH, WC), lambda t: (0, 0)),
                pl.BlockSpec((BH, WC), lambda t: (0, 0)),
            ],
            out_specs=pl.BlockSpec((B, 1, H, WC), lambda t: (0, t, 0, 0)),
            scratch_shapes=[
                pltpu.VMEM((B, Hp, WC), jnp.float32),     # padded h state
                pltpu.VMEM((BH, WC), jnp.float32),        # cell state
                pltpu.VMEM((BH, KWCh), jnp.bfloat16),     # h row-band cols
            ],
        ),
        compiler_params=pltpu.CompilerParams(
            dimension_semantics=("arbitrary",)),
        cost_estimate=cost,
    )(xg, wx_band, wh_band, bias_band, wci_b, wcf_b, wco_b)


# ---------------------------------------------------------------------------
# Wrapper-side layout plumbing (per layer, NOT per timestep).
# ---------------------------------------------------------------------------
def _row_im2col(x_nhwc, K):
    """(B, T, H, W, C) -> (T, B*H, K*W*C); vertical zero pad only, band-major.

    Column index = dy*(W*C) + x*C + c  (matches the banded weight row order)."""
    B, T, H, W, C = x_nhwc.shape
    pad = K // 2
    xp = jnp.pad(x_nhwc, ((0, 0), (0, 0), (pad, pad), (0, 0), (0, 0)))
    bands = [xp[:, :, dy:dy + H, :, :].reshape(B, T, H, W * C)
             for dy in range(K)]
    cols = jnp.concatenate(bands, axis=-1)               # (B, T, H, K*W*C)
    return jnp.transpose(cols, (1, 0, 2, 3)).reshape(T, B * H, K * W * C)


def conv_lstm_forward(x, params, K):
    """x: (B, T, C, H, W).  Returns last layer's hidden states (B, T, Chid, H, W)."""
    B, T, _, H, W = x.shape
    cur = jnp.transpose(x, (0, 1, 3, 4, 2))               # NCHW -> NHWC, once
    for p in params:
        Chid = p['wci_rows'].shape[-1] // W
        xg = _row_im2col(cur, K).astype(jnp.bfloat16)      # (T, B*H, K*W*Cin)
        wci_b = jnp.tile(p['wci_rows'], (B, 1))            # (B*H, W*Chid), tiny
        wcf_b = jnp.tile(p['wcf_rows'], (B, 1))
        wco_b = jnp.tile(p['wco_rows'], (B, 1))
        h = convlstm_layer(xg, p['wx_band'], p['wh_band'], p['bias_band'],
                           wci_b, wcf_b, wco_b,
                           B=B, H=H, W=W, Chid=Chid, K=K)  # (B, T, H, W*Chid)
        cur = h.reshape(B, T, H, W, Chid)
    return jnp.transpose(cur, (0, 1, 4, 2, 3))             # back to NCHW per step


# ---------------------------------------------------------------------------
# Banded (Toeplitz) weight construction — done ONCE at setup, in numpy.
#   row = dy*(W*Cin) + xp*Cin + ci
#   col = gate*(W*Chid) + x*Chid + co
#   val = w[gate*Chid + co, ci, dy, xp - x + pad]  (0 outside the band /
#         outside [0, W), which also encodes the horizontal zero padding).
# ---------------------------------------------------------------------------
def _band_weight(w_oihw, K, W, Cin, Chid):
    pad = K // 2
    WCi, WCo = W * Cin, W * Chid
    band = np.zeros((K * WCi, 4 * WCo), np.float32)
    for dy in range(K):
        for x in range(W):
            for dx in range(K):
                xp = x + dx - pad
                if not (0 <= xp < W):
                    continue
                tap = w_oihw[:, :, dy, dx]                 # (4*Chid, Cin)
                for g in range(4):
                    band[dy * WCi + xp * Cin: dy * WCi + (xp + 1) * Cin,
                         g * WCo + x * Chid: g * WCo + (x + 1) * Chid] = (
                        tap[g * Chid:(g + 1) * Chid, :].T)
    return band


def _bias_band(bx, W, Chid):
    WCo = W * Chid
    bb = np.zeros((1, 4 * WCo), np.float32)
    for g in range(4):
        bb[0, g * WCo:(g + 1) * WCo] = np.tile(bx[g * Chid:(g + 1) * Chid], W)
    return bb


# ---------------------------------------------------------------------------
# Pure-JAX f32 reference (mirrors the PyTorch forward, NCHW) for validation.
# ---------------------------------------------------------------------------
def ref_conv_lstm(x, params, K):
    pad = K // 2
    dn = ('NCHW', 'OIHW', 'NCHW')
    B, T, _, H, W = x.shape
    cur = x
    for p in params:
        Chid = p['wh_oihw'].shape[0] // 4
        h = jnp.zeros((B, Chid, H, W), x.dtype)
        c = jnp.zeros((B, Chid, H, W), x.dtype)
        outs = []
        for t in range(T):
            xt = cur[:, t]
            cx = jax.lax.conv_general_dilated(
                xt, p['wx_oihw'], (1, 1), [(pad, pad), (pad, pad)],
                dimension_numbers=dn) + p['bx'][None, :, None, None]
            ch = jax.lax.conv_general_dilated(
                h, p['wh_oihw'], (1, 1), [(pad, pad), (pad, pad)],
                dimension_numbers=dn)
            xi, xf, xo, xc = jnp.split(cx, 4, axis=1)
            hi, hf, ho, hc = jnp.split(ch, 4, axis=1)
            i = jax.nn.sigmoid(xi + hi + c * p['wci'])
            f = jax.nn.sigmoid(xf + hf + c * p['wcf'])
            c_next = f * c + i * jnp.tanh(xc + hc)
            o = jax.nn.sigmoid(xo + ho + c * p['wco'])
            h = o * jnp.tanh(c_next)
            c = c_next
            outs.append(h)
        cur = jnp.stack(outs, axis=1)
    return cur


# ---------------------------------------------------------------------------
def make_params(key, input_dim, hidden_dims, K, H, W):
    params = []
    cin = input_dim
    for Chid in hidden_dims:
        key, *ks = jax.random.split(key, 7)
        C4 = 4 * Chid
        wx_oihw = jax.random.uniform(ks[0], (C4, cin, K, K), jnp.float32, -0.1, 0.1)
        bx = jax.random.uniform(ks[1], (C4,), jnp.float32, -0.1, 0.1)
        wh_oihw = jax.random.uniform(ks[2], (C4, Chid, K, K), jnp.float32, -0.1, 0.1)
        # NOTE: torch inits Wci/Wcf/Wco to zeros; we use small random values
        # (deterministic) so the peephole path is actually exercised.
        wci = jax.random.uniform(ks[3], (1, Chid, H, W), jnp.float32, -0.1, 0.1)
        wcf = jax.random.uniform(ks[4], (1, Chid, H, W), jnp.float32, -0.1, 0.1)
        wco = jax.random.uniform(ks[5], (1, Chid, H, W), jnp.float32, -0.1, 0.1)

        def _pee_rows(w):     # (1, Chid, H, W) -> (H, W*Chid), lane-dense
            return jnp.asarray(
                np.transpose(np.asarray(w)[0], (1, 2, 0)).reshape(H, W * Chid))

        params.append(dict(
            # reference (torch) layouts
            wx_oihw=wx_oihw, bx=bx, wh_oihw=wh_oihw, wci=wci, wcf=wcf, wco=wco,
            # kernel layouts: banded/Toeplitz bf16 matmul operands, lane-dense
            wx_band=jnp.asarray(_band_weight(np.asarray(wx_oihw), K, W, cin, Chid)
                                ).astype(jnp.bfloat16),
            wh_band=jnp.asarray(_band_weight(np.asarray(wh_oihw), K, W, Chid, Chid)
                                ).astype(jnp.bfloat16),
            bias_band=jnp.asarray(_bias_band(np.asarray(bx), W, Chid)),
            wci_rows=_pee_rows(wci),
            wcf_rows=_pee_rows(wcf),
            wco_rows=_pee_rows(wco),
        ))
        cin = Chid
    return params


if __name__ == "__main__":
    key = jax.random.PRNGKey(0)
    B, T, Cin, H, W = 2, 4, 4, 8, 8            # map_h = map_w = 8 (module default)
    hidden_dims = [32, 32]                     # num_layers = 2
    K = 3                                      # kernel_size = (3, 3)

    key, kx, kp = jax.random.split(key, 3)
    x = jax.random.normal(kx, (B, T, Cin, H, W), jnp.float32)
    params = make_params(kp, Cin, hidden_dims, K, H, W)

    fwd = jax.jit(functools.partial(conv_lstm_forward, K=K))
    out = jax.block_until_ready(fwd(x, params))

    ref = ref_conv_lstm(x, params, K)
    # bf16 matmul operands (f32 accumulation) vs a pure-f32 reference -> looser tol.
    np.testing.assert_allclose(np.asarray(out), np.asarray(ref),
                               rtol=3e-2, atol=3e-2)
    print("KERNEL_OK")
</pallas_src>

<mosaic_0001>
module attributes {stable_mosaic.version = 11 : i64} {
  func.func @convlstm_step_kernel(%arg0: i32, %arg1: memref<1x16x96xbf16, #tpu.memory_space<vmem>>, %arg2: memref<96x1024xbf16, #tpu.memory_space<vmem>>, %arg3: memref<768x1024xbf16, #tpu.memory_space<vmem>>, %arg4: memref<1x1024xf32, #tpu.memory_space<vmem>>, %arg5: memref<16x256xf32, #tpu.memory_space<vmem>>, %arg6: memref<16x256xf32, #tpu.memory_space<vmem>>, %arg7: memref<16x256xf32, #tpu.memory_space<vmem>>, %arg8: memref<2x1x8x256xf32, #tpu.memory_space<vmem>>, %arg9: memref<2x10x256xf32, #tpu.memory_space<vmem>>, %arg10: memref<16x256xf32, #tpu.memory_space<vmem>>, %arg11: memref<16x768xbf16, #tpu.memory_space<vmem>>) attributes {dimension_semantics = [#tpu.dimension_semantics<arbitrary>], iteration_bounds = array<i64: 4>, scalar_prefetch = 0 : i64, scratch_operands = 3 : i64, tpu.core_type = #tpu.core_type<tc>, window_params = [{transform_indices = @transform_0, window_bounds = array<i64: 1, 16, 96>}, {pipeline_mode = #tpu.pipeline_mode<synchronous>, transform_indices = @transform_1, window_bounds = array<i64: 96, 1024>}, {pipeline_mode = #tpu.pipeline_mode<synchronous>, transform_indices = @transform_2, window_bounds = array<i64: 768, 1024>}, {pipeline_mode = #tpu.pipeline_mode<synchronous>, transform_indices = @transform_3, window_bounds = array<i64: 1, 1024>}, {pipeline_mode = #tpu.pipeline_mode<synchronous>, transform_indices = @transform_4, window_bounds = array<i64: 16, 256>}, {pipeline_mode = #tpu.pipeline_mode<synchronous>, transform_indices = @transform_5, window_bounds = array<i64: 16, 256>}, {pipeline_mode = #tpu.pipeline_mode<synchronous>, transform_indices = @transform_6, window_bounds = array<i64: 16, 256>}, {transform_indices = @transform_7, window_bounds = array<i64: 2, 1, 8, 256>}]} {
    %c0_i32 = arith.constant 0 : i32
    %0 = arith.cmpi eq, %arg0, %c0_i32 : i32
    %1 = arith.extui %0 : i1 to i32
    %c0_i32_0 = arith.constant 0 : i32
    %2 = arith.cmpi ne, %1, %c0_i32_0 : i32
    scf.if %2 {
      %cst_43 = arith.constant 0.000000e+00 : f32
      %66 = vector.broadcast %cst_43 : f32 to vector<2x10x256xf32>
      %c0_44 = arith.constant 0 : index
      %c0_45 = arith.constant 0 : index
      %c0_46 = arith.constant 0 : index
      %67 = vector.load %arg9[%c0_44, %c0_45, %c0_46] : memref<2x10x256xf32, #tpu.memory_space<vmem>>, vector<2x10x256xf32>
      tpu.vector_store %arg9[%c0_44, %c0_45, %c0_46], %66 {strides = array<i32>} : memref<2x10x256xf32, #tpu.memory_space<vmem>>, vector<2x10x256xf32>,
      %cst_47 = arith.constant 0.000000e+00 : f32
      %68 = vector.broadcast %cst_47 : f32 to vector<16x256xf32>
      %c0_48 = arith.constant 0 : index
      %c0_49 = arith.constant 0 : index
      %69 = vector.load %arg10[%c0_48, %c0_49] : memref<16x256xf32, #tpu.memory_space<vmem>>, vector<16x256xf32>
      tpu.vector_store %arg10[%c0_48, %c0_49], %68 {strides = array<i32>} : memref<16x256xf32, #tpu.memory_space<vmem>>, vector<16x256xf32>,
    } else {
    }
    %c0 = arith.constant 0 : index
    %c0_1 = arith.constant 0 : index
    %c0_2 = arith.constant 0 : index
    %3 = vector.load %arg9[%c0, %c0_1, %c0_2] : memref<2x10x256xf32, #tpu.memory_space<vmem>>, vector<2x8x256xf32>
    %4 = vector.shape_cast %3 : vector<2x8x256xf32> to vector<16x256xf32>
    %5 = arith.truncf %4 : vector<16x256xf32> to vector<16x256xbf16>
    %c0_3 = arith.constant 0 : index
    %c0_4 = arith.constant 0 : index
    %6 = vector.load %arg11[%c0_3, %c0_4] : memref<16x768xbf16, #tpu.memory_space<vmem>>, vector<16x256xbf16>
    tpu.vector_store %arg11[%c0_3, %c0_4], %5 {strides = array<i32>} : memref<16x768xbf16, #tpu.memory_space<vmem>>, vector<16x256xbf16>,
    %c0_5 = arith.constant 0 : index
    %c1 = arith.constant 1 : index
    %c0_6 = arith.constant 0 : index
    %7 = vector.load %arg9[%c0_5, %c1, %c0_6] : memref<2x10x256xf32, #tpu.memory_space<vmem>>, vector<2x8x256xf32>
    %8 = vector.shape_cast %7 : vector<2x8x256xf32> to vector<16x256xf32>
    %9 = arith.truncf %8 : vector<16x256xf32> to vector<16x256xbf16>
    %c0_7 = arith.constant 0 : index
    %c256 = arith.constant 256 : index
    %10 = vector.load %arg11[%c0_7, %c256] : memref<16x768xbf16, #tpu.memory_space<vmem>>, vector<16x256xbf16>
    tpu.vector_store %arg11[%c0_7, %c256], %9 {strides = array<i32>} : memref<16x768xbf16, #tpu.memory_space<vmem>>, vector<16x256xbf16>,
    %c0_8 = arith.constant 0 : index
    %c2 = arith.constant 2 : index
    %c0_9 = arith.constant 0 : index
    %11 = vector.load %arg9[%c0_8, %c2, %c0_9] : memref<2x10x256xf32, #tpu.memory_space<vmem>>, vector<2x8x256xf32>
    %12 = vector.shape_cast %11 : vector<2x8x256xf32> to vector<16x256xf32>
    %13 = arith.truncf %12 : vector<16x256xf32> to vector<16x256xbf16>
    %c0_10 = arith.constant 0 : index
    %c512 = arith.constant 512 : index
    %14 = vector.load %arg11[%c0_10, %c512] : memref<16x768xbf16, #tpu.memory_space<vmem>>, vector<16x256xbf16>
    tpu.vector_store %arg11[%c0_10, %c512], %13 {strides = array<i32>} : memref<16x768xbf16, #tpu.memory_space<vmem>>, vector<16x256xbf16>,
    %c0_11 = arith.constant 0 : index
    %c0_12 = arith.constant 0 : index
    %c0_13 = arith.constant 0 : index
    %15 = vector.load %arg1[%c0_11, %c0_12, %c0_13] : memref<1x16x96xbf16, #tpu.memory_space<vmem>>, vector<1x16x96xbf16>
    %16 = vector.shape_cast %15 : vector<1x16x96xbf16> to vector<16x96xbf16>
    %c0_14 = arith.constant 0 : index
    %c0_15 = arith.constant 0 : index
    %17 = vector.load %arg2[%c0_14, %c0_15] : memref<96x1024xbf16, #tpu.memory_space<vmem>>, vector<96x1024xbf16>
    %cst = arith.constant dense<0.000000e+00> : vector<16x1024xf32>
    %18 = tpu.matmul %16, %17, %cst {dimension_numbers = #tpu.dot_dimension_numbers<[1], [0], [0], [1], [0, 0, 1, 1], [], []>} : vector<16x96xbf16>, vector<96x1024xbf16>, vector<16x1024xf32> -> vector<16x1024xf32>
    %c0_16 = arith.constant 0 : index
    %c0_17 = arith.constant 0 : index
    %19 = vector.load %arg11[%c0_16, %c0_17] : memref<16x768xbf16, #tpu.memory_space<vmem>>, vector<16x768xbf16>
    %c0_18 = arith.constant 0 : index
    %c0_19 = arith.constant 0 : index
    %20 = vector.load %arg3[%c0_18, %c0_19] : memref<768x1024xbf16, #tpu.memory_space<vmem>>, vector<768x1024xbf16>
    %cst_20 = arith.constant dense<0.000000e+00> : vector<16x1024xf32>
    %21 = tpu.matmul %19, %20, %cst_20 {dimension_numbers = #tpu.dot_dimension_numbers<[1], [0], [0], [1], [0, 0, 1, 1], [], []>} : vector<16x768xbf16>, vector<768x1024xbf16>, vector<16x1024xf32> -> vector<16x1024xf32>
    %22 = arith.addf %18, %21 : vector<16x1024xf32>
    %c0_21 = arith.constant 0 : index
    %c0_22 = arith.constant 0 : index
    %23 = vector.load %arg4[%c0_21, %c0_22] : memref<1x1024xf32, #tpu.memory_space<vmem>>, vector<1x1024xf32>
    %24 = vector.broadcast %23 : vector<1x1024xf32> to vector<16x1024xf32>
    %25 = arith.addf %22, %24 : vector<16x1024xf32>
    %c0_23 = arith.constant 0 : index
    %c0_24 = arith.constant 0 : index
    %26 = vector.load %arg10[%c0_23, %c0_24] : memref<16x256xf32, #tpu.memory_space<vmem>>, vector<16x256xf32>
    %27 = vector.extract_strided_slice %25 {offsets = [0, 0], sizes = [16, 256], strides = [1, 1]} : vector<16x1024xf32> to vector<16x256xf32>
    %28 = vector.extract_strided_slice %25 {offsets = [0, 256], sizes = [16, 256], strides = [1, 1]} : vector<16x1024xf32> to vector<16x256xf32>
    %29 = vector.extract_strided_slice %25 {offsets = [0, 512], sizes = [16, 256], strides = [1, 1]} : vector<16x1024xf32> to vector<16x256xf32>
    %30 = vector.extract_strided_slice %25 {offsets = [0, 768], sizes = [16, 256], strides = [1, 1]} : vector<16x1024xf32> to vector<16x256xf32>
    %c0_25 = arith.constant 0 : index
    %c0_26 = arith.constant 0 : index
    %31 = vector.load %arg5[%c0_25, %c0_26] : memref<16x256xf32, #tpu.memory_space<vmem>>, vector<16x256xf32>
    %32 = arith.mulf %26, %31 : vector<16x256xf32>
    %33 = arith.addf %27, %32 : vector<16x256xf32>
    %34 = arith.negf %33 : vector<16x256xf32>
    %35 = math.exp %34 : vector<16x256xf32>
    %cst_27 = arith.constant 1.000000e+00 : f32
    %36 = vector.broadcast %cst_27 : f32 to vector<16x256xf32>
    %37 = arith.addf %36, %35 : vector<16x256xf32>
    %38 = arith.divf %36, %37 : vector<16x256xf32>
    %c0_28 = arith.constant 0 : index
    %c0_29 = arith.constant 0 : index
    %39 = vector.load %arg6[%c0_28, %c0_29] : memref<16x256xf32, #tpu.memory_space<vmem>>, vector<16x256xf32>
    %40 = arith.mulf %26, %39 : vector<16x256xf32>
    %41 = arith.addf %28, %40 : vector<16x256xf32>
    %42 = arith.negf %41 : vector<16x256xf32>
    %43 = math.exp %42 : vector<16x256xf32>
    %cst_30 = arith.constant 1.000000e+00 : f32
    %44 = vector.broadcast %cst_30 : f32 to vector<16x256xf32>
    %45 = arith.addf %44, %43 : vector<16x256xf32>
    %46 = arith.divf %44, %45 : vector<16x256xf32>
    %47 = arith.mulf %46, %26 : vector<16x256xf32>
    %48 = math.tanh %30 : vector<16x256xf32>
    %49 = arith.mulf %38, %48 : vector<16x256xf32>
    %50 = arith.addf %47, %49 : vector<16x256xf32>
    %c0_31 = arith.constant 0 : index
    %c0_32 = arith.constant 0 : index
    %51 = vector.load %arg7[%c0_31, %c0_32] : memref<16x256xf32, #tpu.memory_space<vmem>>, vector<16x256xf32>
    %52 = arith.mulf %26, %51 : vector<16x256xf32>
    %53 = arith.addf %29, %52 : vector<16x256xf32>
    %54 = arith.negf %53 : vector<16x256xf32>
    %55 = math.exp %54 : vector<16x256xf32>
    %cst_33 = arith.constant 1.000000e+00 : f32
    %56 = vector.broadcast %cst_33 : f32 to vector<16x256xf32>
    %57 = arith.addf %56, %55 : vector<16x256xf32>
    %58 = arith.divf %56, %57 : vector<16x256xf32>
    %59 = math.tanh %50 : vector<16x256xf32>
    %60 = arith.mulf %58, %59 : vector<16x256xf32>
    %c0_34 = arith.constant 0 : index
    %c0_35 = arith.constant 0 : index
    %61 = vector.load %arg10[%c0_34, %c0_35] : memref<16x256xf32, #tpu.memory_space<vmem>>, vector<16x256xf32>
    tpu.vector_store %arg10[%c0_34, %c0_35], %50 {strides = array<i32>} : memref<16x256xf32, #tpu.memory_space<vmem>>, vector<16x256xf32>,
    %62 = vector.shape_cast %60 : vector<16x256xf32> to vector<2x8x256xf32>
    %c0_36 = arith.constant 0 : index
    %c1_37 = arith.constant 1 : index
    %c0_38 = arith.constant 0 : index
    %63 = vector.load %arg9[%c0_36, %c1_37, %c0_38] : memref<2x10x256xf32, #tpu.memory_space<vmem>>, vector<2x8x256xf32>
    tpu.vector_store %arg9[%c0_36, %c1_37, %c0_38], %62 {strides = array<i32>} : memref<2x10x256xf32, #tpu.memory_space<vmem>>, vector<2x8x256xf32>,
    %64 = vector.shape_cast %60 : vector<16x256xf32> to vector<2x1x8x256xf32>
    %c0_39 = arith.constant 0 : index
    %c0_40 = arith.constant 0 : index
    %c0_41 = arith.constant 0 : index
    %c0_42 = arith.constant 0 : index
    %65 = vector.load %arg8[%c0_39, %c0_40, %c0_41, %c0_42] : memref<2x1x8x256xf32, #tpu.memory_space<vmem>>, vector<2x1x8x256xf32>
    tpu.vector_store %arg8[%c0_39, %c0_40, %c0_41, %c0_42], %64 {strides = array<i32>} : memref<2x1x8x256xf32, #tpu.memory_space<vmem>>, vector<2x1x8x256xf32>,
    return
  }
  func.func @transform_0(%arg0: i32) -> (i32, i32, i32) {
    %c0_i32 = arith.constant 0 : i32
    %c0_i32_0 = arith.constant 0 : i32
    %c0_i32_1 = arith.constant 0 : i32
    return %arg0, %c0_i32, %c0_i32_0 : i32, i32, i32
  }
  func.func @transform_1(%arg0: i32) -> (i32, i32) {
    %c0_i32 = arith.constant 0 : i32
    %c0_i32_0 = arith.constant 0 : i32
    %c0_i32_1 = arith.constant 0 : i32
    return %c0_i32, %c0_i32_0 : i32, i32
  }
  func.func @transform_2(%arg0: i32) -> (i32, i32) {
    %c0_i32 = arith.constant 0 : i32
    %c0_i32_0 = arith.constant 0 : i32
    %c0_i32_1 = arith.constant 0 : i32
    return %c0_i32, %c0_i32_0 : i32, i32
  }
  func.func @transform_3(%arg0: i32) -> (i32, i32) {
    %c0_i32 = arith.constant 0 : i32
    %c0_i32_0 = arith.constant 0 : i32
    %c0_i32_1 = arith.constant 0 : i32
    return %c0_i32, %c0_i32_0 : i32, i32
  }
  func.func @transform_4(%arg0: i32) -> (i32, i32) {
    %c0_i32 = arith.constant 0 : i32
    %c0_i32_0 = arith.constant 0 : i32
    %c0_i32_1 = arith.constant 0 : i32
    return %c0_i32, %c0_i32_0 : i32, i32
  }
  func.func @transform_5(%arg0: i32) -> (i32, i32) {
    %c0_i32 = arith.constant 0 : i32
    %c0_i32_0 = arith.constant 0 : i32
    %c0_i32_1 = arith.constant 0 : i32
    return %c0_i32, %c0_i32_0 : i32, i32
  }
  func.func @transform_6(%arg0: i32) -> (i32, i32) {
    %c0_i32 = arith.constant 0 : i32
    %c0_i32_0 = arith.constant 0 : i32
    %c0_i32_1 = arith.constant 0 : i32
    return %c0_i32, %c0_i32_0 : i32, i32
  }
  func.func @transform_7(%arg0: i32) -> (i32, i32, i32, i32) {
    %c0_i32 = arith.constant 0 : i32
    %c0_i32_0 = arith.constant 0 : i32
    %c0_i32_1 = arith.constant 0 : i32
    %c0_i32_2 = arith.constant 0 : i32
    return %c0_i32, %arg0, %c0_i32_0, %c0_i32_1 : i32, i32, i32, i32
  }
}

module attributes {stable_mosaic.version = 11 : i64} {
  func.func @convlstm_step_kernel(%arg0: i32, %arg1: memref<1x16x768xbf16, #tpu.memory_space<vmem>>, %arg2: memref<768x1024xbf16, #tpu.memory_space<vmem>>, %arg3: memref<768x1024xbf16, #tpu.memory_space<vmem>>, %arg4: memref<1x1024xf32, #tpu.memory_space<vmem>>, %arg5: memref<16x256xf32, #tpu.memory_space<vmem>>, %arg6: memref<16x256xf32, #tpu.memory_space<vmem>>, %arg7: memref<16x256xf32, #tpu.memory_space<vmem>>, %arg8: memref<2x1x8x256xf32, #tpu.memory_space<vmem>>, %arg9: memref<2x10x256xf32, #tpu.memory_space<vmem>>, %arg10: memref<16x256xf32, #tpu.memory_space<vmem>>, %arg11: memref<16x768xbf16, #tpu.memory_space<vmem>>) attributes {dimension_semantics = [#tpu.dimension_semantics<arbitrary>], iteration_bounds = array<i64: 4>, scalar_prefetch = 0 : i64, scratch_operands = 3 : i64, tpu.core_type = #tpu.core_type<tc>, window_params = [{transform_indices = @transform_0, window_bounds = array<i64: 1, 16, 768>}, {pipeline_mode = #tpu.pipeline_mode<synchronous>, transform_indices = @transform_1, window_bounds = array<i64: 768, 1024>}, {pipeline_mode = #tpu.pipeline_mode<synchronous>, transform_indices = @transform_2, window_bounds = array<i64: 768, 1024>}, {pipeline_mode = #tpu.pipeline_mode<synchronous>, transform_indices = @transform_3, window_bounds = array<i64: 1, 1024>}, {pipeline_mode = #tpu.pipeline_mode<synchronous>, transform_indices = @transform_4, window_bounds = array<i64: 16, 256>}, {pipeline_mode = #tpu.pipeline_mode<synchronous>, transform_indices = @transform_5, window_bounds = array<i64: 16, 256>}, {pipeline_mode = #tpu.pipeline_mode<synchronous>, transform_indices = @transform_6, window_bounds = array<i64: 16, 256>}, {transform_indices = @transform_7, window_bounds = array<i64: 2, 1, 8, 256>}]} {
    %c0_i32 = arith.constant 0 : i32
    %0 = arith.cmpi eq, %arg0, %c0_i32 : i32
    %1 = arith.extui %0 : i1 to i32
    %c0_i32_0 = arith.constant 0 : i32
    %2 = arith.cmpi ne, %1, %c0_i32_0 : i32
    scf.if %2 {
      %cst_43 = arith.constant 0.000000e+00 : f32
      %66 = vector.broadcast %cst_43 : f32 to vector<2x10x256xf32>
      %c0_44 = arith.constant 0 : index
      %c0_45 = arith.constant 0 : index
      %c0_46 = arith.constant 0 : index
      %67 = vector.load %arg9[%c0_44, %c0_45, %c0_46] : memref<2x10x256xf32, #tpu.memory_space<vmem>>, vector<2x10x256xf32>
      tpu.vector_store %arg9[%c0_44, %c0_45, %c0_46], %66 {strides = array<i32>} : memref<2x10x256xf32, #tpu.memory_space<vmem>>, vector<2x10x256xf32>,
      %cst_47 = arith.constant 0.000000e+00 : f32
      %68 = vector.broadcast %cst_47 : f32 to vector<16x256xf32>
      %c0_48 = arith.constant 0 : index
      %c0_49 = arith.constant 0 : index
      %69 = vector.load %arg10[%c0_48, %c0_49] : memref<16x256xf32, #tpu.memory_space<vmem>>, vector<16x256xf32>
      tpu.vector_store %arg10[%c0_48, %c0_49], %68 {strides = array<i32>} : memref<16x256xf32, #tpu.memory_space<vmem>>, vector<16x256xf32>,
    } else {
    }
    %c0 = arith.constant 0 : index
    %c0_1 = arith.constant 0 : index
    %c0_2 = arith.constant 0 : index
    %3 = vector.load %arg9[%c0, %c0_1, %c0_2] : memref<2x10x256xf32, #tpu.memory_space<vmem>>, vector<2x8x256xf32>
    %4 = vector.shape_cast %3 : vector<2x8x256xf32> to vector<16x256xf32>
    %5 = arith.truncf %4 : vector<16x256xf32> to vector<16x256xbf16>
    %c0_3 = arith.constant 0 : index
    %c0_4 = arith.constant 0 : index
    %6 = vector.load %arg11[%c0_3, %c0_4] : memref<16x768xbf16, #tpu.memory_space<vmem>>, vector<16x256xbf16>
    tpu.vector_store %arg11[%c0_3, %c0_4], %5 {strides = array<i32>} : memref<16x768xbf16, #tpu.memory_space<vmem>>, vector<16x256xbf16>,
    %c0_5 = arith.constant 0 : index
    %c1 = arith.constant 1 : index
    %c0_6 = arith.constant 0 : index
    %7 = vector.load %arg9[%c0_5, %c1, %c0_6] : memref<2x10x256xf32, #tpu.memory_space<vmem>>, vector<2x8x256xf32>
    %8 = vector.shape_cast %7 : vector<2x8x256xf32> to vector<16x256xf32>
    %9 = arith.truncf %8 : vector<16x256xf32> to vector<16x256xbf16>
    %c0_7 = arith.constant 0 : index
    %c256 = arith.constant 256 : index
    %10 = vector.load %arg11[%c0_7, %c256] : memref<16x768xbf16, #tpu.memory_space<vmem>>, vector<16x256xbf16>
    tpu.vector_store %arg11[%c0_7, %c256], %9 {strides = array<i32>} : memref<16x768xbf16, #tpu.memory_space<vmem>>, vector<16x256xbf16>,
    %c0_8 = arith.constant 0 : index
    %c2 = arith.constant 2 : index
    %c0_9 = arith.constant 0 : index
    %11 = vector.load %arg9[%c0_8, %c2, %c0_9] : memref<2x10x256xf32, #tpu.memory_space<vmem>>, vector<2x8x256xf32>
    %12 = vector.shape_cast %11 : vector<2x8x256xf32> to vector<16x256xf32>
    %13 = arith.truncf %12 : vector<16x256xf32> to vector<16x256xbf16>
    %c0_10 = arith.constant 0 : index
    %c512 = arith.constant 512 : index
    %14 = vector.load %arg11[%c0_10, %c512] : memref<16x768xbf16, #tpu.memory_space<vmem>>, vector<16x256xbf16>
    tpu.vector_store %arg11[%c0_10, %c512], %13 {strides = array<i32>} : memref<16x768xbf16, #tpu.memory_space<vmem>>, vector<16x256xbf16>,
    %c0_11 = arith.constant 0 : index
    %c0_12 = arith.constant 0 : index
    %c0_13 = arith.constant 0 : index
    %15 = vector.load %arg1[%c0_11, %c0_12, %c0_13] : memref<1x16x768xbf16, #tpu.memory_space<vmem>>, vector<1x16x768xbf16>
    %16 = vector.shape_cast %15 : vector<1x16x768xbf16> to vector<16x768xbf16>
    %c0_14 = arith.constant 0 : index
    %c0_15 = arith.constant 0 : index
    %17 = vector.load %arg2[%c0_14, %c0_15] : memref<768x1024xbf16, #tpu.memory_space<vmem>>, vector<768x1024xbf16>
    %cst = arith.constant dense<0.000000e+00> : vector<16x1024xf32>
    %18 = tpu.matmul %16, %17, %cst {dimension_numbers = #tpu.dot_dimension_numbers<[1], [0], [0], [1], [0, 0, 1, 1], [], []>} : vector<16x768xbf16>, vector<768x1024xbf16>, vector<16x1024xf32> -> vector<16x1024xf32>
    %c0_16 = arith.constant 0 : index
    %c0_17 = arith.constant 0 : index
    %19 = vector.load %arg11[%c0_16, %c0_17] : memref<16x768xbf16, #tpu.memory_space<vmem>>, vector<16x768xbf16>
    %c0_18 = arith.constant 0 : index
    %c0_19 = arith.constant 0 : index
    %20 = vector.load %arg3[%c0_18, %c0_19] : memref<768x1024xbf16, #tpu.memory_space<vmem>>, vector<768x1024xbf16>
    %cst_20 = arith.constant dense<0.000000e+00> : vector<16x1024xf32>
    %21 = tpu.matmul %19, %20, %cst_20 {dimension_numbers = #tpu.dot_dimension_numbers<[1], [0], [0], [1], [0, 0, 1, 1], [], []>} : vector<16x768xbf16>, vector<768x1024xbf16>, vector<16x1024xf32> -> vector<16x1024xf32>
    %22 = arith.addf %18, %21 : vector<16x1024xf32>
    %c0_21 = arith.constant 0 : index
    %c0_22 = arith.constant 0 : index
    %23 = vector.load %arg4[%c0_21, %c0_22] : memref<1x1024xf32, #tpu.memory_space<vmem>>, vector<1x1024xf32>
    %24 = vector.broadcast %23 : vector<1x1024xf32> to vector<16x1024xf32>
    %25 = arith.addf %22, %24 : vector<16x1024xf32>
    %c0_23 = arith.constant 0 : index
    %c0_24 = arith.constant 0 : index
    %26 = vector.load %arg10[%c0_23, %c0_24] : memref<16x256xf32, #tpu.memory_space<vmem>>, vector<16x256xf32>
    %27 = vector.extract_strided_slice %25 {offsets = [0, 0], sizes = [16, 256], strides = [1, 1]} : vector<16x1024xf32> to vector<16x256xf32>
    %28 = vector.extract_strided_slice %25 {offsets = [0, 256], sizes = [16, 256], strides = [1, 1]} : vector<16x1024xf32> to vector<16x256xf32>
    %29 = vector.extract_strided_slice %25 {offsets = [0, 512], sizes = [16, 256], strides = [1, 1]} : vector<16x1024xf32> to vector<16x256xf32>
    %30 = vector.extract_strided_slice %25 {offsets = [0, 768], sizes = [16, 256], strides = [1, 1]} : vector<16x1024xf32> to vector<16x256xf32>
    %c0_25 = arith.constant 0 : index
    %c0_26 = arith.constant 0 : index
    %31 = vector.load %arg5[%c0_25, %c0_26] : memref<16x256xf32, #tpu.memory_space<vmem>>, vector<16x256xf32>
    %32 = arith.mulf %26, %31 : vector<16x256xf32>
    %33 = arith.addf %27, %32 : vector<16x256xf32>
    %34 = arith.negf %33 : vector<16x256xf32>
    %35 = math.exp %34 : vector<16x256xf32>
    %cst_27 = arith.constant 1.000000e+00 : f32
    %36 = vector.broadcast %cst_27 : f32 to vector<16x256xf32>
    %37 = arith.addf %36, %35 : vector<16x256xf32>
    %38 = arith.divf %36, %37 : vector<16x256xf32>
    %c0_28 = arith.constant 0 : index
    %c0_29 = arith.constant 0 : index
    %39 = vector.load %arg6[%c0_28, %c0_29] : memref<16x256xf32, #tpu.memory_space<vmem>>, vector<16x256xf32>
    %40 = arith.mulf %26, %39 : vector<16x256xf32>
    %41 = arith.addf %28, %40 : vector<16x256xf32>
    %42 = arith.negf %41 : vector<16x256xf32>
    %43 = math.exp %42 : vector<16x256xf32>
    %cst_30 = arith.constant 1.000000e+00 : f32
    %44 = vector.broadcast %cst_30 : f32 to vector<16x256xf32>
    %45 = arith.addf %44, %43 : vector<16x256xf32>
    %46 = arith.divf %44, %45 : vector<16x256xf32>
    %47 = arith.mulf %46, %26 : vector<16x256xf32>
    %48 = math.tanh %30 : vector<16x256xf32>
    %49 = arith.mulf %38, %48 : vector<16x256xf32>
    %50 = arith.addf %47, %49 : vector<16x256xf32>
    %c0_31 = arith.constant 0 : index
    %c0_32 = arith.constant 0 : index
    %51 = vector.load %arg7[%c0_31, %c0_32] : memref<16x256xf32, #tpu.memory_space<vmem>>, vector<16x256xf32>
    %52 = arith.mulf %26, %51 : vector<16x256xf32>
    %53 = arith.addf %29, %52 : vector<16x256xf32>
    %54 = arith.negf %53 : vector<16x256xf32>
    %55 = math.exp %54 : vector<16x256xf32>
    %cst_33 = arith.constant 1.000000e+00 : f32
    %56 = vector.broadcast %cst_33 : f32 to vector<16x256xf32>
    %57 = arith.addf %56, %55 : vector<16x256xf32>
    %58 = arith.divf %56, %57 : vector<16x256xf32>
    %59 = math.tanh %50 : vector<16x256xf32>
    %60 = arith.mulf %58, %59 : vector<16x256xf32>
    %c0_34 = arith.constant 0 : index
    %c0_35 = arith.constant 0 : index
    %61 = vector.load %arg10[%c0_34, %c0_35] : memref<16x256xf32, #tpu.memory_space<vmem>>, vector<16x256xf32>
    tpu.vector_store %arg10[%c0_34, %c0_35], %50 {strides = array<i32>} : memref<16x256xf32, #tpu.memory_space<vmem>>, vector<16x256xf32>,
    %62 = vector.shape_cast %60 : vector<16x256xf32> to vector<2x8x256xf32>
    %c0_36 = arith.constant 0 : index
    %c1_37 = arith.constant 1 : index
    %c0_38 = arith.constant 0 : index
    %63 = vector.load %arg9[%c0_36, %c1_37, %c0_38] : memref<2x10x256xf32, #tpu.memory_space<vmem>>, vector<2x8x256xf32>
    tpu.vector_store %arg9[%c0_36, %c1_37, %c0_38], %62 {strides = array<i32>} : memref<2x10x256xf32, #tpu.memory_space<vmem>>, vector<2x8x256xf32>,
    %64 = vector.shape_cast %60 : vector<16x256xf32> to vector<2x1x8x256xf32>
    %c0_39 = arith.constant 0 : index
    %c0_40 = arith.constant 0 : index
    %c0_41 = arith.constant 0 : index
    %c0_42 = arith.constant 0 : index
    %65 = vector.load %arg8[%c0_39, %c0_40, %c0_41, %c0_42] : memref<2x1x8x256xf32, #tpu.memory_space<vmem>>, vector<2x1x8x256xf32>
    tpu.vector_store %arg8[%c0_39, %c0_40, %c0_41, %c0_42], %64 {strides = array<i32>} : memref<2x1x8x256xf32, #tpu.memory_space<vmem>>, vector<2x1x8x256xf32>,
    return
  }
  func.func @transform_0(%arg0: i32) -> (i32, i32, i32) {
    %c0_i32 = arith.constant 0 : i32
    %c0_i32_0 = arith.constant 0 : i32
    %c0_i32_1 = arith.constant 0 : i32
    return %arg0, %c0_i32, %c0_i32_0 : i32, i32, i32
  }
  func.func @transform_1(%arg0: i32) -> (i32, i32) {
    %c0_i32 = arith.constant 0 : i32
    %c0_i32_0 = arith.constant 0 : i32
    %c0_i32_1 = arith.constant 0 : i32
    return %c0_i32, %c0_i32_0 : i32, i32
  }
  func.func @transform_2(%arg0: i32) -> (i32, i32) {
    %c0_i32 = arith.constant 0 : i32
    %c0_i32_0 = arith.constant 0 : i32
    %c0_i32_1 = arith.constant 0 : i32
    return %c0_i32, %c0_i32_0 : i32, i32
  }
  func.func @transform_3(%arg0: i32) -> (i32, i32) {
    %c0_i32 = arith.constant 0 : i32
    %c0_i32_0 = arith.constant 0 : i32
    %c0_i32_1 = arith.constant 0 : i32
    return %c0_i32, %c0_i32_0 : i32, i32
  }
  func.func @transform_4(%arg0: i32) -> (i32, i32) {
    %c0_i32 = arith.constant 0 : i32
    %c0_i32_0 = arith.constant 0 : i32
    %c0_i32_1 = arith.constant 0 : i32
    return %c0_i32, %c0_i32_0 : i32, i32
  }
  func.func @transform_5(%arg0: i32) -> (i32, i32) {
    %c0_i32 = arith.constant 0 : i32
    %c0_i32_0 = arith.constant 0 : i32
    %c0_i32_1 = arith.constant 0 : i32
    return %c0_i32, %c0_i32_0 : i32, i32
  }
  func.func @transform_6(%arg0: i32) -> (i32, i32) {
    %c0_i32 = arith.constant 0 : i32
    %c0_i32_0 = arith.constant 0 : i32
    %c0_i32_1 = arith.constant 0 : i32
    return %c0_i32, %c0_i32_0 : i32, i32
  }
  func.func @transform_7(%arg0: i32) -> (i32, i32, i32, i32) {
    %c0_i32 = arith.constant 0 : i32
    %c0_i32_0 = arith.constant 0 : i32
    %c0_i32_1 = arith.constant 0 : i32
    %c0_i32_2 = arith.constant 0 : i32
    return %c0_i32, %arg0, %c0_i32_0, %c0_i32_1 : i32, i32, i32, i32
  }
}

</mosaic_0001>

<bundles_post_ra>
// kernel: conv_lstm_forward.2
= control target key start
LH: loop header
LB: loop body
LE: loop exit
PB: predicated region body
PF: predicated region fallthrough
CT: control target
= control target key end

     0   :  { %12 = vsyncpa [#allocation6], 0  ;;  %s5210_s0 = inlined_call_operand.vmem [shape: bf16[4,16,96], index: 0, kind: input, shape index: {}]   ;;  %s5211_s1 = inlined_call_operand.vmem [shape: bf16[96,1024], index: 1, kind: input, shape index: {}]   ;;  %s5212_s2 = inlined_call_operand.hbm [shape: bf16[768,1024], index: 2, kind: input, shape index: {}]   ;;  %s5213_s3 = inlined_call_operand.hbm [shape: f32[1,1024], index: 3, kind: input, shape index: {}]   ;;  %s5214_s4 = inlined_call_operand.vmem [shape: f32[16,256], index: 4, kind: input, shape index: {}]   ;;  %s5215_s5 = inlined_call_operand.vmem [shape: f32[16,256], index: 5, kind: input, shape index: {}]   ;;  %s5216_s6 = inlined_call_operand.vmem [shape: f32[16,256], index: 6, kind: input, shape index: {}]   ;;  %s5217_s7 = inlined_call_operand.vmem [shape: f32[2,4,8,256], index: 7, kind: output, shape index: {}]  }
   0x1   :  { %13 = vsyncpa [#allocation8], 0  ;;  %s4789_s24 = smov 0   ;;  %s4791_s25 = smov 0  }
   0x2   :  { %s4793_s26 = smov 0  }
   0x3 LB: > { %s4802_s27 = sadd.s32 4294967295, %s4741_s26   ;;  %s4804_s28 = sadd.s32 1, %s4741_s26   ;;  %s4741_s26 = sphi %s4793_s26, %s5232_s26   ;;  %s4737_s25 = sphi %s4791_s25, %s5231_s25   ;;  %s4733_s24 = sphi %s4789_s24, %s5230_s24  }
   0x4   : > { %s175_s29 = ssub.s32 %s4741_s26, %s4804_s28  ;;  %s178_s30 = sadd.s32 1, %s4737_s25 }
   0x5   : > { %p176_p0 = scmp.eq.s32.totalorder %s175_s29, 0  ;;  %p188_p1 = scmp.ne.s32.totalorder %s4737_s25, %s4733_s24 }
   0x6   : > { %p189_p2 = scmp.eq.s32.totalorder %s4802_s27, 3  ;;  %p4026_p3 = scmp.ge.s32.totalorder %s4741_s26, 1 }
   0x7   : > { %s4812_s8 = scalar_select %p176_p0, %s4737_s25, %s178_s30  }
   0x8   : > { %p4814_p4 = por %p189_p2, %p188_p1  ;;  %p202_p5 = scmp.lt.s32.totalorder %s4741_s26, 5 }
   0x9   : > { %p5218_p7 = scmp.eq.s32.totalorder %s4802_s27, 0  ;;  %s4743_s11 = smov [#allocation5]  }
   0xa   : > { %s5220_s9 = scalar_select %p4814_p4, 1, 0 }
   0xb   : > { %p4820_p8 = pnand %p4026_p3, %p202_p5  ;;  %s217_s12 = sshll.u32 %s4743_s11, 4  ;;  %s218_s12 = int_to_ptr.vmem [resolvable:$true] %s217_s12 }
   0xc   : > { %s4744_s14 = smov [#allocation7]   ;;  %s4655_s18 = scalar_lea.hbm %s5212_s2, 49152 }
   0xd   : > { %s5221_s10 = scalar_select %p4820_p8, 1, 0 }
   0xe   : > { %p4549_p9 = pneg %p4820_p8  ;;  %s231_s15 = sshll.u32 %s4744_s14, 4  ;;  %s4832_s15 = int_to_ptr.vmem [resolvable:$true] %s231_s15 }
   0xf   : > { %p4656_p11 = scmp.ne.s32.totalorder %s5212_s2, %s4655_s18  ;;  %p4662_p1 = scmp.lt.u32.totalorder %s4655_s18, %s5212_s2 }
  0x10   : > { %p4828_p10 = pnand %p5218_p7, %p4549_p9 }
  0x12   : > { %p4657_p12 = pneg %p4828_p10 }
  0x14   : > { %p4658_p13 = pnand %p4657_p12, %p4656_p11 }
  0x16   : > { %p4659_p0 = pneg %p4658_p13 }
  0x18   : > { %p4664_p2 = pnand %p4662_p1, %p4659_p0 }
  0x1a   : > { %4667 = shalt.err (!%p4664_p2)
}
  0x1b   : > { %s4668_s23 = scalar_lea.vmem %s218_s12, 49152  ;;  %p4676_p6 = scmp.lt.s32.totalorder %s218_s12, %s218_s12 }
  0x1c   : > { %p4669_p3 = scmp.ne.s32.totalorder %s218_s12, %s4668_s23  ;;  %p4677_p7 = scmp.lt.s32.totalorder %s4668_s23, %s4668_s23 }
  0x1e   : > { %p4671_p5 = pnand %p4669_p3, %p4657_p12  ;;  %p4678_p4 = por %p4677_p7, %p4676_p6 }
  0x20   : > { %p4672_p9 = pneg %p4671_p5 }
  0x22   : > { %p4679_p8 = pnand %p4678_p4, %p4672_p9 }
  0x24   : > { %4682 = shalt.err (!%p4679_p8)
}
  0x25   : > { %s4745_s26 = smov 512   ;;  %s4746_s29 = smov 32  }
  0x26   : > { %4552 = dma.hbm_to_vmem [thread:$0]  (!%p4828_p10), %s5212_s2, 49152, %s218_s12, [#allocation6], %s4745_s26, %s4745_s26, %s4746_s29  }
  0x27   : > { %s4683_s17 = scalar_lea.hbm %s5213_s3, 128 }
  0x28   : > { %p4684_p11 = scmp.ne.s32.totalorder %s5213_s3, %s4683_s17  ;;  %p4690_p7 = scmp.lt.u32.totalorder %s4683_s17, %s5213_s3 }
  0x2a   : > { %p4686_p4 = pnand %p4684_p11, %p4657_p12 }
  0x2c   : > { %p4687_p6 = pneg %p4686_p4 }
  0x2e   : > { %p4692_p8 = pnand %p4690_p7, %p4687_p6 }
  0x30   : > { %4695 = shalt.err (!%p4692_p8)
}
  0x31   : > { %s4696_s12 = scalar_lea.vmem %s4832_s15, 128  ;;  %p4704_p2 = scmp.lt.s32.totalorder %s4832_s15, %s4832_s15 }
  0x32   : > { %p4697_p13 = scmp.ne.s32.totalorder %s4832_s15, %s4696_s12  ;;  %p4705_p3 = scmp.lt.s32.totalorder %s4696_s12, %s4696_s12 }
  0x34   : > { %p4699_p0 = pnand %p4697_p13, %p4657_p12  ;;  %p4706_p5 = por %p4705_p3, %p4704_p2 }
  0x36   : > { %p4700_p1 = pneg %p4699_p0 }
  0x38   : > { %p4707_p9 = pnand %p4706_p5, %p4700_p1 }
  0x3a   : > { %4710 = shalt.err (!%p4707_p9)
}
  0x3b   : > { %4555 = dma.hbm_to_vmem [thread:$0]  (!%p4828_p10), %s5213_s3, 128, %s4832_s15, [#allocation8]  }
  0x3c   : > { %p5223_p11 = scmp.ne.s32.totalorder %s5221_s10, 0 }
  0x3d   : > { %p5224_p4 = scmp.eq.s32.totalorder (!%p5223_p11), %s4802_s27, 0 }
  0x3e   : > { %261 = sbr.rel (%p5223_p11) target bundleno = 779 (0x30b), region = 48 }
  0x45   : > { %4724 = dma.done.wait (%p5224_p4), [#allocation6], 49152   ;;  %p5225_p12 = pmov %p5224_p4 }
  0x46   : > { %p5226_p6 = pmov %p5224_p4 }
  0x47   : > { %4726 = vsyncadd (%p5225_p12), [#allocation6], 4294918144 }
  0x48   : > { %4728 = dma.done.wait (%p5226_p6), [#allocation8], 128   ;;  %p5227_p7 = pmov %p5224_p4 }
  0x49   : > { %s293_s13 = sand.u32 1, %s4733_s24   ;;  %p296_p10 = scmp.lt.s32.totalorder %s4802_s27, 3 }
  0x4a   : > { %4730 = vsyncadd (%p5227_p7), [#allocation8], 4294967168  ;;  %s4033_s15 = sshll.u32 %s293_s13, 5  ;;  %p5228_p8 = scmp.ne.s32.totalorder %s4802_s27, 0 }
  0x4b   : > { %s297_s10 = scalar_select %p296_p10, %s4802_s27, 3 }
  0x4c   : > { %s4899_s14 = scalar_lea.vmem [#allocation9], %s4033_s15  ;;  %305 = sbr.rel (%p5228_p8) target bundleno = 83 (0x53), region = 60  ;;  %v4747_v0 = vmov (!%p5228_p8), 0.0  }
  0x4d   : > { %s4491_s26 = sshll.u32 %s297_s10, 3  ;;  %306 = vst [vmem:[#allocation2] sm:$0xff] (!%p5228_p8), %v4747_v0  ;;  %307 = vst [vmem:[#allocation2 + $0x8] sm:$0xff] (!%p5228_p8), %v4747_v0 }
  0x4e   : > { %s4897_s11 = scalar_lea.vmem %s5210_s0, %s4491_s26  ;;  %308 = vst [vmem:[#allocation2 + $0x10] sm:$0x3] (!%p5228_p8), %v4747_v0  ;;  %309 = vst [vmem:[#allocation2 + $0x18] sm:$0x3] (!%p5228_p8), %v4747_v0 }
  0x4f   : > { %310 = vst [vmem:[#allocation2 + $0x20] sm:$0xff] (!%p5228_p8), %v4747_v0  ;;  %311 = vst [vmem:[#allocation2 + $0x28] sm:$0xff] (!%p5228_p8), %v4747_v0 }
  0x50   : > { %312 = vst [vmem:[#allocation2 + $0x30] sm:$0x3] (!%p5228_p8), %v4747_v0  ;;  %313 = vst [vmem:[#allocation2 + $0x38] sm:$0x3] (!%p5228_p8), %v4747_v0 }
  0x51   : > { %314 = vst [vmem:[#allocation3] sm:$0xff] (!%p5228_p8), %v4747_v0  ;;  %315 = vst [vmem:[#allocation3 + $0x8] sm:$0xff] (!%p5228_p8), %v4747_v0 }
  0x52   : > { %316 = vst [vmem:[#allocation3 + $0x10] sm:$0xff] (!%p5228_p8), %v4747_v0  ;;  %317 = vst [vmem:[#allocation3 + $0x18] sm:$0xff] (!%p5228_p8), %v4747_v0 }
  0x53 PF: > { %v456_v1 = vld [vmem:[#allocation5] sm:$0xff]  ;;  %v457_v3 = vld [vmem:[#allocation5 + $0x8] sm:$0xff]  ;;  %vm342_vm0 = vcmask 1046528   ;;  %vm379_vm1 = vcmask 1045504   ;;  %vm3521_vm2 = vcmask 785408   ;;  %p5229_p13 = scmp.ne.s32.totalorder %s5220_s9, 0 }
  0x54   : > { %v460_v2 = vld [vmem:[#allocation5 + $0x20] sm:$0xff]  ;;  %v461_v5 = vld [vmem:[#allocation5 + $0x28] sm:$0xff]  ;;  %s4492_s19 = sshll.u32 (%p5229_p13), %s4802_s27, 4 }
  0x55   : > { %v4038_v4 = vcombine.high %v456_v1, %v460_v2  ;;  %v4037_v6 = vcombine.low %v456_v1, %v460_v2  ;;  %v464_v7 = vld [vmem:[#allocation5 + $0x40] sm:$0xff]  ;;  %v4040_v9 = vcombine.high %v457_v3, %v461_v5  ;;  %v4039_v10 = vcombine.low %v457_v3, %v461_v5  ;;  %v465_v12 = vld [vmem:[#allocation5 + $0x48] sm:$0xff]  ;;  %s3928_s12 = scalar_lea.vmem (%p5229_p13), %s5217_s7, %s4492_s19 }
  0x56   : > { %v468_v8 = vld [vmem:[#allocation5 + $0x60] sm:$0xff]  ;;  %v469_v13 = vld [vmem:[#allocation5 + $0x68] sm:$0xff] }
  0x57   : > { %v4046_v11 = vcombine.high %v464_v7, %v468_v8  ;;  %v472_v14 = vld [vmem:[#allocation5 + $0x80] sm:$0xff]  ;;  %2760 = vmatprep.subr.bf16.mxu0 %v4038_v4  ;;  %v4048_v15 = vcombine.high %v465_v12, %v469_v13  ;;  %v473_v17 = vld [vmem:[#allocation5 + $0x88] sm:$0xff]  ;;  %2889 = vmatprep.subr.bf16.mxu1 %v4040_v9  ;;  %v4045_v19 = vcombine.low %v464_v7, %v468_v8 }
  0x58   : > { %v476_v16 = vld [vmem:[#allocation5 + $0xa0] sm:$0xff]  ;;  %v477_v18 = vld [vmem:[#allocation5 + $0xa8] sm:$0xff]  ;;  %2761 = vmatpush1.bf16.msra.mxu0 %v4037_v6  ;;  %2890 = vmatpush1.bf16.msra.mxu1 %v4039_v10  ;;  %v4047_v20 = vcombine.low %v465_v12, %v469_v13 }
  0x59   : > { %2762 = vmatprep.subr.bf16.mxu0 %v4046_v11  ;;  %v4054_v21 = vcombine.high %v472_v14, %v476_v16  ;;  %2891 = vmatprep.subr.bf16.mxu1 %v4048_v15  ;;  %v4056_v22 = vcombine.high %v473_v17, %v477_v18  ;;  %v480_v23 = vld [vmem:[#allocation5 + $0xc0] sm:$0xff]  ;;  %v481_v25 = vld [vmem:[#allocation5 + $0xc8] sm:$0xff]  ;;  %v4053_v27 = vcombine.low %v472_v14, %v476_v16 }
  0x5a   : > { %v484_v24 = vld [vmem:[#allocation5 + $0xe0] sm:$0xff]  ;;  %v485_v26 = vld [vmem:[#allocation5 + $0xe8] sm:$0xff]  ;;  %v4055_v28 = vcombine.low %v473_v17, %v477_v18 }
  0x5b   : > { %v4062_v29 = vcombine.high %v480_v23, %v484_v24  ;;  %v4064_v30 = vcombine.high %v481_v25, %v485_v26  ;;  %v488_v31 = vld [vmem:[#allocation5 + $0x100] sm:$0xff]  ;;  %v489_v33 = vld [vmem:[#allocation5 + $0x108] sm:$0xff]  ;;  %v4061_v35 = vcombine.low %v480_v23, %v484_v24  ;;  %v4063_v36 = vcombine.low %v481_v25, %v485_v26 }
  0x5c   : > { %2763 = vmatpush1.bf16.msra.mxu0 %v4045_v19  ;;  %2892 = vmatpush1.bf16.msra.mxu1 %v4047_v20  ;;  %v492_v32 = vld [vmem:[#allocation5 + $0x120] sm:$0xff]  ;;  %v493_v34 = vld [vmem:[#allocation5 + $0x128] sm:$0xff] }
  0x5d   : > { %2764 = vmatprep.subr.bf16.mxu0 %v4054_v21  ;;  %2893 = vmatprep.subr.bf16.mxu1 %v4056_v22  ;;  %v4070_v37 = vcombine.high %v488_v31, %v492_v32  ;;  %v4072_v38 = vcombine.high %v489_v33, %v493_v34  ;;  %v496_v39 = vld [vmem:[#allocation5 + $0x140] sm:$0xff]  ;;  %v497_v41 = vld [vmem:[#allocation5 + $0x148] sm:$0xff]  ;;  %v4069_v43 = vcombine.low %v488_v31, %v492_v32 }
  0x5e   : > { %v500_v40 = vld [vmem:[#allocation5 + $0x160] sm:$0xff]  ;;  %v501_v42 = vld [vmem:[#allocation5 + $0x168] sm:$0xff]  ;;  %v4071_v44 = vcombine.low %v489_v33, %v493_v34 }
  0x5f   : > { %v4078_v45 = vcombine.high %v496_v39, %v500_v40  ;;  %v4080_v46 = vcombine.high %v497_v41, %v501_v42  ;;  %v504_v47 = vld [vmem:[#allocation5 + $0x180] sm:$0xff]  ;;  %v505_v49 = vld [vmem:[#allocation5 + $0x188] sm:$0xff]  ;;  %v4077_v51 = vcombine.low %v496_v39, %v500_v40  ;;  %v4079_v52 = vcombine.low %v497_v41, %v501_v42 }
  0x60   : > { %2765 = vmatpush1.bf16.msra.mxu0 %v4053_v27  ;;  %2894 = vmatpush1.bf16.msra.mxu1 %v4055_v28  ;;  %v508_v48 = vld [vmem:[#allocation5 + $0x1a0] sm:$0xff]  ;;  %v509_v50 = vld [vmem:[#allocation5 + $0x1a8] sm:$0xff] }
  0x61   : > { %2766 = vmatprep.subr.bf16.mxu0 %v4062_v29  ;;  %2895 = vmatprep.subr.bf16.mxu1 %v4064_v30  ;;  %v4086_v53 = vcombine.high %v504_v47, %v508_v48  ;;  %v319_v54 = vld [vmem:[#allocation2 + $0x8] sm:$0xff]  ;;  %v4088_v56 = vcombine.high %v505_v49, %v509_v50  ;;  %v512_v57 = vld [vmem:[#allocation5 + $0x1c0] sm:$0xff]  ;;  %v4085_v62 = vcombine.low %v504_v47, %v508_v48 }
  0x62   : > { %v321_v55 = vld [vmem:[#allocation2 + $0x28] sm:$0xff]  ;;  %v516_v58 = vld [vmem:[#allocation5 + $0x1e0] sm:$0xff]  ;;  %v4087_v63 = vcombine.low %v505_v49, %v509_v50 }
  0x63   : > { %v4903_v59 = vpack.c.bf16 %v321_v55, %v319_v54  ;;  %v513_v60 = vld [vmem:[#allocation5 + $0x1c8] sm:$0xff]  ;;  %v4094_v0 = vcombine.high %v512_v57, %v516_v58  ;;  %v520_v2 = vld [vmem:[#allocation5 + $0x200] sm:$0xff]  ;;  %v4093_v6 = vcombine.low %v512_v57, %v516_v58 }
  0x64   : > { %2767 = vmatpush1.bf16.msra.mxu0 %v4061_v35  ;;  %2896 = vmatpush1.bf16.msra.mxu1 %v4063_v36  ;;  %v517_v61 = vld [vmem:[#allocation5 + $0x1e8] sm:$0xff]  ;;  %v524_v3 = vld [vmem:[#allocation5 + $0x220] sm:$0xff] }
  0x65   : > { %2768 = vmatprep.subr.bf16.mxu0 %v4070_v37  ;;  %2897 = vmatprep.subr.bf16.mxu1 %v4072_v38  ;;  %v4096_v1 = vcombine.high %v513_v60, %v517_v61  ;;  %v521_v4 = vld [vmem:[#allocation5 + $0x208] sm:$0xff]  ;;  %v4095_v7 = vcombine.low %v513_v60, %v517_v61  ;;  %v4102_v8 = vcombine.high %v520_v2, %v524_v3  ;;  %v528_v10 = vld [vmem:[#allocation5 + $0x240] sm:$0xff] }
  0x66   : > { %2792 = vmatprep.mubr.bf16.mxu0 %v4903_v59  ;;  %2921 = vmatprep.mubr.bf16.mxu1 %v4903_v59  ;;  %v525_v5 = vld [vmem:[#allocation5 + $0x228] sm:$0xff]  ;;  %v532_v11 = vld [vmem:[#allocation5 + $0x260] sm:$0xff]  ;;  %v4101_v14 = vcombine.low %v520_v2, %v524_v3  ;;  %v333_v3 = vld [vmem:[#allocation2 + $0x38] sm:$0x1] }
  0x67   : > { %v4104_v9 = vcombine.high %v521_v4, %v525_v5  ;;  %v529_v12 = vld [vmem:[#allocation5 + $0x248] sm:$0xff]  ;;  %v4103_v15 = vcombine.low %v521_v4, %v525_v5  ;;  %v4110_v16 = vcombine.high %v528_v10, %v532_v11  ;;  %v536_v18 = vld [vmem:[#allocation5 + $0x280] sm:$0xff]  ;;  %v4109_v22 = vcombine.low %v528_v10, %v532_v11 }
  0x68   : > { %2769 = vmatpush1.bf16.msra.mxu0 %v4069_v43  ;;  %2898 = vmatpush1.bf16.msra.mxu1 %v4071_v44  ;;  %v533_v13 = vld [vmem:[#allocation5 + $0x268] sm:$0xff]  ;;  %v540_v19 = vld [vmem:[#allocation5 + $0x2a0] sm:$0xff] }
  0x69   : > { %2770 = vmatprep.subr.bf16.mxu0 %v4078_v45  ;;  %2899 = vmatprep.subr.bf16.mxu1 %v4080_v46  ;;  %v4112_v17 = vcombine.high %v529_v12, %v533_v13  ;;  %v537_v20 = vld [vmem:[#allocation5 + $0x288] sm:$0xff]  ;;  %v4111_v23 = vcombine.low %v529_v12, %v533_v13  ;;  %v4118_v24 = vcombine.high %v536_v18, %v540_v19  ;;  %v544_v26 = vld [vmem:[#allocation5 + $0x2c0] sm:$0xff] }
  0x6a   : > { %v541_v21 = vld [vmem:[#allocation5 + $0x2a8] sm:$0xff]  ;;  %v548_v27 = vld [vmem:[#allocation5 + $0x2e0] sm:$0xff]  ;;  %v4117_v30 = vcombine.low %v536_v18, %v540_v19 }
  0x6b   : > { %v4120_v25 = vcombine.high %v537_v20, %v541_v21  ;;  %v545_v28 = vld [vmem:[#allocation5 + $0x2c8] sm:$0xff]  ;;  %v4119_v31 = vcombine.low %v537_v20, %v541_v21  ;;  %v4126_v32 = vcombine.high %v544_v26, %v548_v27  ;;  %v552_v34 = vld [vmem:[#allocation5 + $0x300] sm:$0xff]  ;;  %v4125_v38 = vcombine.low %v544_v26, %v548_v27 }
  0x6c   : > { %2771 = vmatpush1.bf16.msra.mxu0 %v4077_v51  ;;  %2900 = vmatpush1.bf16.msra.mxu1 %v4079_v52  ;;  %v549_v29 = vld [vmem:[#allocation5 + $0x2e8] sm:$0xff]  ;;  %v556_v35 = vld [vmem:[#allocation5 + $0x320] sm:$0xff] }
  0x6d   : > { %2772 = vmatprep.subr.bf16.mxu0 %v4086_v53  ;;  %2901 = vmatprep.subr.bf16.mxu1 %v4088_v56  ;;  %v4128_v33 = vcombine.high %v545_v28, %v549_v29  ;;  %v553_v36 = vld [vmem:[#allocation5 + $0x308] sm:$0xff]  ;;  %v4127_v39 = vcombine.low %v545_v28, %v549_v29  ;;  %v4134_v40 = vcombine.high %v552_v34, %v556_v35  ;;  %v560_v42 = vld [vmem:[#allocation5 + $0x340] sm:$0xff] }
  0x6e   : > { %v557_v37 = vld [vmem:[#allocation5 + $0x328] sm:$0xff]  ;;  %v564_v43 = vld [vmem:[#allocation5 + $0x360] sm:$0xff]  ;;  %v4133_v46 = vcombine.low %v552_v34, %v556_v35 }
  0x6f   : > { %v4136_v41 = vcombine.high %v553_v36, %v557_v37  ;;  %v561_v44 = vld [vmem:[#allocation5 + $0x348] sm:$0xff]  ;;  %v4135_v47 = vcombine.low %v553_v36, %v557_v37  ;;  %v4142_v48 = vcombine.high %v560_v42, %v564_v43  ;;  %v568_v50 = vld [vmem:[#allocation5 + $0x380] sm:$0xff]  ;;  %v4141_v54 = vcombine.low %v560_v42, %v564_v43 }
  0x70   : > { %2773 = vmatpush1.bf16.msra.mxu0 %v4085_v62  ;;  %2902 = vmatpush1.bf16.msra.mxu1 %v4087_v63  ;;  %v565_v45 = vld [vmem:[#allocation5 + $0x368] sm:$0xff]  ;;  %v572_v51 = vld [vmem:[#allocation5 + $0x3a0] sm:$0xff] }
  0x71   : > { %2774 = vmatprep.subr.bf16.mxu0 %v4094_v0  ;;  %2903 = vmatprep.subr.bf16.mxu1 %v4096_v1  ;;  %v4144_v49 = vcombine.high %v561_v44, %v565_v45  ;;  %v569_v52 = vld [vmem:[#allocation5 + $0x388] sm:$0xff]  ;;  %v4143_v55 = vcombine.low %v561_v44, %v565_v45  ;;  %v4150_v56 = vcombine.high %v568_v50, %v572_v51  ;;  %v576_v58 = vld [vmem:[#allocation5 + $0x3c0] sm:$0xff]  ;;  %v329_v1 = vld [vmem:[#allocation2 + $0x18] sm:$0x1] }
  0x72   : > { %v573_v53 = vld [vmem:[#allocation5 + $0x3a8] sm:$0xff]  ;;  %v580_v60 = vld [vmem:[#allocation5 + $0x3e0] sm:$0xff]  ;;  %v4149_v0 = vcombine.low %v568_v50, %v572_v51  ;;  %v347_v12 = vrot.slane %v329_v1, 1 }
  0x73   : > { %v4152_v57 = vcombine.high %v569_v52, %v573_v53  ;;  %v577_v61 = vld [vmem:[#allocation5 + $0x3c8] sm:$0xff]  ;;  %v4151_v4 = vcombine.low %v569_v52, %v573_v53  ;;  %v4158_v5 = vcombine.high %v576_v58, %v580_v60  ;;  %v592_v21 = vld [vmem:[#allocation5 + $0x440] sm:$0xff] }
  0x74   : > { %2775 = vmatpush1.bf16.msra.mxu0 %v4093_v6  ;;  %2904 = vmatpush1.bf16.msra.mxu1 %v4095_v7  ;;  %v581_v62 = vld [vmem:[#allocation5 + $0x3e8] sm:$0xff]  ;;  %v584_v7 = vld [vmem:[#allocation5 + $0x400] sm:$0xff] }
  0x75   : > { %2776 = vmatprep.subr.bf16.mxu0 %v4102_v8  ;;  %2905 = vmatprep.subr.bf16.mxu1 %v4104_v9  ;;  %v327_v63 = vld [vmem:[#allocation2 + $0x8] sm:$0xfe]  ;;  %v4160_v6 = vcombine.high %v577_v61, %v581_v62  ;;  %v588_v8 = vld [vmem:[#allocation5 + $0x420] sm:$0xff]  ;;  %v4159_v18 = vcombine.low %v577_v61, %v581_v62 }
  0x76   : > { %v331_v2 = vld [vmem:[#allocation2 + $0x28] sm:$0xfe]  ;;  %v346_v11 = vrot.slane %v327_v63, 1  ;;  %v4166_v19 = vcombine.high %v584_v7, %v588_v8  ;;  %v4165_v28 = vcombine.low %v584_v7, %v588_v8  ;;  %v612_v42 = vld [vmem:[#allocation5 + $0x4e0] sm:$0xff] }
  0x77   : > { %v585_v9 = vld [vmem:[#allocation5 + $0x408] sm:$0xff]  ;;  %v352_v13 = vrot.slane %v331_v2, 1  ;;  %v620_v50 = vld [vmem:[#allocation5 + $0x520] sm:$0xff] }
  0x78   : > { %2777 = vmatpush1.bf16.msra.mxu0 %v4101_v14  ;;  %2906 = vmatpush1.bf16.msra.mxu1 %v4103_v15  ;;  %v589_v10 = vld [vmem:[#allocation5 + $0x428] sm:$0xff]  ;;  %v353_v14 = vrot.slane %v333_v3, 1  ;;  %v4157_v15 = vcombine.low %v576_v58, %v580_v60  ;;  %v348_v26 = vsel %vm342_vm0, %v346_v11, %v347_v12  ;;  %v628_v58 = vld [vmem:[#allocation5 + $0x560] sm:$0xff] }
  0x79   : > { %2778 = vmatprep.subr.bf16.mxu0 %v4110_v16  ;;  %2907 = vmatprep.subr.bf16.mxu1 %v4112_v17  ;;  %v318_v16 = vld [vmem:[#allocation2] sm:$0xff]  ;;  %v4168_v20 = vcombine.high %v585_v9, %v589_v10  ;;  %v4167_v29 = vcombine.low %v585_v9, %v589_v10  ;;  %v601_v35 = vld [vmem:[#allocation5 + $0x488] sm:$0xff] }
  0x7a   : > { %v320_v17 = vld [vmem:[#allocation2 + $0x20] sm:$0xff]  ;;  %v354_v27 = vsel %vm342_vm0, %v352_v13, %v353_v14  ;;  %v605_v36 = vld [vmem:[#allocation5 + $0x4a8] sm:$0xff] }
  0x7b   : > { %v4911_v34 = vpack.c.bf16 %v354_v27, %v348_v26  ;;  %v609_v43 = vld [vmem:[#allocation5 + $0x4c8] sm:$0xff]  ;;  %v632_v2 = vld [vmem:[#allocation5 + $0x580] sm:$0xff] }
  0x7c   : > { %2779 = vmatpush1.bf16.msra.mxu0 %v4109_v22  ;;  %2908 = vmatpush1.bf16.msra.mxu1 %v4111_v23  ;;  %v596_v22 = vld [vmem:[#allocation5 + $0x460] sm:$0xff]  ;;  %v4907_v23 = vpack.c.bf16 %v320_v17, %v318_v16  ;;  %v613_v44 = vld [vmem:[#allocation5 + $0x4e8] sm:$0xff] }
  0x7d   : > { %2780 = vmatprep.subr.bf16.mxu0 %v4118_v24  ;;  %2909 = vmatprep.subr.bf16.mxu1 %v4120_v25  ;;  %v593_v24 = vld [vmem:[#allocation5 + $0x448] sm:$0xff]  ;;  %v4173_v37 = vcombine.low %v592_v21, %v596_v22  ;;  %v636_v3 = vld [vmem:[#allocation5 + $0x5a0] sm:$0xff] }
  0x7e   : > { %v597_v25 = vld [vmem:[#allocation5 + $0x468] sm:$0xff]  ;;  %v4214_v8 = vcombine.high %v632_v2, %v636_v3  ;;  %v640_v10 = vld [vmem:[#allocation5 + $0x5c0] sm:$0xff]  ;;  %v4213_v14 = vcombine.low %v632_v2, %v636_v3 }
  0x7f   : > { %v617_v51 = vld [vmem:[#allocation5 + $0x508] sm:$0xff]  ;;  %v644_v11 = vld [vmem:[#allocation5 + $0x5e0] sm:$0xff] }
  0x80   : > { %2781 = vmatpush1.bf16.msra.mxu0 %v4117_v30  ;;  %2910 = vmatpush1.bf16.msra.mxu1 %v4119_v31  ;;  %v4174_v30 = vcombine.high %v592_v21, %v596_v22  ;;  %v4176_v31 = vcombine.high %v593_v24, %v597_v25  ;;  %v621_v52 = vld [vmem:[#allocation5 + $0x528] sm:$0xff]  ;;  %v4222_v16 = vcombine.high %v640_v10, %v644_v11  ;;  %v656_v27 = vld [vmem:[#allocation5 + $0x640] sm:$0xff] }
  0x81   : > { %2782 = vmatprep.subr.bf16.mxu0 %v4126_v32  ;;  %2911 = vmatprep.subr.bf16.mxu1 %v4128_v33  ;;  %v600_v32 = vld [vmem:[#allocation5 + $0x480] sm:$0xff]  ;;  %v625_v60 = vld [vmem:[#allocation5 + $0x548] sm:$0xff]  ;;  %v4199_v63 = vcombine.low %v617_v51, %v621_v52  ;;  %v4221_v22 = vcombine.low %v640_v10, %v644_v11  ;;  %v328_v11 = vld [vmem:[#allocation2 + $0x10] sm:$0x1] }
  0x82   : > { %v604_v33 = vld [vmem:[#allocation5 + $0x4a0] sm:$0xff]  ;;  %v629_v61 = vld [vmem:[#allocation5 + $0x568] sm:$0xff] }
  0x83   : > { %v4181_v45 = vcombine.low %v600_v32, %v604_v33  ;;  %v4208_v1 = vcombine.high %v625_v60, %v629_v61  ;;  %v4207_v7 = vcombine.low %v625_v60, %v629_v61  ;;  %v641_v12 = vld [vmem:[#allocation5 + $0x5c8] sm:$0xff]  ;;  %v688_v61 = vld [vmem:[#allocation5 + $0x740] sm:$0xff] }
  0x84   : > { %2783 = vmatpush1.bf16.msra.mxu0 %v4125_v38  ;;  %2912 = vmatpush1.bf16.msra.mxu1 %v4127_v39  ;;  %v4175_v38 = vcombine.low %v593_v24, %v597_v25  ;;  %v4182_v39 = vcombine.high %v600_v32, %v604_v33  ;;  %v645_v13 = vld [vmem:[#allocation5 + $0x5e8] sm:$0xff] }
  0x85   : > { %2784 = vmatprep.subr.bf16.mxu0 %v4134_v40  ;;  %2913 = vmatprep.subr.bf16.mxu1 %v4136_v41  ;;  %v4184_v40 = vcombine.high %v601_v35, %v605_v36  ;;  %v608_v41 = vld [vmem:[#allocation5 + $0x4c0] sm:$0xff]  ;;  %v4224_v17 = vcombine.high %v641_v12, %v645_v13  ;;  %v653_v21 = vld [vmem:[#allocation5 + $0x628] sm:$0xff]  ;;  %v4223_v24 = vcombine.low %v641_v12, %v645_v13  ;;  %v332_v13 = vld [vmem:[#allocation2 + $0x30] sm:$0x1] }
  0x86   : > { %v4189_v53 = vcombine.low %v608_v41, %v612_v42  ;;  %v330_v12 = vld [vmem:[#allocation2 + $0x20] sm:$0xfe] }
  0x88   : > { %2785 = vmatpush1.bf16.msra.mxu0 %v4133_v46  ;;  %2914 = vmatpush1.bf16.msra.mxu1 %v4135_v47  ;;  %v4183_v46 = vcombine.low %v601_v35, %v605_v36  ;;  %v4190_v47 = vcombine.high %v608_v41, %v612_v42  ;;  %v664_v36 = vld [vmem:[#allocation5 + $0x680] sm:$0xff] }
  0x89   : > { %2786 = vmatprep.subr.bf16.mxu0 %v4142_v48  ;;  %2915 = vmatprep.subr.bf16.mxu1 %v4144_v49  ;;  %v4192_v48 = vcombine.high %v609_v43, %v613_v44  ;;  %v616_v49 = vld [vmem:[#allocation5 + $0x500] sm:$0xff] }
  0x8a   : > { %v4197_v62 = vcombine.low %v616_v49, %v620_v50 }
  0x8c   : > { %2787 = vmatpush1.bf16.msra.mxu0 %v4141_v54  ;;  %2916 = vmatpush1.bf16.msra.mxu1 %v4143_v55  ;;  %v4191_v54 = vcombine.low %v609_v43, %v613_v44  ;;  %v4198_v55 = vcombine.high %v616_v49, %v620_v50  ;;  %v672_v44 = vld [vmem:[#allocation5 + $0x6c0] sm:$0xff] }
  0x8d   : > { %2788 = vmatprep.subr.bf16.mxu0 %v4150_v56  ;;  %2917 = vmatprep.subr.bf16.mxu1 %v4152_v57  ;;  %v4200_v56 = vcombine.high %v617_v51, %v621_v52  ;;  %v624_v57 = vld [vmem:[#allocation5 + $0x540] sm:$0xff] }
  0x8e   : > { %v680_v52 = vld [vmem:[#allocation5 + $0x700] sm:$0xff] }
  0x90   : > { %2789 = vmatpush1.bf16.msra.mxu0 %v4149_v0  ;;  %2918 = vmatpush1.bf16.msra.mxu1 %v4151_v4  ;;  %v4206_v0 = vcombine.high %v624_v57, %v628_v58  ;;  %v633_v4 = vld [vmem:[#allocation5 + $0x588] sm:$0xff] }
  0x91   : > { %2790 = vmatprep.subr.bf16.mxu0 %v4158_v5  ;;  %2919 = vmatprep.subr.bf16.mxu1 %v4160_v6  ;;  %v637_v5 = vld [vmem:[#allocation5 + $0x5a8] sm:$0xff]  ;;  %v4205_v6 = vcombine.low %v624_v57, %v628_v58 }
  0x92   : > { %v4216_v9 = vcombine.high %v633_v4, %v637_v5 }
  0x94   : > { %2791 = vmatpush1.bf16.msra.mxu0 %v4157_v15  ;;  %2920 = vmatpush1.bf16.msra.mxu1 %v4159_v18  ;;  %v4215_v15 = vcombine.low %v633_v4, %v637_v5  ;;  %v648_v18 = vld [vmem:[#allocation5 + $0x600] sm:$0xff] }
  0x95   : > { %2803 = vmatprep.subr.bf16.mxu0 %v4166_v19  ;;  %2932 = vmatprep.subr.bf16.mxu1 %v4168_v20  ;;  %v652_v19 = vld [vmem:[#allocation5 + $0x620] sm:$0xff]  ;;  %v649_v20 = vld [vmem:[#allocation5 + $0x608] sm:$0xff] }
  0x96   : > { %v4230_v25 = vcombine.high %v648_v18, %v652_v19  ;;  %v4232_v26 = vcombine.high %v649_v20, %v653_v21  ;;  %v4231_v32 = vcombine.low %v649_v20, %v653_v21  ;;  %v696_v5 = vld [vmem:[#allocation5 + $0x780] sm:$0xff]  ;;  %v709_v20 = vld [vmem:[#allocation5 + $0x7e8] sm:$0xff] }
  0x97   : > { %2793 = vmatmul.mubr.bf16.vlgmr.msra.gmra.mrb[0].mxu0 %v4907_v23  ;;  %2922 = vmatmul.mubr.bf16.vlgmr.msra.gmra.mrb[0].mxu1 %v4907_v23 }
  0x98   : > { %2804 = vmatpush1.bf16.msra.mxu0 %v4165_v28  ;;  %2933 = vmatpush1.bf16.msra.mxu1 %v4167_v29  ;;  %v660_v28 = vld [vmem:[#allocation5 + $0x660] sm:$0xff]  ;;  %v657_v29 = vld [vmem:[#allocation5 + $0x648] sm:$0xff] }
  0x99   : > { %2805 = vmatprep.subr.bf16.mxu0 %v4174_v30  ;;  %2934 = vmatprep.subr.bf16.mxu1 %v4176_v31  ;;  %v661_v30 = vld [vmem:[#allocation5 + $0x668] sm:$0xff]  ;;  %v4229_v31 = vcombine.low %v648_v18, %v652_v19  ;;  %v4238_v33 = vcombine.high %v656_v27, %v660_v28  ;;  %v708_v18 = vld [vmem:[#allocation5 + $0x7e0] sm:$0xff] }
  0x9a   : > { %2835 = vmatprep.mubr.bf16.mxu0 %v4911_v34  ;;  %2964 = vmatprep.mubr.bf16.mxu1 %v4911_v34  ;;  %v4240_v35 = vcombine.high %v657_v29, %v661_v30  ;;  %v4239_v41 = vcombine.low %v657_v29, %v661_v30  ;;  %v705_v19 = vld [vmem:[#allocation5 + $0x7c8] sm:$0xff]  ;;  %v370_v30 = vld [vmem:[#allocation2 + $0x38] sm:$0x3] }
  0x9b   : > { %v368_v29 = vld [vmem:[#allocation2 + $0x28] sm:$0xfc] }
  0x9c   : > { %2806 = vmatpush1.bf16.msra.mxu0 %v4173_v37  ;;  %2935 = vmatpush1.bf16.msra.mxu1 %v4175_v38  ;;  %v668_v37 = vld [vmem:[#allocation5 + $0x6a0] sm:$0xff]  ;;  %v665_v38 = vld [vmem:[#allocation5 + $0x688] sm:$0xff] }
  0x9d   : > { %2807 = vmatprep.subr.bf16.mxu0 %v4182_v39  ;;  %2936 = vmatprep.subr.bf16.mxu1 %v4184_v40  ;;  %v669_v39 = vld [vmem:[#allocation5 + $0x6a8] sm:$0xff]  ;;  %v4237_v40 = vcombine.low %v656_v27, %v660_v28  ;;  %v4246_v42 = vcombine.high %v664_v36, %v668_v37  ;;  %v366_v28 = vld [vmem:[#allocation2 + $0x18] sm:$0x3] }
  0x9e   : > { %v4248_v43 = vcombine.high %v665_v38, %v669_v39  ;;  %v4247_v49 = vcombine.low %v665_v38, %v669_v39  ;;  %v717_v38 = vld [vmem:[#allocation5 + $0x828] sm:$0xff] }
  0xa0   : > { %2808 = vmatpush1.bf16.msra.mxu0 %v4181_v45  ;;  %2937 = vmatpush1.bf16.msra.mxu1 %v4183_v46  ;;  %v676_v45 = vld [vmem:[#allocation5 + $0x6e0] sm:$0xff]  ;;  %v673_v46 = vld [vmem:[#allocation5 + $0x6c8] sm:$0xff] }
  0xa1   : > { %2809 = vmatprep.subr.bf16.mxu0 %v4190_v47  ;;  %2938 = vmatprep.subr.bf16.mxu1 %v4192_v48  ;;  %v677_v47 = vld [vmem:[#allocation5 + $0x6e8] sm:$0xff]  ;;  %v4245_v48 = vcombine.low %v664_v36, %v668_v37  ;;  %v4254_v50 = vcombine.high %v672_v44, %v676_v45  ;;  %v716_v36 = vld [vmem:[#allocation5 + $0x820] sm:$0xff] }
  0xa2   : > { %v4256_v51 = vcombine.high %v673_v46, %v677_v47  ;;  %v4255_v57 = vcombine.low %v673_v46, %v677_v47  ;;  %v713_v37 = vld [vmem:[#allocation5 + $0x808] sm:$0xff]  ;;  %v4287_v46 = vcombine.low %v705_v19, %v709_v20 }
  0xa4   : > { %2810 = vmatpush1.bf16.msra.mxu0 %v4189_v53  ;;  %2939 = vmatpush1.bf16.msra.mxu1 %v4191_v54  ;;  %v684_v53 = vld [vmem:[#allocation5 + $0x720] sm:$0xff]  ;;  %v681_v54 = vld [vmem:[#allocation5 + $0x708] sm:$0xff] }
  0xa5   : > { %2811 = vmatprep.subr.bf16.mxu0 %v4198_v55  ;;  %2940 = vmatprep.subr.bf16.mxu1 %v4200_v56  ;;  %v685_v55 = vld [vmem:[#allocation5 + $0x728] sm:$0xff]  ;;  %v4253_v56 = vcombine.low %v672_v44, %v676_v45  ;;  %v4262_v58 = vcombine.high %v680_v52, %v684_v53 }
  0xa6   : > { %v4264_v60 = vcombine.high %v681_v54, %v685_v55  ;;  %v4263_v2 = vcombine.low %v681_v54, %v685_v55 }
  0xa8   : > { %2812 = vmatpush1.bf16.msra.mxu0 %v4197_v62  ;;  %2941 = vmatpush1.bf16.msra.mxu1 %v4199_v63  ;;  %v692_v62 = vld [vmem:[#allocation5 + $0x760] sm:$0xff]  ;;  %v689_v63 = vld [vmem:[#allocation5 + $0x748] sm:$0xff] }
  0xa9   : > { %2813 = vmatprep.subr.bf16.mxu0 %v4206_v0  ;;  %2942 = vmatprep.subr.bf16.mxu1 %v4208_v1  ;;  %v693_v0 = vld [vmem:[#allocation5 + $0x768] sm:$0xff]  ;;  %v4261_v1 = vcombine.low %v680_v52, %v684_v53  ;;  %v4270_v3 = vcombine.high %v688_v61, %v692_v62  ;;  %v4269_v10 = vcombine.low %v688_v61, %v692_v62  ;;  %v728_v61 = vld [vmem:[#allocation5 + $0x880] sm:$0xff] }
  0xaa   : > { %v4272_v4 = vcombine.high %v689_v63, %v693_v0  ;;  %v721_v52 = vld [vmem:[#allocation5 + $0x848] sm:$0xff]  ;;  %v732_v62 = vld [vmem:[#allocation5 + $0x8a0] sm:$0xff] }
  0xab   : > { %v725_v53 = vld [vmem:[#allocation5 + $0x868] sm:$0xff] }
  0xac   : > { %2814 = vmatpush1.bf16.msra.mxu0 %v4205_v6  ;;  %2943 = vmatpush1.bf16.msra.mxu1 %v4207_v7  ;;  %v700_v6 = vld [vmem:[#allocation5 + $0x7a0] sm:$0xff]  ;;  %v697_v7 = vld [vmem:[#allocation5 + $0x788] sm:$0xff] }
  0xad   : > { %2815 = vmatprep.subr.bf16.mxu0 %v4214_v8  ;;  %2944 = vmatprep.subr.bf16.mxu1 %v4216_v9  ;;  %v701_v8 = vld [vmem:[#allocation5 + $0x7a8] sm:$0xff]  ;;  %v326_v9 = vld [vmem:[#allocation2] sm:$0xfe]  ;;  %v4277_v27 = vcombine.low %v696_v5, %v700_v6 }
  0xae   : > { %v343_v21 = vrot.slane %v326_v9, 1  ;;  %v741_v9 = vld [vmem:[#allocation5 + $0x8e8] sm:$0xff] }
  0xb0   : > { %2816 = vmatpush1.bf16.msra.mxu0 %v4213_v14  ;;  %2945 = vmatpush1.bf16.msra.mxu1 %v4215_v15  ;;  %v4271_v14 = vcombine.low %v689_v63, %v693_v0  ;;  %v4278_v15 = vcombine.high %v696_v5, %v700_v6  ;;  %v729_v0 = vld [vmem:[#allocation5 + $0x888] sm:$0xff]  ;;  %v736_v6 = vld [vmem:[#allocation5 + $0x8c0] sm:$0xff] }
  0xb1   : > { %2817 = vmatprep.subr.bf16.mxu0 %v4222_v16  ;;  %2946 = vmatprep.subr.bf16.mxu1 %v4224_v17  ;;  %v704_v16 = vld [vmem:[#allocation5 + $0x7c0] sm:$0xff]  ;;  %v4280_v17 = vcombine.high %v697_v7, %v701_v8 }
  0xb4   : > { %2818 = vmatpush1.bf16.msra.mxu0 %v4221_v22  ;;  %2947 = vmatpush1.bf16.msra.mxu1 %v4223_v24  ;;  %v344_v22 = vrot.slane %v328_v11, 1  ;;  %v349_v24 = vrot.slane %v330_v12, 1 }
  0xb5   : > { %2819 = vmatprep.subr.bf16.mxu0 %v4230_v25  ;;  %2948 = vmatprep.subr.bf16.mxu1 %v4232_v26  ;;  %v350_v25 = vrot.slane %v332_v13, 1  ;;  %v364_v26 = vld [vmem:[#allocation2 + $0x8] sm:$0xfc] }
  0xb6   : > { %v383_v39 = vrot.slane %v364_v26, 2  ;;  %v345_v44 = vsel %vm342_vm0, %v343_v21, %v344_v22  ;;  %v752_v22 = vld [vmem:[#allocation5 + $0x940] sm:$0xff]  ;;  %v757_v26 = vld [vmem:[#allocation5 + $0x968] sm:$0xff] }
  0xb7   : > { %v351_v45 = vsel %vm342_vm0, %v349_v24, %v350_v25  ;;  %v756_v24 = vld [vmem:[#allocation5 + $0x960] sm:$0xff]  ;;  %v753_v25 = vld [vmem:[#allocation5 + $0x948] sm:$0xff] }
  0xb8   : > { %2820 = vmatpush1.bf16.msra.mxu0 %v4229_v31  ;;  %2949 = vmatpush1.bf16.msra.mxu1 %v4231_v32  ;;  %v4279_v31 = vcombine.low %v697_v7, %v701_v8  ;;  %v4286_v32 = vcombine.high %v704_v16, %v708_v18  ;;  %v740_v7 = vld [vmem:[#allocation5 + $0x8e0] sm:$0xff]  ;;  %v737_v8 = vld [vmem:[#allocation5 + $0x8c8] sm:$0xff] }
  0xb9   : > { %2821 = vmatprep.subr.bf16.mxu0 %v4238_v33  ;;  %2950 = vmatprep.subr.bf16.mxu1 %v4240_v35  ;;  %v4288_v33 = vcombine.high %v705_v19, %v709_v20  ;;  %v712_v35 = vld [vmem:[#allocation5 + $0x800] sm:$0xff]  ;;  %v4318_v12 = vcombine.high %v736_v6, %v740_v7  ;;  %v4320_v13 = vcombine.high %v737_v8, %v741_v9 }
  0xba   : > { %v4294_v47 = vcombine.high %v712_v35, %v716_v36  ;;  %v4319_v19 = vcombine.low %v737_v8, %v741_v9 }
  0xbc   : > { %2822 = vmatpush1.bf16.msra.mxu0 %v4237_v40  ;;  %2951 = vmatpush1.bf16.msra.mxu1 %v4239_v41  ;;  %v384_v40 = vrot.slane %v366_v28, 2  ;;  %v389_v41 = vrot.slane %v368_v29, 2  ;;  %v4334_v29 = vcombine.high %v752_v22, %v756_v24 }
  0xbd   : > { %2823 = vmatprep.subr.bf16.mxu0 %v4246_v42  ;;  %2952 = vmatprep.subr.bf16.mxu1 %v4248_v43  ;;  %v390_v42 = vrot.slane %v370_v30, 2  ;;  %v4285_v43 = vcombine.low %v704_v16, %v708_v18  ;;  %v745_v16 = vld [vmem:[#allocation5 + $0x908] sm:$0xff]  ;;  %v4317_v18 = vcombine.low %v736_v6, %v740_v7  ;;  %v4336_v30 = vcombine.high %v753_v25, %v757_v26 }
  0xbe   : > { %v385_v54 = vsel %vm379_vm1, %v383_v39, %v384_v40  ;;  %v768_v40 = vld [vmem:[#allocation5 + $0x9c0] sm:$0xff]  ;;  %v797_v6 = vld [vmem:[#allocation5 + $0xaa8] sm:$0xff] }
  0xbf   : > { %v391_v55 = vsel %vm379_vm1, %v389_v41, %v390_v42  ;;  %v772_v41 = vld [vmem:[#allocation5 + $0x9e0] sm:$0xff]  ;;  %v769_v42 = vld [vmem:[#allocation5 + $0x9c8] sm:$0xff] }
  0xc0   : > { %2824 = vmatpush1.bf16.msra.mxu0 %v4245_v48  ;;  %2953 = vmatpush1.bf16.msra.mxu1 %v4247_v49  ;;  %v4296_v48 = vcombine.high %v713_v37, %v717_v38  ;;  %v720_v49 = vld [vmem:[#allocation5 + $0x840] sm:$0xff]  ;;  %v4923_v63 = vpack.c.bf16 %v391_v55, %v385_v54 }
  0xc1   : > { %2825 = vmatprep.subr.bf16.mxu0 %v4254_v50  ;;  %2954 = vmatprep.subr.bf16.mxu1 %v4256_v51  ;;  %v724_v50 = vld [vmem:[#allocation5 + $0x860] sm:$0xff]  ;;  %v4919_v51 = vpack.c.bf16 %v351_v45, %v345_v44 }
  0xc4   : > { %2826 = vmatpush1.bf16.msra.mxu0 %v4253_v56  ;;  %2955 = vmatpush1.bf16.msra.mxu1 %v4255_v57  ;;  %v4293_v56 = vcombine.low %v712_v35, %v716_v36  ;;  %v4295_v57 = vcombine.low %v713_v37, %v717_v38  ;;  %v765_v35 = vld [vmem:[#allocation5 + $0x9a8] sm:$0xff]  ;;  %v4333_v36 = vcombine.low %v752_v22, %v756_v24 }
  0xc5   : > { %2827 = vmatprep.subr.bf16.mxu0 %v4262_v58  ;;  %2956 = vmatprep.subr.bf16.mxu1 %v4264_v60  ;;  %v4302_v58 = vcombine.high %v720_v49, %v724_v50  ;;  %v4304_v60 = vcombine.high %v721_v52, %v725_v53  ;;  %v4335_v37 = vcombine.low %v753_v25, %v757_v26  ;;  %v813_v22 = vld [vmem:[#allocation5 + $0xb28] sm:$0xff] }
  0xc8   : > { %2828 = vmatpush1.bf16.msra.mxu0 %v4261_v1  ;;  %2957 = vmatpush1.bf16.msra.mxu1 %v4263_v2  ;;  %v733_v1 = vld [vmem:[#allocation5 + $0x8a8] sm:$0xff]  ;;  %v4301_v2 = vcombine.low %v720_v49, %v724_v50  ;;  %v780_v49 = vld [vmem:[#allocation5 + $0xa20] sm:$0xff] }
  0xc9   : > { %2829 = vmatprep.subr.bf16.mxu0 %v4270_v3  ;;  %2958 = vmatprep.subr.bf16.mxu1 %v4272_v4  ;;  %v4303_v3 = vcombine.low %v721_v52, %v725_v53  ;;  %v4310_v4 = vcombine.high %v728_v61, %v732_v62  ;;  %v4312_v5 = vcombine.high %v729_v0, %v733_v1  ;;  %v777_v50 = vld [vmem:[#allocation5 + $0xa08] sm:$0xff] }
  0xca   : > { %v4311_v11 = vcombine.low %v729_v0, %v733_v1  ;;  %v781_v52 = vld [vmem:[#allocation5 + $0xa28] sm:$0xff]  ;;  %v4349_v53 = vcombine.low %v768_v40, %v772_v41 }
  0xcb   : > { %v4359_v0 = vcombine.low %v777_v50, %v781_v52 }
  0xcc   : > { %2830 = vmatpush1.bf16.msra.mxu0 %v4269_v10  ;;  %2959 = vmatpush1.bf16.msra.mxu1 %v4271_v14  ;;  %v4309_v10 = vcombine.low %v728_v61, %v732_v62  ;;  %v744_v14 = vld [vmem:[#allocation5 + $0x900] sm:$0xff]  ;;  %v789_v61 = vld [vmem:[#allocation5 + $0xa68] sm:$0xff] }
  0xcd   : > { %2831 = vmatprep.subr.bf16.mxu0 %v4278_v15  ;;  %2960 = vmatprep.subr.bf16.mxu1 %v4280_v17  ;;  %v748_v15 = vld [vmem:[#allocation5 + $0x920] sm:$0xff]  ;;  %v749_v17 = vld [vmem:[#allocation5 + $0x928] sm:$0xff] }
  0xce   : > { %v4326_v20 = vcombine.high %v744_v14, %v748_v15  ;;  %v4328_v21 = vcombine.high %v745_v16, %v749_v17  ;;  %v4327_v28 = vcombine.low %v745_v16, %v749_v17 }
  0xd0   : > { %2832 = vmatpush1.bf16.msra.mxu0 %v4277_v27  ;;  %2961 = vmatpush1.bf16.msra.mxu1 %v4279_v31  ;;  %v4325_v27 = vcombine.low %v744_v14, %v748_v15  ;;  %v760_v31 = vld [vmem:[#allocation5 + $0x980] sm:$0xff]  ;;  %v805_v14 = vld [vmem:[#allocation5 + $0xae8] sm:$0xff] }
  0xd1   : > { %2833 = vmatprep.subr.bf16.mxu0 %v4286_v32  ;;  %2962 = vmatprep.subr.bf16.mxu1 %v4288_v33  ;;  %v764_v32 = vld [vmem:[#allocation5 + $0x9a0] sm:$0xff]  ;;  %v761_v33 = vld [vmem:[#allocation5 + $0x988] sm:$0xff] }
  0xd2   : > { %v4342_v38 = vcombine.high %v760_v31, %v764_v32  ;;  %v4344_v39 = vcombine.high %v761_v33, %v765_v35  ;;  %v4341_v44 = vcombine.low %v760_v31, %v764_v32  ;;  %v4343_v45 = vcombine.low %v761_v33, %v765_v35  ;;  %v821_v31 = vld [vmem:[#allocation5 + $0xb68] sm:$0xff] }
  0xd4   : > { %2834 = vmatpush1.bf16.msra.mxu0 %v4285_v43  ;;  %2963 = vmatpush1.bf16.msra.mxu1 %v4287_v46  ;;  %v773_v43 = vld [vmem:[#allocation5 + $0x9e8] sm:$0xff]  ;;  %v4350_v46 = vcombine.high %v768_v40, %v772_v41 }
  0xd5   : > { %2846 = vmatprep.subr.bf16.mxu0 %v4294_v47  ;;  %2975 = vmatprep.subr.bf16.mxu1 %v4296_v48  ;;  %v4352_v47 = vcombine.high %v769_v42, %v773_v43  ;;  %v776_v48 = vld [vmem:[#allocation5 + $0xa00] sm:$0xff]  ;;  %v4351_v54 = vcombine.low %v769_v42, %v773_v43  ;;  %v829_v40 = vld [vmem:[#allocation5 + $0xba8] sm:$0xff] }
  0xd6   : > { %v4358_v55 = vcombine.high %v776_v48, %v780_v49  ;;  %v4357_v62 = vcombine.low %v776_v48, %v780_v49  ;;  %v363_v42 = vld [vmem:[#allocation2] sm:$0xfc] }
  0xd7   : > { %2836 = vmatmul.mubr.bf16.vlgmr.msra.gmra.mrb[0].mxu0 %v4919_v51  ;;  %2965 = vmatmul.mubr.bf16.vlgmr.msra.gmra.mrb[0].mxu1 %v4919_v51  ;;  %v832_v49 = vld [vmem:[#allocation5 + $0xbc0] sm:$0xff] }
  0xd8   : > { %2847 = vmatpush1.bf16.msra.mxu0 %v4293_v56  ;;  %2976 = vmatpush1.bf16.msra.mxu1 %v4295_v57  ;;  %v4360_v56 = vcombine.high %v777_v50, %v781_v52  ;;  %v784_v57 = vld [vmem:[#allocation5 + $0xa40] sm:$0xff] }
  0xd9   : > { %2848 = vmatprep.subr.bf16.mxu0 %v4302_v58  ;;  %2977 = vmatprep.subr.bf16.mxu1 %v4304_v60  ;;  %v788_v58 = vld [vmem:[#allocation5 + $0xa60] sm:$0xff]  ;;  %v785_v60 = vld [vmem:[#allocation5 + $0xa48] sm:$0xff] }
  0xda   : > { %2878 = vmatprep.mubr.bf16.mxu0 %v4923_v63  ;;  %3007 = vmatprep.mubr.bf16.mxu1 %v4923_v63  ;;  %v4366_v1 = vcombine.high %v784_v57, %v788_v58  ;;  %v4365_v7 = vcombine.low %v784_v57, %v788_v58  ;;  %v4367_v8 = vcombine.low %v785_v60, %v789_v61  ;;  %v836_v50 = vld [vmem:[#allocation5 + $0xbe0] sm:$0xff] }
  0xdc   : > { %2849 = vmatpush1.bf16.msra.mxu0 %v4301_v2  ;;  %2978 = vmatpush1.bf16.msra.mxu1 %v4303_v3  ;;  %v4368_v2 = vcombine.high %v785_v60, %v789_v61  ;;  %v792_v3 = vld [vmem:[#allocation5 + $0xa80] sm:$0xff]  ;;  %v4414_v61 = vcombine.high %v832_v49, %v836_v50 }
  0xdd   : > { %2850 = vmatprep.subr.bf16.mxu0 %v4310_v4  ;;  %2979 = vmatprep.subr.bf16.mxu1 %v4312_v5  ;;  %v796_v4 = vld [vmem:[#allocation5 + $0xaa0] sm:$0xff]  ;;  %v793_v5 = vld [vmem:[#allocation5 + $0xa88] sm:$0xff] }
  0xde   : > { %v4374_v9 = vcombine.high %v792_v3, %v796_v4  ;;  %v4373_v15 = vcombine.low %v792_v3, %v796_v4  ;;  %v4375_v16 = vcombine.low %v793_v5, %v797_v6  ;;  %v463_v3 = vld [vmem:[#allocation5 + $0x38] sm:$0xff]  ;;  %v4413_v4 = vcombine.low %v832_v49, %v836_v50 }
  0xe0   : > { %2851 = vmatpush1.bf16.msra.mxu0 %v4309_v10  ;;  %2980 = vmatpush1.bf16.msra.mxu1 %v4311_v11  ;;  %v4376_v10 = vcombine.high %v793_v5, %v797_v6  ;;  %v800_v11 = vld [vmem:[#allocation5 + $0xac0] sm:$0xff] }
  0xe1   : > { %2852 = vmatprep.subr.bf16.mxu0 %v4318_v12  ;;  %2981 = vmatprep.subr.bf16.mxu1 %v4320_v13  ;;  %v804_v12 = vld [vmem:[#allocation5 + $0xae0] sm:$0xff]  ;;  %v801_v13 = vld [vmem:[#allocation5 + $0xac8] sm:$0xff] }
  0xe2   : > { %v4382_v17 = vcombine.high %v800_v11, %v804_v12  ;;  %v4381_v24 = vcombine.low %v800_v11, %v804_v12  ;;  %v4383_v25 = vcombine.low %v801_v13, %v805_v14  ;;  %v470_v11 = vld [vmem:[#allocation5 + $0x70] sm:$0xff] }
  0xe4   : > { %2853 = vmatpush1.bf16.msra.mxu0 %v4317_v18  ;;  %2982 = vmatpush1.bf16.msra.mxu1 %v4319_v19  ;;  %v4384_v18 = vcombine.high %v801_v13, %v805_v14  ;;  %v808_v19 = vld [vmem:[#allocation5 + $0xb00] sm:$0xff]  ;;  %v467_v13 = vld [vmem:[#allocation5 + $0x58] sm:$0xff] }
  0xe5   : > { %2854 = vmatprep.subr.bf16.mxu0 %v4326_v20  ;;  %2983 = vmatprep.subr.bf16.mxu1 %v4328_v21  ;;  %v812_v20 = vld [vmem:[#allocation5 + $0xb20] sm:$0xff]  ;;  %v809_v21 = vld [vmem:[#allocation5 + $0xb08] sm:$0xff]  ;;  %v471_v14 = vld [vmem:[#allocation5 + $0x78] sm:$0xff] }
  0xe6   : > { %v4390_v26 = vcombine.high %v808_v19, %v812_v20  ;;  %v4389_v32 = vcombine.low %v808_v19, %v812_v20  ;;  %v4391_v33 = vcombine.low %v809_v21, %v813_v22  ;;  %v474_v19 = vld [vmem:[#allocation5 + $0x90] sm:$0xff] }
  0xe7   : > { %v478_v20 = vld [vmem:[#allocation5 + $0xb0] sm:$0xff] }
  0xe8   : > { %2855 = vmatpush1.bf16.msra.mxu0 %v4325_v27  ;;  %2984 = vmatpush1.bf16.msra.mxu1 %v4327_v28  ;;  %v4392_v27 = vcombine.high %v809_v21, %v813_v22  ;;  %v816_v28 = vld [vmem:[#allocation5 + $0xb40] sm:$0xff]  ;;  %v475_v21 = vld [vmem:[#allocation5 + $0x98] sm:$0xff] }
  0xe9   : > { %2856 = vmatprep.subr.bf16.mxu0 %v4334_v29  ;;  %2985 = vmatprep.subr.bf16.mxu1 %v4336_v30  ;;  %v820_v29 = vld [vmem:[#allocation5 + $0xb60] sm:$0xff]  ;;  %v817_v30 = vld [vmem:[#allocation5 + $0xb48] sm:$0xff]  ;;  %v479_v22 = vld [vmem:[#allocation5 + $0xb8] sm:$0xff] }
  0xea   : > { %v4398_v35 = vcombine.high %v816_v28, %v820_v29  ;;  %v4397_v41 = vcombine.low %v816_v28, %v820_v29  ;;  %v4399_v43 = vcombine.low %v817_v30, %v821_v31  ;;  %v482_v28 = vld [vmem:[#allocation5 + $0xd0] sm:$0xff] }
  0xeb   : > { %v486_v29 = vld [vmem:[#allocation5 + $0xf0] sm:$0xff] }
  0xec   : > { %2857 = vmatpush1.bf16.msra.mxu0 %v4333_v36  ;;  %2986 = vmatpush1.bf16.msra.mxu1 %v4335_v37  ;;  %v4400_v36 = vcombine.high %v817_v30, %v821_v31  ;;  %v824_v37 = vld [vmem:[#allocation5 + $0xb80] sm:$0xff]  ;;  %v483_v30 = vld [vmem:[#allocation5 + $0xd8] sm:$0xff] }
  0xed   : > { %2858 = vmatprep.subr.bf16.mxu0 %v4342_v38  ;;  %2987 = vmatprep.subr.bf16.mxu1 %v4344_v39  ;;  %v828_v38 = vld [vmem:[#allocation5 + $0xba0] sm:$0xff]  ;;  %v825_v39 = vld [vmem:[#allocation5 + $0xb88] sm:$0xff]  ;;  %v487_v31 = vld [vmem:[#allocation5 + $0xf8] sm:$0xff] }
  0xee   : > { %v4408_v48 = vcombine.high %v825_v39, %v829_v40  ;;  %v4405_v52 = vcombine.low %v824_v37, %v828_v38  ;;  %v4407_v60 = vcombine.low %v825_v39, %v829_v40  ;;  %v491_v39 = vld [vmem:[#allocation5 + $0x118] sm:$0xff] }
  0xef   : > { %v495_v40 = vld [vmem:[#allocation5 + $0x138] sm:$0xff] }
  0xf0   : > { %2859 = vmatpush1.bf16.msra.mxu0 %v4341_v44  ;;  %2988 = vmatpush1.bf16.msra.mxu1 %v4343_v45  ;;  %v4406_v44 = vcombine.high %v824_v37, %v828_v38  ;;  %v365_v45 = vld [vmem:[#allocation2 + $0x10] sm:$0x3]  ;;  %v4075_v49 = vcombine.low %v491_v39, %v495_v40 }
  0xf1   : > { %2860 = vmatprep.subr.bf16.mxu0 %v4350_v46  ;;  %2989 = vmatprep.subr.bf16.mxu1 %v4352_v47  ;;  %v367_v46 = vld [vmem:[#allocation2 + $0x20] sm:$0xfc]  ;;  %v369_v47 = vld [vmem:[#allocation2 + $0x30] sm:$0x3] }
  0xf2   : > { %v386_v57 = vrot.slane %v367_v46, 2  ;;  %v387_v58 = vrot.slane %v369_v47, 2  ;;  %v490_v37 = vld [vmem:[#allocation5 + $0x110] sm:$0xff]  ;;  %v499_v46 = vld [vmem:[#allocation5 + $0x158] sm:$0xff] }
  0xf3   : > { %v494_v38 = vld [vmem:[#allocation5 + $0x130] sm:$0xff]  ;;  %v503_v47 = vld [vmem:[#allocation5 + $0x178] sm:$0xff] }
  0xf4   : > { %2861 = vmatpush1.bf16.msra.mxu0 %v4349_v53  ;;  %2990 = vmatpush1.bf16.msra.mxu1 %v4351_v54  ;;  %v833_v53 = vld [vmem:[#allocation5 + $0xbc8] sm:$0xff]  ;;  %v388_v6 = vsel %vm379_vm1, %v386_v57, %v387_v58  ;;  %v4083_v58 = vcombine.low %v499_v46, %v503_v47 }
  0xf5   : > { %2862 = vmatprep.subr.bf16.mxu0 %v4358_v55  ;;  %2991 = vmatprep.subr.bf16.mxu1 %v4360_v56  ;;  %v837_v54 = vld [vmem:[#allocation5 + $0xbe8] sm:$0xff]  ;;  %v380_v55 = vrot.slane %v363_v42, 2  ;;  %v381_v56 = vrot.slane %v365_v45, 2  ;;  %v4067_v42 = vcombine.low %v483_v30, %v487_v31  ;;  %v502_v45 = vld [vmem:[#allocation5 + $0x170] sm:$0xff] }
  0xf7   : > { %v382_v5 = vsel %vm379_vm1, %v380_v55, %v381_v56  ;;  %v507_v55 = vld [vmem:[#allocation5 + $0x198] sm:$0xff] }
  0xf8   : > { %2863 = vmatpush1.bf16.msra.mxu0 %v4357_v62  ;;  %2992 = vmatpush1.bf16.msra.mxu1 %v4359_v0  ;;  %v4416_v62 = vcombine.high %v833_v53, %v837_v54  ;;  %v458_v0 = vld [vmem:[#allocation5 + $0x10] sm:$0xff]  ;;  %v4931_v12 = vpack.c.bf16 %v388_v6, %v382_v5  ;;  %v511_v56 = vld [vmem:[#allocation5 + $0x1b8] sm:$0xff] }
  0xf9   : > { %2864 = vmatprep.subr.bf16.mxu0 %v4366_v1  ;;  %2993 = vmatprep.subr.bf16.mxu1 %v4368_v2  ;;  %v462_v1 = vld [vmem:[#allocation5 + $0x30] sm:$0xff]  ;;  %v459_v2 = vld [vmem:[#allocation5 + $0x18] sm:$0xff] }
  0xfc   : > { %2865 = vmatpush1.bf16.msra.mxu0 %v4365_v7  ;;  %2994 = vmatpush1.bf16.msra.mxu1 %v4367_v8  ;;  %v4415_v7 = vcombine.low %v833_v53, %v837_v54  ;;  %v4042_v8 = vcombine.high %v458_v0, %v462_v1  ;;  %v506_v53 = vld [vmem:[#allocation5 + $0x190] sm:$0xff] }
  0xfd   : > { %2866 = vmatprep.subr.bf16.mxu0 %v4374_v9  ;;  %2995 = vmatprep.subr.bf16.mxu1 %v4376_v10  ;;  %v4044_v9 = vcombine.high %v459_v2, %v463_v3  ;;  %v466_v10 = vld [vmem:[#allocation5 + $0x50] sm:$0xff] }
  0xfe   : > { %v510_v54 = vld [vmem:[#allocation5 + $0x1b0] sm:$0xff] }
 0x100   : > { %2867 = vmatpush1.bf16.msra.mxu0 %v4373_v15  ;;  %2996 = vmatpush1.bf16.msra.mxu1 %v4375_v16  ;;  %v4041_v15 = vcombine.low %v458_v0, %v462_v1  ;;  %v4043_v16 = vcombine.low %v459_v2, %v463_v3  ;;  %v518_v0 = vld [vmem:[#allocation5 + $0x1f0] sm:$0xff]  ;;  %v515_v1 = vld [vmem:[#allocation5 + $0x1d8] sm:$0xff]  ;;  %v4089_v3 = vcombine.low %v506_v53, %v510_v54 }
 0x101   : > { %2868 = vmatprep.subr.bf16.mxu0 %v4382_v17  ;;  %2997 = vmatprep.subr.bf16.mxu1 %v4384_v18  ;;  %v4050_v17 = vcombine.high %v466_v10, %v470_v11  ;;  %v4052_v18 = vcombine.high %v467_v13, %v471_v14  ;;  %v519_v2 = vld [vmem:[#allocation5 + $0x1f8] sm:$0xff] }
 0x102   : > { %v4100_v6 = vcombine.high %v515_v1, %v519_v2 }
 0x104   : > { %2869 = vmatpush1.bf16.msra.mxu0 %v4381_v24  ;;  %2998 = vmatpush1.bf16.msra.mxu1 %v4383_v25  ;;  %v4049_v24 = vcombine.low %v466_v10, %v470_v11  ;;  %v4051_v25 = vcombine.low %v467_v13, %v471_v14  ;;  %v527_v10 = vld [vmem:[#allocation5 + $0x238] sm:$0xff]  ;;  %v4099_v13 = vcombine.low %v515_v1, %v519_v2 }
 0x105   : > { %2870 = vmatprep.subr.bf16.mxu0 %v4390_v26  ;;  %2999 = vmatprep.subr.bf16.mxu1 %v4392_v27  ;;  %v4058_v26 = vcombine.high %v474_v19, %v478_v20  ;;  %v4060_v27 = vcombine.high %v475_v21, %v479_v22 }
 0x108   : > { %2871 = vmatpush1.bf16.msra.mxu0 %v4389_v32  ;;  %3000 = vmatpush1.bf16.msra.mxu1 %v4391_v33  ;;  %v4057_v32 = vcombine.low %v474_v19, %v478_v20  ;;  %v4059_v33 = vcombine.low %v475_v21, %v479_v22  ;;  %v535_v19 = vld [vmem:[#allocation5 + $0x278] sm:$0xff] }
 0x109   : > { %2872 = vmatprep.subr.bf16.mxu0 %v4398_v35  ;;  %3001 = vmatprep.subr.bf16.mxu1 %v4400_v36  ;;  %v4066_v35 = vcombine.high %v482_v28, %v486_v29  ;;  %v4068_v36 = vcombine.high %v483_v30, %v487_v31 }
 0x10c   : > { %2873 = vmatpush1.bf16.msra.mxu0 %v4397_v41  ;;  %3002 = vmatpush1.bf16.msra.mxu1 %v4399_v43  ;;  %v4065_v41 = vcombine.low %v482_v28, %v486_v29  ;;  %v4074_v43 = vcombine.high %v490_v37, %v494_v38  ;;  %v543_v28 = vld [vmem:[#allocation5 + $0x2b8] sm:$0xff] }
 0x10d   : > { %2874 = vmatprep.subr.bf16.mxu0 %v4406_v44  ;;  %3003 = vmatprep.subr.bf16.mxu1 %v4408_v48  ;;  %v498_v44 = vld [vmem:[#allocation5 + $0x150] sm:$0xff]  ;;  %v4073_v48 = vcombine.low %v490_v37, %v494_v38  ;;  %v551_v37 = vld [vmem:[#allocation5 + $0x2f8] sm:$0xff] }
 0x10e   : > { %v4082_v50 = vcombine.high %v498_v44, %v502_v45  ;;  %v4081_v57 = vcombine.low %v498_v44, %v502_v45  ;;  %v559_v44 = vld [vmem:[#allocation5 + $0x338] sm:$0xff] }
 0x110   : > { %2875 = vmatpush1.bf16.msra.mxu0 %v4405_v52  ;;  %3004 = vmatpush1.bf16.msra.mxu1 %v4407_v60  ;;  %v4084_v52 = vcombine.high %v499_v46, %v503_v47  ;;  %v4090_v60 = vcombine.high %v506_v53, %v510_v54  ;;  %v567_v53 = vld [vmem:[#allocation5 + $0x378] sm:$0xff] }
 0x111   : > { %2876 = vmatprep.subr.bf16.mxu0 %v4414_v61  ;;  %3005 = vmatprep.subr.bf16.mxu1 %v4416_v62  ;;  %v4092_v61 = vcombine.high %v507_v55, %v511_v56  ;;  %v514_v62 = vld [vmem:[#allocation5 + $0x1d0] sm:$0xff] }
 0x112   : > { %v4098_v5 = vcombine.high %v514_v62, %v518_v0  ;;  %v4097_v11 = vcombine.low %v514_v62, %v518_v0  ;;  %v575_v62 = vld [vmem:[#allocation5 + $0x3b8] sm:$0xff] }
 0x114   : > { %2877 = vmatpush1.bf16.msra.mxu0 %v4413_v4  ;;  %3006 = vmatpush1.bf16.msra.mxu1 %v4415_v7  ;;  %v4091_v4 = vcombine.low %v507_v55, %v511_v56  ;;  %v522_v7 = vld [vmem:[#allocation5 + $0x210] sm:$0xff] }
 0x115   : > { %3018 = vmatprep.subr.bf16.mxu0 %v4042_v8  ;;  %3147 = vmatprep.subr.bf16.mxu1 %v4044_v9  ;;  %v526_v8 = vld [vmem:[#allocation5 + $0x230] sm:$0xff]  ;;  %v523_v9 = vld [vmem:[#allocation5 + $0x218] sm:$0xff] }
 0x116   : > { %v4106_v14 = vcombine.high %v522_v7, %v526_v8  ;;  %v4105_v20 = vcombine.low %v522_v7, %v526_v8  ;;  %v4107_v21 = vcombine.low %v523_v9, %v527_v10  ;;  %v583_v7 = vld [vmem:[#allocation5 + $0x3f8] sm:$0xff] }
 0x117   : > { %2879 = vmatmul.mubr.bf16.vlgmr.msra.gmra.mrb[0].mxu0 %v4931_v12  ;;  %3008 = vmatmul.mubr.bf16.vlgmr.msra.gmra.mrb[0].mxu1 %v4931_v12 }
 0x118   : > { %3019 = vmatpush1.bf16.msra.mxu0 %v4041_v15  ;;  %3148 = vmatpush1.bf16.msra.mxu1 %v4043_v16  ;;  %v4108_v15 = vcombine.high %v523_v9, %v527_v10  ;;  %v530_v16 = vld [vmem:[#allocation5 + $0x250] sm:$0xff] }
 0x119   : > { %3020 = vmatprep.subr.bf16.mxu0 %v4050_v17  ;;  %3149 = vmatprep.subr.bf16.mxu1 %v4052_v18  ;;  %v534_v17 = vld [vmem:[#allocation5 + $0x270] sm:$0xff]  ;;  %v531_v18 = vld [vmem:[#allocation5 + $0x258] sm:$0xff] }
 0x11a   : > { %3050 = vmatprep.mubr.bf16.mxu0 %v4903_v59  ;;  %3179 = vmatprep.mubr.bf16.mxu1 %v4903_v59  ;;  %v4076_v59 = vcombine.high %v491_v39, %v495_v40  ;;  %v4114_v22 = vcombine.high %v530_v16, %v534_v17  ;;  %v4113_v29 = vcombine.low %v530_v16, %v534_v17  ;;  %v591_v16 = vld [vmem:[#allocation5 + $0x438] sm:$0xff] }
 0x11b   : > { %v4115_v30 = vcombine.low %v531_v18, %v535_v19 }
 0x11c   : > { %3021 = vmatpush1.bf16.msra.mxu0 %v4049_v24  ;;  %3150 = vmatpush1.bf16.msra.mxu1 %v4051_v25  ;;  %v4116_v24 = vcombine.high %v531_v18, %v535_v19  ;;  %v538_v25 = vld [vmem:[#allocation5 + $0x290] sm:$0xff] }
 0x11d   : > { %3022 = vmatprep.subr.bf16.mxu0 %v4058_v26  ;;  %3151 = vmatprep.subr.bf16.mxu1 %v4060_v27  ;;  %v542_v26 = vld [vmem:[#allocation5 + $0x2b0] sm:$0xff]  ;;  %v539_v27 = vld [vmem:[#allocation5 + $0x298] sm:$0xff] }
 0x11e   : > { %v4122_v31 = vcombine.high %v538_v25, %v542_v26  ;;  %v4121_v38 = vcombine.low %v538_v25, %v542_v26  ;;  %v4123_v39 = vcombine.low %v539_v27, %v543_v28  ;;  %v599_v25 = vld [vmem:[#allocation5 + $0x478] sm:$0xff] }
 0x120   : > { %3023 = vmatpush1.bf16.msra.mxu0 %v4057_v32  ;;  %3152 = vmatpush1.bf16.msra.mxu1 %v4059_v33  ;;  %v4124_v32 = vcombine.high %v539_v27, %v543_v28  ;;  %v546_v33 = vld [vmem:[#allocation5 + $0x2d0] sm:$0xff] }
 0x121   : > { %3024 = vmatprep.subr.bf16.mxu0 %v4066_v35  ;;  %3153 = vmatprep.subr.bf16.mxu1 %v4068_v36  ;;  %v550_v35 = vld [vmem:[#allocation5 + $0x2f0] sm:$0xff]  ;;  %v547_v36 = vld [vmem:[#allocation5 + $0x2d8] sm:$0xff] }
 0x122   : > { %v4130_v40 = vcombine.high %v546_v33, %v550_v35  ;;  %v4129_v45 = vcombine.low %v546_v33, %v550_v35  ;;  %v4131_v46 = vcombine.low %v547_v36, %v551_v37  ;;  %v607_v33 = vld [vmem:[#allocation5 + $0x4b8] sm:$0xff] }
 0x124   : > { %3025 = vmatpush1.bf16.msra.mxu0 %v4065_v41  ;;  %3154 = vmatpush1.bf16.msra.mxu1 %v4067_v42  ;;  %v4132_v41 = vcombine.high %v547_v36, %v551_v37  ;;  %v554_v42 = vld [vmem:[#allocation5 + $0x310] sm:$0xff] }
 0x125   : > { %3026 = vmatprep.subr.bf16.mxu0 %v4074_v43  ;;  %3155 = vmatprep.subr.bf16.mxu1 %v4076_v59  ;;  %v558_v43 = vld [vmem:[#allocation5 + $0x330] sm:$0xff]  ;;  %v555_v59 = vld [vmem:[#allocation5 + $0x318] sm:$0xff] }
 0x126   : > { %v4138_v47 = vcombine.high %v554_v42, %v558_v43  ;;  %v4137_v54 = vcombine.low %v554_v42, %v558_v43  ;;  %v4139_v55 = vcombine.low %v555_v59, %v559_v44  ;;  %v615_v42 = vld [vmem:[#allocation5 + $0x4f8] sm:$0xff] }
 0x128   : > { %3027 = vmatpush1.bf16.msra.mxu0 %v4073_v48  ;;  %3156 = vmatpush1.bf16.msra.mxu1 %v4075_v49  ;;  %v4140_v48 = vcombine.high %v555_v59, %v559_v44  ;;  %v562_v49 = vld [vmem:[#allocation5 + $0x350] sm:$0xff] }
 0x129   : > { %3028 = vmatprep.subr.bf16.mxu0 %v4082_v50  ;;  %3157 = vmatprep.subr.bf16.mxu1 %v4084_v52  ;;  %v566_v50 = vld [vmem:[#allocation5 + $0x370] sm:$0xff]  ;;  %v563_v52 = vld [vmem:[#allocation5 + $0x358] sm:$0xff] }
 0x12a   : > { %v4146_v56 = vcombine.high %v562_v49, %v566_v50  ;;  %v4145_v0 = vcombine.low %v562_v49, %v566_v50  ;;  %v4147_v1 = vcombine.low %v563_v52, %v567_v53 }
 0x12c   : > { %3029 = vmatpush1.bf16.msra.mxu0 %v4081_v57  ;;  %3158 = vmatpush1.bf16.msra.mxu1 %v4083_v58  ;;  %v4148_v57 = vcombine.high %v563_v52, %v567_v53  ;;  %v570_v58 = vld [vmem:[#allocation5 + $0x390] sm:$0xff] }
 0x12d   : > { %3030 = vmatprep.subr.bf16.mxu0 %v4090_v60  ;;  %3159 = vmatprep.subr.bf16.mxu1 %v4092_v61  ;;  %v574_v60 = vld [vmem:[#allocation5 + $0x3b0] sm:$0xff]  ;;  %v571_v61 = vld [vmem:[#allocation5 + $0x398] sm:$0xff] }
 0x12e   : > { %v4154_v2 = vcombine.high %v570_v58, %v574_v60  ;;  %v4153_v8 = vcombine.low %v570_v58, %v574_v60  ;;  %v4155_v9 = vcombine.low %v571_v61, %v575_v62  ;;  %v626_v53 = vld [vmem:[#allocation5 + $0x550] sm:$0xff] }
 0x130   : > { %3031 = vmatpush1.bf16.msra.mxu0 %v4089_v3  ;;  %3160 = vmatpush1.bf16.msra.mxu1 %v4091_v4  ;;  %v4156_v3 = vcombine.high %v571_v61, %v575_v62  ;;  %v578_v4 = vld [vmem:[#allocation5 + $0x3d0] sm:$0xff] }
 0x131   : > { %3032 = vmatprep.subr.bf16.mxu0 %v4098_v5  ;;  %3161 = vmatprep.subr.bf16.mxu1 %v4100_v6  ;;  %v582_v5 = vld [vmem:[#allocation5 + $0x3f0] sm:$0xff]  ;;  %v579_v6 = vld [vmem:[#allocation5 + $0x3d8] sm:$0xff] }
 0x132   : > { %v4162_v10 = vcombine.high %v578_v4, %v582_v5  ;;  %v4161_v17 = vcombine.low %v578_v4, %v582_v5  ;;  %v4163_v18 = vcombine.low %v579_v6, %v583_v7  ;;  %v634_v62 = vld [vmem:[#allocation5 + $0x590] sm:$0xff] }
 0x134   : > { %3033 = vmatpush1.bf16.msra.mxu0 %v4097_v11  ;;  %3162 = vmatpush1.bf16.msra.mxu1 %v4099_v13  ;;  %v4164_v11 = vcombine.high %v579_v6, %v583_v7  ;;  %v586_v13 = vld [vmem:[#allocation5 + $0x410] sm:$0xff] }
 0x135   : > { %3034 = vmatprep.subr.bf16.mxu0 %v4106_v14  ;;  %3163 = vmatprep.subr.bf16.mxu1 %v4108_v15  ;;  %v590_v14 = vld [vmem:[#allocation5 + $0x430] sm:$0xff]  ;;  %v587_v15 = vld [vmem:[#allocation5 + $0x418] sm:$0xff] }
 0x136   : > { %v4170_v19 = vcombine.high %v586_v13, %v590_v14  ;;  %v4169_v26 = vcombine.low %v586_v13, %v590_v14  ;;  %v4171_v27 = vcombine.low %v587_v15, %v591_v16  ;;  %v642_v7 = vld [vmem:[#allocation5 + $0x5d0] sm:$0xff] }
 0x138   : > { %3035 = vmatpush1.bf16.msra.mxu0 %v4105_v20  ;;  %3164 = vmatpush1.bf16.msra.mxu1 %v4107_v21  ;;  %v4172_v20 = vcombine.high %v587_v15, %v591_v16  ;;  %v594_v21 = vld [vmem:[#allocation5 + $0x450] sm:$0xff] }
 0x139   : > { %3036 = vmatprep.subr.bf16.mxu0 %v4114_v22  ;;  %3165 = vmatprep.subr.bf16.mxu1 %v4116_v24  ;;  %v598_v22 = vld [vmem:[#allocation5 + $0x470] sm:$0xff]  ;;  %v595_v24 = vld [vmem:[#allocation5 + $0x458] sm:$0xff] }
 0x13a   : > { %v4178_v28 = vcombine.high %v594_v21, %v598_v22  ;;  %v4177_v35 = vcombine.low %v594_v21, %v598_v22  ;;  %v4179_v36 = vcombine.low %v595_v24, %v599_v25  ;;  %v650_v16 = vld [vmem:[#allocation5 + $0x610] sm:$0xff] }
 0x13c   : > { %3037 = vmatpush1.bf16.msra.mxu0 %v4113_v29  ;;  %3166 = vmatpush1.bf16.msra.mxu1 %v4115_v30  ;;  %v4180_v29 = vcombine.high %v595_v24, %v599_v25  ;;  %v602_v30 = vld [vmem:[#allocation5 + $0x490] sm:$0xff] }
 0x13d   : > { %3038 = vmatprep.subr.bf16.mxu0 %v4122_v31  ;;  %3167 = vmatprep.subr.bf16.mxu1 %v4124_v32  ;;  %v606_v31 = vld [vmem:[#allocation5 + $0x4b0] sm:$0xff]  ;;  %v603_v32 = vld [vmem:[#allocation5 + $0x498] sm:$0xff] }
 0x13e   : > { %v4186_v37 = vcombine.high %v602_v30, %v606_v31  ;;  %v4185_v43 = vcombine.low %v602_v30, %v606_v31  ;;  %v658_v25 = vld [vmem:[#allocation5 + $0x650] sm:$0xff] }
 0x140   : > { %3039 = vmatpush1.bf16.msra.mxu0 %v4121_v38  ;;  %3168 = vmatpush1.bf16.msra.mxu1 %v4123_v39  ;;  %v4188_v38 = vcombine.high %v603_v32, %v607_v33  ;;  %v610_v39 = vld [vmem:[#allocation5 + $0x4d0] sm:$0xff] }
 0x141   : > { %3040 = vmatprep.subr.bf16.mxu0 %v4130_v40  ;;  %3169 = vmatprep.subr.bf16.mxu1 %v4132_v41  ;;  %v614_v40 = vld [vmem:[#allocation5 + $0x4f0] sm:$0xff]  ;;  %v611_v41 = vld [vmem:[#allocation5 + $0x4d8] sm:$0xff] }
 0x142   : > { %v4194_v59 = vcombine.high %v610_v39, %v614_v40  ;;  %v4196_v44 = vcombine.high %v611_v41, %v615_v42  ;;  %v4193_v49 = vcombine.low %v610_v39, %v614_v40  ;;  %v4195_v50 = vcombine.low %v611_v41, %v615_v42  ;;  %v674_v42 = vld [vmem:[#allocation5 + $0x6d0] sm:$0xff] }
 0x144   : > { %3041 = vmatpush1.bf16.msra.mxu0 %v4129_v45  ;;  %3170 = vmatpush1.bf16.msra.mxu1 %v4131_v46  ;;  %v618_v45 = vld [vmem:[#allocation5 + $0x510] sm:$0xff] }
 0x145   : > { %3042 = vmatprep.subr.bf16.mxu0 %v4138_v47  ;;  %3171 = vmatprep.subr.bf16.mxu1 %v4140_v48  ;;  %v622_v46 = vld [vmem:[#allocation5 + $0x530] sm:$0xff]  ;;  %v619_v47 = vld [vmem:[#allocation5 + $0x518] sm:$0xff] }
 0x146   : > { %v623_v48 = vld [vmem:[#allocation5 + $0x538] sm:$0xff]  ;;  %v4202_v52 = vcombine.high %v618_v45, %v622_v46 }
 0x147   : > { %v4203_v58 = vcombine.low %v619_v47, %v623_v48 }
 0x148   : > { %3043 = vmatpush1.bf16.msra.mxu0 %v4137_v54  ;;  %3172 = vmatpush1.bf16.msra.mxu1 %v4139_v55  ;;  %v630_v54 = vld [vmem:[#allocation5 + $0x570] sm:$0xff]  ;;  %v627_v55 = vld [vmem:[#allocation5 + $0x558] sm:$0xff] }
 0x149   : > { %3044 = vmatprep.subr.bf16.mxu0 %v4146_v56  ;;  %3173 = vmatprep.subr.bf16.mxu1 %v4148_v57  ;;  %v631_v56 = vld [vmem:[#allocation5 + $0x578] sm:$0xff]  ;;  %v4201_v57 = vcombine.low %v618_v45, %v622_v46  ;;  %v4210_v60 = vcombine.high %v626_v53, %v630_v54 }
 0x14a   : > { %v4212_v61 = vcombine.high %v627_v55, %v631_v56  ;;  %v4211_v4 = vcombine.low %v627_v55, %v631_v56  ;;  %v690_v56 = vld [vmem:[#allocation5 + $0x750] sm:$0xff] }
 0x14c   : > { %3045 = vmatpush1.bf16.msra.mxu0 %v4145_v0  ;;  %3174 = vmatpush1.bf16.msra.mxu1 %v4147_v1  ;;  %v638_v0 = vld [vmem:[#allocation5 + $0x5b0] sm:$0xff]  ;;  %v635_v1 = vld [vmem:[#allocation5 + $0x598] sm:$0xff] }
 0x14d   : > { %3046 = vmatprep.subr.bf16.mxu0 %v4154_v2  ;;  %3175 = vmatprep.subr.bf16.mxu1 %v4156_v3  ;;  %v639_v2 = vld [vmem:[#allocation5 + $0x5b8] sm:$0xff]  ;;  %v4209_v3 = vcombine.low %v626_v53, %v630_v54  ;;  %v4218_v5 = vcombine.high %v634_v62, %v638_v0 }
 0x14e   : > { %v4220_v6 = vcombine.high %v635_v1, %v639_v2  ;;  %v4219_v13 = vcombine.low %v635_v1, %v639_v2  ;;  %v698_v2 = vld [vmem:[#allocation5 + $0x790] sm:$0xff] }
 0x150   : > { %3047 = vmatpush1.bf16.msra.mxu0 %v4153_v8  ;;  %3176 = vmatpush1.bf16.msra.mxu1 %v4155_v9  ;;  %v646_v8 = vld [vmem:[#allocation5 + $0x5f0] sm:$0xff]  ;;  %v643_v9 = vld [vmem:[#allocation5 + $0x5d8] sm:$0xff] }
 0x151   : > { %3048 = vmatprep.subr.bf16.mxu0 %v4162_v10  ;;  %3177 = vmatprep.subr.bf16.mxu1 %v4164_v11  ;;  %v647_v10 = vld [vmem:[#allocation5 + $0x5f8] sm:$0xff]  ;;  %v4217_v11 = vcombine.low %v634_v62, %v638_v0  ;;  %v4226_v14 = vcombine.high %v642_v7, %v646_v8 }
 0x152   : > { %v4228_v15 = vcombine.high %v643_v9, %v647_v10  ;;  %v4227_v21 = vcombine.low %v643_v9, %v647_v10  ;;  %v706_v10 = vld [vmem:[#allocation5 + $0x7d0] sm:$0xff] }
 0x154   : > { %3049 = vmatpush1.bf16.msra.mxu0 %v4161_v17  ;;  %3178 = vmatpush1.bf16.msra.mxu1 %v4163_v18  ;;  %v654_v17 = vld [vmem:[#allocation5 + $0x630] sm:$0xff]  ;;  %v651_v18 = vld [vmem:[#allocation5 + $0x618] sm:$0xff] }
 0x155   : > { %3061 = vmatprep.subr.bf16.mxu0 %v4170_v19  ;;  %3190 = vmatprep.subr.bf16.mxu1 %v4172_v20  ;;  %v655_v19 = vld [vmem:[#allocation5 + $0x638] sm:$0xff]  ;;  %v4225_v20 = vcombine.low %v642_v7, %v646_v8  ;;  %v4234_v22 = vcombine.high %v650_v16, %v654_v17 }
 0x156   : > { %v4236_v24 = vcombine.high %v651_v18, %v655_v19  ;;  %v4235_v30 = vcombine.low %v651_v18, %v655_v19  ;;  %v714_v19 = vld [vmem:[#allocation5 + $0x810] sm:$0xff] }
 0x157   : > { %3051 = vmatmul.mubr.bf16.vlgmr.msra.gmra.mrb[4].mxu0 %v4907_v23  ;;  %3180 = vmatmul.mubr.bf16.vlgmr.msra.gmra.mrb[4].mxu1 %v4907_v23  ;;  %v4187_v23 = vcombine.low %v603_v32, %v607_v33  ;;  %v666_v33 = vld [vmem:[#allocation5 + $0x690] sm:$0xff] }
 0x158   : > { %3062 = vmatpush1.bf16.msra.mxu0 %v4169_v26  ;;  %3191 = vmatpush1.bf16.msra.mxu1 %v4171_v27  ;;  %v662_v26 = vld [vmem:[#allocation5 + $0x670] sm:$0xff]  ;;  %v659_v27 = vld [vmem:[#allocation5 + $0x658] sm:$0xff] }
 0x159   : > { %3063 = vmatprep.subr.bf16.mxu0 %v4178_v28  ;;  %3192 = vmatprep.subr.bf16.mxu1 %v4180_v29  ;;  %v663_v28 = vld [vmem:[#allocation5 + $0x678] sm:$0xff]  ;;  %v4233_v29 = vcombine.low %v650_v16, %v654_v17  ;;  %v4242_v31 = vcombine.high %v658_v25, %v662_v26 }
 0x15a   : > { %3093 = vmatprep.mubr.bf16.mxu0 %v4911_v34  ;;  %3222 = vmatprep.mubr.bf16.mxu1 %v4911_v34  ;;  %v4204_v34 = vcombine.high %v619_v47, %v623_v48  ;;  %v4244_v32 = vcombine.high %v659_v27, %v663_v28  ;;  %v4243_v39 = vcombine.low %v659_v27, %v663_v28  ;;  %v682_v48 = vld [vmem:[#allocation5 + $0x710] sm:$0xff] }
 0x15b   : > { %v722_v28 = vld [vmem:[#allocation5 + $0x850] sm:$0xff] }
 0x15c   : > { %3064 = vmatpush1.bf16.msra.mxu0 %v4177_v35  ;;  %3193 = vmatpush1.bf16.msra.mxu1 %v4179_v36  ;;  %v670_v35 = vld [vmem:[#allocation5 + $0x6b0] sm:$0xff]  ;;  %v667_v36 = vld [vmem:[#allocation5 + $0x698] sm:$0xff] }
 0x15d   : > { %3065 = vmatprep.subr.bf16.mxu0 %v4186_v37  ;;  %3194 = vmatprep.subr.bf16.mxu1 %v4188_v38  ;;  %v671_v37 = vld [vmem:[#allocation5 + $0x6b8] sm:$0xff]  ;;  %v4241_v38 = vcombine.low %v658_v25, %v662_v26  ;;  %v4250_v40 = vcombine.high %v666_v33, %v670_v35 }
 0x15e   : > { %v4252_v41 = vcombine.high %v667_v36, %v671_v37  ;;  %v4251_v45 = vcombine.low %v667_v36, %v671_v37  ;;  %v730_v37 = vld [vmem:[#allocation5 + $0x890] sm:$0xff] }
 0x160   : > { %3066 = vmatpush1.bf16.msra.mxu0 %v4185_v43  ;;  %3195 = vmatpush1.bf16.msra.mxu1 %v4187_v23  ;;  %v678_v43 = vld [vmem:[#allocation5 + $0x6f0] sm:$0xff]  ;;  %v675_v23 = vld [vmem:[#allocation5 + $0x6d8] sm:$0xff] }
 0x161   : > { %3067 = vmatprep.subr.bf16.mxu0 %v4194_v59  ;;  %3196 = vmatprep.subr.bf16.mxu1 %v4196_v44  ;;  %v679_v59 = vld [vmem:[#allocation5 + $0x6f8] sm:$0xff]  ;;  %v4249_v44 = vcombine.low %v666_v33, %v670_v35  ;;  %v4258_v46 = vcombine.high %v674_v42, %v678_v43 }
 0x162   : > { %v4260_v47 = vcombine.high %v675_v23, %v679_v59  ;;  %v4259_v53 = vcombine.low %v675_v23, %v679_v59  ;;  %v738_v59 = vld [vmem:[#allocation5 + $0x8d0] sm:$0xff] }
 0x164   : > { %3068 = vmatpush1.bf16.msra.mxu0 %v4193_v49  ;;  %3197 = vmatpush1.bf16.msra.mxu1 %v4195_v50  ;;  %v686_v49 = vld [vmem:[#allocation5 + $0x730] sm:$0xff]  ;;  %v683_v50 = vld [vmem:[#allocation5 + $0x718] sm:$0xff] }
 0x165   : > { %3069 = vmatprep.subr.bf16.mxu0 %v4202_v52  ;;  %3198 = vmatprep.subr.bf16.mxu1 %v4204_v34  ;;  %v687_v52 = vld [vmem:[#allocation5 + $0x738] sm:$0xff]  ;;  %v4257_v34 = vcombine.low %v674_v42, %v678_v43  ;;  %v4266_v54 = vcombine.high %v682_v48, %v686_v49 }
 0x166   : > { %v4268_v55 = vcombine.high %v683_v50, %v687_v52  ;;  %v4267_v62 = vcombine.low %v683_v50, %v687_v52  ;;  %v746_v50 = vld [vmem:[#allocation5 + $0x910] sm:$0xff] }
 0x167   : > { %v750_v52 = vld [vmem:[#allocation5 + $0x930] sm:$0xff] }
 0x168   : > { %3070 = vmatpush1.bf16.msra.mxu0 %v4201_v57  ;;  %3199 = vmatpush1.bf16.msra.mxu1 %v4203_v58  ;;  %v694_v57 = vld [vmem:[#allocation5 + $0x770] sm:$0xff]  ;;  %v691_v58 = vld [vmem:[#allocation5 + $0x758] sm:$0xff] }
 0x169   : > { %3071 = vmatprep.subr.bf16.mxu0 %v4210_v60  ;;  %3200 = vmatprep.subr.bf16.mxu1 %v4212_v61  ;;  %v695_v60 = vld [vmem:[#allocation5 + $0x778] sm:$0xff]  ;;  %v4265_v61 = vcombine.low %v682_v48, %v686_v49  ;;  %v4274_v0 = vcombine.high %v690_v56, %v694_v57 }
 0x16a   : > { %v4276_v1 = vcombine.high %v691_v58, %v695_v60  ;;  %v4275_v7 = vcombine.low %v691_v58, %v695_v60  ;;  %v758_v58 = vld [vmem:[#allocation5 + $0x970] sm:$0xff]  ;;  %v755_v60 = vld [vmem:[#allocation5 + $0x958] sm:$0xff] }
 0x16c   : > { %3072 = vmatpush1.bf16.msra.mxu0 %v4209_v3  ;;  %3201 = vmatpush1.bf16.msra.mxu1 %v4211_v4  ;;  %v702_v3 = vld [vmem:[#allocation5 + $0x7b0] sm:$0xff]  ;;  %v699_v4 = vld [vmem:[#allocation5 + $0x798] sm:$0xff] }
 0x16d   : > { %3073 = vmatprep.subr.bf16.mxu0 %v4218_v5  ;;  %3202 = vmatprep.subr.bf16.mxu1 %v4220_v6  ;;  %v703_v5 = vld [vmem:[#allocation5 + $0x7b8] sm:$0xff]  ;;  %v4273_v6 = vcombine.low %v690_v56, %v694_v57  ;;  %v4282_v8 = vcombine.high %v698_v2, %v702_v3  ;;  %v4330_v56 = vcombine.high %v746_v50, %v750_v52  ;;  %v754_v57 = vld [vmem:[#allocation5 + $0x950] sm:$0xff] }
 0x16e   : > { %v4284_v9 = vcombine.high %v699_v4, %v703_v5  ;;  %v4283_v16 = vcombine.low %v699_v4, %v703_v5  ;;  %v766_v4 = vld [vmem:[#allocation5 + $0x9b0] sm:$0xff]  ;;  %v763_v5 = vld [vmem:[#allocation5 + $0x998] sm:$0xff] }
 0x170   : > { %3074 = vmatpush1.bf16.msra.mxu0 %v4217_v11  ;;  %3203 = vmatpush1.bf16.msra.mxu1 %v4219_v13  ;;  %v710_v11 = vld [vmem:[#allocation5 + $0x7f0] sm:$0xff]  ;;  %v707_v13 = vld [vmem:[#allocation5 + $0x7d8] sm:$0xff] }
 0x171   : > { %3075 = vmatprep.subr.bf16.mxu0 %v4226_v14  ;;  %3204 = vmatprep.subr.bf16.mxu1 %v4228_v15  ;;  %v711_v14 = vld [vmem:[#allocation5 + $0x7f8] sm:$0xff]  ;;  %v4281_v15 = vcombine.low %v698_v2, %v702_v3  ;;  %v4290_v17 = vcombine.high %v706_v10, %v710_v11  ;;  %v762_v3 = vld [vmem:[#allocation5 + $0x990] sm:$0xff] }
 0x172   : > { %v4292_v18 = vcombine.high %v707_v13, %v711_v14  ;;  %v4291_v25 = vcombine.low %v707_v13, %v711_v14  ;;  %v774_v13 = vld [vmem:[#allocation5 + $0x9f0] sm:$0xff]  ;;  %v771_v14 = vld [vmem:[#allocation5 + $0x9d8] sm:$0xff] }
 0x174   : > { %3076 = vmatpush1.bf16.msra.mxu0 %v4225_v20  ;;  %3205 = vmatpush1.bf16.msra.mxu1 %v4227_v21  ;;  %v718_v20 = vld [vmem:[#allocation5 + $0x830] sm:$0xff]  ;;  %v715_v21 = vld [vmem:[#allocation5 + $0x818] sm:$0xff] }
 0x175   : > { %3077 = vmatprep.subr.bf16.mxu0 %v4234_v22  ;;  %3206 = vmatprep.subr.bf16.mxu1 %v4236_v24  ;;  %v719_v22 = vld [vmem:[#allocation5 + $0x838] sm:$0xff]  ;;  %v4289_v24 = vcombine.low %v706_v10, %v710_v11  ;;  %v4298_v26 = vcombine.high %v714_v19, %v718_v20  ;;  %v770_v11 = vld [vmem:[#allocation5 + $0x9d0] sm:$0xff] }
 0x176   : > { %v4300_v27 = vcombine.high %v715_v21, %v719_v22  ;;  %v4299_v33 = vcombine.low %v715_v21, %v719_v22  ;;  %v782_v21 = vld [vmem:[#allocation5 + $0xa30] sm:$0xff]  ;;  %v779_v22 = vld [vmem:[#allocation5 + $0xa18] sm:$0xff] }
 0x178   : > { %3078 = vmatpush1.bf16.msra.mxu0 %v4233_v29  ;;  %3207 = vmatpush1.bf16.msra.mxu1 %v4235_v30  ;;  %v726_v29 = vld [vmem:[#allocation5 + $0x870] sm:$0xff]  ;;  %v723_v30 = vld [vmem:[#allocation5 + $0x858] sm:$0xff] }
 0x179   : > { %3079 = vmatprep.subr.bf16.mxu0 %v4242_v31  ;;  %3208 = vmatprep.subr.bf16.mxu1 %v4244_v32  ;;  %v727_v31 = vld [vmem:[#allocation5 + $0x878] sm:$0xff]  ;;  %v4297_v32 = vcombine.low %v714_v19, %v718_v20  ;;  %v4306_v35 = vcombine.high %v722_v28, %v726_v29  ;;  %v778_v20 = vld [vmem:[#allocation5 + $0xa10] sm:$0xff] }
 0x17a   : > { %v4308_v36 = vcombine.high %v723_v30, %v727_v31  ;;  %v4307_v42 = vcombine.low %v723_v30, %v727_v31  ;;  %v790_v30 = vld [vmem:[#allocation5 + $0xa70] sm:$0xff]  ;;  %v787_v31 = vld [vmem:[#allocation5 + $0xa58] sm:$0xff] }
 0x17c   : > { %3080 = vmatpush1.bf16.msra.mxu0 %v4241_v38  ;;  %3209 = vmatpush1.bf16.msra.mxu1 %v4243_v39  ;;  %v734_v38 = vld [vmem:[#allocation5 + $0x8b0] sm:$0xff]  ;;  %v731_v39 = vld [vmem:[#allocation5 + $0x898] sm:$0xff] }
 0x17d   : > { %3081 = vmatprep.subr.bf16.mxu0 %v4250_v40  ;;  %3210 = vmatprep.subr.bf16.mxu1 %v4252_v41  ;;  %v735_v40 = vld [vmem:[#allocation5 + $0x8b8] sm:$0xff]  ;;  %v4305_v41 = vcombine.low %v722_v28, %v726_v29  ;;  %v4314_v43 = vcombine.high %v730_v37, %v734_v38  ;;  %v786_v29 = vld [vmem:[#allocation5 + $0xa50] sm:$0xff] }
 0x17e   : > { %v4316_v23 = vcombine.high %v731_v39, %v735_v40 }
 0x180   : > { %3082 = vmatpush1.bf16.msra.mxu0 %v4249_v44  ;;  %3211 = vmatpush1.bf16.msra.mxu1 %v4251_v45  ;;  %v742_v44 = vld [vmem:[#allocation5 + $0x8f0] sm:$0xff]  ;;  %v739_v45 = vld [vmem:[#allocation5 + $0x8d8] sm:$0xff] }
 0x181   : > { %3083 = vmatprep.subr.bf16.mxu0 %v4258_v46  ;;  %3212 = vmatprep.subr.bf16.mxu1 %v4260_v47  ;;  %v743_v46 = vld [vmem:[#allocation5 + $0x8f8] sm:$0xff]  ;;  %v4313_v47 = vcombine.low %v730_v37, %v734_v38  ;;  %v4322_v48 = vcombine.high %v738_v59, %v742_v44  ;;  %v794_v38 = vld [vmem:[#allocation5 + $0xa90] sm:$0xff] }
 0x182   : > { %v4324_v49 = vcombine.high %v739_v45, %v743_v46 }
 0x184   : > { %3084 = vmatpush1.bf16.msra.mxu0 %v4257_v34  ;;  %3213 = vmatpush1.bf16.msra.mxu1 %v4259_v53  ;;  %v747_v34 = vld [vmem:[#allocation5 + $0x918] sm:$0xff] }
 0x185   : > { %3085 = vmatprep.subr.bf16.mxu0 %v4266_v54  ;;  %3214 = vmatprep.subr.bf16.mxu1 %v4268_v55  ;;  %v751_v53 = vld [vmem:[#allocation5 + $0x938] sm:$0xff]  ;;  %v4321_v54 = vcombine.low %v738_v59, %v742_v44  ;;  %v4323_v55 = vcombine.low %v739_v45, %v743_v46  ;;  %v802_v44 = vld [vmem:[#allocation5 + $0xad0] sm:$0xff] }
 0x186   : > { %v806_v45 = vld [vmem:[#allocation5 + $0xaf0] sm:$0xff]  ;;  %v803_v46 = vld [vmem:[#allocation5 + $0xad8] sm:$0xff] }
 0x188   : > { %3086 = vmatpush1.bf16.msra.mxu0 %v4265_v61  ;;  %3215 = vmatpush1.bf16.msra.mxu1 %v4267_v62  ;;  %v759_v61 = vld [vmem:[#allocation5 + $0x978] sm:$0xff]  ;;  %v4329_v62 = vcombine.low %v746_v50, %v750_v52  ;;  %v810_v52 = vld [vmem:[#allocation5 + $0xb10] sm:$0xff] }
 0x189   : > { %3087 = vmatprep.subr.bf16.mxu0 %v4274_v0  ;;  %3216 = vmatprep.subr.bf16.mxu1 %v4276_v1  ;;  %v4331_v0 = vcombine.low %v747_v34, %v751_v53  ;;  %v4338_v1 = vcombine.high %v754_v57, %v758_v58  ;;  %v4340_v2 = vcombine.high %v755_v60, %v759_v61 }
 0x18c   : > { %3088 = vmatpush1.bf16.msra.mxu0 %v4273_v6  ;;  %3217 = vmatpush1.bf16.msra.mxu1 %v4275_v7  ;;  %v767_v6 = vld [vmem:[#allocation5 + $0x9b8] sm:$0xff]  ;;  %v4337_v7 = vcombine.low %v754_v57, %v758_v58  ;;  %v818_v58 = vld [vmem:[#allocation5 + $0xb50] sm:$0xff] }
 0x18d   : > { %3089 = vmatprep.subr.bf16.mxu0 %v4282_v8  ;;  %3218 = vmatprep.subr.bf16.mxu1 %v4284_v9  ;;  %v4339_v8 = vcombine.low %v755_v60, %v759_v61  ;;  %v4346_v9 = vcombine.high %v762_v3, %v766_v4  ;;  %v4348_v10 = vcombine.high %v763_v5, %v767_v6  ;;  %v822_v60 = vld [vmem:[#allocation5 + $0xb70] sm:$0xff]  ;;  %v819_v61 = vld [vmem:[#allocation5 + $0xb58] sm:$0xff] }
 0x190   : > { %3090 = vmatpush1.bf16.msra.mxu0 %v4281_v15  ;;  %3219 = vmatpush1.bf16.msra.mxu1 %v4283_v16  ;;  %v775_v15 = vld [vmem:[#allocation5 + $0x9f8] sm:$0xff]  ;;  %v4345_v16 = vcombine.low %v762_v3, %v766_v4  ;;  %v826_v4 = vld [vmem:[#allocation5 + $0xb90] sm:$0xff] }
 0x191   : > { %3091 = vmatprep.subr.bf16.mxu0 %v4290_v17  ;;  %3220 = vmatprep.subr.bf16.mxu1 %v4292_v18  ;;  %v4347_v17 = vcombine.low %v763_v5, %v767_v6  ;;  %v4354_v18 = vcombine.high %v770_v11, %v774_v13  ;;  %v4356_v19 = vcombine.high %v771_v14, %v775_v15  ;;  %v830_v5 = vld [vmem:[#allocation5 + $0xbb0] sm:$0xff]  ;;  %v827_v6 = vld [vmem:[#allocation5 + $0xb98] sm:$0xff] }
 0x194   : > { %3092 = vmatpush1.bf16.msra.mxu0 %v4289_v24  ;;  %3221 = vmatpush1.bf16.msra.mxu1 %v4291_v25  ;;  %v783_v24 = vld [vmem:[#allocation5 + $0xa38] sm:$0xff]  ;;  %v4353_v25 = vcombine.low %v770_v11, %v774_v13  ;;  %v834_v13 = vld [vmem:[#allocation5 + $0xbd0] sm:$0xff] }
 0x195   : > { %3104 = vmatprep.subr.bf16.mxu0 %v4298_v26  ;;  %3233 = vmatprep.subr.bf16.mxu1 %v4300_v27  ;;  %v4355_v26 = vcombine.low %v771_v14, %v775_v15  ;;  %v4362_v27 = vcombine.high %v778_v20, %v782_v21  ;;  %v4364_v28 = vcombine.high %v779_v22, %v783_v24  ;;  %v838_v14 = vld [vmem:[#allocation5 + $0xbf0] sm:$0xff]  ;;  %v835_v15 = vld [vmem:[#allocation5 + $0xbd8] sm:$0xff] }
 0x197   : > { %3094 = vmatmul.mubr.bf16.vlgmr.msra.gmra.mrb[4].mxu0 %v4919_v51  ;;  %3223 = vmatmul.mubr.bf16.vlgmr.msra.gmra.mrb[4].mxu1 %v4919_v51  ;;  %v4315_v51 = vcombine.low %v731_v39, %v735_v40  ;;  %v798_v39 = vld [vmem:[#allocation5 + $0xab0] sm:$0xff]  ;;  %v795_v40 = vld [vmem:[#allocation5 + $0xa98] sm:$0xff] }
 0x198   : > { %3105 = vmatpush1.bf16.msra.mxu0 %v4297_v32  ;;  %3234 = vmatpush1.bf16.msra.mxu1 %v4299_v33  ;;  %v791_v32 = vld [vmem:[#allocation5 + $0xa78] sm:$0xff]  ;;  %v4361_v33 = vcombine.low %v778_v20, %v782_v21  ;;  %v402_v21 = vld [vmem:[%s5211_s1] sm:$0xff] }
 0x199   : > { %3106 = vmatprep.subr.bf16.mxu0 %v4306_v35  ;;  %3235 = vmatprep.subr.bf16.mxu1 %v4308_v36  ;;  %v4363_v35 = vcombine.low %v779_v22, %v783_v24  ;;  %v4370_v36 = vcombine.high %v786_v29, %v790_v30  ;;  %v4372_v37 = vcombine.high %v787_v31, %v791_v32  ;;  %v406_v22 = vld [vmem:[%s5211_s1 + $0x20] sm:$0xff]  ;;  %v403_v24 = vld [vmem:[%s5211_s1 + $0x8] sm:$0xff] }
 0x19a   : > { %3136 = vmatprep.mubr.bf16.mxu0 %v4923_v63  ;;  %3265 = vmatprep.mubr.bf16.mxu1 %v4923_v63  ;;  %v4332_v63 = vcombine.high %v747_v34, %v751_v53  ;;  %v814_v34 = vld [vmem:[#allocation5 + $0xb30] sm:$0xff]  ;;  %v811_v53 = vld [vmem:[#allocation5 + $0xb18] sm:$0xff] }
 0x19c   : > { %3107 = vmatpush1.bf16.msra.mxu0 %v4305_v41  ;;  %3236 = vmatpush1.bf16.msra.mxu1 %v4307_v42  ;;  %v799_v41 = vld [vmem:[#allocation5 + $0xab8] sm:$0xff]  ;;  %v4369_v42 = vcombine.low %v786_v29, %v790_v30  ;;  %v410_v30 = vld [vmem:[%s5211_s1 + $0x40] sm:$0xff] }
 0x19d   : > { %3108 = vmatprep.subr.bf16.mxu0 %v4314_v43  ;;  %3237 = vmatprep.subr.bf16.mxu1 %v4316_v23  ;;  %v4371_v43 = vcombine.low %v787_v31, %v791_v32  ;;  %v4378_v23 = vcombine.high %v794_v38, %v798_v39  ;;  %v4380_v59 = vcombine.high %v795_v40, %v799_v41  ;;  %v414_v31 = vld [vmem:[%s5211_s1 + $0x60] sm:$0xff]  ;;  %v411_v32 = vld [vmem:[%s5211_s1 + $0x48] sm:$0xff] }
 0x1a0   : > { %3109 = vmatpush1.bf16.msra.mxu0 %v4313_v47  ;;  %3238 = vmatpush1.bf16.msra.mxu1 %v4315_v51  ;;  %v807_v47 = vld [vmem:[#allocation5 + $0xaf8] sm:$0xff]  ;;  %v4377_v51 = vcombine.low %v794_v38, %v798_v39  ;;  %v418_v39 = vld [vmem:[%s5211_s1 + $0x80] sm:$0xff] }
 0x1a1   : > { %3110 = vmatprep.subr.bf16.mxu0 %v4322_v48  ;;  %3239 = vmatprep.subr.bf16.mxu1 %v4324_v49  ;;  %v4379_v48 = vcombine.low %v795_v40, %v799_v41  ;;  %v4386_v49 = vcombine.high %v802_v44, %v806_v45  ;;  %v4388_v50 = vcombine.high %v803_v46, %v807_v47  ;;  %v422_v40 = vld [vmem:[%s5211_s1 + $0xa0] sm:$0xff]  ;;  %v419_v41 = vld [vmem:[%s5211_s1 + $0x88] sm:$0xff] }
 0x1a4   : > { %3111 = vmatpush1.bf16.msra.mxu0 %v4321_v54  ;;  %3240 = vmatpush1.bf16.msra.mxu1 %v4323_v55  ;;  %v815_v54 = vld [vmem:[#allocation5 + $0xb38] sm:$0xff]  ;;  %v4385_v55 = vcombine.low %v802_v44, %v806_v45  ;;  %v426_v45 = vld [vmem:[%s5211_s1 + $0xc0] sm:$0xff] }
 0x1a5   : > { %3112 = vmatprep.subr.bf16.mxu0 %v4330_v56  ;;  %3241 = vmatprep.subr.bf16.mxu1 %v4332_v63  ;;  %v4387_v56 = vcombine.low %v803_v46, %v807_v47  ;;  %v4394_v63 = vcombine.high %v810_v52, %v814_v34  ;;  %v4396_v57 = vcombine.high %v811_v53, %v815_v54  ;;  %v430_v46 = vld [vmem:[%s5211_s1 + $0xe0] sm:$0xff]  ;;  %v4748_v47 = vmov 0  }
 0x1a8   : > { %3113 = vmatpush1.bf16.msra.mxu0 %v4329_v62  ;;  %3242 = vmatpush1.bf16.msra.mxu1 %v4331_v0  ;;  %v823_v62 = vld [vmem:[#allocation5 + $0xb78] sm:$0xff]  ;;  %v4393_v0 = vcombine.low %v810_v52, %v814_v34  ;;  %v434_v34 = vld [vmem:[%s5211_s1 + $0x100] sm:$0xff] }
 0x1a9   : > { %3114 = vmatprep.subr.bf16.mxu0 %v4338_v1  ;;  %3243 = vmatprep.subr.bf16.mxu1 %v4340_v2  ;;  %v4395_v1 = vcombine.low %v811_v53, %v815_v54  ;;  %v4402_v2 = vcombine.high %v818_v58, %v822_v60  ;;  %v4404_v3 = vcombine.high %v819_v61, %v823_v62  ;;  %v438_v53 = vld [vmem:[%s5211_s1 + $0x120] sm:$0xff]  ;;  %v435_v54 = vld [vmem:[%s5211_s1 + $0x108] sm:$0xff] }
 0x1ac   : > { %3115 = vmatpush1.bf16.msra.mxu0 %v4337_v7  ;;  %3244 = vmatpush1.bf16.msra.mxu1 %v4339_v8  ;;  %v831_v7 = vld [vmem:[#allocation5 + $0xbb8] sm:$0xff]  ;;  %v4401_v8 = vcombine.low %v818_v58, %v822_v60  ;;  %v442_v60 = vld [vmem:[%s5211_s1 + $0x140] sm:$0xff] }
 0x1ad   : > { %3116 = vmatprep.subr.bf16.mxu0 %v4346_v9  ;;  %3245 = vmatprep.subr.bf16.mxu1 %v4348_v10  ;;  %v4403_v9 = vcombine.low %v819_v61, %v823_v62  ;;  %v4410_v10 = vcombine.high %v826_v4, %v830_v5  ;;  %v4412_v11 = vcombine.high %v827_v6, %v831_v7  ;;  %v446_v61 = vld [vmem:[%s5211_s1 + $0x160] sm:$0xff]  ;;  %v443_v62 = vld [vmem:[%s5211_s1 + $0x148] sm:$0xff] }
 0x1b0   : > { %3117 = vmatpush1.bf16.msra.mxu0 %v4345_v16  ;;  %3246 = vmatpush1.bf16.msra.mxu1 %v4347_v17  ;;  %v839_v16 = vld [vmem:[#allocation5 + $0xbf8] sm:$0xff]  ;;  %v4409_v17 = vcombine.low %v826_v4, %v830_v5  ;;  %v404_v5 = vld [vmem:[%s5211_s1 + $0x10] sm:$0xff] }
 0x1b1   : > { %3118 = vmatprep.subr.bf16.mxu0 %v4354_v18  ;;  %3247 = vmatprep.subr.bf16.mxu1 %v4356_v19  ;;  %v4411_v18 = vcombine.low %v827_v6, %v831_v7  ;;  %v4418_v19 = vcombine.high %v834_v13, %v838_v14  ;;  %v4420_v20 = vcombine.high %v835_v15, %v839_v16  ;;  %v408_v6 = vld [vmem:[%s5211_s1 + $0x30] sm:$0xff]  ;;  %v405_v7 = vld [vmem:[%s5211_s1 + $0x18] sm:$0xff] }
 0x1b4   : > { %3119 = vmatpush1.bf16.msra.mxu0 %v4353_v25  ;;  %3248 = vmatpush1.bf16.msra.mxu1 %v4355_v26  ;;  %v407_v25 = vld [vmem:[%s5211_s1 + $0x28] sm:$0xff]  ;;  %v4417_v26 = vcombine.low %v834_v13, %v838_v14  ;;  %v412_v14 = vld [vmem:[%s5211_s1 + $0x50] sm:$0xff] }
 0x1b5   : > { %3120 = vmatprep.subr.bf16.mxu0 %v4362_v27  ;;  %3249 = vmatprep.subr.bf16.mxu1 %v4364_v28  ;;  %v4419_v27 = vcombine.low %v835_v15, %v839_v16  ;;  %v4423_v28 = vcombine.high %v402_v21, %v406_v22  ;;  %v4425_v29 = vcombine.high %v403_v24, %v407_v25  ;;  %v416_v15 = vld [vmem:[%s5211_s1 + $0x70] sm:$0xff]  ;;  %v5040_v16 = vld [vmem:[%s4897_s11] sm:$0xff]  }
 0x1b8   : > { %3121 = vmatpush1.bf16.msra.mxu0 %v4361_v33  ;;  %3250 = vmatpush1.bf16.msra.mxu1 %v4363_v35  ;;  %v415_v33 = vld [vmem:[%s5211_s1 + $0x68] sm:$0xff]  ;;  %v4422_v35 = vcombine.low %v402_v21, %v406_v22  ;;  %v4435_v21 = vcombine.high %v412_v14, %v416_v15 }
 0x1b9   : > { %3122 = vmatprep.subr.bf16.mxu0 %v4370_v36  ;;  %3251 = vmatprep.subr.bf16.mxu1 %v4372_v37  ;;  %v4424_v36 = vcombine.low %v403_v24, %v407_v25  ;;  %v4431_v37 = vcombine.high %v410_v30, %v414_v31  ;;  %v4433_v38 = vcombine.high %v411_v32, %v415_v33  ;;  %v420_v24 = vld [vmem:[%s5211_s1 + $0x90] sm:$0xff] }
 0x1ba   : > { %v424_v25 = vld [vmem:[%s5211_s1 + $0xb0] sm:$0xff] }
 0x1bc   : > { %3123 = vmatpush1.bf16.msra.mxu0 %v4369_v42  ;;  %3252 = vmatpush1.bf16.msra.mxu1 %v4371_v43  ;;  %v423_v42 = vld [vmem:[%s5211_s1 + $0xa8] sm:$0xff]  ;;  %v4430_v43 = vcombine.low %v410_v30, %v414_v31  ;;  %v4443_v30 = vcombine.high %v420_v24, %v424_v25 }
 0x1bd   : > { %3124 = vmatprep.subr.bf16.mxu0 %v4378_v23  ;;  %3253 = vmatprep.subr.bf16.mxu1 %v4380_v59  ;;  %v4432_v23 = vcombine.low %v411_v32, %v415_v33  ;;  %v4439_v59 = vcombine.high %v418_v39, %v422_v40  ;;  %v4441_v44 = vcombine.high %v419_v41, %v423_v42  ;;  %v428_v32 = vld [vmem:[%s5211_s1 + $0xd0] sm:$0xff] }
 0x1be   : > { %v432_v33 = vld [vmem:[%s5211_s1 + $0xf0] sm:$0xff] }
 0x1c0   : > { %3125 = vmatpush1.bf16.msra.mxu0 %v4377_v51  ;;  %3254 = vmatpush1.bf16.msra.mxu1 %v4379_v48  ;;  %v431_v51 = vld [vmem:[%s5211_s1 + $0xe8] sm:$0xff]  ;;  %v4438_v48 = vcombine.low %v418_v39, %v422_v40  ;;  %v4451_v39 = vcombine.high %v428_v32, %v432_v33 }
 0x1c1   : > { %3126 = vmatprep.subr.bf16.mxu0 %v4386_v49  ;;  %3255 = vmatprep.subr.bf16.mxu1 %v4388_v50  ;;  %v4440_v49 = vcombine.low %v419_v41, %v423_v42  ;;  %v4447_v50 = vcombine.high %v426_v45, %v430_v46  ;;  %v436_v41 = vld [vmem:[%s5211_s1 + $0x110] sm:$0xff] }
 0x1c2   : > { %v440_v42 = vld [vmem:[%s5211_s1 + $0x130] sm:$0xff] }
 0x1c4   : > { %3127 = vmatpush1.bf16.msra.mxu0 %v4385_v55  ;;  %3256 = vmatpush1.bf16.msra.mxu1 %v4387_v56  ;;  %v439_v55 = vld [vmem:[%s5211_s1 + $0x128] sm:$0xff]  ;;  %v4446_v56 = vcombine.low %v426_v45, %v430_v46  ;;  %v4459_v45 = vcombine.high %v436_v41, %v440_v42 }
 0x1c5   : > { %3128 = vmatprep.subr.bf16.mxu0 %v4394_v63  ;;  %3257 = vmatprep.subr.bf16.mxu1 %v4396_v57  ;;  %v4455_v57 = vcombine.high %v434_v34, %v438_v53  ;;  %v4457_v58 = vcombine.high %v435_v54, %v439_v55 }
 0x1c8   : > { %3129 = vmatpush1.bf16.msra.mxu0 %v4393_v0  ;;  %3258 = vmatpush1.bf16.msra.mxu1 %v4395_v1  ;;  %v447_v0 = vld [vmem:[%s5211_s1 + $0x168] sm:$0xff]  ;;  %v4454_v1 = vcombine.low %v434_v34, %v438_v53 }
 0x1c9   : > { %3130 = vmatprep.subr.bf16.mxu0 %v4402_v2  ;;  %3259 = vmatprep.subr.bf16.mxu1 %v4404_v3  ;;  %v4456_v2 = vcombine.low %v435_v54, %v439_v55  ;;  %v4463_v3 = vcombine.high %v442_v60, %v446_v61  ;;  %v4465_v4 = vcombine.high %v443_v62, %v447_v0  ;;  %v3699_v55 = vlaneseq }
 0x1cc   : > { %3131 = vmatpush1.bf16.msra.mxu0 %v4401_v8  ;;  %3260 = vmatpush1.bf16.msra.mxu1 %v4403_v9  ;;  %v409_v8 = vld [vmem:[%s5211_s1 + $0x38] sm:$0xff]  ;;  %v4462_v9 = vcombine.low %v442_v60, %v446_v61 }
 0x1cd   : > { %3132 = vmatprep.subr.bf16.mxu0 %v4410_v10  ;;  %3261 = vmatprep.subr.bf16.mxu1 %v4412_v11  ;;  %v4464_v10 = vcombine.low %v443_v62, %v447_v0  ;;  %v4427_v11 = vcombine.high %v404_v5, %v408_v6  ;;  %v4429_v13 = vcombine.high %v405_v7, %v409_v8  ;;  %v5114_v62 = vld [vmem:[#allocation3] sm:$0xff] }
 0x1ce   : > { %v3759_v0 = vld [vmem:[%s5214_s4] sm:$0xff] }
 0x1d0   : > { %3133 = vmatpush1.bf16.msra.mxu0 %v4409_v17  ;;  %3262 = vmatpush1.bf16.msra.mxu1 %v4411_v18  ;;  %v413_v17 = vld [vmem:[%s5211_s1 + $0x58] sm:$0xff] }
 0x1d1   : > { %3134 = vmatprep.subr.bf16.mxu0 %v4418_v19  ;;  %3263 = vmatprep.subr.bf16.mxu1 %v4420_v20  ;;  %v417_v18 = vld [vmem:[%s5211_s1 + $0x78] sm:$0xff]  ;;  %v4426_v19 = vcombine.low %v404_v5, %v408_v6  ;;  %v4428_v20 = vcombine.low %v405_v7, %v409_v8  ;;  %v3796_v7 = vld [vmem:[%s5215_s5 + $0x8] sm:$0xff]  ;;  %v5133_v8 = vld [vmem:[#allocation3 + $0x10] sm:$0xff] }
 0x1d2   : > { %v4437_v22 = vcombine.high %v413_v17, %v417_v18 }
 0x1d4   : > { %3135 = vmatpush1.bf16.msra.mxu0 %v4417_v26  ;;  %3264 = vmatpush1.bf16.msra.mxu1 %v4419_v27  ;;  %v421_v26 = vld [vmem:[%s5211_s1 + $0x98] sm:$0xff] }
 0x1d5   : > { %3525 = vmatprep.subr.bf16.mxu0 %v4423_v28  ;;  %3568 = vmatprep.subr.bf16.mxu1 %v4425_v29  ;;  %v425_v27 = vld [vmem:[%s5211_s1 + $0xb8] sm:$0xff]  ;;  %v4434_v28 = vcombine.low %v412_v14, %v416_v15  ;;  %v4436_v29 = vcombine.low %v413_v17, %v417_v18 }
 0x1d6   : > { %v4445_v31 = vcombine.high %v421_v26, %v425_v27  ;;  %v5143_v14 = vld [vmem:[#allocation3 + $0x18] sm:$0xff] }
 0x1d7   : > { %3137 = vmatmul.mubr.bf16.vlgmr.msra.gmra.mrb[4].mxu0 %v4931_v12  ;;  %3266 = vmatmul.mubr.bf16.vlgmr.msra.gmra.mrb[4].mxu1 %v4931_v12  ;;  %v427_v12 = vld [vmem:[%s5211_s1 + $0xc8] sm:$0xff]  ;;  %v3762_v15 = vld [vmem:[%s5214_s4 + $0x18] sm:$0xff] }
 0x1d8   : > { %3526 = vmatpush1.bf16.msra.mxu0 %v4422_v35  ;;  %3569 = vmatpush1.bf16.msra.mxu1 %v4424_v36  ;;  %v4449_v52 = vcombine.high %v427_v12, %v431_v51  ;;  %v4448_v63 = vcombine.low %v427_v12, %v431_v51  ;;  %v429_v35 = vld [vmem:[%s5211_s1 + $0xd8] sm:$0xff]  ;;  %v448_v12 = vld [vmem:[%s5211_s1 + $0x170] sm:$0xff] }
 0x1d9   : > { %3527 = vmatprep.subr.bf16.mxu0 %v4431_v37  ;;  %3570 = vmatprep.subr.bf16.mxu1 %v4433_v38  ;;  %v433_v36 = vld [vmem:[%s5211_s1 + $0xf8] sm:$0xff]  ;;  %v4442_v37 = vcombine.low %v420_v24, %v424_v25  ;;  %v4444_v38 = vcombine.low %v421_v26, %v425_v27 }
 0x1da   : > { %3557 = vmatprep.mubr.bf16.mxu0 %v4748_v47  ;;  %3600 = vmatprep.mubr.bf16.mxu1 %v4748_v47  ;;  %v4453_v40 = vcombine.high %v429_v35, %v433_v36  ;;  %v445_v51 = vld [vmem:[%s5211_s1 + $0x158] sm:$0xff] }
 0x1dc   : > { %3528 = vmatpush1.bf16.msra.mxu0 %v4430_v43  ;;  %3571 = vmatpush1.bf16.msra.mxu1 %v4432_v23  ;;  %v437_v43 = vld [vmem:[%s5211_s1 + $0x118] sm:$0xff] }
 0x1dd   : > { %3529 = vmatprep.subr.bf16.mxu0 %v4439_v59  ;;  %3572 = vmatprep.subr.bf16.mxu1 %v4441_v44  ;;  %v441_v23 = vld [vmem:[%s5211_s1 + $0x138] sm:$0xff]  ;;  %v4450_v59 = vcombine.low %v428_v32, %v432_v33  ;;  %v4452_v44 = vcombine.low %v429_v35, %v433_v36 }
 0x1de   : > { %v4461_v46 = vcombine.high %v437_v43, %v441_v23 }
 0x1e0   : > { %3530 = vmatpush1.bf16.msra.mxu0 %v4438_v48  ;;  %3573 = vmatpush1.bf16.msra.mxu1 %v4440_v49  ;;  %v449_v48 = vld [vmem:[%s5211_s1 + $0x178] sm:$0xff]  ;;  %v4458_v49 = vcombine.low %v436_v41, %v440_v42 }
 0x1e1   : > { %3531 = vmatprep.subr.bf16.mxu0 %v4447_v50  ;;  %3574 = vmatprep.subr.bf16.mxu1 %v4449_v52  ;;  %v4460_v50 = vcombine.low %v437_v43, %v441_v23  ;;  %v4469_v34 = vcombine.high %v445_v51, %v449_v48  ;;  %v4468_v54 = vcombine.low %v445_v51, %v449_v48 }
 0x1e4   : > { %3532 = vmatpush1.bf16.msra.mxu0 %v4446_v56  ;;  %3575 = vmatpush1.bf16.msra.mxu1 %v4448_v63  ;;  %v5106_v56 = vshrl.u32 %v3699_v55, 7 }
 0x1e5   : > { %3533 = vmatprep.subr.bf16.mxu0 %v4455_v57  ;;  %3576 = vmatprep.subr.bf16.mxu1 %v4457_v58  ;;  %v5109_v57 = vld [vmem:[#allocation7] sm:$0xff] }
 0x1e6   : > { %v3701_v63 = vsub.s32 0, %v5106_v56  ;;  %v3709_v58 = vsub.s32 2, %v5106_v56  ;;  %v3705_v60 = vsub.s32 1, %v5106_v56  ;;  %v3713_v61 = vsub.s32 3, %v5106_v56 }
 0x1e7   : > { %v3717_v55 = vsub.s32 4, %v5106_v56 }
 0x1e8   : > { %3534 = vmatpush1.bf16.msra.mxu0 %v4454_v1  ;;  %3577 = vmatpush1.bf16.msra.mxu1 %v4456_v2  ;;  %v3702_v1 = vrot.slane %v5109_v57, %v3701_v63  ;;  %v3795_v2 = vld [vmem:[%s5215_s5] sm:$0xff]  ;;  %v3710_v5 = vrot.slane %v5109_v57, %v3709_v58  ;;  %v3706_v6 = vrot.slane %v5109_v57, %v3705_v60  ;;  %v3725_v60 = vsub.s32 6, %v5106_v56 }
 0x1e9   : > { %3535 = vmatprep.subr.bf16.mxu0 %v4463_v3  ;;  %3578 = vmatprep.subr.bf16.mxu1 %v4465_v4  ;;  %v5123_v3 = vld [vmem:[#allocation3 + $0x8] sm:$0xff]  ;;  %v3799_v17 = vmul.f32 %v3795_v2, %v5114_v62  ;;  %v3729_v2 = vsub.s32 7, %v5106_v56 }
 0x1ea   : > { %v3760_v4 = vld [vmem:[%s5214_s4 + $0x8] sm:$0xff]  ;;  %v3800_v24 = vmul.f32 %v3796_v7, %v5123_v3 }
 0x1eb   : > { %v3764_v18 = vmul.f32 %v3760_v4, %v5123_v3 }
 0x1ec   : > { %3536 = vmatpush1.bf16.msra.mxu0 %v4462_v9  ;;  %3579 = vmatpush1.bf16.msra.mxu1 %v4464_v10  ;;  %v3761_v9 = vld [vmem:[%s5214_s4 + $0x10] sm:$0xff]  ;;  %v3763_v10 = vmul.f32 %v3759_v0, %v5114_v62 }
 0x1ed   : > { %3611 = vmatprep.subr.bf16.mxu0 %v4427_v11  ;;  %3654 = vmatprep.subr.bf16.mxu1 %v4429_v13  ;;  %v3714_v11 = vrot.slane %v5109_v57, %v3713_v61  ;;  %v3797_v13 = vld [vmem:[%s5215_s5 + $0x10] sm:$0xff]  ;;  %v3765_v25 = vmul.f32 %v3761_v9, %v5133_v8  ;;  %v3721_v61 = vsub.s32 5, %v5106_v56  ;;  %v3726_v56 = vrot.slane %v5109_v57, %v3725_v60 }
 0x1ef   : > { %4470 = vmatmul.mubr.msk.bf16.vlgmr.msra.gmra.mrb[0].mxu0 %vm3521_vm2, %v5040_v16  ;;  %4471 = vmatmul.mubr.msk.bf16.vlgmr.msra.gmra.mrb[0].mxu1 %vm3521_vm2, %v5040_v16 }
 0x1f0   : > { %3612 = vmatpush1.bf16.msra.mxu0 %v4426_v19  ;;  %3655 = vmatpush1.bf16.msra.mxu1 %v4428_v20  ;;  %v3798_v19 = vld [vmem:[%s5215_s5 + $0x18] sm:$0xff] }
 0x1f1   : > { %3613 = vmatprep.subr.bf16.mxu0 %v4435_v21  ;;  %3656 = vmatprep.subr.bf16.mxu1 %v4437_v22 }
 0x1f2   : > { %3643 = vmatprep.mubr.bf16.mxu0 %v4748_v47  ;;  %3686 = vmatprep.mubr.bf16.mxu1 %v4748_v47  ;;  %v444_v47 = vld [vmem:[%s5211_s1 + $0x150] sm:$0xff] }
 0x1f3   : > { %v4467_v52 = vcombine.high %v444_v47, %v448_v12  ;;  %v4466_v53 = vcombine.low %v444_v47, %v448_v12 }
 0x1f4   : > { %3614 = vmatpush1.bf16.msra.mxu0 %v4434_v28  ;;  %3657 = vmatpush1.bf16.msra.mxu1 %v4436_v29 }
 0x1f5   : > { %3615 = vmatprep.subr.bf16.mxu0 %v4443_v30  ;;  %3658 = vmatprep.subr.bf16.mxu1 %v4445_v31  ;;  %v3801_v30 = vmul.f32 %v3797_v13, %v5133_v8  ;;  %v3766_v31 = vmul.f32 %v3762_v15, %v5143_v14 }
 0x1f8   : > { %3616 = vmatpush1.bf16.msra.mxu0 %v4442_v37  ;;  %3659 = vmatpush1.bf16.msra.mxu1 %v4444_v38  ;;  %v3802_v38 = vmul.f32 %v3798_v19, %v5143_v14 }
 0x1f9   : > { %3617 = vmatprep.subr.bf16.mxu0 %v4451_v39  ;;  %3660 = vmatprep.subr.bf16.mxu1 %v4453_v40 }
 0x1fc   : > { %3618 = vmatpush1.bf16.msra.mxu0 %v4450_v59  ;;  %3661 = vmatpush1.bf16.msra.mxu1 %v4452_v44 }
 0x1fd   : > { %3619 = vmatprep.subr.bf16.mxu0 %v4459_v45  ;;  %3662 = vmatprep.subr.bf16.mxu1 %v4461_v46 }
 0x200   : > { %3620 = vmatpush1.bf16.msra.mxu0 %v4458_v49  ;;  %3663 = vmatpush1.bf16.msra.mxu1 %v4460_v50 }
 0x201   : > { %3621 = vmatprep.subr.bf16.mxu0 %v4467_v52  ;;  %3664 = vmatprep.subr.bf16.mxu1 %v4469_v34 }
 0x204   : > { %3622 = vmatpush1.bf16.msra.mxu0 %v4466_v53  ;;  %3665 = vmatpush1.bf16.msra.mxu1 %v4468_v54 }
 0x207   : > { %4472 = vmatmul.mubr.msk.bf16.vlgmr.msra.gmra.mrb[4].mxu0 %vm3521_vm2, %v5040_v16  ;;  %4473 = vmatmul.mubr.msk.bf16.vlgmr.msra.gmra.mrb[4].mxu1 %vm3521_vm2, %v5040_v16 }
 0x2c2   : > { %v3559_v16 = vpop.f32.mrb[0].mxu0  ;;  %v3602_v21 = vpop.f32.mrb[0].mxu1 }
 0x2c3   : > { %v3739_v20 = vadd.f32 %v3702_v1, %v3559_v16  ;;  %v3561_v22 = vpop.f32.mrb[1].mxu0  ;;  %v3741_v26 = vadd.f32 %v3710_v5, %v3602_v21  ;;  %v3604_v28 = vpop.f32.mrb[1].mxu1  ;;  %v3722_v16 = vrot.slane %v5109_v57, %v3721_v61  ;;  %v3730_v21 = vrot.slane %v5109_v57, %v3729_v2 }
 0x2c4   : > { %v3740_v27 = vadd.f32 %v3706_v6, %v3561_v22  ;;  %v3563_v29 = vpop.f32.mrb[2].mxu0  ;;  %v3742_v33 = vadd.f32 %v3714_v11, %v3604_v28  ;;  %v3606_v36 = vpop.f32.mrb[2].mxu1  ;;  %v3850_v22 = vld [vmem:[%s5216_s6 + $0x18] sm:$0xff] }
 0x2c5   : > { %v3767_v32 = vadd.f32 %v3763_v10, %v3739_v20  ;;  %v3747_v35 = vadd.f32 %v3702_v1, %v3563_v29  ;;  %v3565_v37 = vpop.f32.mrb[3].mxu0  ;;  %v3803_v39 = vadd.f32 %v3799_v17, %v3741_v26  ;;  %v3749_v41 = vadd.f32 %v3710_v5, %v3606_v36  ;;  %v3608_v43 = vpop.f32.mrb[3].mxu1  ;;  %v3849_v17 = vld [vmem:[%s5216_s6 + $0x10] sm:$0xff] }
 0x2c6   : > { %v3768_v40 = vadd.f32 %v3764_v18, %v3740_v27  ;;  %v3748_v42 = vadd.f32 %v3706_v6, %v3565_v37  ;;  %v3804_v59 = vadd.f32 %v3800_v24, %v3742_v33  ;;  %v3750_v45 = vadd.f32 %v3714_v11, %v3608_v43  ;;  %v3847_v6 = vld [vmem:[%s5216_s6] sm:$0xff]  ;;  %v3848_v11 = vld [vmem:[%s5216_s6 + $0x8] sm:$0xff] }
 0x2c7   : > { %v4474_v23 = vmul.f32 -1.442695, %v3767_v32  ;;  %v3769_v44 = vadd.f32 %v3765_v25, %v3747_v35  ;;  %v4478_v46 = vmul.f32 -1.442695, %v3803_v39  ;;  %v3805_v12 = vadd.f32 %v3801_v30, %v3749_v41 }
 0x2c8   : > { %v4475_v47 = vmul.f32 -1.442695, %v3768_v40  ;;  %v3770_v51 = vadd.f32 %v3766_v31, %v3748_v42  ;;  %v4479_v48 = vmul.f32 -1.442695, %v3804_v59  ;;  %v3806_v50 = vadd.f32 %v3802_v38, %v3750_v45 }
 0x2c9   : > { %4591 = vpow2.f32 %v4474_v23  ;;  %v4476_v49 = vmul.f32 -1.442695, %v3769_v44  ;;  %v4480_v52 = vmul.f32 -1.442695, %v3805_v12  ;;  %v3718_v10 = vrot.slane %v5109_v57, %v3717_v55 }
 0x2ca   : > { %4593 = vpow2.f32 %v4478_v46  ;;  %v4477_v34 = vmul.f32 -1.442695, %v3770_v51  ;;  %v4481_v53 = vmul.f32 -1.442695, %v3806_v50  ;;  %v3851_v20 = vmul.f32 %v3847_v6, %v5114_v62 }
 0x2cb   : > { %4595 = vpow2.f32 %v4475_v47  ;;  %v3852_v27 = vmul.f32 %v3848_v11, %v5123_v3  ;;  %v3853_v32 = vmul.f32 %v3849_v17, %v5133_v8  ;;  %v3854_v37 = vmul.f32 %v3850_v22, %v5143_v14 }
 0x2cc   : > { %4597 = vpow2.f32 %v4479_v48 }
 0x2cd   : > { %4599 = vpow2.f32 %v4476_v49 }
 0x2ce   : > { %4601 = vpow2.f32 %v4480_v52 }
 0x2cf   : > { %4603 = vpow2.f32 %v4477_v34 }
 0x2d0   : > { %4605 = vpow2.f32 %v4481_v53 }
 0x2d3   : > { %v4592_v54 = vpop.eup %4591 }
 0x2d4   : > { %v4594_v63 = vpop.eup %4593  ;;  %v3783_v58 = vadd.f32 1.0, %v4592_v54 }
 0x2d5   : > { %v4596_v0 = vpop.eup %4595  ;;  %v3819_v1 = vadd.f32 1.0, %v4594_v63 }
 0x2d6   : > { %v4598_v4 = vpop.eup %4597  ;;  %4607 = vrcp.f32 %v3783_v58  ;;  %v3784_v5 = vadd.f32 1.0, %v4596_v0 }
 0x2d7   : > { %v4600_v7 = vpop.eup %4599  ;;  %4609 = vrcp.f32 %v3819_v1  ;;  %v3820_v9 = vadd.f32 1.0, %v4598_v4 }
 0x2d8   : > { %v4602_v13 = vpop.eup %4601  ;;  %4611 = vrcp.f32 %v3784_v5  ;;  %v3785_v15 = vadd.f32 1.0, %v4600_v7 }
 0x2d9   : > { %v4604_v18 = vpop.eup %4603  ;;  %4613 = vrcp.f32 %v3820_v9  ;;  %v3821_v19 = vadd.f32 1.0, %v4602_v13 }
 0x2da   : > { %v4606_v24 = vpop.eup %4605  ;;  %4615 = vrcp.f32 %v3785_v15  ;;  %v3786_v25 = vadd.f32 1.0, %v4604_v18  ;;  %v3645_v26 = vpop.f32.mrb[4].mxu0 }
 0x2db   : > { %4617 = vrcp.f32 %v3821_v19  ;;  %v3822_v28 = vadd.f32 1.0, %v4606_v24  ;;  %v3743_v29 = vadd.f32 %v3718_v10, %v3645_v26  ;;  %v3688_v30 = vpop.f32.mrb[4].mxu1  ;;  %v3647_v31 = vpop.f32.mrb[5].mxu0 }
 0x2dc   : > { %4619 = vrcp.f32 %v3786_v25  ;;  %v3745_v33 = vadd.f32 %v3726_v56, %v3688_v30  ;;  %v3744_v57 = vadd.f32 %v3722_v16, %v3647_v31  ;;  %v3690_v35 = vpop.f32.mrb[5].mxu1  ;;  %v3649_v36 = vpop.f32.mrb[6].mxu0 }
 0x2dd   : > { %4621 = vrcp.f32 %v3822_v28  ;;  %v3855_v38 = vadd.f32 %v3851_v20, %v3743_v29  ;;  %v3746_v39 = vadd.f32 %v3730_v21, %v3690_v35  ;;  %v3751_v40 = vadd.f32 %v3718_v10, %v3649_v36  ;;  %v3692_v41 = vpop.f32.mrb[6].mxu1  ;;  %v3651_v42 = vpop.f32.mrb[7].mxu0 }
 0x2de   : > { %4623 = vtanh.f32 %v3745_v33  ;;  %v3856_v43 = vadd.f32 %v3852_v27, %v3744_v57  ;;  %v3753_v23 = vadd.f32 %v3726_v56, %v3692_v41  ;;  %v3752_v59 = vadd.f32 %v3722_v16, %v3651_v42  ;;  %v3694_v44 = vpop.f32.mrb[7].mxu1 }
 0x2df   : > { %v4482_v45 = vmul.f32 -1.442695, %v3855_v38  ;;  %4625 = vtanh.f32 %v3746_v39  ;;  %v3857_v46 = vadd.f32 %v3853_v32, %v3751_v40  ;;  %v3754_v50 = vadd.f32 %v3730_v21, %v3694_v44 }
 0x2e0   : > { %v4608_v47 = vpop.eup %4607  ;;  %v4483_v12 = vmul.f32 -1.442695, %v3856_v43  ;;  %4627 = vtanh.f32 %v3753_v23  ;;  %v3858_v51 = vadd.f32 %v3854_v37, %v3752_v59 }
 0x2e1   : > { %v4610_v48 = vpop.eup %4609  ;;  %4629 = vpow2.f32 %v4482_v45  ;;  %v4484_v49 = vmul.f32 -1.442695, %v3857_v46 }
 0x2e2   : > { %v4612_v52 = vpop.eup %4611  ;;  %4631 = vpow2.f32 %v4483_v12  ;;  %v4485_v34 = vmul.f32 -1.442695, %v3858_v51  ;;  %v3831_v0 = vmul.f32 %v4610_v48, %v5114_v62 }
 0x2e3   : > { %v4614_v53 = vpop.eup %4613  ;;  %4633 = vpow2.f32 %v4484_v49 }
 0x2e4   : > { %v4616_v54 = vpop.eup %4615  ;;  %4635 = vpow2.f32 %v4485_v34  ;;  %v3832_v4 = vmul.f32 %v4614_v53, %v5123_v3 }
 0x2e5   : > { %v4618_v55 = vpop.eup %4617  ;;  %4637 = vtanh.f32 %v3754_v50 }
 0x2e6   : > { %v4620_v63 = vpop.eup %4619  ;;  %v3833_v9 = vmul.f32 %v4618_v55, %v5133_v8 }
 0x2e7   : > { %v4622_v58 = vpop.eup %4621 }
 0x2e8   : > { %v4624_v60 = vpop.eup %4623  ;;  %v3834_v8 = vmul.f32 %v4622_v58, %v5143_v14 }
 0x2e9   : > { %v4626_v61 = vpop.eup %4625  ;;  %v3839_v1 = vmul.f32 %v4624_v60, %v4608_v47 }
 0x2ea   : > { %v4628_v2 = vpop.eup %4627  ;;  %v3840_v5 = vmul.f32 %v4626_v61, %v4612_v52 }
 0x2eb   : > { %v4630_v6 = vpop.eup %4629  ;;  %v3843_v7 = vadd.f32 %v3839_v1, %v3831_v0  ;;  %v3841_v10 = vmul.f32 %v4628_v2, %v4616_v54 }
 0x2ec   : > { %v4632_v11 = vpop.eup %4631  ;;  %v3871_v13 = vadd.f32 1.0, %v4630_v6  ;;  %v3844_v15 = vadd.f32 %v3840_v5, %v3832_v4 }
 0x2ed   : > { %v4634_v56 = vpop.eup %4633  ;;  %4639 = vtanh.f32 %v3843_v7  ;;  %3891 = vst [vmem:[#allocation3] sm:$0xff] %v3843_v7  ;;  %v3872_v16 = vadd.f32 1.0, %v4632_v11  ;;  %v3845_v17 = vadd.f32 %v3841_v10, %v3833_v9 }
 0x2ee   : > { %v4636_v18 = vpop.eup %4635  ;;  %4641 = vrcp.f32 %v3871_v13  ;;  %3892 = vst [vmem:[#allocation3 + $0x8] sm:$0xff] %v3844_v15  ;;  %v3873_v62 = vadd.f32 1.0, %v4634_v56 }
 0x2ef   : > { %v4638_v19 = vpop.eup %4637  ;;  %4643 = vrcp.f32 %v3872_v16  ;;  %3893 = vst [vmem:[#allocation3 + $0x10] sm:$0xff] %v3845_v17  ;;  %v3874_v3 = vadd.f32 1.0, %v4636_v18 }
 0x2f0   : > { %4645 = vtanh.f32 %v3844_v15  ;;  %v3842_v20 = vmul.f32 %v4638_v19, %v4620_v63 }
 0x2f1   : > { %4647 = vrcp.f32 %v3873_v62 }
 0x2f2   : > { %4649 = vtanh.f32 %v3845_v17  ;;  %v3846_v21 = vadd.f32 %v3842_v20, %v3834_v8 }
 0x2f3   : > { %4651 = vrcp.f32 %v3874_v3 }
 0x2f4   : > { %4653 = vtanh.f32 %v3846_v21  ;;  %3894 = vst [vmem:[#allocation3 + $0x18] sm:$0xff] %v3846_v21 }
 0x2f7   : > { %v4640_v22 = vpop.eup %4639 }
 0x2f8   : > { %v4642_v24 = vpop.eup %4641 }
 0x2f9   : > { %v4644_v25 = vpop.eup %4643  ;;  %v3887_v26 = vmul.f32 %v4642_v24, %v4640_v22 }
 0x2fa   : > { %v4646_v27 = vpop.eup %4645 }
 0x2fb   : > { %v4648_v28 = vpop.eup %4647  ;;  %v3899_v29 = vrot.slane %v3887_v26, 7  ;;  %3915 = vst [vmem:[%s4899_s14] sm:$0xff] %v3887_v26  ;;  %v3888_v30 = vmul.f32 %v4646_v27, %v4644_v25 }
 0x2fc   : > { %v4650_v31 = vpop.eup %4649 }
 0x2fd   : > { %v4652_v14 = vpop.eup %4651  ;;  %3907 = vst [vmem:[#allocation2] sm:$0xfe] %v3899_v29  ;;  %3909 = vst [vmem:[#allocation2 + $0x10] sm:$0x1] %v3899_v29  ;;  %v3900_v32 = vrot.slane %v3888_v30, 7  ;;  %v3889_v33 = vmul.f32 %v4650_v31, %v4648_v28  ;;  %3925 = sbr.rel (!%p5229_p13) target bundleno = 779 (0x30b), region = 64 }
 0x2fe   : > { %3916 = vst [vmem:[%s4899_s14 + $0x8] sm:$0xff] %v3888_v30  ;;  %v4654_v57 = vpop.eup %4653 }
 0x2ff   : > { %3908 = vst [vmem:[#allocation2 + $0x8] sm:$0xfe] %v3900_v32  ;;  %3910 = vst [vmem:[#allocation2 + $0x18] sm:$0x1] %v3900_v32  ;;  %v3901_v35 = vrot.slane %v3889_v33, 7  ;;  %v3890_v36 = vmul.f32 %v4654_v57, %v4652_v14 }
 0x300   : > { %3917 = vst [vmem:[%s4899_s14 + $0x10] sm:$0xff] %v3889_v33 }
 0x301   : > { %3911 = vst [vmem:[#allocation2 + $0x20] sm:$0xfe] %v3901_v35  ;;  %3913 = vst [vmem:[#allocation2 + $0x30] sm:$0x1] %v3901_v35  ;;  %v3902_v37 = vrot.slane %v3890_v36, 7 }
 0x302   : > { %3918 = vst [vmem:[%s4899_s14 + $0x18] sm:$0xff] %v3890_v36  ;;  %v3941_v38 = vld [vmem:[%s4899_s14] sm:$0xff] (%p5229_p13) }
 0x303   : > { %3912 = vst [vmem:[#allocation2 + $0x28] sm:$0xfe] %v3902_v37  ;;  %3914 = vst [vmem:[#allocation2 + $0x38] sm:$0x1] %v3902_v37 }
 0x304   : > { %3942 = vst [vmem:[%s3928_s12] sm:$0xff] %v3941_v38 }
 0x305   : > { %v3943_v39 = vld [vmem:[%s4899_s14 + $0x8] sm:$0xff] }
 0x306   : > { %3944 = vst [vmem:[%s3928_s12 + $0x8] sm:$0xff] %v3943_v39 }
 0x307   : > { %v3945_v40 = vld [vmem:[%s4899_s14 + $0x10] sm:$0xff] }
 0x308   : > { %3946 = vst [vmem:[%s3928_s12 + $0x40] sm:$0xff] %v3945_v40 }
 0x309   : > { %v3947_v41 = vld [vmem:[%s4899_s14 + $0x18] sm:$0xff] }
 0x30a   : > { %3948 = vst [vmem:[%s3928_s12 + $0x48] sm:$0xff] %v3947_v41 }
 0x30b PF: > { %p16_p0 = scmp.ge.s32.totalorder %s4804_s28, 6   ;;  %s5230_s24 = smov %s4737_s25 }
 0x30c   : > { %s5231_s25 = smov %s4812_s8  ;;  %s5232_s26 = smov %s4804_s28 }
 0x30d   :  { %18 = sbr.rel (!%p16_p0) target bundleno = 3 (0x3), region = 114 }
 0x314   :  { %3964 = vsyncpa [#allocation6], 1 }
 0x315   :  { %3966 = vsyncpa [#allocation6 + $0x1], 1 }
 0x316   :  { %3967 = vsyncpa [#allocation8], 1 }

// kernel: conv_lstm_forward.3
= control target key start
LH: loop header
LB: loop body
LE: loop exit
PB: predicated region body
PF: predicated region fallthrough
CT: control target
= control target key end

     0   :  { %s7408_s24 = smov 0   ;;  %s7410_s25 = smov 0   ;;  %s9911_s0 = inlined_call_operand.vmem [shape: bf16[4,16,768], index: 0, kind: input, shape index: {}]   ;;  %s9912_s1 = inlined_call_operand.vmem [shape: bf16[768,1024], index: 1, kind: input, shape index: {}]   ;;  %s9913_s2 = inlined_call_operand.vmem [shape: bf16[768,1024], index: 2, kind: input, shape index: {}]   ;;  %s9914_s3 = inlined_call_operand.vmem [shape: f32[1,1024], index: 3, kind: input, shape index: {}]   ;;  %s9915_s4 = inlined_call_operand.vmem [shape: f32[16,256], index: 4, kind: input, shape index: {}]   ;;  %s9916_s5 = inlined_call_operand.vmem [shape: f32[16,256], index: 5, kind: input, shape index: {}]   ;;  %s9917_s6 = inlined_call_operand.vmem [shape: f32[16,256], index: 6, kind: input, shape index: {}]   ;;  %s9918_s7 = inlined_call_operand.vmem [shape: f32[2,4,8,256], index: 7, kind: output, shape index: {}]  }
   0x1   :  { %s7412_s26 = smov 0  }
   0x2 LB: > { %s7419_s27 = sadd.s32 4294967295, %s7365_s26   ;;  %s7421_s28 = sadd.s32 1, %s7365_s26   ;;  %s7365_s26 = sphi %s7412_s26, %s9922_s26   ;;  %s7361_s25 = sphi %s7410_s25, %s9921_s25   ;;  %s7357_s24 = sphi %s7408_s24, %s9920_s24  }
   0x3   : > { %s173_s29 = ssub.s32 %s7365_s26, %s7421_s28  ;;  %s176_s30 = sadd.s32 1, %s7361_s25 }
   0x4   : > { %p174_p0 = scmp.eq.s32.totalorder %s173_s29, 0  ;;  %p186_p1 = scmp.ne.s32.totalorder %s7361_s25, %s7357_s24 }
   0x5   : > { %p187_p2 = scmp.eq.s32.totalorder %s7419_s27, 3  ;;  %p6362_p3 = scmp.ge.s32.totalorder %s7365_s26, 1 }
   0x6   : > { %s7428_s8 = scalar_select %p174_p0, %s7361_s25, %s176_s30  }
   0x7   : > { %p7430_p4 = por %p187_p2, %p186_p1  ;;  %p237_p5 = scmp.lt.s32.totalorder %s7365_s26, 5 }
   0x9   : > { %p238_p6 = pnand %p6362_p3, %p237_p5 }
   0xa   : > { %s265_s10 = sand.u32 (!%p238_p6), 1, %s7357_s24   ;;  %p268_p7 = scmp.lt.s32.totalorder (!%p238_p6), %s7419_s27, 3 }
   0xb   : > { %241 = sbr.rel (%p238_p6) target bundleno = 1058 (0x422), region = 48  ;;  %s6363_s11 = sshll.u32 (!%p238_p6), %s265_s10, 5 }
   0xc   : > { %s7441_s17 = scalar_lea.vmem (!%p238_p6), [#allocation5], %s6363_s11  ;;  %p6365_p8 = scmp.ne.s32.totalorder (!%p238_p6), %s7419_s27, 0 }
  0x12   : > { %s269_s12 = scalar_select %p268_p7, %s7419_s27, 3 }
  0x13   : > { %276 = sbr.rel (%p6365_p8) target bundleno = 26 (0x1a), region = 52  ;;  %v7367_v0 = vmov (!%p6365_p8), 0.0  }
  0x14   : > { %s7238_s13 = smul.u32 48, %s269_s12  ;;  %277 = vst [vmem:[#allocation2] sm:$0xff] (!%p6365_p8), %v7367_v0  ;;  %278 = vst [vmem:[#allocation2 + $0x8] sm:$0xff] (!%p6365_p8), %v7367_v0 }
  0x15   : > { %279 = vst [vmem:[#allocation2 + $0x10] sm:$0x3] (!%p6365_p8), %v7367_v0  ;;  %280 = vst [vmem:[#allocation2 + $0x18] sm:$0x3] (!%p6365_p8), %v7367_v0 }
  0x16   : > { %s7439_s16 = scalar_lea.vmem %s9911_s0, %s7238_s13  ;;  %281 = vst [vmem:[#allocation2 + $0x20] sm:$0xff] (!%p6365_p8), %v7367_v0  ;;  %282 = vst [vmem:[#allocation2 + $0x28] sm:$0xff] (!%p6365_p8), %v7367_v0 }
  0x17   : > { %283 = vst [vmem:[#allocation2 + $0x30] sm:$0x3] (!%p6365_p8), %v7367_v0  ;;  %284 = vst [vmem:[#allocation2 + $0x38] sm:$0x3] (!%p6365_p8), %v7367_v0 }
  0x18   : > { %285 = vst [vmem:[#allocation3] sm:$0xff] (!%p6365_p8), %v7367_v0  ;;  %286 = vst [vmem:[#allocation3 + $0x8] sm:$0xff] (!%p6365_p8), %v7367_v0 }
  0x19   : > { %287 = vst [vmem:[#allocation3 + $0x10] sm:$0xff] (!%p6365_p8), %v7367_v0  ;;  %288 = vst [vmem:[#allocation3 + $0x18] sm:$0xff] (!%p6365_p8), %v7367_v0 }
  0x1a PF: > { %v767_v1 = vld [vmem:[%s9913_s2] sm:$0xff]  ;;  %v768_v3 = vld [vmem:[%s9913_s2 + $0x8] sm:$0xff]  ;;  %vm313_vm0 = vcmask 1046528   ;;  %vm350_vm1 = vcmask 1045504   ;;  %s7157_s29 = sshll.u32 (%p7430_p4), %s7419_s27, 4 }
  0x1b   : > { %v771_v2 = vld [vmem:[%s9913_s2 + $0x20] sm:$0xff]  ;;  %v772_v5 = vld [vmem:[%s9913_s2 + $0x28] sm:$0xff]  ;;  %s6284_s11 = scalar_lea.vmem (%p7430_p4), %s9918_s7, %s7157_s29 }
  0x1c   : > { %v6367_v4 = vcombine.high %v767_v1, %v771_v2  ;;  %v6366_v6 = vcombine.low %v767_v1, %v771_v2  ;;  %v775_v7 = vld [vmem:[%s9913_s2 + $0x40] sm:$0xff]  ;;  %v6369_v9 = vcombine.high %v768_v3, %v772_v5  ;;  %v6368_v10 = vcombine.low %v768_v3, %v772_v5  ;;  %v776_v12 = vld [vmem:[%s9913_s2 + $0x48] sm:$0xff] }
  0x1d   : > { %v779_v8 = vld [vmem:[%s9913_s2 + $0x60] sm:$0xff]  ;;  %v780_v13 = vld [vmem:[%s9913_s2 + $0x68] sm:$0xff] }
  0x1e   : > { %v6375_v11 = vcombine.high %v775_v7, %v779_v8  ;;  %v783_v14 = vld [vmem:[%s9913_s2 + $0x80] sm:$0xff]  ;;  %3071 = vmatprep.subr.bf16.mxu0 %v6367_v4  ;;  %v6377_v15 = vcombine.high %v776_v12, %v780_v13  ;;  %v784_v17 = vld [vmem:[%s9913_s2 + $0x88] sm:$0xff]  ;;  %3200 = vmatprep.subr.bf16.mxu1 %v6369_v9  ;;  %v6374_v19 = vcombine.low %v775_v7, %v779_v8 }
  0x1f   : > { %v787_v16 = vld [vmem:[%s9913_s2 + $0xa0] sm:$0xff]  ;;  %v788_v18 = vld [vmem:[%s9913_s2 + $0xa8] sm:$0xff]  ;;  %3072 = vmatpush1.bf16.msra.mxu0 %v6366_v6  ;;  %3201 = vmatpush1.bf16.msra.mxu1 %v6368_v10  ;;  %v6376_v20 = vcombine.low %v776_v12, %v780_v13 }
  0x20   : > { %3073 = vmatprep.subr.bf16.mxu0 %v6375_v11  ;;  %v6383_v21 = vcombine.high %v783_v14, %v787_v16  ;;  %3202 = vmatprep.subr.bf16.mxu1 %v6377_v15  ;;  %v6385_v22 = vcombine.high %v784_v17, %v788_v18  ;;  %v791_v23 = vld [vmem:[%s9913_s2 + $0xc0] sm:$0xff]  ;;  %v792_v25 = vld [vmem:[%s9913_s2 + $0xc8] sm:$0xff]  ;;  %v6382_v27 = vcombine.low %v783_v14, %v787_v16 }
  0x21   : > { %v795_v24 = vld [vmem:[%s9913_s2 + $0xe0] sm:$0xff]  ;;  %v796_v26 = vld [vmem:[%s9913_s2 + $0xe8] sm:$0xff]  ;;  %v6384_v28 = vcombine.low %v784_v17, %v788_v18 }
  0x22   : > { %v6391_v29 = vcombine.high %v791_v23, %v795_v24  ;;  %v6393_v30 = vcombine.high %v792_v25, %v796_v26  ;;  %v799_v31 = vld [vmem:[%s9913_s2 + $0x100] sm:$0xff]  ;;  %v800_v33 = vld [vmem:[%s9913_s2 + $0x108] sm:$0xff]  ;;  %v6390_v35 = vcombine.low %v791_v23, %v795_v24  ;;  %v6392_v36 = vcombine.low %v792_v25, %v796_v26 }
  0x23   : > { %3074 = vmatpush1.bf16.msra.mxu0 %v6374_v19  ;;  %3203 = vmatpush1.bf16.msra.mxu1 %v6376_v20  ;;  %v803_v32 = vld [vmem:[%s9913_s2 + $0x120] sm:$0xff]  ;;  %v804_v34 = vld [vmem:[%s9913_s2 + $0x128] sm:$0xff] }
  0x24   : > { %3075 = vmatprep.subr.bf16.mxu0 %v6383_v21  ;;  %3204 = vmatprep.subr.bf16.mxu1 %v6385_v22  ;;  %v6399_v37 = vcombine.high %v799_v31, %v803_v32  ;;  %v6401_v38 = vcombine.high %v800_v33, %v804_v34  ;;  %v807_v39 = vld [vmem:[%s9913_s2 + $0x140] sm:$0xff]  ;;  %v808_v41 = vld [vmem:[%s9913_s2 + $0x148] sm:$0xff]  ;;  %v6398_v43 = vcombine.low %v799_v31, %v803_v32 }
  0x25   : > { %v811_v40 = vld [vmem:[%s9913_s2 + $0x160] sm:$0xff]  ;;  %v812_v42 = vld [vmem:[%s9913_s2 + $0x168] sm:$0xff]  ;;  %v6400_v44 = vcombine.low %v800_v33, %v804_v34 }
  0x26   : > { %v6407_v45 = vcombine.high %v807_v39, %v811_v40  ;;  %v6409_v46 = vcombine.high %v808_v41, %v812_v42  ;;  %v815_v47 = vld [vmem:[%s9913_s2 + $0x180] sm:$0xff]  ;;  %v816_v49 = vld [vmem:[%s9913_s2 + $0x188] sm:$0xff]  ;;  %v6406_v51 = vcombine.low %v807_v39, %v811_v40  ;;  %v6408_v52 = vcombine.low %v808_v41, %v812_v42 }
  0x27   : > { %3076 = vmatpush1.bf16.msra.mxu0 %v6382_v27  ;;  %3205 = vmatpush1.bf16.msra.mxu1 %v6384_v28  ;;  %v819_v48 = vld [vmem:[%s9913_s2 + $0x1a0] sm:$0xff]  ;;  %v820_v50 = vld [vmem:[%s9913_s2 + $0x1a8] sm:$0xff] }
  0x28   : > { %3077 = vmatprep.subr.bf16.mxu0 %v6391_v29  ;;  %3206 = vmatprep.subr.bf16.mxu1 %v6393_v30  ;;  %v6415_v53 = vcombine.high %v815_v47, %v819_v48  ;;  %v290_v54 = vld [vmem:[#allocation2 + $0x8] sm:$0xff]  ;;  %v6417_v56 = vcombine.high %v816_v49, %v820_v50  ;;  %v823_v57 = vld [vmem:[%s9913_s2 + $0x1c0] sm:$0xff]  ;;  %v6414_v62 = vcombine.low %v815_v47, %v819_v48 }
  0x29   : > { %v292_v55 = vld [vmem:[#allocation2 + $0x28] sm:$0xff]  ;;  %v827_v58 = vld [vmem:[%s9913_s2 + $0x1e0] sm:$0xff]  ;;  %v6416_v63 = vcombine.low %v816_v49, %v820_v50 }
  0x2a   : > { %v7534_v59 = vpack.c.bf16 %v292_v55, %v290_v54  ;;  %v824_v60 = vld [vmem:[%s9913_s2 + $0x1c8] sm:$0xff]  ;;  %v6423_v0 = vcombine.high %v823_v57, %v827_v58  ;;  %v831_v2 = vld [vmem:[%s9913_s2 + $0x200] sm:$0xff]  ;;  %v6422_v6 = vcombine.low %v823_v57, %v827_v58 }
  0x2b   : > { %3078 = vmatpush1.bf16.msra.mxu0 %v6390_v35  ;;  %3207 = vmatpush1.bf16.msra.mxu1 %v6392_v36  ;;  %v828_v61 = vld [vmem:[%s9913_s2 + $0x1e8] sm:$0xff]  ;;  %v835_v3 = vld [vmem:[%s9913_s2 + $0x220] sm:$0xff] }
  0x2c   : > { %3079 = vmatprep.subr.bf16.mxu0 %v6399_v37  ;;  %3208 = vmatprep.subr.bf16.mxu1 %v6401_v38  ;;  %v6425_v1 = vcombine.high %v824_v60, %v828_v61  ;;  %v832_v4 = vld [vmem:[%s9913_s2 + $0x208] sm:$0xff]  ;;  %v6424_v7 = vcombine.low %v824_v60, %v828_v61  ;;  %v6431_v8 = vcombine.high %v831_v2, %v835_v3  ;;  %v839_v10 = vld [vmem:[%s9913_s2 + $0x240] sm:$0xff] }
  0x2d   : > { %3103 = vmatprep.mubr.bf16.mxu0 %v7534_v59  ;;  %3232 = vmatprep.mubr.bf16.mxu1 %v7534_v59  ;;  %v836_v5 = vld [vmem:[%s9913_s2 + $0x228] sm:$0xff]  ;;  %v843_v11 = vld [vmem:[%s9913_s2 + $0x260] sm:$0xff]  ;;  %v6430_v14 = vcombine.low %v831_v2, %v835_v3  ;;  %v304_v3 = vld [vmem:[#allocation2 + $0x38] sm:$0x1] }
  0x2e   : > { %v6433_v9 = vcombine.high %v832_v4, %v836_v5  ;;  %v840_v12 = vld [vmem:[%s9913_s2 + $0x248] sm:$0xff]  ;;  %v6432_v15 = vcombine.low %v832_v4, %v836_v5  ;;  %v6439_v16 = vcombine.high %v839_v10, %v843_v11  ;;  %v847_v18 = vld [vmem:[%s9913_s2 + $0x280] sm:$0xff]  ;;  %v6438_v22 = vcombine.low %v839_v10, %v843_v11 }
  0x2f   : > { %3080 = vmatpush1.bf16.msra.mxu0 %v6398_v43  ;;  %3209 = vmatpush1.bf16.msra.mxu1 %v6400_v44  ;;  %v844_v13 = vld [vmem:[%s9913_s2 + $0x268] sm:$0xff]  ;;  %v851_v19 = vld [vmem:[%s9913_s2 + $0x2a0] sm:$0xff] }
  0x30   : > { %3081 = vmatprep.subr.bf16.mxu0 %v6407_v45  ;;  %3210 = vmatprep.subr.bf16.mxu1 %v6409_v46  ;;  %v6441_v17 = vcombine.high %v840_v12, %v844_v13  ;;  %v848_v20 = vld [vmem:[%s9913_s2 + $0x288] sm:$0xff]  ;;  %v6440_v23 = vcombine.low %v840_v12, %v844_v13  ;;  %v6447_v24 = vcombine.high %v847_v18, %v851_v19  ;;  %v855_v26 = vld [vmem:[%s9913_s2 + $0x2c0] sm:$0xff] }
  0x31   : > { %v852_v21 = vld [vmem:[%s9913_s2 + $0x2a8] sm:$0xff]  ;;  %v859_v27 = vld [vmem:[%s9913_s2 + $0x2e0] sm:$0xff]  ;;  %v6446_v30 = vcombine.low %v847_v18, %v851_v19 }
  0x32   : > { %v6449_v25 = vcombine.high %v848_v20, %v852_v21  ;;  %v856_v28 = vld [vmem:[%s9913_s2 + $0x2c8] sm:$0xff]  ;;  %v6448_v31 = vcombine.low %v848_v20, %v852_v21  ;;  %v6455_v32 = vcombine.high %v855_v26, %v859_v27  ;;  %v863_v34 = vld [vmem:[%s9913_s2 + $0x300] sm:$0xff]  ;;  %v6454_v38 = vcombine.low %v855_v26, %v859_v27 }
  0x33   : > { %3082 = vmatpush1.bf16.msra.mxu0 %v6406_v51  ;;  %3211 = vmatpush1.bf16.msra.mxu1 %v6408_v52  ;;  %v860_v29 = vld [vmem:[%s9913_s2 + $0x2e8] sm:$0xff]  ;;  %v867_v35 = vld [vmem:[%s9913_s2 + $0x320] sm:$0xff] }
  0x34   : > { %3083 = vmatprep.subr.bf16.mxu0 %v6415_v53  ;;  %3212 = vmatprep.subr.bf16.mxu1 %v6417_v56  ;;  %v6457_v33 = vcombine.high %v856_v28, %v860_v29  ;;  %v864_v36 = vld [vmem:[%s9913_s2 + $0x308] sm:$0xff]  ;;  %v6456_v39 = vcombine.low %v856_v28, %v860_v29  ;;  %v6463_v40 = vcombine.high %v863_v34, %v867_v35  ;;  %v871_v42 = vld [vmem:[%s9913_s2 + $0x340] sm:$0xff] }
  0x35   : > { %v868_v37 = vld [vmem:[%s9913_s2 + $0x328] sm:$0xff]  ;;  %v875_v43 = vld [vmem:[%s9913_s2 + $0x360] sm:$0xff]  ;;  %v6462_v46 = vcombine.low %v863_v34, %v867_v35 }
  0x36   : > { %v6465_v41 = vcombine.high %v864_v36, %v868_v37  ;;  %v872_v44 = vld [vmem:[%s9913_s2 + $0x348] sm:$0xff]  ;;  %v6464_v47 = vcombine.low %v864_v36, %v868_v37  ;;  %v6471_v48 = vcombine.high %v871_v42, %v875_v43  ;;  %v879_v50 = vld [vmem:[%s9913_s2 + $0x380] sm:$0xff]  ;;  %v6470_v54 = vcombine.low %v871_v42, %v875_v43 }
  0x37   : > { %3084 = vmatpush1.bf16.msra.mxu0 %v6414_v62  ;;  %3213 = vmatpush1.bf16.msra.mxu1 %v6416_v63  ;;  %v876_v45 = vld [vmem:[%s9913_s2 + $0x368] sm:$0xff]  ;;  %v883_v51 = vld [vmem:[%s9913_s2 + $0x3a0] sm:$0xff] }
  0x38   : > { %3085 = vmatprep.subr.bf16.mxu0 %v6423_v0  ;;  %3214 = vmatprep.subr.bf16.mxu1 %v6425_v1  ;;  %v6473_v49 = vcombine.high %v872_v44, %v876_v45  ;;  %v880_v52 = vld [vmem:[%s9913_s2 + $0x388] sm:$0xff]  ;;  %v6472_v55 = vcombine.low %v872_v44, %v876_v45  ;;  %v6479_v56 = vcombine.high %v879_v50, %v883_v51  ;;  %v887_v58 = vld [vmem:[%s9913_s2 + $0x3c0] sm:$0xff]  ;;  %v300_v1 = vld [vmem:[#allocation2 + $0x18] sm:$0x1] }
  0x39   : > { %v884_v53 = vld [vmem:[%s9913_s2 + $0x3a8] sm:$0xff]  ;;  %v891_v60 = vld [vmem:[%s9913_s2 + $0x3e0] sm:$0xff]  ;;  %v6478_v0 = vcombine.low %v879_v50, %v883_v51  ;;  %v318_v12 = vrot.slane %v300_v1, 1 }
  0x3a   : > { %v6481_v57 = vcombine.high %v880_v52, %v884_v53  ;;  %v888_v61 = vld [vmem:[%s9913_s2 + $0x3c8] sm:$0xff]  ;;  %v6480_v4 = vcombine.low %v880_v52, %v884_v53  ;;  %v6487_v5 = vcombine.high %v887_v58, %v891_v60  ;;  %v903_v21 = vld [vmem:[%s9913_s2 + $0x440] sm:$0xff] }
  0x3b   : > { %3086 = vmatpush1.bf16.msra.mxu0 %v6422_v6  ;;  %3215 = vmatpush1.bf16.msra.mxu1 %v6424_v7  ;;  %v892_v62 = vld [vmem:[%s9913_s2 + $0x3e8] sm:$0xff]  ;;  %v895_v7 = vld [vmem:[%s9913_s2 + $0x400] sm:$0xff] }
  0x3c   : > { %3087 = vmatprep.subr.bf16.mxu0 %v6431_v8  ;;  %3216 = vmatprep.subr.bf16.mxu1 %v6433_v9  ;;  %v298_v63 = vld [vmem:[#allocation2 + $0x8] sm:$0xfe]  ;;  %v6489_v6 = vcombine.high %v888_v61, %v892_v62  ;;  %v899_v8 = vld [vmem:[%s9913_s2 + $0x420] sm:$0xff]  ;;  %v6488_v18 = vcombine.low %v888_v61, %v892_v62 }
  0x3d   : > { %v302_v2 = vld [vmem:[#allocation2 + $0x28] sm:$0xfe]  ;;  %v317_v11 = vrot.slane %v298_v63, 1  ;;  %v6495_v19 = vcombine.high %v895_v7, %v899_v8  ;;  %v6494_v28 = vcombine.low %v895_v7, %v899_v8  ;;  %v923_v42 = vld [vmem:[%s9913_s2 + $0x4e0] sm:$0xff] }
  0x3e   : > { %v896_v9 = vld [vmem:[%s9913_s2 + $0x408] sm:$0xff]  ;;  %v323_v13 = vrot.slane %v302_v2, 1  ;;  %v931_v50 = vld [vmem:[%s9913_s2 + $0x520] sm:$0xff] }
  0x3f   : > { %3088 = vmatpush1.bf16.msra.mxu0 %v6430_v14  ;;  %3217 = vmatpush1.bf16.msra.mxu1 %v6432_v15  ;;  %v900_v10 = vld [vmem:[%s9913_s2 + $0x428] sm:$0xff]  ;;  %v324_v14 = vrot.slane %v304_v3, 1  ;;  %v6486_v15 = vcombine.low %v887_v58, %v891_v60  ;;  %v319_v26 = vsel %vm313_vm0, %v317_v11, %v318_v12  ;;  %v939_v58 = vld [vmem:[%s9913_s2 + $0x560] sm:$0xff] }
  0x40   : > { %3089 = vmatprep.subr.bf16.mxu0 %v6439_v16  ;;  %3218 = vmatprep.subr.bf16.mxu1 %v6441_v17  ;;  %v289_v16 = vld [vmem:[#allocation2] sm:$0xff]  ;;  %v6497_v20 = vcombine.high %v896_v9, %v900_v10  ;;  %v6496_v29 = vcombine.low %v896_v9, %v900_v10  ;;  %v912_v35 = vld [vmem:[%s9913_s2 + $0x488] sm:$0xff] }
  0x41   : > { %v291_v17 = vld [vmem:[#allocation2 + $0x20] sm:$0xff]  ;;  %v325_v27 = vsel %vm313_vm0, %v323_v13, %v324_v14  ;;  %v916_v36 = vld [vmem:[%s9913_s2 + $0x4a8] sm:$0xff] }
  0x42   : > { %v7674_v34 = vpack.c.bf16 %v325_v27, %v319_v26  ;;  %v920_v43 = vld [vmem:[%s9913_s2 + $0x4c8] sm:$0xff]  ;;  %v943_v2 = vld [vmem:[%s9913_s2 + $0x580] sm:$0xff] }
  0x43   : > { %3090 = vmatpush1.bf16.msra.mxu0 %v6438_v22  ;;  %3219 = vmatpush1.bf16.msra.mxu1 %v6440_v23  ;;  %v907_v22 = vld [vmem:[%s9913_s2 + $0x460] sm:$0xff]  ;;  %v7658_v23 = vpack.c.bf16 %v291_v17, %v289_v16  ;;  %v924_v44 = vld [vmem:[%s9913_s2 + $0x4e8] sm:$0xff] }
  0x44   : > { %3091 = vmatprep.subr.bf16.mxu0 %v6447_v24  ;;  %3220 = vmatprep.subr.bf16.mxu1 %v6449_v25  ;;  %v904_v24 = vld [vmem:[%s9913_s2 + $0x448] sm:$0xff]  ;;  %v6502_v37 = vcombine.low %v903_v21, %v907_v22  ;;  %v947_v3 = vld [vmem:[%s9913_s2 + $0x5a0] sm:$0xff] }
  0x45   : > { %v908_v25 = vld [vmem:[%s9913_s2 + $0x468] sm:$0xff]  ;;  %v6543_v8 = vcombine.high %v943_v2, %v947_v3  ;;  %v951_v10 = vld [vmem:[%s9913_s2 + $0x5c0] sm:$0xff]  ;;  %v6542_v14 = vcombine.low %v943_v2, %v947_v3 }
  0x46   : > { %v928_v51 = vld [vmem:[%s9913_s2 + $0x508] sm:$0xff]  ;;  %v955_v11 = vld [vmem:[%s9913_s2 + $0x5e0] sm:$0xff] }
  0x47   : > { %3092 = vmatpush1.bf16.msra.mxu0 %v6446_v30  ;;  %3221 = vmatpush1.bf16.msra.mxu1 %v6448_v31  ;;  %v6503_v30 = vcombine.high %v903_v21, %v907_v22  ;;  %v6505_v31 = vcombine.high %v904_v24, %v908_v25  ;;  %v932_v52 = vld [vmem:[%s9913_s2 + $0x528] sm:$0xff]  ;;  %v6551_v16 = vcombine.high %v951_v10, %v955_v11  ;;  %v967_v27 = vld [vmem:[%s9913_s2 + $0x640] sm:$0xff] }
  0x48   : > { %3093 = vmatprep.subr.bf16.mxu0 %v6455_v32  ;;  %3222 = vmatprep.subr.bf16.mxu1 %v6457_v33  ;;  %v911_v32 = vld [vmem:[%s9913_s2 + $0x480] sm:$0xff]  ;;  %v936_v60 = vld [vmem:[%s9913_s2 + $0x548] sm:$0xff]  ;;  %v6528_v63 = vcombine.low %v928_v51, %v932_v52  ;;  %v6550_v22 = vcombine.low %v951_v10, %v955_v11  ;;  %v299_v11 = vld [vmem:[#allocation2 + $0x10] sm:$0x1] }
  0x49   : > { %v915_v33 = vld [vmem:[%s9913_s2 + $0x4a0] sm:$0xff]  ;;  %v940_v61 = vld [vmem:[%s9913_s2 + $0x568] sm:$0xff] }
  0x4a   : > { %v6510_v45 = vcombine.low %v911_v32, %v915_v33  ;;  %v6537_v1 = vcombine.high %v936_v60, %v940_v61  ;;  %v6536_v7 = vcombine.low %v936_v60, %v940_v61  ;;  %v952_v12 = vld [vmem:[%s9913_s2 + $0x5c8] sm:$0xff]  ;;  %v999_v61 = vld [vmem:[%s9913_s2 + $0x740] sm:$0xff] }
  0x4b   : > { %3094 = vmatpush1.bf16.msra.mxu0 %v6454_v38  ;;  %3223 = vmatpush1.bf16.msra.mxu1 %v6456_v39  ;;  %v6504_v38 = vcombine.low %v904_v24, %v908_v25  ;;  %v6511_v39 = vcombine.high %v911_v32, %v915_v33  ;;  %v956_v13 = vld [vmem:[%s9913_s2 + $0x5e8] sm:$0xff] }
  0x4c   : > { %3095 = vmatprep.subr.bf16.mxu0 %v6463_v40  ;;  %3224 = vmatprep.subr.bf16.mxu1 %v6465_v41  ;;  %v6513_v40 = vcombine.high %v912_v35, %v916_v36  ;;  %v919_v41 = vld [vmem:[%s9913_s2 + $0x4c0] sm:$0xff]  ;;  %v6553_v17 = vcombine.high %v952_v12, %v956_v13  ;;  %v964_v21 = vld [vmem:[%s9913_s2 + $0x628] sm:$0xff]  ;;  %v6552_v24 = vcombine.low %v952_v12, %v956_v13  ;;  %v303_v13 = vld [vmem:[#allocation2 + $0x30] sm:$0x1] }
  0x4d   : > { %v6518_v53 = vcombine.low %v919_v41, %v923_v42  ;;  %v301_v12 = vld [vmem:[#allocation2 + $0x20] sm:$0xfe] }
  0x4f   : > { %3096 = vmatpush1.bf16.msra.mxu0 %v6462_v46  ;;  %3225 = vmatpush1.bf16.msra.mxu1 %v6464_v47  ;;  %v6512_v46 = vcombine.low %v912_v35, %v916_v36  ;;  %v6519_v47 = vcombine.high %v919_v41, %v923_v42  ;;  %v975_v36 = vld [vmem:[%s9913_s2 + $0x680] sm:$0xff] }
  0x50   : > { %3097 = vmatprep.subr.bf16.mxu0 %v6471_v48  ;;  %3226 = vmatprep.subr.bf16.mxu1 %v6473_v49  ;;  %v6521_v48 = vcombine.high %v920_v43, %v924_v44  ;;  %v927_v49 = vld [vmem:[%s9913_s2 + $0x500] sm:$0xff] }
  0x51   : > { %v6526_v62 = vcombine.low %v927_v49, %v931_v50 }
  0x53   : > { %3098 = vmatpush1.bf16.msra.mxu0 %v6470_v54  ;;  %3227 = vmatpush1.bf16.msra.mxu1 %v6472_v55  ;;  %v6520_v54 = vcombine.low %v920_v43, %v924_v44  ;;  %v6527_v55 = vcombine.high %v927_v49, %v931_v50  ;;  %v983_v44 = vld [vmem:[%s9913_s2 + $0x6c0] sm:$0xff] }
  0x54   : > { %3099 = vmatprep.subr.bf16.mxu0 %v6479_v56  ;;  %3228 = vmatprep.subr.bf16.mxu1 %v6481_v57  ;;  %v6529_v56 = vcombine.high %v928_v51, %v932_v52  ;;  %v935_v57 = vld [vmem:[%s9913_s2 + $0x540] sm:$0xff] }
  0x55   : > { %v991_v52 = vld [vmem:[%s9913_s2 + $0x700] sm:$0xff] }
  0x57   : > { %3100 = vmatpush1.bf16.msra.mxu0 %v6478_v0  ;;  %3229 = vmatpush1.bf16.msra.mxu1 %v6480_v4  ;;  %v6535_v0 = vcombine.high %v935_v57, %v939_v58  ;;  %v944_v4 = vld [vmem:[%s9913_s2 + $0x588] sm:$0xff] }
  0x58   : > { %3101 = vmatprep.subr.bf16.mxu0 %v6487_v5  ;;  %3230 = vmatprep.subr.bf16.mxu1 %v6489_v6  ;;  %v948_v5 = vld [vmem:[%s9913_s2 + $0x5a8] sm:$0xff]  ;;  %v6534_v6 = vcombine.low %v935_v57, %v939_v58 }
  0x59   : > { %v6545_v9 = vcombine.high %v944_v4, %v948_v5 }
  0x5b   : > { %3102 = vmatpush1.bf16.msra.mxu0 %v6486_v15  ;;  %3231 = vmatpush1.bf16.msra.mxu1 %v6488_v18  ;;  %v6544_v15 = vcombine.low %v944_v4, %v948_v5  ;;  %v959_v18 = vld [vmem:[%s9913_s2 + $0x600] sm:$0xff] }
  0x5c   : > { %3114 = vmatprep.subr.bf16.mxu0 %v6495_v19  ;;  %3243 = vmatprep.subr.bf16.mxu1 %v6497_v20  ;;  %v963_v19 = vld [vmem:[%s9913_s2 + $0x620] sm:$0xff]  ;;  %v960_v20 = vld [vmem:[%s9913_s2 + $0x608] sm:$0xff] }
  0x5d   : > { %v6559_v25 = vcombine.high %v959_v18, %v963_v19  ;;  %v6561_v26 = vcombine.high %v960_v20, %v964_v21  ;;  %v6560_v32 = vcombine.low %v960_v20, %v964_v21  ;;  %v1007_v5 = vld [vmem:[%s9913_s2 + $0x780] sm:$0xff]  ;;  %v1020_v20 = vld [vmem:[%s9913_s2 + $0x7e8] sm:$0xff] }
  0x5e   : > { %3104 = vmatmul.mubr.bf16.vlgmr.msra.gmra.mrb[0].mxu0 %v7658_v23  ;;  %3233 = vmatmul.mubr.bf16.vlgmr.msra.gmra.mrb[0].mxu1 %v7658_v23 }
  0x5f   : > { %3115 = vmatpush1.bf16.msra.mxu0 %v6494_v28  ;;  %3244 = vmatpush1.bf16.msra.mxu1 %v6496_v29  ;;  %v971_v28 = vld [vmem:[%s9913_s2 + $0x660] sm:$0xff]  ;;  %v968_v29 = vld [vmem:[%s9913_s2 + $0x648] sm:$0xff] }
  0x60   : > { %3116 = vmatprep.subr.bf16.mxu0 %v6503_v30  ;;  %3245 = vmatprep.subr.bf16.mxu1 %v6505_v31  ;;  %v972_v30 = vld [vmem:[%s9913_s2 + $0x668] sm:$0xff]  ;;  %v6558_v31 = vcombine.low %v959_v18, %v963_v19  ;;  %v6567_v33 = vcombine.high %v967_v27, %v971_v28  ;;  %v1019_v18 = vld [vmem:[%s9913_s2 + $0x7e0] sm:$0xff] }
  0x61   : > { %3146 = vmatprep.mubr.bf16.mxu0 %v7674_v34  ;;  %3275 = vmatprep.mubr.bf16.mxu1 %v7674_v34  ;;  %v6569_v35 = vcombine.high %v968_v29, %v972_v30  ;;  %v6568_v41 = vcombine.low %v968_v29, %v972_v30  ;;  %v1016_v19 = vld [vmem:[%s9913_s2 + $0x7c8] sm:$0xff]  ;;  %v341_v30 = vld [vmem:[#allocation2 + $0x38] sm:$0x3] }
  0x62   : > { %v339_v29 = vld [vmem:[#allocation2 + $0x28] sm:$0xfc] }
  0x63   : > { %3117 = vmatpush1.bf16.msra.mxu0 %v6502_v37  ;;  %3246 = vmatpush1.bf16.msra.mxu1 %v6504_v38  ;;  %v979_v37 = vld [vmem:[%s9913_s2 + $0x6a0] sm:$0xff]  ;;  %v976_v38 = vld [vmem:[%s9913_s2 + $0x688] sm:$0xff] }
  0x64   : > { %3118 = vmatprep.subr.bf16.mxu0 %v6511_v39  ;;  %3247 = vmatprep.subr.bf16.mxu1 %v6513_v40  ;;  %v980_v39 = vld [vmem:[%s9913_s2 + $0x6a8] sm:$0xff]  ;;  %v6566_v40 = vcombine.low %v967_v27, %v971_v28  ;;  %v6575_v42 = vcombine.high %v975_v36, %v979_v37  ;;  %v337_v28 = vld [vmem:[#allocation2 + $0x18] sm:$0x3] }
  0x65   : > { %v6577_v43 = vcombine.high %v976_v38, %v980_v39  ;;  %v6576_v49 = vcombine.low %v976_v38, %v980_v39  ;;  %v1028_v38 = vld [vmem:[%s9913_s2 + $0x828] sm:$0xff] }
  0x67   : > { %3119 = vmatpush1.bf16.msra.mxu0 %v6510_v45  ;;  %3248 = vmatpush1.bf16.msra.mxu1 %v6512_v46  ;;  %v987_v45 = vld [vmem:[%s9913_s2 + $0x6e0] sm:$0xff]  ;;  %v984_v46 = vld [vmem:[%s9913_s2 + $0x6c8] sm:$0xff] }
  0x68   : > { %3120 = vmatprep.subr.bf16.mxu0 %v6519_v47  ;;  %3249 = vmatprep.subr.bf16.mxu1 %v6521_v48  ;;  %v988_v47 = vld [vmem:[%s9913_s2 + $0x6e8] sm:$0xff]  ;;  %v6574_v48 = vcombine.low %v975_v36, %v979_v37  ;;  %v6583_v50 = vcombine.high %v983_v44, %v987_v45  ;;  %v1027_v36 = vld [vmem:[%s9913_s2 + $0x820] sm:$0xff] }
  0x69   : > { %v6585_v51 = vcombine.high %v984_v46, %v988_v47  ;;  %v6584_v57 = vcombine.low %v984_v46, %v988_v47  ;;  %v1024_v37 = vld [vmem:[%s9913_s2 + $0x808] sm:$0xff]  ;;  %v6616_v46 = vcombine.low %v1016_v19, %v1020_v20 }
  0x6b   : > { %3121 = vmatpush1.bf16.msra.mxu0 %v6518_v53  ;;  %3250 = vmatpush1.bf16.msra.mxu1 %v6520_v54  ;;  %v995_v53 = vld [vmem:[%s9913_s2 + $0x720] sm:$0xff]  ;;  %v992_v54 = vld [vmem:[%s9913_s2 + $0x708] sm:$0xff] }
  0x6c   : > { %3122 = vmatprep.subr.bf16.mxu0 %v6527_v55  ;;  %3251 = vmatprep.subr.bf16.mxu1 %v6529_v56  ;;  %v996_v55 = vld [vmem:[%s9913_s2 + $0x728] sm:$0xff]  ;;  %v6582_v56 = vcombine.low %v983_v44, %v987_v45  ;;  %v6591_v58 = vcombine.high %v991_v52, %v995_v53 }
  0x6d   : > { %v6593_v60 = vcombine.high %v992_v54, %v996_v55  ;;  %v6592_v2 = vcombine.low %v992_v54, %v996_v55 }
  0x6f   : > { %3123 = vmatpush1.bf16.msra.mxu0 %v6526_v62  ;;  %3252 = vmatpush1.bf16.msra.mxu1 %v6528_v63  ;;  %v1003_v62 = vld [vmem:[%s9913_s2 + $0x760] sm:$0xff]  ;;  %v1000_v63 = vld [vmem:[%s9913_s2 + $0x748] sm:$0xff] }
  0x70   : > { %3124 = vmatprep.subr.bf16.mxu0 %v6535_v0  ;;  %3253 = vmatprep.subr.bf16.mxu1 %v6537_v1  ;;  %v1004_v0 = vld [vmem:[%s9913_s2 + $0x768] sm:$0xff]  ;;  %v6590_v1 = vcombine.low %v991_v52, %v995_v53  ;;  %v6599_v3 = vcombine.high %v999_v61, %v1003_v62  ;;  %v6598_v10 = vcombine.low %v999_v61, %v1003_v62  ;;  %v1039_v61 = vld [vmem:[%s9913_s2 + $0x880] sm:$0xff] }
  0x71   : > { %v6601_v4 = vcombine.high %v1000_v63, %v1004_v0  ;;  %v1032_v52 = vld [vmem:[%s9913_s2 + $0x848] sm:$0xff]  ;;  %v1043_v62 = vld [vmem:[%s9913_s2 + $0x8a0] sm:$0xff] }
  0x72   : > { %v1036_v53 = vld [vmem:[%s9913_s2 + $0x868] sm:$0xff] }
  0x73   : > { %3125 = vmatpush1.bf16.msra.mxu0 %v6534_v6  ;;  %3254 = vmatpush1.bf16.msra.mxu1 %v6536_v7  ;;  %v1011_v6 = vld [vmem:[%s9913_s2 + $0x7a0] sm:$0xff]  ;;  %v1008_v7 = vld [vmem:[%s9913_s2 + $0x788] sm:$0xff] }
  0x74   : > { %3126 = vmatprep.subr.bf16.mxu0 %v6543_v8  ;;  %3255 = vmatprep.subr.bf16.mxu1 %v6545_v9  ;;  %v1012_v8 = vld [vmem:[%s9913_s2 + $0x7a8] sm:$0xff]  ;;  %v297_v9 = vld [vmem:[#allocation2] sm:$0xfe]  ;;  %v6606_v27 = vcombine.low %v1007_v5, %v1011_v6 }
  0x75   : > { %v314_v21 = vrot.slane %v297_v9, 1  ;;  %v1052_v9 = vld [vmem:[%s9913_s2 + $0x8e8] sm:$0xff] }
  0x77   : > { %3127 = vmatpush1.bf16.msra.mxu0 %v6542_v14  ;;  %3256 = vmatpush1.bf16.msra.mxu1 %v6544_v15  ;;  %v6600_v14 = vcombine.low %v1000_v63, %v1004_v0  ;;  %v6607_v15 = vcombine.high %v1007_v5, %v1011_v6  ;;  %v1040_v0 = vld [vmem:[%s9913_s2 + $0x888] sm:$0xff]  ;;  %v1047_v6 = vld [vmem:[%s9913_s2 + $0x8c0] sm:$0xff] }
  0x78   : > { %3128 = vmatprep.subr.bf16.mxu0 %v6551_v16  ;;  %3257 = vmatprep.subr.bf16.mxu1 %v6553_v17  ;;  %v1015_v16 = vld [vmem:[%s9913_s2 + $0x7c0] sm:$0xff]  ;;  %v6609_v17 = vcombine.high %v1008_v7, %v1012_v8 }
  0x7b   : > { %3129 = vmatpush1.bf16.msra.mxu0 %v6550_v22  ;;  %3258 = vmatpush1.bf16.msra.mxu1 %v6552_v24  ;;  %v315_v22 = vrot.slane %v299_v11, 1  ;;  %v320_v24 = vrot.slane %v301_v12, 1 }
  0x7c   : > { %3130 = vmatprep.subr.bf16.mxu0 %v6559_v25  ;;  %3259 = vmatprep.subr.bf16.mxu1 %v6561_v26  ;;  %v321_v25 = vrot.slane %v303_v13, 1  ;;  %v335_v26 = vld [vmem:[#allocation2 + $0x8] sm:$0xfc] }
  0x7d   : > { %v354_v39 = vrot.slane %v335_v26, 2  ;;  %v316_v44 = vsel %vm313_vm0, %v314_v21, %v315_v22  ;;  %v1063_v22 = vld [vmem:[%s9913_s2 + $0x940] sm:$0xff]  ;;  %v1068_v26 = vld [vmem:[%s9913_s2 + $0x968] sm:$0xff] }
  0x7e   : > { %v322_v45 = vsel %vm313_vm0, %v320_v24, %v321_v25  ;;  %v1067_v24 = vld [vmem:[%s9913_s2 + $0x960] sm:$0xff]  ;;  %v1064_v25 = vld [vmem:[%s9913_s2 + $0x948] sm:$0xff] }
  0x7f   : > { %3131 = vmatpush1.bf16.msra.mxu0 %v6558_v31  ;;  %3260 = vmatpush1.bf16.msra.mxu1 %v6560_v32  ;;  %v6608_v31 = vcombine.low %v1008_v7, %v1012_v8  ;;  %v6615_v32 = vcombine.high %v1015_v16, %v1019_v18  ;;  %v1051_v7 = vld [vmem:[%s9913_s2 + $0x8e0] sm:$0xff]  ;;  %v1048_v8 = vld [vmem:[%s9913_s2 + $0x8c8] sm:$0xff] }
  0x80   : > { %3132 = vmatprep.subr.bf16.mxu0 %v6567_v33  ;;  %3261 = vmatprep.subr.bf16.mxu1 %v6569_v35  ;;  %v6617_v33 = vcombine.high %v1016_v19, %v1020_v20  ;;  %v1023_v35 = vld [vmem:[%s9913_s2 + $0x800] sm:$0xff]  ;;  %v6647_v12 = vcombine.high %v1047_v6, %v1051_v7  ;;  %v6649_v13 = vcombine.high %v1048_v8, %v1052_v9 }
  0x81   : > { %v6623_v47 = vcombine.high %v1023_v35, %v1027_v36  ;;  %v6648_v19 = vcombine.low %v1048_v8, %v1052_v9 }
  0x83   : > { %3133 = vmatpush1.bf16.msra.mxu0 %v6566_v40  ;;  %3262 = vmatpush1.bf16.msra.mxu1 %v6568_v41  ;;  %v355_v40 = vrot.slane %v337_v28, 2  ;;  %v360_v41 = vrot.slane %v339_v29, 2  ;;  %v6663_v29 = vcombine.high %v1063_v22, %v1067_v24 }
  0x84   : > { %3134 = vmatprep.subr.bf16.mxu0 %v6575_v42  ;;  %3263 = vmatprep.subr.bf16.mxu1 %v6577_v43  ;;  %v361_v42 = vrot.slane %v341_v30, 2  ;;  %v6614_v43 = vcombine.low %v1015_v16, %v1019_v18  ;;  %v1056_v16 = vld [vmem:[%s9913_s2 + $0x908] sm:$0xff]  ;;  %v6646_v18 = vcombine.low %v1047_v6, %v1051_v7  ;;  %v6665_v30 = vcombine.high %v1064_v25, %v1068_v26 }
  0x85   : > { %v356_v54 = vsel %vm350_vm1, %v354_v39, %v355_v40  ;;  %v1079_v40 = vld [vmem:[%s9913_s2 + $0x9c0] sm:$0xff]  ;;  %v1108_v6 = vld [vmem:[%s9913_s2 + $0xaa8] sm:$0xff] }
  0x86   : > { %v362_v55 = vsel %vm350_vm1, %v360_v41, %v361_v42  ;;  %v1083_v41 = vld [vmem:[%s9913_s2 + $0x9e0] sm:$0xff]  ;;  %v1080_v42 = vld [vmem:[%s9913_s2 + $0x9c8] sm:$0xff] }
  0x87   : > { %3135 = vmatpush1.bf16.msra.mxu0 %v6574_v48  ;;  %3264 = vmatpush1.bf16.msra.mxu1 %v6576_v49  ;;  %v6625_v48 = vcombine.high %v1024_v37, %v1028_v38  ;;  %v1031_v49 = vld [vmem:[%s9913_s2 + $0x840] sm:$0xff]  ;;  %v7878_v63 = vpack.c.bf16 %v362_v55, %v356_v54 }
  0x88   : > { %3136 = vmatprep.subr.bf16.mxu0 %v6583_v50  ;;  %3265 = vmatprep.subr.bf16.mxu1 %v6585_v51  ;;  %v1035_v50 = vld [vmem:[%s9913_s2 + $0x860] sm:$0xff]  ;;  %v7862_v51 = vpack.c.bf16 %v322_v45, %v316_v44 }
  0x8b   : > { %3137 = vmatpush1.bf16.msra.mxu0 %v6582_v56  ;;  %3266 = vmatpush1.bf16.msra.mxu1 %v6584_v57  ;;  %v6622_v56 = vcombine.low %v1023_v35, %v1027_v36  ;;  %v6624_v57 = vcombine.low %v1024_v37, %v1028_v38  ;;  %v1076_v35 = vld [vmem:[%s9913_s2 + $0x9a8] sm:$0xff]  ;;  %v6662_v36 = vcombine.low %v1063_v22, %v1067_v24 }
  0x8c   : > { %3138 = vmatprep.subr.bf16.mxu0 %v6591_v58  ;;  %3267 = vmatprep.subr.bf16.mxu1 %v6593_v60  ;;  %v6631_v58 = vcombine.high %v1031_v49, %v1035_v50  ;;  %v6633_v60 = vcombine.high %v1032_v52, %v1036_v53  ;;  %v6664_v37 = vcombine.low %v1064_v25, %v1068_v26  ;;  %v1124_v22 = vld [vmem:[%s9913_s2 + $0xb28] sm:$0xff] }
  0x8f   : > { %3139 = vmatpush1.bf16.msra.mxu0 %v6590_v1  ;;  %3268 = vmatpush1.bf16.msra.mxu1 %v6592_v2  ;;  %v1044_v1 = vld [vmem:[%s9913_s2 + $0x8a8] sm:$0xff]  ;;  %v6630_v2 = vcombine.low %v1031_v49, %v1035_v50  ;;  %v1091_v49 = vld [vmem:[%s9913_s2 + $0xa20] sm:$0xff] }
  0x90   : > { %3140 = vmatprep.subr.bf16.mxu0 %v6599_v3  ;;  %3269 = vmatprep.subr.bf16.mxu1 %v6601_v4  ;;  %v6632_v3 = vcombine.low %v1032_v52, %v1036_v53  ;;  %v6639_v4 = vcombine.high %v1039_v61, %v1043_v62  ;;  %v6641_v5 = vcombine.high %v1040_v0, %v1044_v1  ;;  %v1088_v50 = vld [vmem:[%s9913_s2 + $0xa08] sm:$0xff] }
  0x91   : > { %v6640_v11 = vcombine.low %v1040_v0, %v1044_v1  ;;  %v1092_v52 = vld [vmem:[%s9913_s2 + $0xa28] sm:$0xff]  ;;  %v6678_v53 = vcombine.low %v1079_v40, %v1083_v41 }
  0x92   : > { %v6688_v0 = vcombine.low %v1088_v50, %v1092_v52 }
  0x93   : > { %3141 = vmatpush1.bf16.msra.mxu0 %v6598_v10  ;;  %3270 = vmatpush1.bf16.msra.mxu1 %v6600_v14  ;;  %v6638_v10 = vcombine.low %v1039_v61, %v1043_v62  ;;  %v1055_v14 = vld [vmem:[%s9913_s2 + $0x900] sm:$0xff]  ;;  %v1100_v61 = vld [vmem:[%s9913_s2 + $0xa68] sm:$0xff] }
  0x94   : > { %3142 = vmatprep.subr.bf16.mxu0 %v6607_v15  ;;  %3271 = vmatprep.subr.bf16.mxu1 %v6609_v17  ;;  %v1059_v15 = vld [vmem:[%s9913_s2 + $0x920] sm:$0xff]  ;;  %v1060_v17 = vld [vmem:[%s9913_s2 + $0x928] sm:$0xff] }
  0x95   : > { %v6655_v20 = vcombine.high %v1055_v14, %v1059_v15  ;;  %v6657_v21 = vcombine.high %v1056_v16, %v1060_v17  ;;  %v6656_v28 = vcombine.low %v1056_v16, %v1060_v17 }
  0x97   : > { %3143 = vmatpush1.bf16.msra.mxu0 %v6606_v27  ;;  %3272 = vmatpush1.bf16.msra.mxu1 %v6608_v31  ;;  %v6654_v27 = vcombine.low %v1055_v14, %v1059_v15  ;;  %v1071_v31 = vld [vmem:[%s9913_s2 + $0x980] sm:$0xff]  ;;  %v1116_v14 = vld [vmem:[%s9913_s2 + $0xae8] sm:$0xff] }
  0x98   : > { %3144 = vmatprep.subr.bf16.mxu0 %v6615_v32  ;;  %3273 = vmatprep.subr.bf16.mxu1 %v6617_v33  ;;  %v1075_v32 = vld [vmem:[%s9913_s2 + $0x9a0] sm:$0xff]  ;;  %v1072_v33 = vld [vmem:[%s9913_s2 + $0x988] sm:$0xff] }
  0x99   : > { %v6671_v38 = vcombine.high %v1071_v31, %v1075_v32  ;;  %v6673_v39 = vcombine.high %v1072_v33, %v1076_v35  ;;  %v6670_v44 = vcombine.low %v1071_v31, %v1075_v32  ;;  %v6672_v45 = vcombine.low %v1072_v33, %v1076_v35  ;;  %v1132_v31 = vld [vmem:[%s9913_s2 + $0xb68] sm:$0xff] }
  0x9b   : > { %3145 = vmatpush1.bf16.msra.mxu0 %v6614_v43  ;;  %3274 = vmatpush1.bf16.msra.mxu1 %v6616_v46  ;;  %v1084_v43 = vld [vmem:[%s9913_s2 + $0x9e8] sm:$0xff]  ;;  %v6679_v46 = vcombine.high %v1079_v40, %v1083_v41 }
  0x9c   : > { %3157 = vmatprep.subr.bf16.mxu0 %v6623_v47  ;;  %3286 = vmatprep.subr.bf16.mxu1 %v6625_v48  ;;  %v6681_v47 = vcombine.high %v1080_v42, %v1084_v43  ;;  %v1087_v48 = vld [vmem:[%s9913_s2 + $0xa00] sm:$0xff]  ;;  %v6680_v54 = vcombine.low %v1080_v42, %v1084_v43  ;;  %v1140_v40 = vld [vmem:[%s9913_s2 + $0xba8] sm:$0xff] }
  0x9d   : > { %v6687_v55 = vcombine.high %v1087_v48, %v1091_v49  ;;  %v6686_v62 = vcombine.low %v1087_v48, %v1091_v49  ;;  %v334_v42 = vld [vmem:[#allocation2] sm:$0xfc] }
  0x9e   : > { %3147 = vmatmul.mubr.bf16.vlgmr.msra.gmra.mrb[0].mxu0 %v7862_v51  ;;  %3276 = vmatmul.mubr.bf16.vlgmr.msra.gmra.mrb[0].mxu1 %v7862_v51  ;;  %v1143_v49 = vld [vmem:[%s9913_s2 + $0xbc0] sm:$0xff] }
  0x9f   : > { %3158 = vmatpush1.bf16.msra.mxu0 %v6622_v56  ;;  %3287 = vmatpush1.bf16.msra.mxu1 %v6624_v57  ;;  %v6689_v56 = vcombine.high %v1088_v50, %v1092_v52  ;;  %v1095_v57 = vld [vmem:[%s9913_s2 + $0xa40] sm:$0xff] }
  0xa0   : > { %3159 = vmatprep.subr.bf16.mxu0 %v6631_v58  ;;  %3288 = vmatprep.subr.bf16.mxu1 %v6633_v60  ;;  %v1099_v58 = vld [vmem:[%s9913_s2 + $0xa60] sm:$0xff]  ;;  %v1096_v60 = vld [vmem:[%s9913_s2 + $0xa48] sm:$0xff] }
  0xa1   : > { %3189 = vmatprep.mubr.bf16.mxu0 %v7878_v63  ;;  %3318 = vmatprep.mubr.bf16.mxu1 %v7878_v63  ;;  %v6695_v1 = vcombine.high %v1095_v57, %v1099_v58  ;;  %v6694_v7 = vcombine.low %v1095_v57, %v1099_v58  ;;  %v6696_v8 = vcombine.low %v1096_v60, %v1100_v61  ;;  %v1147_v50 = vld [vmem:[%s9913_s2 + $0xbe0] sm:$0xff] }
  0xa3   : > { %3160 = vmatpush1.bf16.msra.mxu0 %v6630_v2  ;;  %3289 = vmatpush1.bf16.msra.mxu1 %v6632_v3  ;;  %v6697_v2 = vcombine.high %v1096_v60, %v1100_v61  ;;  %v1103_v3 = vld [vmem:[%s9913_s2 + $0xa80] sm:$0xff]  ;;  %v6743_v61 = vcombine.high %v1143_v49, %v1147_v50 }
  0xa4   : > { %3161 = vmatprep.subr.bf16.mxu0 %v6639_v4  ;;  %3290 = vmatprep.subr.bf16.mxu1 %v6641_v5  ;;  %v1107_v4 = vld [vmem:[%s9913_s2 + $0xaa0] sm:$0xff]  ;;  %v1104_v5 = vld [vmem:[%s9913_s2 + $0xa88] sm:$0xff] }
  0xa5   : > { %v6703_v9 = vcombine.high %v1103_v3, %v1107_v4  ;;  %v6702_v15 = vcombine.low %v1103_v3, %v1107_v4  ;;  %v6704_v16 = vcombine.low %v1104_v5, %v1108_v6  ;;  %v774_v3 = vld [vmem:[%s9913_s2 + $0x38] sm:$0xff]  ;;  %v6742_v4 = vcombine.low %v1143_v49, %v1147_v50 }
  0xa7   : > { %3162 = vmatpush1.bf16.msra.mxu0 %v6638_v10  ;;  %3291 = vmatpush1.bf16.msra.mxu1 %v6640_v11  ;;  %v6705_v10 = vcombine.high %v1104_v5, %v1108_v6  ;;  %v1111_v11 = vld [vmem:[%s9913_s2 + $0xac0] sm:$0xff] }
  0xa8   : > { %3163 = vmatprep.subr.bf16.mxu0 %v6647_v12  ;;  %3292 = vmatprep.subr.bf16.mxu1 %v6649_v13  ;;  %v1115_v12 = vld [vmem:[%s9913_s2 + $0xae0] sm:$0xff]  ;;  %v1112_v13 = vld [vmem:[%s9913_s2 + $0xac8] sm:$0xff] }
  0xa9   : > { %v6711_v17 = vcombine.high %v1111_v11, %v1115_v12  ;;  %v6710_v24 = vcombine.low %v1111_v11, %v1115_v12  ;;  %v6712_v25 = vcombine.low %v1112_v13, %v1116_v14  ;;  %v781_v11 = vld [vmem:[%s9913_s2 + $0x70] sm:$0xff] }
  0xab   : > { %3164 = vmatpush1.bf16.msra.mxu0 %v6646_v18  ;;  %3293 = vmatpush1.bf16.msra.mxu1 %v6648_v19  ;;  %v6713_v18 = vcombine.high %v1112_v13, %v1116_v14  ;;  %v1119_v19 = vld [vmem:[%s9913_s2 + $0xb00] sm:$0xff]  ;;  %v778_v13 = vld [vmem:[%s9913_s2 + $0x58] sm:$0xff] }
  0xac   : > { %3165 = vmatprep.subr.bf16.mxu0 %v6655_v20  ;;  %3294 = vmatprep.subr.bf16.mxu1 %v6657_v21  ;;  %v1123_v20 = vld [vmem:[%s9913_s2 + $0xb20] sm:$0xff]  ;;  %v1120_v21 = vld [vmem:[%s9913_s2 + $0xb08] sm:$0xff]  ;;  %v782_v14 = vld [vmem:[%s9913_s2 + $0x78] sm:$0xff] }
  0xad   : > { %v6719_v26 = vcombine.high %v1119_v19, %v1123_v20  ;;  %v6718_v32 = vcombine.low %v1119_v19, %v1123_v20  ;;  %v6720_v33 = vcombine.low %v1120_v21, %v1124_v22  ;;  %v785_v19 = vld [vmem:[%s9913_s2 + $0x90] sm:$0xff] }
  0xae   : > { %v789_v20 = vld [vmem:[%s9913_s2 + $0xb0] sm:$0xff] }
  0xaf   : > { %3166 = vmatpush1.bf16.msra.mxu0 %v6654_v27  ;;  %3295 = vmatpush1.bf16.msra.mxu1 %v6656_v28  ;;  %v6721_v27 = vcombine.high %v1120_v21, %v1124_v22  ;;  %v1127_v28 = vld [vmem:[%s9913_s2 + $0xb40] sm:$0xff]  ;;  %v786_v21 = vld [vmem:[%s9913_s2 + $0x98] sm:$0xff] }
  0xb0   : > { %3167 = vmatprep.subr.bf16.mxu0 %v6663_v29  ;;  %3296 = vmatprep.subr.bf16.mxu1 %v6665_v30  ;;  %v1131_v29 = vld [vmem:[%s9913_s2 + $0xb60] sm:$0xff]  ;;  %v1128_v30 = vld [vmem:[%s9913_s2 + $0xb48] sm:$0xff]  ;;  %v790_v22 = vld [vmem:[%s9913_s2 + $0xb8] sm:$0xff] }
  0xb1   : > { %v6727_v35 = vcombine.high %v1127_v28, %v1131_v29  ;;  %v6726_v41 = vcombine.low %v1127_v28, %v1131_v29  ;;  %v6728_v43 = vcombine.low %v1128_v30, %v1132_v31  ;;  %v793_v28 = vld [vmem:[%s9913_s2 + $0xd0] sm:$0xff] }
  0xb2   : > { %v797_v29 = vld [vmem:[%s9913_s2 + $0xf0] sm:$0xff] }
  0xb3   : > { %3168 = vmatpush1.bf16.msra.mxu0 %v6662_v36  ;;  %3297 = vmatpush1.bf16.msra.mxu1 %v6664_v37  ;;  %v6729_v36 = vcombine.high %v1128_v30, %v1132_v31  ;;  %v1135_v37 = vld [vmem:[%s9913_s2 + $0xb80] sm:$0xff]  ;;  %v794_v30 = vld [vmem:[%s9913_s2 + $0xd8] sm:$0xff] }
  0xb4   : > { %3169 = vmatprep.subr.bf16.mxu0 %v6671_v38  ;;  %3298 = vmatprep.subr.bf16.mxu1 %v6673_v39  ;;  %v1139_v38 = vld [vmem:[%s9913_s2 + $0xba0] sm:$0xff]  ;;  %v1136_v39 = vld [vmem:[%s9913_s2 + $0xb88] sm:$0xff]  ;;  %v798_v31 = vld [vmem:[%s9913_s2 + $0xf8] sm:$0xff] }
  0xb5   : > { %v6737_v48 = vcombine.high %v1136_v39, %v1140_v40  ;;  %v6734_v52 = vcombine.low %v1135_v37, %v1139_v38  ;;  %v6736_v60 = vcombine.low %v1136_v39, %v1140_v40  ;;  %v806_v39 = vld [vmem:[%s9913_s2 + $0x138] sm:$0xff]  ;;  %v6394_v40 = vcombine.low %v793_v28, %v797_v29 }
  0xb7   : > { %3170 = vmatpush1.bf16.msra.mxu0 %v6670_v44  ;;  %3299 = vmatpush1.bf16.msra.mxu1 %v6672_v45  ;;  %v6735_v44 = vcombine.high %v1135_v37, %v1139_v38  ;;  %v336_v45 = vld [vmem:[#allocation2 + $0x10] sm:$0x3] }
  0xb8   : > { %3171 = vmatprep.subr.bf16.mxu0 %v6679_v46  ;;  %3300 = vmatprep.subr.bf16.mxu1 %v6681_v47  ;;  %v338_v46 = vld [vmem:[#allocation2 + $0x20] sm:$0xfc]  ;;  %v340_v47 = vld [vmem:[#allocation2 + $0x30] sm:$0x3] }
  0xb9   : > { %v357_v57 = vrot.slane %v338_v46, 2  ;;  %v358_v58 = vrot.slane %v340_v47, 2  ;;  %v801_v37 = vld [vmem:[%s9913_s2 + $0x110] sm:$0xff]  ;;  %v810_v46 = vld [vmem:[%s9913_s2 + $0x158] sm:$0xff] }
  0xba   : > { %v805_v38 = vld [vmem:[%s9913_s2 + $0x130] sm:$0xff]  ;;  %v814_v47 = vld [vmem:[%s9913_s2 + $0x178] sm:$0xff] }
  0xbb   : > { %3172 = vmatpush1.bf16.msra.mxu0 %v6678_v53  ;;  %3301 = vmatpush1.bf16.msra.mxu1 %v6680_v54  ;;  %v1144_v53 = vld [vmem:[%s9913_s2 + $0xbc8] sm:$0xff]  ;;  %v359_v6 = vsel %vm350_vm1, %v357_v57, %v358_v58  ;;  %v6412_v58 = vcombine.low %v810_v46, %v814_v47 }
  0xbc   : > { %3173 = vmatprep.subr.bf16.mxu0 %v6687_v55  ;;  %3302 = vmatprep.subr.bf16.mxu1 %v6689_v56  ;;  %v1148_v54 = vld [vmem:[%s9913_s2 + $0xbe8] sm:$0xff]  ;;  %v351_v55 = vrot.slane %v334_v42, 2  ;;  %v352_v56 = vrot.slane %v336_v45, 2  ;;  %v6403_v42 = vcombine.high %v801_v37, %v805_v38  ;;  %v813_v45 = vld [vmem:[%s9913_s2 + $0x170] sm:$0xff] }
  0xbe   : > { %v353_v5 = vsel %vm350_vm1, %v351_v55, %v352_v56  ;;  %v818_v55 = vld [vmem:[%s9913_s2 + $0x198] sm:$0xff] }
  0xbf   : > { %3174 = vmatpush1.bf16.msra.mxu0 %v6686_v62  ;;  %3303 = vmatpush1.bf16.msra.mxu1 %v6688_v0  ;;  %v6745_v62 = vcombine.high %v1144_v53, %v1148_v54  ;;  %v769_v0 = vld [vmem:[%s9913_s2 + $0x10] sm:$0xff]  ;;  %v8066_v12 = vpack.c.bf16 %v359_v6, %v353_v5  ;;  %v822_v56 = vld [vmem:[%s9913_s2 + $0x1b8] sm:$0xff] }
  0xc0   : > { %3175 = vmatprep.subr.bf16.mxu0 %v6695_v1  ;;  %3304 = vmatprep.subr.bf16.mxu1 %v6697_v2  ;;  %v773_v1 = vld [vmem:[%s9913_s2 + $0x30] sm:$0xff]  ;;  %v770_v2 = vld [vmem:[%s9913_s2 + $0x18] sm:$0xff] }
  0xc3   : > { %3176 = vmatpush1.bf16.msra.mxu0 %v6694_v7  ;;  %3305 = vmatpush1.bf16.msra.mxu1 %v6696_v8  ;;  %v6744_v7 = vcombine.low %v1144_v53, %v1148_v54  ;;  %v6371_v8 = vcombine.high %v769_v0, %v773_v1  ;;  %v817_v53 = vld [vmem:[%s9913_s2 + $0x190] sm:$0xff] }
  0xc4   : > { %3177 = vmatprep.subr.bf16.mxu0 %v6703_v9  ;;  %3306 = vmatprep.subr.bf16.mxu1 %v6705_v10  ;;  %v6373_v9 = vcombine.high %v770_v2, %v774_v3  ;;  %v777_v10 = vld [vmem:[%s9913_s2 + $0x50] sm:$0xff] }
  0xc5   : > { %v821_v54 = vld [vmem:[%s9913_s2 + $0x1b0] sm:$0xff] }
  0xc7   : > { %3178 = vmatpush1.bf16.msra.mxu0 %v6702_v15  ;;  %3307 = vmatpush1.bf16.msra.mxu1 %v6704_v16  ;;  %v6370_v15 = vcombine.low %v769_v0, %v773_v1  ;;  %v6372_v16 = vcombine.low %v770_v2, %v774_v3  ;;  %v829_v0 = vld [vmem:[%s9913_s2 + $0x1f0] sm:$0xff]  ;;  %v826_v1 = vld [vmem:[%s9913_s2 + $0x1d8] sm:$0xff]  ;;  %v6418_v3 = vcombine.low %v817_v53, %v821_v54 }
  0xc8   : > { %3179 = vmatprep.subr.bf16.mxu0 %v6711_v17  ;;  %3308 = vmatprep.subr.bf16.mxu1 %v6713_v18  ;;  %v6379_v17 = vcombine.high %v777_v10, %v781_v11  ;;  %v6381_v18 = vcombine.high %v778_v13, %v782_v14  ;;  %v830_v2 = vld [vmem:[%s9913_s2 + $0x1f8] sm:$0xff] }
  0xc9   : > { %v6429_v6 = vcombine.high %v826_v1, %v830_v2 }
  0xcb   : > { %3180 = vmatpush1.bf16.msra.mxu0 %v6710_v24  ;;  %3309 = vmatpush1.bf16.msra.mxu1 %v6712_v25  ;;  %v6378_v24 = vcombine.low %v777_v10, %v781_v11  ;;  %v6380_v25 = vcombine.low %v778_v13, %v782_v14  ;;  %v838_v10 = vld [vmem:[%s9913_s2 + $0x238] sm:$0xff]  ;;  %v6428_v13 = vcombine.low %v826_v1, %v830_v2 }
  0xcc   : > { %3181 = vmatprep.subr.bf16.mxu0 %v6719_v26  ;;  %3310 = vmatprep.subr.bf16.mxu1 %v6721_v27  ;;  %v6387_v26 = vcombine.high %v785_v19, %v789_v20  ;;  %v6389_v27 = vcombine.high %v786_v21, %v790_v22 }
  0xcf   : > { %3182 = vmatpush1.bf16.msra.mxu0 %v6718_v32  ;;  %3311 = vmatpush1.bf16.msra.mxu1 %v6720_v33  ;;  %v6386_v32 = vcombine.low %v785_v19, %v789_v20  ;;  %v6388_v33 = vcombine.low %v786_v21, %v790_v22  ;;  %v846_v19 = vld [vmem:[%s9913_s2 + $0x278] sm:$0xff] }
  0xd0   : > { %3183 = vmatprep.subr.bf16.mxu0 %v6727_v35  ;;  %3312 = vmatprep.subr.bf16.mxu1 %v6729_v36  ;;  %v6395_v35 = vcombine.high %v793_v28, %v797_v29  ;;  %v6397_v36 = vcombine.high %v794_v30, %v798_v31  ;;  %v854_v28 = vld [vmem:[%s9913_s2 + $0x2b8] sm:$0xff] }
  0xd3   : > { %3184 = vmatpush1.bf16.msra.mxu0 %v6726_v41  ;;  %3313 = vmatpush1.bf16.msra.mxu1 %v6728_v43  ;;  %v6396_v41 = vcombine.low %v794_v30, %v798_v31 }
  0xd4   : > { %3185 = vmatprep.subr.bf16.mxu0 %v6735_v44  ;;  %3314 = vmatprep.subr.bf16.mxu1 %v6737_v48  ;;  %v809_v44 = vld [vmem:[%s9913_s2 + $0x150] sm:$0xff]  ;;  %v6402_v48 = vcombine.low %v801_v37, %v805_v38  ;;  %v862_v37 = vld [vmem:[%s9913_s2 + $0x2f8] sm:$0xff] }
  0xd5   : > { %v6411_v50 = vcombine.high %v809_v44, %v813_v45  ;;  %v6410_v57 = vcombine.low %v809_v44, %v813_v45  ;;  %v870_v44 = vld [vmem:[%s9913_s2 + $0x338] sm:$0xff] }
  0xd7   : > { %3186 = vmatpush1.bf16.msra.mxu0 %v6734_v52  ;;  %3315 = vmatpush1.bf16.msra.mxu1 %v6736_v60  ;;  %v6413_v52 = vcombine.high %v810_v46, %v814_v47  ;;  %v6419_v60 = vcombine.high %v817_v53, %v821_v54  ;;  %v878_v53 = vld [vmem:[%s9913_s2 + $0x378] sm:$0xff] }
  0xd8   : > { %3187 = vmatprep.subr.bf16.mxu0 %v6743_v61  ;;  %3316 = vmatprep.subr.bf16.mxu1 %v6745_v62  ;;  %v6421_v61 = vcombine.high %v818_v55, %v822_v56  ;;  %v825_v62 = vld [vmem:[%s9913_s2 + $0x1d0] sm:$0xff] }
  0xd9   : > { %v6427_v5 = vcombine.high %v825_v62, %v829_v0  ;;  %v6426_v11 = vcombine.low %v825_v62, %v829_v0  ;;  %v886_v62 = vld [vmem:[%s9913_s2 + $0x3b8] sm:$0xff] }
  0xdb   : > { %3188 = vmatpush1.bf16.msra.mxu0 %v6742_v4  ;;  %3317 = vmatpush1.bf16.msra.mxu1 %v6744_v7  ;;  %v6420_v4 = vcombine.low %v818_v55, %v822_v56  ;;  %v833_v7 = vld [vmem:[%s9913_s2 + $0x210] sm:$0xff] }
  0xdc   : > { %3329 = vmatprep.subr.bf16.mxu0 %v6371_v8  ;;  %3458 = vmatprep.subr.bf16.mxu1 %v6373_v9  ;;  %v837_v8 = vld [vmem:[%s9913_s2 + $0x230] sm:$0xff]  ;;  %v834_v9 = vld [vmem:[%s9913_s2 + $0x218] sm:$0xff] }
  0xdd   : > { %v6435_v14 = vcombine.high %v833_v7, %v837_v8  ;;  %v6434_v20 = vcombine.low %v833_v7, %v837_v8  ;;  %v6436_v21 = vcombine.low %v834_v9, %v838_v10  ;;  %v894_v7 = vld [vmem:[%s9913_s2 + $0x3f8] sm:$0xff] }
  0xde   : > { %3190 = vmatmul.mubr.bf16.vlgmr.msra.gmra.mrb[0].mxu0 %v8066_v12  ;;  %3319 = vmatmul.mubr.bf16.vlgmr.msra.gmra.mrb[0].mxu1 %v8066_v12 }
  0xdf   : > { %3330 = vmatpush1.bf16.msra.mxu0 %v6370_v15  ;;  %3459 = vmatpush1.bf16.msra.mxu1 %v6372_v16  ;;  %v6437_v15 = vcombine.high %v834_v9, %v838_v10  ;;  %v841_v16 = vld [vmem:[%s9913_s2 + $0x250] sm:$0xff] }
  0xe0   : > { %3331 = vmatprep.subr.bf16.mxu0 %v6379_v17  ;;  %3460 = vmatprep.subr.bf16.mxu1 %v6381_v18  ;;  %v845_v17 = vld [vmem:[%s9913_s2 + $0x270] sm:$0xff]  ;;  %v842_v18 = vld [vmem:[%s9913_s2 + $0x258] sm:$0xff] }
  0xe1   : > { %3361 = vmatprep.mubr.bf16.mxu0 %v7534_v59  ;;  %3490 = vmatprep.mubr.bf16.mxu1 %v7534_v59  ;;  %v802_v59 = vld [vmem:[%s9913_s2 + $0x118] sm:$0xff]  ;;  %v6443_v22 = vcombine.high %v841_v16, %v845_v17  ;;  %v6442_v29 = vcombine.low %v841_v16, %v845_v17  ;;  %v6444_v30 = vcombine.low %v842_v18, %v846_v19 }
  0xe2   : > { %v6405_v43 = vcombine.high %v802_v59, %v806_v39  ;;  %v6404_v49 = vcombine.low %v802_v59, %v806_v39  ;;  %v902_v16 = vld [vmem:[%s9913_s2 + $0x438] sm:$0xff] }
  0xe3   : > { %3332 = vmatpush1.bf16.msra.mxu0 %v6378_v24  ;;  %3461 = vmatpush1.bf16.msra.mxu1 %v6380_v25  ;;  %v6445_v24 = vcombine.high %v842_v18, %v846_v19  ;;  %v849_v25 = vld [vmem:[%s9913_s2 + $0x290] sm:$0xff] }
  0xe4   : > { %3333 = vmatprep.subr.bf16.mxu0 %v6387_v26  ;;  %3462 = vmatprep.subr.bf16.mxu1 %v6389_v27  ;;  %v853_v26 = vld [vmem:[%s9913_s2 + $0x2b0] sm:$0xff]  ;;  %v850_v27 = vld [vmem:[%s9913_s2 + $0x298] sm:$0xff] }
  0xe5   : > { %v6451_v31 = vcombine.high %v849_v25, %v853_v26  ;;  %v6450_v38 = vcombine.low %v849_v25, %v853_v26  ;;  %v6452_v59 = vcombine.low %v850_v27, %v854_v28  ;;  %v910_v25 = vld [vmem:[%s9913_s2 + $0x478] sm:$0xff] }
  0xe7   : > { %3334 = vmatpush1.bf16.msra.mxu0 %v6386_v32  ;;  %3463 = vmatpush1.bf16.msra.mxu1 %v6388_v33  ;;  %v6453_v32 = vcombine.high %v850_v27, %v854_v28  ;;  %v857_v33 = vld [vmem:[%s9913_s2 + $0x2d0] sm:$0xff] }
  0xe8   : > { %3335 = vmatprep.subr.bf16.mxu0 %v6395_v35  ;;  %3464 = vmatprep.subr.bf16.mxu1 %v6397_v36  ;;  %v861_v35 = vld [vmem:[%s9913_s2 + $0x2f0] sm:$0xff]  ;;  %v858_v36 = vld [vmem:[%s9913_s2 + $0x2d8] sm:$0xff] }
  0xe9   : > { %v6459_v39 = vcombine.high %v857_v33, %v861_v35  ;;  %v6458_v45 = vcombine.low %v857_v33, %v861_v35  ;;  %v6460_v46 = vcombine.low %v858_v36, %v862_v37  ;;  %v918_v33 = vld [vmem:[%s9913_s2 + $0x4b8] sm:$0xff] }
  0xeb   : > { %3336 = vmatpush1.bf16.msra.mxu0 %v6394_v40  ;;  %3465 = vmatpush1.bf16.msra.mxu1 %v6396_v41  ;;  %v6461_v40 = vcombine.high %v858_v36, %v862_v37  ;;  %v865_v41 = vld [vmem:[%s9913_s2 + $0x310] sm:$0xff] }
  0xec   : > { %3337 = vmatprep.subr.bf16.mxu0 %v6403_v42  ;;  %3466 = vmatprep.subr.bf16.mxu1 %v6405_v43  ;;  %v869_v42 = vld [vmem:[%s9913_s2 + $0x330] sm:$0xff]  ;;  %v866_v43 = vld [vmem:[%s9913_s2 + $0x318] sm:$0xff] }
  0xed   : > { %v6467_v47 = vcombine.high %v865_v41, %v869_v42  ;;  %v6466_v54 = vcombine.low %v865_v41, %v869_v42  ;;  %v6468_v55 = vcombine.low %v866_v43, %v870_v44 }
  0xef   : > { %3338 = vmatpush1.bf16.msra.mxu0 %v6402_v48  ;;  %3467 = vmatpush1.bf16.msra.mxu1 %v6404_v49  ;;  %v6469_v48 = vcombine.high %v866_v43, %v870_v44  ;;  %v873_v49 = vld [vmem:[%s9913_s2 + $0x350] sm:$0xff] }
  0xf0   : > { %3339 = vmatprep.subr.bf16.mxu0 %v6411_v50  ;;  %3468 = vmatprep.subr.bf16.mxu1 %v6413_v52  ;;  %v877_v50 = vld [vmem:[%s9913_s2 + $0x370] sm:$0xff]  ;;  %v874_v52 = vld [vmem:[%s9913_s2 + $0x358] sm:$0xff] }
  0xf1   : > { %v6475_v56 = vcombine.high %v873_v49, %v877_v50  ;;  %v6474_v0 = vcombine.low %v873_v49, %v877_v50  ;;  %v6476_v1 = vcombine.low %v874_v52, %v878_v53 }
  0xf3   : > { %3340 = vmatpush1.bf16.msra.mxu0 %v6410_v57  ;;  %3469 = vmatpush1.bf16.msra.mxu1 %v6412_v58  ;;  %v6477_v57 = vcombine.high %v874_v52, %v878_v53  ;;  %v881_v58 = vld [vmem:[%s9913_s2 + $0x390] sm:$0xff] }
  0xf4   : > { %3341 = vmatprep.subr.bf16.mxu0 %v6419_v60  ;;  %3470 = vmatprep.subr.bf16.mxu1 %v6421_v61  ;;  %v885_v60 = vld [vmem:[%s9913_s2 + $0x3b0] sm:$0xff]  ;;  %v882_v61 = vld [vmem:[%s9913_s2 + $0x398] sm:$0xff] }
  0xf5   : > { %v6483_v2 = vcombine.high %v881_v58, %v885_v60  ;;  %v6482_v8 = vcombine.low %v881_v58, %v885_v60  ;;  %v6484_v9 = vcombine.low %v882_v61, %v886_v62  ;;  %v937_v53 = vld [vmem:[%s9913_s2 + $0x550] sm:$0xff] }
  0xf7   : > { %3342 = vmatpush1.bf16.msra.mxu0 %v6418_v3  ;;  %3471 = vmatpush1.bf16.msra.mxu1 %v6420_v4  ;;  %v6485_v3 = vcombine.high %v882_v61, %v886_v62  ;;  %v889_v4 = vld [vmem:[%s9913_s2 + $0x3d0] sm:$0xff] }
  0xf8   : > { %3343 = vmatprep.subr.bf16.mxu0 %v6427_v5  ;;  %3472 = vmatprep.subr.bf16.mxu1 %v6429_v6  ;;  %v893_v5 = vld [vmem:[%s9913_s2 + $0x3f0] sm:$0xff]  ;;  %v890_v6 = vld [vmem:[%s9913_s2 + $0x3d8] sm:$0xff] }
  0xf9   : > { %v6491_v10 = vcombine.high %v889_v4, %v893_v5  ;;  %v6490_v17 = vcombine.low %v889_v4, %v893_v5  ;;  %v6492_v18 = vcombine.low %v890_v6, %v894_v7  ;;  %v945_v62 = vld [vmem:[%s9913_s2 + $0x590] sm:$0xff] }
  0xfb   : > { %3344 = vmatpush1.bf16.msra.mxu0 %v6426_v11  ;;  %3473 = vmatpush1.bf16.msra.mxu1 %v6428_v13  ;;  %v6493_v11 = vcombine.high %v890_v6, %v894_v7  ;;  %v897_v13 = vld [vmem:[%s9913_s2 + $0x410] sm:$0xff] }
  0xfc   : > { %3345 = vmatprep.subr.bf16.mxu0 %v6435_v14  ;;  %3474 = vmatprep.subr.bf16.mxu1 %v6437_v15  ;;  %v901_v14 = vld [vmem:[%s9913_s2 + $0x430] sm:$0xff]  ;;  %v898_v15 = vld [vmem:[%s9913_s2 + $0x418] sm:$0xff] }
  0xfd   : > { %v6499_v19 = vcombine.high %v897_v13, %v901_v14  ;;  %v6498_v26 = vcombine.low %v897_v13, %v901_v14  ;;  %v6500_v27 = vcombine.low %v898_v15, %v902_v16  ;;  %v953_v7 = vld [vmem:[%s9913_s2 + $0x5d0] sm:$0xff] }
  0xff   : > { %3346 = vmatpush1.bf16.msra.mxu0 %v6434_v20  ;;  %3475 = vmatpush1.bf16.msra.mxu1 %v6436_v21  ;;  %v6501_v20 = vcombine.high %v898_v15, %v902_v16  ;;  %v905_v21 = vld [vmem:[%s9913_s2 + $0x450] sm:$0xff] }
 0x100   : > { %3347 = vmatprep.subr.bf16.mxu0 %v6443_v22  ;;  %3476 = vmatprep.subr.bf16.mxu1 %v6445_v24  ;;  %v909_v22 = vld [vmem:[%s9913_s2 + $0x470] sm:$0xff]  ;;  %v906_v24 = vld [vmem:[%s9913_s2 + $0x458] sm:$0xff] }
 0x101   : > { %v6507_v28 = vcombine.high %v905_v21, %v909_v22  ;;  %v6506_v35 = vcombine.low %v905_v21, %v909_v22  ;;  %v6508_v36 = vcombine.low %v906_v24, %v910_v25  ;;  %v961_v16 = vld [vmem:[%s9913_s2 + $0x610] sm:$0xff] }
 0x103   : > { %3348 = vmatpush1.bf16.msra.mxu0 %v6442_v29  ;;  %3477 = vmatpush1.bf16.msra.mxu1 %v6444_v30  ;;  %v6509_v29 = vcombine.high %v906_v24, %v910_v25  ;;  %v913_v30 = vld [vmem:[%s9913_s2 + $0x490] sm:$0xff] }
 0x104   : > { %3349 = vmatprep.subr.bf16.mxu0 %v6451_v31  ;;  %3478 = vmatprep.subr.bf16.mxu1 %v6453_v32  ;;  %v917_v31 = vld [vmem:[%s9913_s2 + $0x4b0] sm:$0xff]  ;;  %v914_v32 = vld [vmem:[%s9913_s2 + $0x498] sm:$0xff] }
 0x105   : > { %v6515_v37 = vcombine.high %v913_v30, %v917_v31  ;;  %v6514_v41 = vcombine.low %v913_v30, %v917_v31  ;;  %v6516_v42 = vcombine.low %v914_v32, %v918_v33  ;;  %v969_v25 = vld [vmem:[%s9913_s2 + $0x650] sm:$0xff] }
 0x107   : > { %3350 = vmatpush1.bf16.msra.mxu0 %v6450_v38  ;;  %3479 = vmatpush1.bf16.msra.mxu1 %v6452_v59  ;;  %v6517_v38 = vcombine.high %v914_v32, %v918_v33  ;;  %v921_v59 = vld [vmem:[%s9913_s2 + $0x4d0] sm:$0xff] }
 0x108   : > { %3351 = vmatprep.subr.bf16.mxu0 %v6459_v39  ;;  %3480 = vmatprep.subr.bf16.mxu1 %v6461_v40  ;;  %v925_v39 = vld [vmem:[%s9913_s2 + $0x4f0] sm:$0xff]  ;;  %v926_v40 = vld [vmem:[%s9913_s2 + $0x4f8] sm:$0xff] }
 0x109   : > { %v6523_v43 = vcombine.high %v921_v59, %v925_v39  ;;  %v977_v33 = vld [vmem:[%s9913_s2 + $0x690] sm:$0xff] }
 0x10b   : > { %3352 = vmatpush1.bf16.msra.mxu0 %v6458_v45  ;;  %3481 = vmatpush1.bf16.msra.mxu1 %v6460_v46  ;;  %v929_v45 = vld [vmem:[%s9913_s2 + $0x510] sm:$0xff] }
 0x10c   : > { %3353 = vmatprep.subr.bf16.mxu0 %v6467_v47  ;;  %3482 = vmatprep.subr.bf16.mxu1 %v6469_v48  ;;  %v933_v46 = vld [vmem:[%s9913_s2 + $0x530] sm:$0xff]  ;;  %v934_v47 = vld [vmem:[%s9913_s2 + $0x538] sm:$0xff]  ;;  %v6522_v48 = vcombine.low %v921_v59, %v925_v39 }
 0x10d   : > { %v6531_v50 = vcombine.high %v929_v45, %v933_v46 }
 0x10f   : > { %3354 = vmatpush1.bf16.msra.mxu0 %v6466_v54  ;;  %3483 = vmatpush1.bf16.msra.mxu1 %v6468_v55  ;;  %v941_v54 = vld [vmem:[%s9913_s2 + $0x570] sm:$0xff]  ;;  %v938_v55 = vld [vmem:[%s9913_s2 + $0x558] sm:$0xff] }
 0x110   : > { %3355 = vmatprep.subr.bf16.mxu0 %v6475_v56  ;;  %3484 = vmatprep.subr.bf16.mxu1 %v6477_v57  ;;  %v942_v56 = vld [vmem:[%s9913_s2 + $0x578] sm:$0xff]  ;;  %v6530_v57 = vcombine.low %v929_v45, %v933_v46  ;;  %v6539_v60 = vcombine.high %v937_v53, %v941_v54 }
 0x111   : > { %v6541_v61 = vcombine.high %v938_v55, %v942_v56  ;;  %v6540_v4 = vcombine.low %v938_v55, %v942_v56  ;;  %v1001_v56 = vld [vmem:[%s9913_s2 + $0x750] sm:$0xff] }
 0x113   : > { %3356 = vmatpush1.bf16.msra.mxu0 %v6474_v0  ;;  %3485 = vmatpush1.bf16.msra.mxu1 %v6476_v1  ;;  %v949_v0 = vld [vmem:[%s9913_s2 + $0x5b0] sm:$0xff]  ;;  %v946_v1 = vld [vmem:[%s9913_s2 + $0x598] sm:$0xff] }
 0x114   : > { %3357 = vmatprep.subr.bf16.mxu0 %v6483_v2  ;;  %3486 = vmatprep.subr.bf16.mxu1 %v6485_v3  ;;  %v950_v2 = vld [vmem:[%s9913_s2 + $0x5b8] sm:$0xff]  ;;  %v6538_v3 = vcombine.low %v937_v53, %v941_v54  ;;  %v6547_v5 = vcombine.high %v945_v62, %v949_v0 }
 0x115   : > { %v6549_v6 = vcombine.high %v946_v1, %v950_v2  ;;  %v6548_v13 = vcombine.low %v946_v1, %v950_v2  ;;  %v1009_v2 = vld [vmem:[%s9913_s2 + $0x790] sm:$0xff] }
 0x117   : > { %3358 = vmatpush1.bf16.msra.mxu0 %v6482_v8  ;;  %3487 = vmatpush1.bf16.msra.mxu1 %v6484_v9  ;;  %v957_v8 = vld [vmem:[%s9913_s2 + $0x5f0] sm:$0xff]  ;;  %v954_v9 = vld [vmem:[%s9913_s2 + $0x5d8] sm:$0xff] }
 0x118   : > { %3359 = vmatprep.subr.bf16.mxu0 %v6491_v10  ;;  %3488 = vmatprep.subr.bf16.mxu1 %v6493_v11  ;;  %v958_v10 = vld [vmem:[%s9913_s2 + $0x5f8] sm:$0xff]  ;;  %v6546_v11 = vcombine.low %v945_v62, %v949_v0  ;;  %v6555_v14 = vcombine.high %v953_v7, %v957_v8 }
 0x119   : > { %v6557_v15 = vcombine.high %v954_v9, %v958_v10  ;;  %v6556_v21 = vcombine.low %v954_v9, %v958_v10  ;;  %v1017_v10 = vld [vmem:[%s9913_s2 + $0x7d0] sm:$0xff] }
 0x11b   : > { %3360 = vmatpush1.bf16.msra.mxu0 %v6490_v17  ;;  %3489 = vmatpush1.bf16.msra.mxu1 %v6492_v18  ;;  %v965_v17 = vld [vmem:[%s9913_s2 + $0x630] sm:$0xff]  ;;  %v962_v18 = vld [vmem:[%s9913_s2 + $0x618] sm:$0xff] }
 0x11c   : > { %3372 = vmatprep.subr.bf16.mxu0 %v6499_v19  ;;  %3501 = vmatprep.subr.bf16.mxu1 %v6501_v20  ;;  %v966_v19 = vld [vmem:[%s9913_s2 + $0x638] sm:$0xff]  ;;  %v6554_v20 = vcombine.low %v953_v7, %v957_v8  ;;  %v6563_v22 = vcombine.high %v961_v16, %v965_v17 }
 0x11d   : > { %v6565_v24 = vcombine.high %v962_v18, %v966_v19  ;;  %v6564_v30 = vcombine.low %v962_v18, %v966_v19  ;;  %v1025_v19 = vld [vmem:[%s9913_s2 + $0x810] sm:$0xff] }
 0x11e   : > { %3362 = vmatmul.mubr.bf16.vlgmr.msra.gmra.mrb[4].mxu0 %v7658_v23  ;;  %3491 = vmatmul.mubr.bf16.vlgmr.msra.gmra.mrb[4].mxu1 %v7658_v23  ;;  %v922_v23 = vld [vmem:[%s9913_s2 + $0x4d8] sm:$0xff] }
 0x11f   : > { %3373 = vmatpush1.bf16.msra.mxu0 %v6498_v26  ;;  %3502 = vmatpush1.bf16.msra.mxu1 %v6500_v27  ;;  %v6525_v44 = vcombine.high %v922_v23, %v926_v40  ;;  %v6524_v49 = vcombine.low %v922_v23, %v926_v40  ;;  %v973_v26 = vld [vmem:[%s9913_s2 + $0x670] sm:$0xff]  ;;  %v970_v27 = vld [vmem:[%s9913_s2 + $0x658] sm:$0xff] }
 0x120   : > { %3374 = vmatprep.subr.bf16.mxu0 %v6507_v28  ;;  %3503 = vmatprep.subr.bf16.mxu1 %v6509_v29  ;;  %v974_v28 = vld [vmem:[%s9913_s2 + $0x678] sm:$0xff]  ;;  %v6562_v29 = vcombine.low %v961_v16, %v965_v17  ;;  %v6571_v31 = vcombine.high %v969_v25, %v973_v26  ;;  %v985_v40 = vld [vmem:[%s9913_s2 + $0x6d0] sm:$0xff] }
 0x121   : > { %3404 = vmatprep.mubr.bf16.mxu0 %v7674_v34  ;;  %3533 = vmatprep.mubr.bf16.mxu1 %v7674_v34  ;;  %v930_v34 = vld [vmem:[%s9913_s2 + $0x518] sm:$0xff]  ;;  %v6573_v32 = vcombine.high %v970_v27, %v974_v28  ;;  %v6572_v59 = vcombine.low %v970_v27, %v974_v28  ;;  %v1033_v28 = vld [vmem:[%s9913_s2 + $0x850] sm:$0xff] }
 0x122   : > { %v6533_v52 = vcombine.high %v930_v34, %v934_v47  ;;  %v6532_v58 = vcombine.low %v930_v34, %v934_v47  ;;  %v993_v47 = vld [vmem:[%s9913_s2 + $0x710] sm:$0xff] }
 0x123   : > { %3375 = vmatpush1.bf16.msra.mxu0 %v6506_v35  ;;  %3504 = vmatpush1.bf16.msra.mxu1 %v6508_v36  ;;  %v981_v35 = vld [vmem:[%s9913_s2 + $0x6b0] sm:$0xff]  ;;  %v978_v36 = vld [vmem:[%s9913_s2 + $0x698] sm:$0xff] }
 0x124   : > { %3376 = vmatprep.subr.bf16.mxu0 %v6515_v37  ;;  %3505 = vmatprep.subr.bf16.mxu1 %v6517_v38  ;;  %v982_v37 = vld [vmem:[%s9913_s2 + $0x6b8] sm:$0xff]  ;;  %v6570_v38 = vcombine.low %v969_v25, %v973_v26  ;;  %v6579_v39 = vcombine.high %v977_v33, %v981_v35 }
 0x125   : > { %v6581_v23 = vcombine.high %v978_v36, %v982_v37  ;;  %v6580_v45 = vcombine.low %v978_v36, %v982_v37  ;;  %v1041_v37 = vld [vmem:[%s9913_s2 + $0x890] sm:$0xff] }
 0x127   : > { %3377 = vmatpush1.bf16.msra.mxu0 %v6514_v41  ;;  %3506 = vmatpush1.bf16.msra.mxu1 %v6516_v42  ;;  %v989_v41 = vld [vmem:[%s9913_s2 + $0x6f0] sm:$0xff]  ;;  %v986_v42 = vld [vmem:[%s9913_s2 + $0x6d8] sm:$0xff] }
 0x128   : > { %3378 = vmatprep.subr.bf16.mxu0 %v6523_v43  ;;  %3507 = vmatprep.subr.bf16.mxu1 %v6525_v44  ;;  %v990_v43 = vld [vmem:[%s9913_s2 + $0x6f8] sm:$0xff]  ;;  %v6578_v44 = vcombine.low %v977_v33, %v981_v35  ;;  %v6587_v46 = vcombine.high %v985_v40, %v989_v41 }
 0x129   : > { %v6589_v34 = vcombine.high %v986_v42, %v990_v43  ;;  %v6588_v53 = vcombine.low %v986_v42, %v990_v43  ;;  %v1049_v43 = vld [vmem:[%s9913_s2 + $0x8d0] sm:$0xff] }
 0x12b   : > { %3379 = vmatpush1.bf16.msra.mxu0 %v6522_v48  ;;  %3508 = vmatpush1.bf16.msra.mxu1 %v6524_v49  ;;  %v997_v48 = vld [vmem:[%s9913_s2 + $0x730] sm:$0xff]  ;;  %v994_v49 = vld [vmem:[%s9913_s2 + $0x718] sm:$0xff] }
 0x12c   : > { %3380 = vmatprep.subr.bf16.mxu0 %v6531_v50  ;;  %3509 = vmatprep.subr.bf16.mxu1 %v6533_v52  ;;  %v998_v50 = vld [vmem:[%s9913_s2 + $0x738] sm:$0xff]  ;;  %v6586_v52 = vcombine.low %v985_v40, %v989_v41  ;;  %v6595_v54 = vcombine.high %v993_v47, %v997_v48 }
 0x12d   : > { %v6597_v55 = vcombine.high %v994_v49, %v998_v50  ;;  %v6596_v62 = vcombine.low %v994_v49, %v998_v50  ;;  %v1057_v49 = vld [vmem:[%s9913_s2 + $0x910] sm:$0xff] }
 0x12e   : > { %v1061_v50 = vld [vmem:[%s9913_s2 + $0x930] sm:$0xff] }
 0x12f   : > { %3381 = vmatpush1.bf16.msra.mxu0 %v6530_v57  ;;  %3510 = vmatpush1.bf16.msra.mxu1 %v6532_v58  ;;  %v1005_v57 = vld [vmem:[%s9913_s2 + $0x770] sm:$0xff]  ;;  %v1002_v58 = vld [vmem:[%s9913_s2 + $0x758] sm:$0xff] }
 0x130   : > { %3382 = vmatprep.subr.bf16.mxu0 %v6539_v60  ;;  %3511 = vmatprep.subr.bf16.mxu1 %v6541_v61  ;;  %v1006_v60 = vld [vmem:[%s9913_s2 + $0x778] sm:$0xff]  ;;  %v6594_v61 = vcombine.low %v993_v47, %v997_v48  ;;  %v6603_v0 = vcombine.high %v1001_v56, %v1005_v57 }
 0x131   : > { %v6605_v1 = vcombine.high %v1002_v58, %v1006_v60  ;;  %v6604_v7 = vcombine.low %v1002_v58, %v1006_v60  ;;  %v1069_v58 = vld [vmem:[%s9913_s2 + $0x970] sm:$0xff]  ;;  %v1066_v60 = vld [vmem:[%s9913_s2 + $0x958] sm:$0xff] }
 0x133   : > { %3383 = vmatpush1.bf16.msra.mxu0 %v6538_v3  ;;  %3512 = vmatpush1.bf16.msra.mxu1 %v6540_v4  ;;  %v1013_v3 = vld [vmem:[%s9913_s2 + $0x7b0] sm:$0xff]  ;;  %v1010_v4 = vld [vmem:[%s9913_s2 + $0x798] sm:$0xff] }
 0x134   : > { %3384 = vmatprep.subr.bf16.mxu0 %v6547_v5  ;;  %3513 = vmatprep.subr.bf16.mxu1 %v6549_v6  ;;  %v1014_v5 = vld [vmem:[%s9913_s2 + $0x7b8] sm:$0xff]  ;;  %v6602_v6 = vcombine.low %v1001_v56, %v1005_v57  ;;  %v6611_v8 = vcombine.high %v1009_v2, %v1013_v3  ;;  %v1065_v57 = vld [vmem:[%s9913_s2 + $0x950] sm:$0xff] }
 0x135   : > { %v6613_v9 = vcombine.high %v1010_v4, %v1014_v5  ;;  %v6612_v16 = vcombine.low %v1010_v4, %v1014_v5  ;;  %v1077_v4 = vld [vmem:[%s9913_s2 + $0x9b0] sm:$0xff]  ;;  %v1074_v5 = vld [vmem:[%s9913_s2 + $0x998] sm:$0xff] }
 0x137   : > { %3385 = vmatpush1.bf16.msra.mxu0 %v6546_v11  ;;  %3514 = vmatpush1.bf16.msra.mxu1 %v6548_v13  ;;  %v1021_v11 = vld [vmem:[%s9913_s2 + $0x7f0] sm:$0xff]  ;;  %v1018_v13 = vld [vmem:[%s9913_s2 + $0x7d8] sm:$0xff] }
 0x138   : > { %3386 = vmatprep.subr.bf16.mxu0 %v6555_v14  ;;  %3515 = vmatprep.subr.bf16.mxu1 %v6557_v15  ;;  %v1022_v14 = vld [vmem:[%s9913_s2 + $0x7f8] sm:$0xff]  ;;  %v6610_v15 = vcombine.low %v1009_v2, %v1013_v3  ;;  %v6619_v17 = vcombine.high %v1017_v10, %v1021_v11  ;;  %v1073_v3 = vld [vmem:[%s9913_s2 + $0x990] sm:$0xff] }
 0x139   : > { %v6621_v18 = vcombine.high %v1018_v13, %v1022_v14  ;;  %v6620_v25 = vcombine.low %v1018_v13, %v1022_v14  ;;  %v1085_v13 = vld [vmem:[%s9913_s2 + $0x9f0] sm:$0xff]  ;;  %v1082_v14 = vld [vmem:[%s9913_s2 + $0x9d8] sm:$0xff] }
 0x13b   : > { %3387 = vmatpush1.bf16.msra.mxu0 %v6554_v20  ;;  %3516 = vmatpush1.bf16.msra.mxu1 %v6556_v21  ;;  %v1029_v20 = vld [vmem:[%s9913_s2 + $0x830] sm:$0xff]  ;;  %v1026_v21 = vld [vmem:[%s9913_s2 + $0x818] sm:$0xff] }
 0x13c   : > { %3388 = vmatprep.subr.bf16.mxu0 %v6563_v22  ;;  %3517 = vmatprep.subr.bf16.mxu1 %v6565_v24  ;;  %v1030_v22 = vld [vmem:[%s9913_s2 + $0x838] sm:$0xff]  ;;  %v6618_v24 = vcombine.low %v1017_v10, %v1021_v11  ;;  %v6627_v26 = vcombine.high %v1025_v19, %v1029_v20  ;;  %v1081_v11 = vld [vmem:[%s9913_s2 + $0x9d0] sm:$0xff] }
 0x13d   : > { %v6629_v27 = vcombine.high %v1026_v21, %v1030_v22  ;;  %v6628_v33 = vcombine.low %v1026_v21, %v1030_v22  ;;  %v1093_v21 = vld [vmem:[%s9913_s2 + $0xa30] sm:$0xff]  ;;  %v1090_v22 = vld [vmem:[%s9913_s2 + $0xa18] sm:$0xff] }
 0x13f   : > { %3389 = vmatpush1.bf16.msra.mxu0 %v6562_v29  ;;  %3518 = vmatpush1.bf16.msra.mxu1 %v6564_v30  ;;  %v1037_v29 = vld [vmem:[%s9913_s2 + $0x870] sm:$0xff]  ;;  %v1034_v30 = vld [vmem:[%s9913_s2 + $0x858] sm:$0xff] }
 0x140   : > { %3390 = vmatprep.subr.bf16.mxu0 %v6571_v31  ;;  %3519 = vmatprep.subr.bf16.mxu1 %v6573_v32  ;;  %v1038_v31 = vld [vmem:[%s9913_s2 + $0x878] sm:$0xff]  ;;  %v6626_v32 = vcombine.low %v1025_v19, %v1029_v20  ;;  %v6635_v35 = vcombine.high %v1033_v28, %v1037_v29  ;;  %v1089_v20 = vld [vmem:[%s9913_s2 + $0xa10] sm:$0xff] }
 0x141   : > { %v6637_v36 = vcombine.high %v1034_v30, %v1038_v31  ;;  %v6636_v40 = vcombine.low %v1034_v30, %v1038_v31  ;;  %v1101_v30 = vld [vmem:[%s9913_s2 + $0xa70] sm:$0xff]  ;;  %v1098_v31 = vld [vmem:[%s9913_s2 + $0xa58] sm:$0xff] }
 0x143   : > { %3391 = vmatpush1.bf16.msra.mxu0 %v6570_v38  ;;  %3520 = vmatpush1.bf16.msra.mxu1 %v6572_v59  ;;  %v1045_v38 = vld [vmem:[%s9913_s2 + $0x8b0] sm:$0xff]  ;;  %v1042_v59 = vld [vmem:[%s9913_s2 + $0x898] sm:$0xff] }
 0x144   : > { %3392 = vmatprep.subr.bf16.mxu0 %v6579_v39  ;;  %3521 = vmatprep.subr.bf16.mxu1 %v6581_v23  ;;  %v1046_v39 = vld [vmem:[%s9913_s2 + $0x8b8] sm:$0xff]  ;;  %v6634_v23 = vcombine.low %v1033_v28, %v1037_v29  ;;  %v6643_v41 = vcombine.high %v1041_v37, %v1045_v38  ;;  %v1097_v29 = vld [vmem:[%s9913_s2 + $0xa50] sm:$0xff] }
 0x145   : > { %v6645_v42 = vcombine.high %v1042_v59, %v1046_v39 }
 0x147   : > { %3393 = vmatpush1.bf16.msra.mxu0 %v6578_v44  ;;  %3522 = vmatpush1.bf16.msra.mxu1 %v6580_v45  ;;  %v1053_v44 = vld [vmem:[%s9913_s2 + $0x8f0] sm:$0xff]  ;;  %v1054_v45 = vld [vmem:[%s9913_s2 + $0x8f8] sm:$0xff] }
 0x148   : > { %3394 = vmatprep.subr.bf16.mxu0 %v6587_v46  ;;  %3523 = vmatprep.subr.bf16.mxu1 %v6589_v34  ;;  %v6642_v46 = vcombine.low %v1041_v37, %v1045_v38  ;;  %v6644_v34 = vcombine.low %v1042_v59, %v1046_v39  ;;  %v6651_v47 = vcombine.high %v1049_v43, %v1053_v44  ;;  %v1105_v38 = vld [vmem:[%s9913_s2 + $0xa90] sm:$0xff]  ;;  %v1106_v39 = vld [vmem:[%s9913_s2 + $0xa98] sm:$0xff] }
 0x149   : > { %v1109_v59 = vld [vmem:[%s9913_s2 + $0xab0] sm:$0xff] }
 0x14b   : > { %3395 = vmatpush1.bf16.msra.mxu0 %v6586_v52  ;;  %3524 = vmatpush1.bf16.msra.mxu1 %v6588_v53  ;;  %v1062_v52 = vld [vmem:[%s9913_s2 + $0x938] sm:$0xff]  ;;  %v6650_v53 = vcombine.low %v1049_v43, %v1053_v44  ;;  %v1113_v44 = vld [vmem:[%s9913_s2 + $0xad0] sm:$0xff] }
 0x14c   : > { %3396 = vmatprep.subr.bf16.mxu0 %v6595_v54  ;;  %3525 = vmatprep.subr.bf16.mxu1 %v6597_v55  ;;  %v6659_v55 = vcombine.high %v1057_v49, %v1061_v50 }
 0x14f   : > { %3397 = vmatpush1.bf16.msra.mxu0 %v6594_v61  ;;  %3526 = vmatpush1.bf16.msra.mxu1 %v6596_v62  ;;  %v1070_v61 = vld [vmem:[%s9913_s2 + $0x978] sm:$0xff]  ;;  %v6658_v62 = vcombine.low %v1057_v49, %v1061_v50  ;;  %v1121_v50 = vld [vmem:[%s9913_s2 + $0xb10] sm:$0xff] }
 0x150   : > { %3398 = vmatprep.subr.bf16.mxu0 %v6603_v0  ;;  %3527 = vmatprep.subr.bf16.mxu1 %v6605_v1  ;;  %v6667_v1 = vcombine.high %v1065_v57, %v1069_v58  ;;  %v6669_v2 = vcombine.high %v1066_v60, %v1070_v61 }
 0x153   : > { %3399 = vmatpush1.bf16.msra.mxu0 %v6602_v6  ;;  %3528 = vmatpush1.bf16.msra.mxu1 %v6604_v7  ;;  %v1078_v6 = vld [vmem:[%s9913_s2 + $0x9b8] sm:$0xff]  ;;  %v6666_v7 = vcombine.low %v1065_v57, %v1069_v58  ;;  %v1129_v58 = vld [vmem:[%s9913_s2 + $0xb50] sm:$0xff] }
 0x154   : > { %3400 = vmatprep.subr.bf16.mxu0 %v6611_v8  ;;  %3529 = vmatprep.subr.bf16.mxu1 %v6613_v9  ;;  %v6668_v8 = vcombine.low %v1066_v60, %v1070_v61  ;;  %v6675_v9 = vcombine.high %v1073_v3, %v1077_v4  ;;  %v6677_v10 = vcombine.high %v1074_v5, %v1078_v6  ;;  %v1133_v60 = vld [vmem:[%s9913_s2 + $0xb70] sm:$0xff]  ;;  %v1130_v61 = vld [vmem:[%s9913_s2 + $0xb58] sm:$0xff] }
 0x157   : > { %3401 = vmatpush1.bf16.msra.mxu0 %v6610_v15  ;;  %3530 = vmatpush1.bf16.msra.mxu1 %v6612_v16  ;;  %v1086_v15 = vld [vmem:[%s9913_s2 + $0x9f8] sm:$0xff]  ;;  %v6674_v16 = vcombine.low %v1073_v3, %v1077_v4  ;;  %v1137_v4 = vld [vmem:[%s9913_s2 + $0xb90] sm:$0xff] }
 0x158   : > { %3402 = vmatprep.subr.bf16.mxu0 %v6619_v17  ;;  %3531 = vmatprep.subr.bf16.mxu1 %v6621_v18  ;;  %v6676_v17 = vcombine.low %v1074_v5, %v1078_v6  ;;  %v6683_v18 = vcombine.high %v1081_v11, %v1085_v13  ;;  %v6685_v19 = vcombine.high %v1082_v14, %v1086_v15  ;;  %v1141_v5 = vld [vmem:[%s9913_s2 + $0xbb0] sm:$0xff]  ;;  %v1138_v6 = vld [vmem:[%s9913_s2 + $0xb98] sm:$0xff] }
 0x15b   : > { %3403 = vmatpush1.bf16.msra.mxu0 %v6618_v24  ;;  %3532 = vmatpush1.bf16.msra.mxu1 %v6620_v25  ;;  %v1094_v24 = vld [vmem:[%s9913_s2 + $0xa38] sm:$0xff]  ;;  %v6682_v25 = vcombine.low %v1081_v11, %v1085_v13  ;;  %v1145_v13 = vld [vmem:[%s9913_s2 + $0xbd0] sm:$0xff] }
 0x15c   : > { %3415 = vmatprep.subr.bf16.mxu0 %v6627_v26  ;;  %3544 = vmatprep.subr.bf16.mxu1 %v6629_v27  ;;  %v6684_v26 = vcombine.low %v1082_v14, %v1086_v15  ;;  %v6691_v27 = vcombine.high %v1089_v20, %v1093_v21  ;;  %v6693_v28 = vcombine.high %v1090_v22, %v1094_v24  ;;  %v1149_v14 = vld [vmem:[%s9913_s2 + $0xbf0] sm:$0xff]  ;;  %v1146_v15 = vld [vmem:[%s9913_s2 + $0xbd8] sm:$0xff] }
 0x15e   : > { %3405 = vmatmul.mubr.bf16.vlgmr.msra.gmra.mrb[4].mxu0 %v7862_v51  ;;  %3534 = vmatmul.mubr.bf16.vlgmr.msra.gmra.mrb[4].mxu1 %v7862_v51  ;;  %v1050_v51 = vld [vmem:[%s9913_s2 + $0x8d8] sm:$0xff] }
 0x15f   : > { %3416 = vmatpush1.bf16.msra.mxu0 %v6626_v32  ;;  %3545 = vmatpush1.bf16.msra.mxu1 %v6628_v33  ;;  %v6653_v48 = vcombine.high %v1050_v51, %v1054_v45  ;;  %v6652_v54 = vcombine.low %v1050_v51, %v1054_v45  ;;  %v1102_v32 = vld [vmem:[%s9913_s2 + $0xa78] sm:$0xff]  ;;  %v6690_v33 = vcombine.low %v1089_v20, %v1093_v21  ;;  %v1117_v51 = vld [vmem:[%s9913_s2 + $0xaf0] sm:$0xff]  ;;  %v377_v21 = vld [vmem:[%s9912_s1] sm:$0xff] }
 0x160   : > { %3417 = vmatprep.subr.bf16.mxu0 %v6635_v35  ;;  %3546 = vmatprep.subr.bf16.mxu1 %v6637_v36  ;;  %v6692_v35 = vcombine.low %v1090_v22, %v1094_v24  ;;  %v6699_v36 = vcombine.high %v1097_v29, %v1101_v30  ;;  %v6701_v37 = vcombine.high %v1098_v31, %v1102_v32  ;;  %v1114_v45 = vld [vmem:[%s9913_s2 + $0xad8] sm:$0xff]  ;;  %v381_v22 = vld [vmem:[%s9912_s1 + $0x20] sm:$0xff]  ;;  %v378_v24 = vld [vmem:[%s9912_s1 + $0x8] sm:$0xff] }
 0x161   : > { %3447 = vmatprep.mubr.bf16.mxu0 %v7878_v63  ;;  %3576 = vmatprep.mubr.bf16.mxu1 %v7878_v63  ;;  %v1058_v63 = vld [vmem:[%s9913_s2 + $0x918] sm:$0xff] }
 0x162   : > { %v6661_v56 = vcombine.high %v1058_v63, %v1062_v52  ;;  %v6660_v0 = vcombine.low %v1058_v63, %v1062_v52  ;;  %v1125_v63 = vld [vmem:[%s9913_s2 + $0xb30] sm:$0xff]  ;;  %v1122_v52 = vld [vmem:[%s9913_s2 + $0xb18] sm:$0xff] }
 0x163   : > { %3418 = vmatpush1.bf16.msra.mxu0 %v6634_v23  ;;  %3547 = vmatpush1.bf16.msra.mxu1 %v6636_v40  ;;  %v1110_v23 = vld [vmem:[%s9913_s2 + $0xab8] sm:$0xff]  ;;  %v6698_v40 = vcombine.low %v1097_v29, %v1101_v30  ;;  %v385_v30 = vld [vmem:[%s9912_s1 + $0x40] sm:$0xff] }
 0x164   : > { %3419 = vmatprep.subr.bf16.mxu0 %v6643_v41  ;;  %3548 = vmatprep.subr.bf16.mxu1 %v6645_v42  ;;  %v6700_v41 = vcombine.low %v1098_v31, %v1102_v32  ;;  %v6707_v42 = vcombine.high %v1105_v38, %v1109_v59  ;;  %v6709_v43 = vcombine.high %v1106_v39, %v1110_v23  ;;  %v389_v31 = vld [vmem:[%s9912_s1 + $0x60] sm:$0xff]  ;;  %v386_v32 = vld [vmem:[%s9912_s1 + $0x48] sm:$0xff] }
 0x167   : > { %3420 = vmatpush1.bf16.msra.mxu0 %v6642_v46  ;;  %3549 = vmatpush1.bf16.msra.mxu1 %v6644_v34  ;;  %v1118_v46 = vld [vmem:[%s9913_s2 + $0xaf8] sm:$0xff]  ;;  %v6706_v34 = vcombine.low %v1105_v38, %v1109_v59  ;;  %v393_v59 = vld [vmem:[%s9912_s1 + $0x80] sm:$0xff] }
 0x168   : > { %3421 = vmatprep.subr.bf16.mxu0 %v6651_v47  ;;  %3550 = vmatprep.subr.bf16.mxu1 %v6653_v48  ;;  %v6708_v47 = vcombine.low %v1106_v39, %v1110_v23  ;;  %v6715_v48 = vcombine.high %v1113_v44, %v1117_v51  ;;  %v6717_v49 = vcombine.high %v1114_v45, %v1118_v46  ;;  %v397_v39 = vld [vmem:[%s9912_s1 + $0xa0] sm:$0xff] }
 0x169   : > { %v7264_v23 = vld [vmem:[%s7439_s16 + $0x4] ss:$24 sps:$4 sm:$0xff]  }
 0x16b   : > { %3422 = vmatpush1.bf16.msra.mxu0 %v6650_v53  ;;  %3551 = vmatpush1.bf16.msra.mxu1 %v6652_v54  ;;  %v1126_v53 = vld [vmem:[%s9913_s2 + $0xb38] sm:$0xff]  ;;  %v6714_v54 = vcombine.low %v1113_v44, %v1117_v51  ;;  %v6773_v44 = vcombine.high %v393_v59, %v397_v39 }
 0x16c   : > { %3423 = vmatprep.subr.bf16.mxu0 %v6659_v55  ;;  %3552 = vmatprep.subr.bf16.mxu1 %v6661_v56  ;;  %v6716_v55 = vcombine.low %v1114_v45, %v1118_v46  ;;  %v6723_v56 = vcombine.high %v1121_v50, %v1125_v63  ;;  %v6725_v57 = vcombine.high %v1122_v52, %v1126_v53  ;;  %v401_v45 = vld [vmem:[%s9912_s1 + $0xc0] sm:$0xff] }
 0x16d   : > { %v405_v46 = vld [vmem:[%s9912_s1 + $0xe0] sm:$0xff] }
 0x16f   : > { %3424 = vmatpush1.bf16.msra.mxu0 %v6658_v62  ;;  %3553 = vmatpush1.bf16.msra.mxu1 %v6660_v0  ;;  %v1134_v62 = vld [vmem:[%s9913_s2 + $0xb78] sm:$0xff]  ;;  %v6722_v0 = vcombine.low %v1121_v50, %v1125_v63  ;;  %v409_v63 = vld [vmem:[%s9912_s1 + $0x100] sm:$0xff] }
 0x170   : > { %3425 = vmatprep.subr.bf16.mxu0 %v6667_v1  ;;  %3554 = vmatprep.subr.bf16.mxu1 %v6669_v2  ;;  %v6724_v1 = vcombine.low %v1122_v52, %v1126_v53  ;;  %v6731_v2 = vcombine.high %v1129_v58, %v1133_v60  ;;  %v6733_v3 = vcombine.high %v1130_v61, %v1134_v62  ;;  %v413_v52 = vld [vmem:[%s9912_s1 + $0x120] sm:$0xff]  ;;  %v410_v53 = vld [vmem:[%s9912_s1 + $0x108] sm:$0xff] }
 0x173   : > { %3426 = vmatpush1.bf16.msra.mxu0 %v6666_v7  ;;  %3555 = vmatpush1.bf16.msra.mxu1 %v6668_v8  ;;  %v1142_v7 = vld [vmem:[%s9913_s2 + $0xbb8] sm:$0xff]  ;;  %v6730_v8 = vcombine.low %v1129_v58, %v1133_v60  ;;  %v417_v60 = vld [vmem:[%s9912_s1 + $0x140] sm:$0xff] }
 0x174   : > { %3427 = vmatprep.subr.bf16.mxu0 %v6675_v9  ;;  %3556 = vmatprep.subr.bf16.mxu1 %v6677_v10  ;;  %v6732_v9 = vcombine.low %v1130_v61, %v1134_v62  ;;  %v6739_v10 = vcombine.high %v1137_v4, %v1141_v5  ;;  %v6741_v11 = vcombine.high %v1138_v6, %v1142_v7  ;;  %v421_v61 = vld [vmem:[%s9912_s1 + $0x160] sm:$0xff]  ;;  %v418_v62 = vld [vmem:[%s9912_s1 + $0x148] sm:$0xff] }
 0x177   : > { %3428 = vmatpush1.bf16.msra.mxu0 %v6674_v16  ;;  %3557 = vmatpush1.bf16.msra.mxu1 %v6676_v17  ;;  %v1150_v16 = vld [vmem:[%s9913_s2 + $0xbf8] sm:$0xff]  ;;  %v6738_v17 = vcombine.low %v1137_v4, %v1141_v5  ;;  %v425_v5 = vld [vmem:[%s9912_s1 + $0x180] sm:$0xff] }
 0x178   : > { %3429 = vmatprep.subr.bf16.mxu0 %v6683_v18  ;;  %3558 = vmatprep.subr.bf16.mxu1 %v6685_v19  ;;  %v6740_v18 = vcombine.low %v1138_v6, %v1142_v7  ;;  %v6747_v19 = vcombine.high %v1145_v13, %v1149_v14  ;;  %v6749_v20 = vcombine.high %v1146_v15, %v1150_v16  ;;  %v429_v6 = vld [vmem:[%s9912_s1 + $0x1a0] sm:$0xff]  ;;  %v426_v7 = vld [vmem:[%s9912_s1 + $0x188] sm:$0xff] }
 0x17b   : > { %3430 = vmatpush1.bf16.msra.mxu0 %v6682_v25  ;;  %3559 = vmatpush1.bf16.msra.mxu1 %v6684_v26  ;;  %v382_v25 = vld [vmem:[%s9912_s1 + $0x28] sm:$0xff]  ;;  %v6746_v26 = vcombine.low %v1145_v13, %v1149_v14  ;;  %v433_v14 = vld [vmem:[%s9912_s1 + $0x1c0] sm:$0xff] }
 0x17c   : > { %3431 = vmatprep.subr.bf16.mxu0 %v6691_v27  ;;  %3560 = vmatprep.subr.bf16.mxu1 %v6693_v28  ;;  %v6748_v27 = vcombine.low %v1146_v15, %v1150_v16  ;;  %v6757_v28 = vcombine.high %v377_v21, %v381_v22  ;;  %v6759_v29 = vcombine.high %v378_v24, %v382_v25  ;;  %v437_v15 = vld [vmem:[%s9912_s1 + $0x1e0] sm:$0xff]  ;;  %v434_v16 = vld [vmem:[%s9912_s1 + $0x1c8] sm:$0xff] }
 0x17f   : > { %3432 = vmatpush1.bf16.msra.mxu0 %v6690_v33  ;;  %3561 = vmatpush1.bf16.msra.mxu1 %v6692_v35  ;;  %v390_v33 = vld [vmem:[%s9912_s1 + $0x68] sm:$0xff]  ;;  %v6756_v35 = vcombine.low %v377_v21, %v381_v22  ;;  %v441_v22 = vld [vmem:[%s9912_s1 + $0x200] sm:$0xff] }
 0x180   : > { %3433 = vmatprep.subr.bf16.mxu0 %v6699_v36  ;;  %3562 = vmatprep.subr.bf16.mxu1 %v6701_v37  ;;  %v6758_v36 = vcombine.low %v378_v24, %v382_v25  ;;  %v6765_v37 = vcombine.high %v385_v30, %v389_v31  ;;  %v6767_v38 = vcombine.high %v386_v32, %v390_v33  ;;  %v445_v24 = vld [vmem:[%s9912_s1 + $0x220] sm:$0xff]  ;;  %v442_v25 = vld [vmem:[%s9912_s1 + $0x208] sm:$0xff] }
 0x183   : > { %3434 = vmatpush1.bf16.msra.mxu0 %v6698_v40  ;;  %3563 = vmatpush1.bf16.msra.mxu1 %v6700_v41  ;;  %v394_v40 = vld [vmem:[%s9912_s1 + $0x88] sm:$0xff] }
 0x184   : > { %3435 = vmatprep.subr.bf16.mxu0 %v6707_v42  ;;  %3564 = vmatprep.subr.bf16.mxu1 %v6709_v43  ;;  %v398_v41 = vld [vmem:[%s9912_s1 + $0xa8] sm:$0xff]  ;;  %v6764_v42 = vcombine.low %v385_v30, %v389_v31  ;;  %v6766_v43 = vcombine.low %v386_v32, %v390_v33  ;;  %v449_v31 = vld [vmem:[%s9912_s1 + $0x240] sm:$0xff] }
 0x185   : > { %v6775_v51 = vcombine.high %v394_v40, %v398_v41  ;;  %v453_v32 = vld [vmem:[%s9912_s1 + $0x260] sm:$0xff]  ;;  %v450_v33 = vld [vmem:[%s9912_s1 + $0x248] sm:$0xff] }
 0x187   : > { %3436 = vmatpush1.bf16.msra.mxu0 %v6706_v34  ;;  %3565 = vmatpush1.bf16.msra.mxu1 %v6708_v47  ;;  %v406_v34 = vld [vmem:[%s9912_s1 + $0xe8] sm:$0xff]  ;;  %v6772_v47 = vcombine.low %v393_v59, %v397_v39  ;;  %v457_v39 = vld [vmem:[%s9912_s1 + $0x280] sm:$0xff] }
 0x188   : > { %3437 = vmatprep.subr.bf16.mxu0 %v6715_v48  ;;  %3566 = vmatprep.subr.bf16.mxu1 %v6717_v49  ;;  %v6774_v48 = vcombine.low %v394_v40, %v398_v41  ;;  %v6781_v49 = vcombine.high %v401_v45, %v405_v46  ;;  %v458_v40 = vld [vmem:[%s9912_s1 + $0x288] sm:$0xff] }
 0x189   : > { %v462_v41 = vld [vmem:[%s9912_s1 + $0x2a8] sm:$0xff] }
 0x18b   : > { %3438 = vmatpush1.bf16.msra.mxu0 %v6714_v54  ;;  %3567 = vmatpush1.bf16.msra.mxu1 %v6716_v55  ;;  %v414_v54 = vld [vmem:[%s9912_s1 + $0x128] sm:$0xff]  ;;  %v6780_v55 = vcombine.low %v401_v45, %v405_v46  ;;  %v465_v45 = vld [vmem:[%s9912_s1 + $0x2c0] sm:$0xff] }
 0x18c   : > { %3439 = vmatprep.subr.bf16.mxu0 %v6723_v56  ;;  %3568 = vmatprep.subr.bf16.mxu1 %v6725_v57  ;;  %v6789_v57 = vcombine.high %v409_v63, %v413_v52  ;;  %v6791_v58 = vcombine.high %v410_v53, %v414_v54  ;;  %v469_v46 = vld [vmem:[%s9912_s1 + $0x2e0] sm:$0xff] }
 0x18f   : > { %3440 = vmatpush1.bf16.msra.mxu0 %v6722_v0  ;;  %3569 = vmatpush1.bf16.msra.mxu1 %v6724_v1  ;;  %v422_v0 = vld [vmem:[%s9912_s1 + $0x168] sm:$0xff]  ;;  %v6788_v1 = vcombine.low %v409_v63, %v413_v52  ;;  %v473_v63 = vld [vmem:[%s9912_s1 + $0x300] sm:$0xff] }
 0x190   : > { %3441 = vmatprep.subr.bf16.mxu0 %v6731_v2  ;;  %3570 = vmatprep.subr.bf16.mxu1 %v6733_v3  ;;  %v6790_v2 = vcombine.low %v410_v53, %v414_v54  ;;  %v6797_v3 = vcombine.high %v417_v60, %v421_v61  ;;  %v6799_v4 = vcombine.high %v418_v62, %v422_v0  ;;  %v477_v52 = vld [vmem:[%s9912_s1 + $0x320] sm:$0xff]  ;;  %v474_v53 = vld [vmem:[%s9912_s1 + $0x308] sm:$0xff] }
 0x191   : > { %v478_v54 = vld [vmem:[%s9912_s1 + $0x328] sm:$0xff] }
 0x193   : > { %3442 = vmatpush1.bf16.msra.mxu0 %v6730_v8  ;;  %3571 = vmatpush1.bf16.msra.mxu1 %v6732_v9  ;;  %v430_v8 = vld [vmem:[%s9912_s1 + $0x1a8] sm:$0xff]  ;;  %v6796_v9 = vcombine.low %v417_v60, %v421_v61  ;;  %v481_v60 = vld [vmem:[%s9912_s1 + $0x340] sm:$0xff] }
 0x194   : > { %3443 = vmatprep.subr.bf16.mxu0 %v6739_v10  ;;  %3572 = vmatprep.subr.bf16.mxu1 %v6741_v11  ;;  %v6798_v10 = vcombine.low %v418_v62, %v422_v0  ;;  %v6805_v11 = vcombine.high %v425_v5, %v429_v6  ;;  %v6807_v13 = vcombine.high %v426_v7, %v430_v8  ;;  %v485_v61 = vld [vmem:[%s9912_s1 + $0x360] sm:$0xff]  ;;  %v482_v62 = vld [vmem:[%s9912_s1 + $0x348] sm:$0xff] }
 0x195   : > { %v486_v0 = vld [vmem:[%s9912_s1 + $0x368] sm:$0xff] }
 0x197   : > { %3444 = vmatpush1.bf16.msra.mxu0 %v6738_v17  ;;  %3573 = vmatpush1.bf16.msra.mxu1 %v6740_v18  ;;  %v438_v17 = vld [vmem:[%s9912_s1 + $0x1e8] sm:$0xff]  ;;  %v6804_v18 = vcombine.low %v425_v5, %v429_v6  ;;  %v489_v5 = vld [vmem:[%s9912_s1 + $0x380] sm:$0xff] }
 0x198   : > { %3445 = vmatprep.subr.bf16.mxu0 %v6747_v19  ;;  %3574 = vmatprep.subr.bf16.mxu1 %v6749_v20  ;;  %v6806_v19 = vcombine.low %v426_v7, %v430_v8  ;;  %v6813_v20 = vcombine.high %v433_v14, %v437_v15  ;;  %v6815_v21 = vcombine.high %v434_v16, %v438_v17  ;;  %v493_v6 = vld [vmem:[%s9912_s1 + $0x3a0] sm:$0xff]  ;;  %v490_v7 = vld [vmem:[%s9912_s1 + $0x388] sm:$0xff] }
 0x199   : > { %v494_v8 = vld [vmem:[%s9912_s1 + $0x3a8] sm:$0xff] }
 0x19b   : > { %3446 = vmatpush1.bf16.msra.mxu0 %v6746_v26  ;;  %3575 = vmatpush1.bf16.msra.mxu1 %v6748_v27  ;;  %v446_v26 = vld [vmem:[%s9912_s1 + $0x228] sm:$0xff]  ;;  %v6812_v27 = vcombine.low %v433_v14, %v437_v15  ;;  %v497_v14 = vld [vmem:[%s9912_s1 + $0x3c0] sm:$0xff] }
 0x19c   : > { %5537 = vmatprep.subr.bf16.mxu0 %v6757_v28  ;;  %5666 = vmatprep.subr.bf16.mxu1 %v6759_v29  ;;  %v6814_v28 = vcombine.low %v434_v16, %v438_v17  ;;  %v6821_v29 = vcombine.high %v441_v22, %v445_v24  ;;  %v6823_v30 = vcombine.high %v442_v25, %v446_v26  ;;  %v501_v15 = vld [vmem:[%s9912_s1 + $0x3e0] sm:$0xff]  ;;  %v498_v16 = vld [vmem:[%s9912_s1 + $0x3c8] sm:$0xff] }
 0x19d   : > { %v502_v17 = vld [vmem:[%s9912_s1 + $0x3e8] sm:$0xff] }
 0x19e   : > { %3448 = vmatmul.mubr.bf16.vlgmr.msra.gmra.mrb[4].mxu0 %v8066_v12  ;;  %3577 = vmatmul.mubr.bf16.vlgmr.msra.gmra.mrb[4].mxu1 %v8066_v12  ;;  %v402_v12 = vld [vmem:[%s9912_s1 + $0xc8] sm:$0xff] }
 0x19f   : > { %5538 = vmatpush1.bf16.msra.mxu0 %v6756_v35  ;;  %5667 = vmatpush1.bf16.msra.mxu1 %v6758_v36  ;;  %v6783_v50 = vcombine.high %v402_v12, %v406_v34  ;;  %v6782_v56 = vcombine.low %v402_v12, %v406_v34  ;;  %v454_v35 = vld [vmem:[%s9912_s1 + $0x268] sm:$0xff]  ;;  %v6820_v36 = vcombine.low %v441_v22, %v445_v24  ;;  %v505_v22 = vld [vmem:[%s9912_s1 + $0x400] sm:$0xff] }
 0x1a0   : > { %5539 = vmatprep.subr.bf16.mxu0 %v6765_v37  ;;  %5668 = vmatprep.subr.bf16.mxu1 %v6767_v38  ;;  %v6822_v37 = vcombine.low %v442_v25, %v446_v26  ;;  %v6829_v38 = vcombine.high %v449_v31, %v453_v32  ;;  %v6831_v59 = vcombine.high %v450_v33, %v454_v35  ;;  %v466_v12 = vld [vmem:[%s9912_s1 + $0x2c8] sm:$0xff]  ;;  %v509_v24 = vld [vmem:[%s9912_s1 + $0x420] sm:$0xff] }
 0x1a1   : > { %5569 = vmatprep.mubr.bf16.mxu0 %v7264_v23  ;;  %5698 = vmatprep.mubr.bf16.mxu1 %v7264_v23  ;;  %v461_v23 = vld [vmem:[%s9912_s1 + $0x2a0] sm:$0xff]  ;;  %v470_v34 = vld [vmem:[%s9912_s1 + $0x2e8] sm:$0xff] }
 0x1a2   : > { %v506_v25 = vld [vmem:[%s9912_s1 + $0x408] sm:$0xff] }
 0x1a3   : > { %5540 = vmatpush1.bf16.msra.mxu0 %v6764_v42  ;;  %5669 = vmatpush1.bf16.msra.mxu1 %v6766_v43  ;;  %v6828_v42 = vcombine.low %v449_v31, %v453_v32  ;;  %v6830_v43 = vcombine.low %v450_v33, %v454_v35  ;;  %v510_v26 = vld [vmem:[%s9912_s1 + $0x428] sm:$0xff]  ;;  %v513_v31 = vld [vmem:[%s9912_s1 + $0x440] sm:$0xff] }
 0x1a4   : > { %5541 = vmatprep.subr.bf16.mxu0 %v6773_v44  ;;  %5670 = vmatprep.subr.bf16.mxu1 %v6775_v51  ;;  %v6837_v44 = vcombine.high %v457_v39, %v461_v23  ;;  %v6839_v51 = vcombine.high %v458_v40, %v462_v41  ;;  %v517_v32 = vld [vmem:[%s9912_s1 + $0x460] sm:$0xff]  ;;  %v514_v35 = vld [vmem:[%s9912_s1 + $0x448] sm:$0xff] }
 0x1a5   : > { %v7266_v33 = vld [vmem:[%s7439_s16] ss:$24 sps:$4 sm:$0xff]  }
 0x1a7   : > { %5542 = vmatpush1.bf16.msra.mxu0 %v6772_v47  ;;  %5671 = vmatpush1.bf16.msra.mxu1 %v6774_v48  ;;  %v6836_v47 = vcombine.low %v457_v39, %v461_v23  ;;  %v6838_v48 = vcombine.low %v458_v40, %v462_v41  ;;  %v521_v23 = vld [vmem:[%s9912_s1 + $0x480] sm:$0xff] }
 0x1a8   : > { %5543 = vmatprep.subr.bf16.mxu0 %v6781_v49  ;;  %5672 = vmatprep.subr.bf16.mxu1 %v6783_v50  ;;  %v6845_v49 = vcombine.high %v465_v45, %v469_v46  ;;  %v6847_v50 = vcombine.high %v466_v12, %v470_v34  ;;  %v525_v40 = vld [vmem:[%s9912_s1 + $0x4a0] sm:$0xff] }
 0x1a9   : > { %v7267_v41 = vld [vmem:[%s7439_s16 + $0xc] ss:$24 sps:$4 sm:$0xff]  }
 0x1ab   : > { %5544 = vmatpush1.bf16.msra.mxu0 %v6780_v55  ;;  %5673 = vmatpush1.bf16.msra.mxu1 %v6782_v56  ;;  %v6844_v55 = vcombine.low %v465_v45, %v469_v46  ;;  %v6846_v56 = vcombine.low %v466_v12, %v470_v34  ;;  %v6901_v45 = vcombine.high %v521_v23, %v525_v40  ;;  %v529_v12 = vld [vmem:[%s9912_s1 + $0x4c0] sm:$0xff] }
 0x1ac   : > { %5545 = vmatprep.subr.bf16.mxu0 %v6789_v57  ;;  %5674 = vmatprep.subr.bf16.mxu1 %v6791_v58  ;;  %v6853_v57 = vcombine.high %v473_v63, %v477_v52  ;;  %v6855_v58 = vcombine.high %v474_v53, %v478_v54  ;;  %v533_v34 = vld [vmem:[%s9912_s1 + $0x4e0] sm:$0xff] }
 0x1af   : > { %5546 = vmatpush1.bf16.msra.mxu0 %v6788_v1  ;;  %5675 = vmatpush1.bf16.msra.mxu1 %v6790_v2  ;;  %v6852_v1 = vcombine.low %v473_v63, %v477_v52  ;;  %v6854_v2 = vcombine.low %v474_v53, %v478_v54  ;;  %v6909_v63 = vcombine.high %v529_v12, %v533_v34  ;;  %v537_v53 = vld [vmem:[%s9912_s1 + $0x500] sm:$0xff] }
 0x1b0   : > { %5547 = vmatprep.subr.bf16.mxu0 %v6797_v3  ;;  %5676 = vmatprep.subr.bf16.mxu1 %v6799_v4  ;;  %v6861_v3 = vcombine.high %v481_v60, %v485_v61  ;;  %v6863_v4 = vcombine.high %v482_v62, %v486_v0  ;;  %v541_v54 = vld [vmem:[%s9912_s1 + $0x520] sm:$0xff] }
 0x1b3   : > { %5548 = vmatpush1.bf16.msra.mxu0 %v6796_v9  ;;  %5677 = vmatpush1.bf16.msra.mxu1 %v6798_v10  ;;  %v6860_v9 = vcombine.low %v481_v60, %v485_v61  ;;  %v6862_v10 = vcombine.low %v482_v62, %v486_v0  ;;  %v6917_v60 = vcombine.high %v537_v53, %v541_v54  ;;  %v545_v62 = vld [vmem:[%s9912_s1 + $0x540] sm:$0xff] }
 0x1b4   : > { %5549 = vmatprep.subr.bf16.mxu0 %v6805_v11  ;;  %5678 = vmatprep.subr.bf16.mxu1 %v6807_v13  ;;  %v6869_v11 = vcombine.high %v489_v5, %v493_v6  ;;  %v6871_v13 = vcombine.high %v490_v7, %v494_v8  ;;  %v549_v0 = vld [vmem:[%s9912_s1 + $0x560] sm:$0xff] }
 0x1b7   : > { %5550 = vmatpush1.bf16.msra.mxu0 %v6804_v18  ;;  %5679 = vmatpush1.bf16.msra.mxu1 %v6806_v19  ;;  %v6868_v18 = vcombine.low %v489_v5, %v493_v6  ;;  %v6870_v19 = vcombine.low %v490_v7, %v494_v8  ;;  %v6925_v5 = vcombine.high %v545_v62, %v549_v0  ;;  %v553_v7 = vld [vmem:[%s9912_s1 + $0x580] sm:$0xff] }
 0x1b8   : > { %5551 = vmatprep.subr.bf16.mxu0 %v6813_v20  ;;  %5680 = vmatprep.subr.bf16.mxu1 %v6815_v21  ;;  %v6877_v20 = vcombine.high %v497_v14, %v501_v15  ;;  %v6879_v21 = vcombine.high %v498_v16, %v502_v17  ;;  %v557_v8 = vld [vmem:[%s9912_s1 + $0x5a0] sm:$0xff] }
 0x1bb   : > { %5552 = vmatpush1.bf16.msra.mxu0 %v6812_v27  ;;  %5681 = vmatpush1.bf16.msra.mxu1 %v6814_v28  ;;  %v6876_v27 = vcombine.low %v497_v14, %v501_v15  ;;  %v6878_v28 = vcombine.low %v498_v16, %v502_v17  ;;  %v6933_v14 = vcombine.high %v553_v7, %v557_v8  ;;  %v561_v16 = vld [vmem:[%s9912_s1 + $0x5c0] sm:$0xff] }
 0x1bc   : > { %5553 = vmatprep.subr.bf16.mxu0 %v6821_v29  ;;  %5682 = vmatprep.subr.bf16.mxu1 %v6823_v30  ;;  %v6885_v29 = vcombine.high %v505_v22, %v509_v24  ;;  %v6887_v30 = vcombine.high %v506_v25, %v510_v26  ;;  %v565_v17 = vld [vmem:[%s9912_s1 + $0x5e0] sm:$0xff] }
 0x1bf   : > { %5554 = vmatpush1.bf16.msra.mxu0 %v6820_v36  ;;  %5683 = vmatpush1.bf16.msra.mxu1 %v6822_v37  ;;  %v518_v36 = vld [vmem:[%s9912_s1 + $0x468] sm:$0xff]  ;;  %v6884_v37 = vcombine.low %v505_v22, %v509_v24  ;;  %v6941_v22 = vcombine.high %v561_v16, %v565_v17 }
 0x1c0   : > { %5555 = vmatprep.subr.bf16.mxu0 %v6829_v38  ;;  %5684 = vmatprep.subr.bf16.mxu1 %v6831_v59  ;;  %v6886_v38 = vcombine.low %v506_v25, %v510_v26  ;;  %v6893_v59 = vcombine.high %v513_v31, %v517_v32  ;;  %v6895_v39 = vcombine.high %v514_v35, %v518_v36  ;;  %v569_v25 = vld [vmem:[%s9912_s1 + $0x600] sm:$0xff] }
 0x1c1   : > { %v573_v26 = vld [vmem:[%s9912_s1 + $0x620] sm:$0xff] }
 0x1c3   : > { %5556 = vmatpush1.bf16.msra.mxu0 %v6828_v42  ;;  %5685 = vmatpush1.bf16.msra.mxu1 %v6830_v43  ;;  %v522_v42 = vld [vmem:[%s9912_s1 + $0x488] sm:$0xff] }
 0x1c4   : > { %5557 = vmatprep.subr.bf16.mxu0 %v6837_v44  ;;  %5686 = vmatprep.subr.bf16.mxu1 %v6839_v51  ;;  %v526_v43 = vld [vmem:[%s9912_s1 + $0x4a8] sm:$0xff]  ;;  %v6892_v44 = vcombine.low %v513_v31, %v517_v32  ;;  %v6894_v51 = vcombine.low %v514_v35, %v518_v36  ;;  %v6949_v31 = vcombine.high %v569_v25, %v573_v26  ;;  %v581_v35 = vld [vmem:[%s9912_s1 + $0x660] sm:$0xff] }
 0x1c5   : > { %v6903_v46 = vcombine.high %v522_v42, %v526_v43  ;;  %v578_v36 = vld [vmem:[%s9912_s1 + $0x648] sm:$0xff] }
 0x1c7   : > { %5558 = vmatpush1.bf16.msra.mxu0 %v6836_v47  ;;  %5687 = vmatpush1.bf16.msra.mxu1 %v6838_v48  ;;  %v530_v47 = vld [vmem:[%s9912_s1 + $0x4c8] sm:$0xff] }
 0x1c8   : > { %5559 = vmatprep.subr.bf16.mxu0 %v6845_v49  ;;  %5688 = vmatprep.subr.bf16.mxu1 %v6847_v50  ;;  %v534_v48 = vld [vmem:[%s9912_s1 + $0x4e8] sm:$0xff]  ;;  %v6900_v49 = vcombine.low %v521_v23, %v525_v40  ;;  %v6902_v50 = vcombine.low %v522_v42, %v526_v43  ;;  %v585_v40 = vld [vmem:[%s9912_s1 + $0x680] sm:$0xff] }
 0x1c9   : > { %v6911_v52 = vcombine.high %v530_v47, %v534_v48  ;;  %v586_v42 = vld [vmem:[%s9912_s1 + $0x688] sm:$0xff] }
 0x1ca   : > { %v590_v43 = vld [vmem:[%s9912_s1 + $0x6a8] sm:$0xff] }
 0x1cb   : > { %5560 = vmatpush1.bf16.msra.mxu0 %v6844_v55  ;;  %5689 = vmatpush1.bf16.msra.mxu1 %v6846_v56  ;;  %v538_v55 = vld [vmem:[%s9912_s1 + $0x508] sm:$0xff] }
 0x1cc   : > { %5561 = vmatprep.subr.bf16.mxu0 %v6853_v57  ;;  %5690 = vmatprep.subr.bf16.mxu1 %v6855_v58  ;;  %v542_v56 = vld [vmem:[%s9912_s1 + $0x528] sm:$0xff]  ;;  %v6908_v57 = vcombine.low %v529_v12, %v533_v34  ;;  %v6910_v58 = vcombine.low %v530_v47, %v534_v48  ;;  %v593_v12 = vld [vmem:[%s9912_s1 + $0x6c0] sm:$0xff] }
 0x1cd   : > { %v6919_v61 = vcombine.high %v538_v55, %v542_v56  ;;  %v597_v34 = vld [vmem:[%s9912_s1 + $0x6e0] sm:$0xff]  ;;  %v594_v47 = vld [vmem:[%s9912_s1 + $0x6c8] sm:$0xff] }
 0x1ce   : > { %v598_v48 = vld [vmem:[%s9912_s1 + $0x6e8] sm:$0xff] }
 0x1cf   : > { %5562 = vmatpush1.bf16.msra.mxu0 %v6852_v1  ;;  %5691 = vmatpush1.bf16.msra.mxu1 %v6854_v2  ;;  %v546_v1 = vld [vmem:[%s9912_s1 + $0x548] sm:$0xff] }
 0x1d0   : > { %5563 = vmatprep.subr.bf16.mxu0 %v6861_v3  ;;  %5692 = vmatprep.subr.bf16.mxu1 %v6863_v4  ;;  %v550_v2 = vld [vmem:[%s9912_s1 + $0x568] sm:$0xff]  ;;  %v6916_v3 = vcombine.low %v537_v53, %v541_v54  ;;  %v6918_v4 = vcombine.low %v538_v55, %v542_v56  ;;  %v601_v53 = vld [vmem:[%s9912_s1 + $0x700] sm:$0xff] }
 0x1d1   : > { %v6927_v6 = vcombine.high %v546_v1, %v550_v2  ;;  %v605_v54 = vld [vmem:[%s9912_s1 + $0x720] sm:$0xff]  ;;  %v602_v55 = vld [vmem:[%s9912_s1 + $0x708] sm:$0xff] }
 0x1d2   : > { %v606_v56 = vld [vmem:[%s9912_s1 + $0x728] sm:$0xff] }
 0x1d3   : > { %5564 = vmatpush1.bf16.msra.mxu0 %v6860_v9  ;;  %5693 = vmatpush1.bf16.msra.mxu1 %v6862_v10  ;;  %v554_v9 = vld [vmem:[%s9912_s1 + $0x588] sm:$0xff] }
 0x1d4   : > { %5565 = vmatprep.subr.bf16.mxu0 %v6869_v11  ;;  %5694 = vmatprep.subr.bf16.mxu1 %v6871_v13  ;;  %v558_v10 = vld [vmem:[%s9912_s1 + $0x5a8] sm:$0xff]  ;;  %v6924_v11 = vcombine.low %v545_v62, %v549_v0  ;;  %v6926_v13 = vcombine.low %v546_v1, %v550_v2  ;;  %v609_v62 = vld [vmem:[%s9912_s1 + $0x740] sm:$0xff] }
 0x1d5   : > { %v6935_v15 = vcombine.high %v554_v9, %v558_v10  ;;  %v613_v0 = vld [vmem:[%s9912_s1 + $0x760] sm:$0xff]  ;;  %v610_v1 = vld [vmem:[%s9912_s1 + $0x748] sm:$0xff] }
 0x1d6   : > { %v614_v2 = vld [vmem:[%s9912_s1 + $0x768] sm:$0xff] }
 0x1d7   : > { %5566 = vmatpush1.bf16.msra.mxu0 %v6868_v18  ;;  %5695 = vmatpush1.bf16.msra.mxu1 %v6870_v19  ;;  %v562_v18 = vld [vmem:[%s9912_s1 + $0x5c8] sm:$0xff] }
 0x1d8   : > { %5567 = vmatprep.subr.bf16.mxu0 %v6877_v20  ;;  %5696 = vmatprep.subr.bf16.mxu1 %v6879_v21  ;;  %v566_v19 = vld [vmem:[%s9912_s1 + $0x5e8] sm:$0xff]  ;;  %v6932_v20 = vcombine.low %v553_v7, %v557_v8  ;;  %v6934_v21 = vcombine.low %v554_v9, %v558_v10  ;;  %v617_v7 = vld [vmem:[%s9912_s1 + $0x780] sm:$0xff] }
 0x1d9   : > { %v6943_v24 = vcombine.high %v562_v18, %v566_v19  ;;  %v621_v8 = vld [vmem:[%s9912_s1 + $0x7a0] sm:$0xff]  ;;  %v618_v9 = vld [vmem:[%s9912_s1 + $0x788] sm:$0xff] }
 0x1da   : > { %v622_v10 = vld [vmem:[%s9912_s1 + $0x7a8] sm:$0xff] }
 0x1db   : > { %5568 = vmatpush1.bf16.msra.mxu0 %v6876_v27  ;;  %5697 = vmatpush1.bf16.msra.mxu1 %v6878_v28  ;;  %v570_v27 = vld [vmem:[%s9912_s1 + $0x608] sm:$0xff] }
 0x1dc   : > { %5580 = vmatprep.subr.bf16.mxu0 %v6885_v29  ;;  %5709 = vmatprep.subr.bf16.mxu1 %v6887_v30  ;;  %v574_v28 = vld [vmem:[%s9912_s1 + $0x628] sm:$0xff]  ;;  %v6940_v29 = vcombine.low %v561_v16, %v565_v17  ;;  %v6942_v30 = vcombine.low %v562_v18, %v566_v19  ;;  %v625_v16 = vld [vmem:[%s9912_s1 + $0x7c0] sm:$0xff] }
 0x1dd   : > { %v6951_v32 = vcombine.high %v570_v27, %v574_v28  ;;  %v629_v17 = vld [vmem:[%s9912_s1 + $0x7e0] sm:$0xff]  ;;  %v626_v18 = vld [vmem:[%s9912_s1 + $0x7c8] sm:$0xff] }
 0x1de   : > { %5570 = vmatmul.mubr.bf16.vlgmr.msra.gmra.mrb[0].mxu0 %v7266_v33  ;;  %5699 = vmatmul.mubr.bf16.vlgmr.msra.gmra.mrb[0].mxu1 %v7266_v33  ;;  %v577_v33 = vld [vmem:[%s9912_s1 + $0x640] sm:$0xff]  ;;  %v630_v19 = vld [vmem:[%s9912_s1 + $0x7e8] sm:$0xff] }
 0x1df   : > { %5581 = vmatpush1.bf16.msra.mxu0 %v6884_v37  ;;  %5710 = vmatpush1.bf16.msra.mxu1 %v6886_v38  ;;  %v582_v37 = vld [vmem:[%s9912_s1 + $0x668] sm:$0xff]  ;;  %v6948_v38 = vcombine.low %v569_v25, %v573_v26  ;;  %v633_v25 = vld [vmem:[%s9912_s1 + $0x800] sm:$0xff] }
 0x1e0   : > { %5582 = vmatprep.subr.bf16.mxu0 %v6893_v59  ;;  %5711 = vmatprep.subr.bf16.mxu1 %v6895_v39  ;;  %v6950_v59 = vcombine.low %v570_v27, %v574_v28  ;;  %v6957_v39 = vcombine.high %v577_v33, %v581_v35  ;;  %v6959_v23 = vcombine.high %v578_v36, %v582_v37  ;;  %v637_v26 = vld [vmem:[%s9912_s1 + $0x820] sm:$0xff]  ;;  %v634_v27 = vld [vmem:[%s9912_s1 + $0x808] sm:$0xff] }
 0x1e1   : > { %5612 = vmatprep.mubr.bf16.mxu0 %v7267_v41  ;;  %5741 = vmatprep.mubr.bf16.mxu1 %v7267_v41  ;;  %v589_v41 = vld [vmem:[%s9912_s1 + $0x6a0] sm:$0xff]  ;;  %v638_v28 = vld [vmem:[%s9912_s1 + $0x828] sm:$0xff] }
 0x1e3   : > { %5583 = vmatpush1.bf16.msra.mxu0 %v6892_v44  ;;  %5712 = vmatpush1.bf16.msra.mxu1 %v6894_v51  ;;  %v6956_v44 = vcombine.low %v577_v33, %v581_v35  ;;  %v6958_v51 = vcombine.low %v578_v36, %v582_v37  ;;  %v641_v33 = vld [vmem:[%s9912_s1 + $0x840] sm:$0xff]  ;;  %v642_v37 = vld [vmem:[%s9912_s1 + $0x848] sm:$0xff] }
 0x1e4   : > { %5584 = vmatprep.subr.bf16.mxu0 %v6901_v45  ;;  %5713 = vmatprep.subr.bf16.mxu1 %v6903_v46  ;;  %v6965_v45 = vcombine.high %v585_v40, %v589_v41  ;;  %v6967_v46 = vcombine.high %v586_v42, %v590_v43  ;;  %v645_v35 = vld [vmem:[%s9912_s1 + $0x860] sm:$0xff] }
 0x1e5   : > { %v7269_v36 = vld [vmem:[%s7439_s16 + $0x8] ss:$24 sps:$4 sm:$0xff]  }
 0x1e7   : > { %5585 = vmatpush1.bf16.msra.mxu0 %v6900_v49  ;;  %5714 = vmatpush1.bf16.msra.mxu1 %v6902_v50  ;;  %v6964_v49 = vcombine.low %v585_v40, %v589_v41  ;;  %v6966_v50 = vcombine.low %v586_v42, %v590_v43  ;;  %v649_v41 = vld [vmem:[%s9912_s1 + $0x880] sm:$0xff]  ;;  %v7270_v43 = vld [vmem:[%s7439_s16 + $0x14] ss:$24 sps:$4 sm:$0xff]  }
 0x1e8   : > { %5586 = vmatprep.subr.bf16.mxu0 %v6909_v63  ;;  %5715 = vmatprep.subr.bf16.mxu1 %v6911_v52  ;;  %v6973_v63 = vcombine.high %v593_v12, %v597_v34  ;;  %v6975_v52 = vcombine.high %v594_v47, %v598_v48  ;;  %v653_v42 = vld [vmem:[%s9912_s1 + $0x8a0] sm:$0xff] }
 0x1eb   : > { %5587 = vmatpush1.bf16.msra.mxu0 %v6908_v57  ;;  %5716 = vmatpush1.bf16.msra.mxu1 %v6910_v58  ;;  %v6972_v57 = vcombine.low %v593_v12, %v597_v34  ;;  %v6974_v58 = vcombine.low %v594_v47, %v598_v48  ;;  %v7029_v12 = vcombine.high %v649_v41, %v653_v42  ;;  %v657_v47 = vld [vmem:[%s9912_s1 + $0x8c0] sm:$0xff] }
 0x1ec   : > { %5588 = vmatprep.subr.bf16.mxu0 %v6917_v60  ;;  %5717 = vmatprep.subr.bf16.mxu1 %v6919_v61  ;;  %v6981_v60 = vcombine.high %v601_v53, %v605_v54  ;;  %v6983_v61 = vcombine.high %v602_v55, %v606_v56  ;;  %v661_v48 = vld [vmem:[%s9912_s1 + $0x8e0] sm:$0xff] }
 0x1ef   : > { %5589 = vmatpush1.bf16.msra.mxu0 %v6916_v3  ;;  %5718 = vmatpush1.bf16.msra.mxu1 %v6918_v4  ;;  %v6980_v3 = vcombine.low %v601_v53, %v605_v54  ;;  %v6982_v4 = vcombine.low %v602_v55, %v606_v56  ;;  %v7037_v53 = vcombine.high %v657_v47, %v661_v48  ;;  %v665_v55 = vld [vmem:[%s9912_s1 + $0x900] sm:$0xff] }
 0x1f0   : > { %5590 = vmatprep.subr.bf16.mxu0 %v6925_v5  ;;  %5719 = vmatprep.subr.bf16.mxu1 %v6927_v6  ;;  %v6989_v5 = vcombine.high %v609_v62, %v613_v0  ;;  %v6991_v6 = vcombine.high %v610_v1, %v614_v2  ;;  %v669_v56 = vld [vmem:[%s9912_s1 + $0x920] sm:$0xff] }
 0x1f3   : > { %5591 = vmatpush1.bf16.msra.mxu0 %v6924_v11  ;;  %5720 = vmatpush1.bf16.msra.mxu1 %v6926_v13  ;;  %v6988_v11 = vcombine.low %v609_v62, %v613_v0  ;;  %v6990_v13 = vcombine.low %v610_v1, %v614_v2  ;;  %v7045_v62 = vcombine.high %v665_v55, %v669_v56  ;;  %v673_v1 = vld [vmem:[%s9912_s1 + $0x940] sm:$0xff] }
 0x1f4   : > { %5592 = vmatprep.subr.bf16.mxu0 %v6933_v14  ;;  %5721 = vmatprep.subr.bf16.mxu1 %v6935_v15  ;;  %v6997_v14 = vcombine.high %v617_v7, %v621_v8  ;;  %v6999_v15 = vcombine.high %v618_v9, %v622_v10  ;;  %v677_v2 = vld [vmem:[%s9912_s1 + $0x960] sm:$0xff] }
 0x1f7   : > { %5593 = vmatpush1.bf16.msra.mxu0 %v6932_v20  ;;  %5722 = vmatpush1.bf16.msra.mxu1 %v6934_v21  ;;  %v6996_v20 = vcombine.low %v617_v7, %v621_v8  ;;  %v6998_v21 = vcombine.low %v618_v9, %v622_v10  ;;  %v7053_v7 = vcombine.high %v673_v1, %v677_v2  ;;  %v681_v9 = vld [vmem:[%s9912_s1 + $0x980] sm:$0xff] }
 0x1f8   : > { %5594 = vmatprep.subr.bf16.mxu0 %v6941_v22  ;;  %5723 = vmatprep.subr.bf16.mxu1 %v6943_v24  ;;  %v7005_v22 = vcombine.high %v625_v16, %v629_v17  ;;  %v7007_v24 = vcombine.high %v626_v18, %v630_v19  ;;  %v685_v10 = vld [vmem:[%s9912_s1 + $0x9a0] sm:$0xff] }
 0x1fb   : > { %5595 = vmatpush1.bf16.msra.mxu0 %v6940_v29  ;;  %5724 = vmatpush1.bf16.msra.mxu1 %v6942_v30  ;;  %v7004_v29 = vcombine.low %v625_v16, %v629_v17  ;;  %v7006_v30 = vcombine.low %v626_v18, %v630_v19  ;;  %v7061_v16 = vcombine.high %v681_v9, %v685_v10  ;;  %v689_v18 = vld [vmem:[%s9912_s1 + $0x9c0] sm:$0xff] }
 0x1fc   : > { %5596 = vmatprep.subr.bf16.mxu0 %v6949_v31  ;;  %5725 = vmatprep.subr.bf16.mxu1 %v6951_v32  ;;  %v7013_v31 = vcombine.high %v633_v25, %v637_v26  ;;  %v7015_v32 = vcombine.high %v634_v27, %v638_v28  ;;  %v693_v19 = vld [vmem:[%s9912_s1 + $0x9e0] sm:$0xff] }
 0x1ff   : > { %5597 = vmatpush1.bf16.msra.mxu0 %v6948_v38  ;;  %5726 = vmatpush1.bf16.msra.mxu1 %v6950_v59  ;;  %v646_v38 = vld [vmem:[%s9912_s1 + $0x868] sm:$0xff]  ;;  %v7012_v59 = vcombine.low %v633_v25, %v637_v26  ;;  %v7069_v25 = vcombine.high %v689_v18, %v693_v19 }
 0x200   : > { %5598 = vmatprep.subr.bf16.mxu0 %v6957_v39  ;;  %5727 = vmatprep.subr.bf16.mxu1 %v6959_v23  ;;  %v7014_v39 = vcombine.low %v634_v27, %v638_v28  ;;  %v7021_v23 = vcombine.high %v641_v33, %v645_v35  ;;  %v7023_v40 = vcombine.high %v642_v37, %v646_v38  ;;  %v697_v27 = vld [vmem:[%s9912_s1 + $0xa00] sm:$0xff] }
 0x201   : > { %v701_v28 = vld [vmem:[%s9912_s1 + $0xa20] sm:$0xff] }
 0x203   : > { %5599 = vmatpush1.bf16.msra.mxu0 %v6956_v44  ;;  %5728 = vmatpush1.bf16.msra.mxu1 %v6958_v51  ;;  %v650_v44 = vld [vmem:[%s9912_s1 + $0x888] sm:$0xff] }
 0x204   : > { %5600 = vmatprep.subr.bf16.mxu0 %v6965_v45  ;;  %5729 = vmatprep.subr.bf16.mxu1 %v6967_v46  ;;  %v654_v51 = vld [vmem:[%s9912_s1 + $0x8a8] sm:$0xff]  ;;  %v7020_v45 = vcombine.low %v641_v33, %v645_v35  ;;  %v7022_v46 = vcombine.low %v642_v37, %v646_v38  ;;  %v7077_v33 = vcombine.high %v697_v27, %v701_v28  ;;  %v709_v37 = vld [vmem:[%s9912_s1 + $0xa60] sm:$0xff] }
 0x205   : > { %v7031_v34 = vcombine.high %v650_v44, %v654_v51  ;;  %v706_v38 = vld [vmem:[%s9912_s1 + $0xa48] sm:$0xff] }
 0x207   : > { %5601 = vmatpush1.bf16.msra.mxu0 %v6964_v49  ;;  %5730 = vmatpush1.bf16.msra.mxu1 %v6966_v50  ;;  %v658_v49 = vld [vmem:[%s9912_s1 + $0x8c8] sm:$0xff] }
 0x208   : > { %5602 = vmatprep.subr.bf16.mxu0 %v6973_v63  ;;  %5731 = vmatprep.subr.bf16.mxu1 %v6975_v52  ;;  %v662_v50 = vld [vmem:[%s9912_s1 + $0x8e8] sm:$0xff]  ;;  %v7028_v63 = vcombine.low %v649_v41, %v653_v42  ;;  %v7030_v52 = vcombine.low %v650_v44, %v654_v51  ;;  %v713_v42 = vld [vmem:[%s9912_s1 + $0xa80] sm:$0xff] }
 0x209   : > { %v7039_v54 = vcombine.high %v658_v49, %v662_v50  ;;  %v714_v44 = vld [vmem:[%s9912_s1 + $0xa88] sm:$0xff] }
 0x20a   : > { %v718_v51 = vld [vmem:[%s9912_s1 + $0xaa8] sm:$0xff] }
 0x20b   : > { %5603 = vmatpush1.bf16.msra.mxu0 %v6972_v57  ;;  %5732 = vmatpush1.bf16.msra.mxu1 %v6974_v58  ;;  %v666_v57 = vld [vmem:[%s9912_s1 + $0x908] sm:$0xff] }
 0x20c   : > { %5604 = vmatprep.subr.bf16.mxu0 %v6981_v60  ;;  %5733 = vmatprep.subr.bf16.mxu1 %v6983_v61  ;;  %v670_v58 = vld [vmem:[%s9912_s1 + $0x928] sm:$0xff]  ;;  %v7036_v60 = vcombine.low %v657_v47, %v661_v48  ;;  %v7038_v61 = vcombine.low %v658_v49, %v662_v50  ;;  %v721_v47 = vld [vmem:[%s9912_s1 + $0xac0] sm:$0xff] }
 0x20d   : > { %v7047_v0 = vcombine.high %v666_v57, %v670_v58  ;;  %v725_v48 = vld [vmem:[%s9912_s1 + $0xae0] sm:$0xff]  ;;  %v722_v49 = vld [vmem:[%s9912_s1 + $0xac8] sm:$0xff] }
 0x20e   : > { %v726_v50 = vld [vmem:[%s9912_s1 + $0xae8] sm:$0xff] }
 0x20f   : > { %5605 = vmatpush1.bf16.msra.mxu0 %v6980_v3  ;;  %5734 = vmatpush1.bf16.msra.mxu1 %v6982_v4  ;;  %v674_v3 = vld [vmem:[%s9912_s1 + $0x948] sm:$0xff] }
 0x210   : > { %5606 = vmatprep.subr.bf16.mxu0 %v6989_v5  ;;  %5735 = vmatprep.subr.bf16.mxu1 %v6991_v6  ;;  %v678_v4 = vld [vmem:[%s9912_s1 + $0x968] sm:$0xff]  ;;  %v7044_v5 = vcombine.low %v665_v55, %v669_v56  ;;  %v7046_v6 = vcombine.low %v666_v57, %v670_v58  ;;  %v729_v55 = vld [vmem:[%s9912_s1 + $0xb00] sm:$0xff] }
 0x211   : > { %v7055_v8 = vcombine.high %v674_v3, %v678_v4  ;;  %v733_v56 = vld [vmem:[%s9912_s1 + $0xb20] sm:$0xff]  ;;  %v730_v57 = vld [vmem:[%s9912_s1 + $0xb08] sm:$0xff] }
 0x212   : > { %v734_v58 = vld [vmem:[%s9912_s1 + $0xb28] sm:$0xff] }
 0x213   : > { %5607 = vmatpush1.bf16.msra.mxu0 %v6988_v11  ;;  %5736 = vmatpush1.bf16.msra.mxu1 %v6990_v13  ;;  %v682_v11 = vld [vmem:[%s9912_s1 + $0x988] sm:$0xff] }
 0x214   : > { %5608 = vmatprep.subr.bf16.mxu0 %v6997_v14  ;;  %5737 = vmatprep.subr.bf16.mxu1 %v6999_v15  ;;  %v686_v13 = vld [vmem:[%s9912_s1 + $0x9a8] sm:$0xff]  ;;  %v7052_v14 = vcombine.low %v673_v1, %v677_v2  ;;  %v7054_v15 = vcombine.low %v674_v3, %v678_v4  ;;  %v737_v1 = vld [vmem:[%s9912_s1 + $0xb40] sm:$0xff] }
 0x215   : > { %v7063_v17 = vcombine.high %v682_v11, %v686_v13  ;;  %v741_v2 = vld [vmem:[%s9912_s1 + $0xb60] sm:$0xff]  ;;  %v738_v3 = vld [vmem:[%s9912_s1 + $0xb48] sm:$0xff] }
 0x216   : > { %v742_v4 = vld [vmem:[%s9912_s1 + $0xb68] sm:$0xff] }
 0x217   : > { %5609 = vmatpush1.bf16.msra.mxu0 %v6996_v20  ;;  %5738 = vmatpush1.bf16.msra.mxu1 %v6998_v21  ;;  %v690_v20 = vld [vmem:[%s9912_s1 + $0x9c8] sm:$0xff] }
 0x218   : > { %5610 = vmatprep.subr.bf16.mxu0 %v7005_v22  ;;  %5739 = vmatprep.subr.bf16.mxu1 %v7007_v24  ;;  %v694_v21 = vld [vmem:[%s9912_s1 + $0x9e8] sm:$0xff]  ;;  %v7060_v22 = vcombine.low %v681_v9, %v685_v10  ;;  %v7062_v24 = vcombine.low %v682_v11, %v686_v13  ;;  %v745_v9 = vld [vmem:[%s9912_s1 + $0xb80] sm:$0xff] }
 0x219   : > { %v7071_v26 = vcombine.high %v690_v20, %v694_v21  ;;  %v749_v10 = vld [vmem:[%s9912_s1 + $0xba0] sm:$0xff]  ;;  %v746_v11 = vld [vmem:[%s9912_s1 + $0xb88] sm:$0xff] }
 0x21a   : > { %v750_v13 = vld [vmem:[%s9912_s1 + $0xba8] sm:$0xff] }
 0x21b   : > { %5611 = vmatpush1.bf16.msra.mxu0 %v7004_v29  ;;  %5740 = vmatpush1.bf16.msra.mxu1 %v7006_v30  ;;  %v698_v29 = vld [vmem:[%s9912_s1 + $0xa08] sm:$0xff] }
 0x21c   : > { %5623 = vmatprep.subr.bf16.mxu0 %v7013_v31  ;;  %5752 = vmatprep.subr.bf16.mxu1 %v7015_v32  ;;  %v702_v30 = vld [vmem:[%s9912_s1 + $0xa28] sm:$0xff]  ;;  %v7068_v31 = vcombine.low %v689_v18, %v693_v19  ;;  %v7070_v32 = vcombine.low %v690_v20, %v694_v21  ;;  %v753_v18 = vld [vmem:[%s9912_s1 + $0xbc0] sm:$0xff] }
 0x21d   : > { %v7079_v35 = vcombine.high %v698_v29, %v702_v30  ;;  %v757_v19 = vld [vmem:[%s9912_s1 + $0xbe0] sm:$0xff]  ;;  %v754_v20 = vld [vmem:[%s9912_s1 + $0xbc8] sm:$0xff] }
 0x21e   : > { %5613 = vmatmul.mubr.bf16.vlgmr.msra.gmra.mrb[0].mxu0 %v7269_v36  ;;  %5742 = vmatmul.mubr.bf16.vlgmr.msra.gmra.mrb[0].mxu1 %v7269_v36  ;;  %v705_v36 = vld [vmem:[%s9912_s1 + $0xa40] sm:$0xff]  ;;  %v758_v21 = vld [vmem:[%s9912_s1 + $0xbe8] sm:$0xff] }
 0x21f   : > { %5624 = vmatpush1.bf16.msra.mxu0 %v7012_v59  ;;  %5753 = vmatpush1.bf16.msra.mxu1 %v7014_v39  ;;  %v710_v59 = vld [vmem:[%s9912_s1 + $0xa68] sm:$0xff]  ;;  %v7076_v39 = vcombine.low %v697_v27, %v701_v28  ;;  %v379_v27 = vld [vmem:[%s9912_s1 + $0x10] sm:$0xff] }
 0x220   : > { %5625 = vmatprep.subr.bf16.mxu0 %v7021_v23  ;;  %5754 = vmatprep.subr.bf16.mxu1 %v7023_v40  ;;  %v7078_v23 = vcombine.low %v698_v29, %v702_v30  ;;  %v7085_v40 = vcombine.high %v705_v36, %v709_v37  ;;  %v7087_v41 = vcombine.high %v706_v38, %v710_v59  ;;  %v383_v28 = vld [vmem:[%s9912_s1 + $0x30] sm:$0xff]  ;;  %v380_v29 = vld [vmem:[%s9912_s1 + $0x18] sm:$0xff] }
 0x221   : > { %5655 = vmatprep.mubr.bf16.mxu0 %v7270_v43  ;;  %5784 = vmatprep.mubr.bf16.mxu1 %v7270_v43  ;;  %v717_v43 = vld [vmem:[%s9912_s1 + $0xaa0] sm:$0xff]  ;;  %v384_v30 = vld [vmem:[%s9912_s1 + $0x38] sm:$0xff] }
 0x223   : > { %5626 = vmatpush1.bf16.msra.mxu0 %v7020_v45  ;;  %5755 = vmatpush1.bf16.msra.mxu1 %v7022_v46  ;;  %v7084_v45 = vcombine.low %v705_v36, %v709_v37  ;;  %v7086_v46 = vcombine.low %v706_v38, %v710_v59  ;;  %v387_v36 = vld [vmem:[%s9912_s1 + $0x50] sm:$0xff]  ;;  %v388_v59 = vld [vmem:[%s9912_s1 + $0x58] sm:$0xff] }
 0x224   : > { %5627 = vmatprep.subr.bf16.mxu0 %v7029_v12  ;;  %5756 = vmatprep.subr.bf16.mxu1 %v7031_v34  ;;  %v7093_v12 = vcombine.high %v713_v42, %v717_v43  ;;  %v7095_v34 = vcombine.high %v714_v44, %v718_v51  ;;  %v391_v37 = vld [vmem:[%s9912_s1 + $0x70] sm:$0xff] }
 0x225   : > { %v7272_v38 = vld [vmem:[%s7439_s16 + $0x10] ss:$24 sps:$4 sm:$0xff]  }
 0x227   : > { %5628 = vmatpush1.bf16.msra.mxu0 %v7028_v63  ;;  %5757 = vmatpush1.bf16.msra.mxu1 %v7030_v52  ;;  %v7092_v63 = vcombine.low %v713_v42, %v717_v43  ;;  %v7094_v52 = vcombine.low %v714_v44, %v718_v51  ;;  %v395_v43 = vld [vmem:[%s9912_s1 + $0x90] sm:$0xff]  ;;  %v396_v51 = vld [vmem:[%s9912_s1 + $0x98] sm:$0xff] }
 0x228   : > { %5629 = vmatprep.subr.bf16.mxu0 %v7037_v53  ;;  %5758 = vmatprep.subr.bf16.mxu1 %v7039_v54  ;;  %v7101_v53 = vcombine.high %v721_v47, %v725_v48  ;;  %v7103_v54 = vcombine.high %v722_v49, %v726_v50  ;;  %v399_v44 = vld [vmem:[%s9912_s1 + $0xb0] sm:$0xff] }
 0x22b   : > { %5630 = vmatpush1.bf16.msra.mxu0 %v7036_v60  ;;  %5759 = vmatpush1.bf16.msra.mxu1 %v7038_v61  ;;  %v7100_v60 = vcombine.low %v721_v47, %v725_v48  ;;  %v7102_v61 = vcombine.low %v722_v49, %v726_v50  ;;  %v403_v48 = vld [vmem:[%s9912_s1 + $0xd0] sm:$0xff]  ;;  %v7337_v50 = vld [vmem:[%s7439_s16 + $0x4] ss:$24 sps:$4 sm:$0xff]  }
 0x22c   : > { %5631 = vmatprep.subr.bf16.mxu0 %v7045_v62  ;;  %5760 = vmatprep.subr.bf16.mxu1 %v7047_v0  ;;  %v7109_v62 = vcombine.high %v729_v55, %v733_v56  ;;  %v7111_v0 = vcombine.high %v730_v57, %v734_v58  ;;  %v407_v49 = vld [vmem:[%s9912_s1 + $0xf0] sm:$0xff] }
 0x22f   : > { %5632 = vmatpush1.bf16.msra.mxu0 %v7044_v5  ;;  %5761 = vmatpush1.bf16.msra.mxu1 %v7046_v6  ;;  %v7108_v5 = vcombine.low %v729_v55, %v733_v56  ;;  %v7110_v6 = vcombine.low %v730_v57, %v734_v58  ;;  %v6785_v55 = vcombine.high %v403_v48, %v407_v49  ;;  %v411_v57 = vld [vmem:[%s9912_s1 + $0x110] sm:$0xff] }
 0x230   : > { %5633 = vmatprep.subr.bf16.mxu0 %v7053_v7  ;;  %5762 = vmatprep.subr.bf16.mxu1 %v7055_v8  ;;  %v7117_v7 = vcombine.high %v737_v1, %v741_v2  ;;  %v7119_v8 = vcombine.high %v738_v3, %v742_v4  ;;  %v415_v58 = vld [vmem:[%s9912_s1 + $0x130] sm:$0xff] }
 0x233   : > { %5634 = vmatpush1.bf16.msra.mxu0 %v7052_v14  ;;  %5763 = vmatpush1.bf16.msra.mxu1 %v7054_v15  ;;  %v7116_v14 = vcombine.low %v737_v1, %v741_v2  ;;  %v7118_v15 = vcombine.low %v738_v3, %v742_v4  ;;  %v6793_v1 = vcombine.high %v411_v57, %v415_v58  ;;  %v419_v3 = vld [vmem:[%s9912_s1 + $0x150] sm:$0xff] }
 0x234   : > { %5635 = vmatprep.subr.bf16.mxu0 %v7061_v16  ;;  %5764 = vmatprep.subr.bf16.mxu1 %v7063_v17  ;;  %v7125_v16 = vcombine.high %v745_v9, %v749_v10  ;;  %v7127_v17 = vcombine.high %v746_v11, %v750_v13  ;;  %v423_v4 = vld [vmem:[%s9912_s1 + $0x170] sm:$0xff] }
 0x237   : > { %5636 = vmatpush1.bf16.msra.mxu0 %v7060_v22  ;;  %5765 = vmatpush1.bf16.msra.mxu1 %v7062_v24  ;;  %v7124_v22 = vcombine.low %v745_v9, %v749_v10  ;;  %v7126_v24 = vcombine.low %v746_v11, %v750_v13  ;;  %v6801_v9 = vcombine.high %v419_v3, %v423_v4  ;;  %v427_v11 = vld [vmem:[%s9912_s1 + $0x190] sm:$0xff] }
 0x238   : > { %5637 = vmatprep.subr.bf16.mxu0 %v7069_v25  ;;  %5766 = vmatprep.subr.bf16.mxu1 %v7071_v26  ;;  %v7133_v25 = vcombine.high %v753_v18, %v757_v19  ;;  %v7135_v26 = vcombine.high %v754_v20, %v758_v21  ;;  %v431_v13 = vld [vmem:[%s9912_s1 + $0x1b0] sm:$0xff] }
 0x23b   : > { %5638 = vmatpush1.bf16.msra.mxu0 %v7068_v31  ;;  %5767 = vmatpush1.bf16.msra.mxu1 %v7070_v32  ;;  %v7132_v31 = vcombine.low %v753_v18, %v757_v19  ;;  %v7134_v32 = vcombine.low %v754_v20, %v758_v21  ;;  %v6809_v18 = vcombine.high %v427_v11, %v431_v13  ;;  %v435_v20 = vld [vmem:[%s9912_s1 + $0x1d0] sm:$0xff] }
 0x23c   : > { %5639 = vmatprep.subr.bf16.mxu0 %v7077_v33  ;;  %5768 = vmatprep.subr.bf16.mxu1 %v7079_v35  ;;  %v6761_v33 = vcombine.high %v379_v27, %v383_v28  ;;  %v6763_v35 = vcombine.high %v380_v29, %v384_v30  ;;  %v439_v21 = vld [vmem:[%s9912_s1 + $0x1f0] sm:$0xff] }
 0x23f   : > { %5640 = vmatpush1.bf16.msra.mxu0 %v7076_v39  ;;  %5769 = vmatpush1.bf16.msra.mxu1 %v7078_v23  ;;  %v392_v39 = vld [vmem:[%s9912_s1 + $0x78] sm:$0xff]  ;;  %v6760_v23 = vcombine.low %v379_v27, %v383_v28  ;;  %v6817_v27 = vcombine.high %v435_v20, %v439_v21 }
 0x240   : > { %5641 = vmatprep.subr.bf16.mxu0 %v7085_v40  ;;  %5770 = vmatprep.subr.bf16.mxu1 %v7087_v41  ;;  %v6762_v40 = vcombine.low %v380_v29, %v384_v30  ;;  %v6769_v41 = vcombine.high %v387_v36, %v391_v37  ;;  %v6771_v42 = vcombine.high %v388_v59, %v392_v39  ;;  %v443_v29 = vld [vmem:[%s9912_s1 + $0x210] sm:$0xff] }
 0x241   : > { %v447_v30 = vld [vmem:[%s9912_s1 + $0x230] sm:$0xff] }
 0x243   : > { %5642 = vmatpush1.bf16.msra.mxu0 %v7084_v45  ;;  %5771 = vmatpush1.bf16.msra.mxu1 %v7086_v46  ;;  %v400_v45 = vld [vmem:[%s9912_s1 + $0xb8] sm:$0xff]  ;;  %v6768_v46 = vcombine.low %v387_v36, %v391_v37  ;;  %v6825_v36 = vcombine.high %v443_v29, %v447_v30 }
 0x244   : > { %5643 = vmatprep.subr.bf16.mxu0 %v7093_v12  ;;  %5772 = vmatprep.subr.bf16.mxu1 %v7095_v34  ;;  %v6770_v12 = vcombine.low %v388_v59, %v392_v39  ;;  %v6777_v34 = vcombine.high %v395_v43, %v399_v44  ;;  %v6779_v47 = vcombine.high %v396_v51, %v400_v45  ;;  %v455_v59 = vld [vmem:[%s9912_s1 + $0x270] sm:$0xff]  ;;  %v452_v39 = vld [vmem:[%s9912_s1 + $0x258] sm:$0xff] }
 0x247   : > { %5644 = vmatpush1.bf16.msra.mxu0 %v7092_v63  ;;  %5773 = vmatpush1.bf16.msra.mxu1 %v7094_v52  ;;  %v404_v63 = vld [vmem:[%s9912_s1 + $0xd8] sm:$0xff] }
 0x248   : > { %5645 = vmatprep.subr.bf16.mxu0 %v7101_v53  ;;  %5774 = vmatprep.subr.bf16.mxu1 %v7103_v54  ;;  %v408_v52 = vld [vmem:[%s9912_s1 + $0xf8] sm:$0xff]  ;;  %v6776_v53 = vcombine.low %v395_v43, %v399_v44  ;;  %v6778_v54 = vcombine.low %v396_v51, %v400_v45  ;;  %v459_v44 = vld [vmem:[%s9912_s1 + $0x290] sm:$0xff] }
 0x249   : > { %v6787_v56 = vcombine.high %v404_v63, %v408_v52  ;;  %v463_v51 = vld [vmem:[%s9912_s1 + $0x2b0] sm:$0xff]  ;;  %v460_v45 = vld [vmem:[%s9912_s1 + $0x298] sm:$0xff] }
 0x24b   : > { %5646 = vmatpush1.bf16.msra.mxu0 %v7100_v60  ;;  %5775 = vmatpush1.bf16.msra.mxu1 %v7102_v61  ;;  %v412_v60 = vld [vmem:[%s9912_s1 + $0x118] sm:$0xff] }
 0x24c   : > { %5647 = vmatprep.subr.bf16.mxu0 %v7109_v62  ;;  %5776 = vmatprep.subr.bf16.mxu1 %v7111_v0  ;;  %v416_v61 = vld [vmem:[%s9912_s1 + $0x138] sm:$0xff]  ;;  %v6784_v62 = vcombine.low %v403_v48, %v407_v49  ;;  %v6786_v0 = vcombine.low %v404_v63, %v408_v52  ;;  %v467_v49 = vld [vmem:[%s9912_s1 + $0x2d0] sm:$0xff] }
 0x24d   : > { %v6795_v2 = vcombine.high %v412_v60, %v416_v61  ;;  %v468_v63 = vld [vmem:[%s9912_s1 + $0x2d8] sm:$0xff] }
 0x24e   : > { %v472_v52 = vld [vmem:[%s9912_s1 + $0x2f8] sm:$0xff] }
 0x24f   : > { %5648 = vmatpush1.bf16.msra.mxu0 %v7108_v5  ;;  %5777 = vmatpush1.bf16.msra.mxu1 %v7110_v6  ;;  %v420_v5 = vld [vmem:[%s9912_s1 + $0x158] sm:$0xff] }
 0x250   : > { %5649 = vmatprep.subr.bf16.mxu0 %v7117_v7  ;;  %5778 = vmatprep.subr.bf16.mxu1 %v7119_v8  ;;  %v424_v6 = vld [vmem:[%s9912_s1 + $0x178] sm:$0xff]  ;;  %v6792_v7 = vcombine.low %v411_v57, %v415_v58  ;;  %v6794_v8 = vcombine.low %v412_v60, %v416_v61  ;;  %v475_v57 = vld [vmem:[%s9912_s1 + $0x310] sm:$0xff] }
 0x251   : > { %v6803_v10 = vcombine.high %v420_v5, %v424_v6  ;;  %v479_v58 = vld [vmem:[%s9912_s1 + $0x330] sm:$0xff]  ;;  %v476_v60 = vld [vmem:[%s9912_s1 + $0x318] sm:$0xff] }
 0x252   : > { %v480_v61 = vld [vmem:[%s9912_s1 + $0x338] sm:$0xff] }
 0x253   : > { %5650 = vmatpush1.bf16.msra.mxu0 %v7116_v14  ;;  %5779 = vmatpush1.bf16.msra.mxu1 %v7118_v15  ;;  %v428_v14 = vld [vmem:[%s9912_s1 + $0x198] sm:$0xff] }
 0x254   : > { %5651 = vmatprep.subr.bf16.mxu0 %v7125_v16  ;;  %5780 = vmatprep.subr.bf16.mxu1 %v7127_v17  ;;  %v432_v15 = vld [vmem:[%s9912_s1 + $0x1b8] sm:$0xff]  ;;  %v6800_v16 = vcombine.low %v419_v3, %v423_v4  ;;  %v6802_v17 = vcombine.low %v420_v5, %v424_v6  ;;  %v483_v3 = vld [vmem:[%s9912_s1 + $0x350] sm:$0xff] }
 0x255   : > { %v6811_v19 = vcombine.high %v428_v14, %v432_v15  ;;  %v487_v4 = vld [vmem:[%s9912_s1 + $0x370] sm:$0xff]  ;;  %v484_v5 = vld [vmem:[%s9912_s1 + $0x358] sm:$0xff] }
 0x256   : > { %v488_v6 = vld [vmem:[%s9912_s1 + $0x378] sm:$0xff] }
 0x257   : > { %5652 = vmatpush1.bf16.msra.mxu0 %v7124_v22  ;;  %5781 = vmatpush1.bf16.msra.mxu1 %v7126_v24  ;;  %v436_v22 = vld [vmem:[%s9912_s1 + $0x1d8] sm:$0xff] }
 0x258   : > { %5653 = vmatprep.subr.bf16.mxu0 %v7133_v25  ;;  %5782 = vmatprep.subr.bf16.mxu1 %v7135_v26  ;;  %v440_v24 = vld [vmem:[%s9912_s1 + $0x1f8] sm:$0xff]  ;;  %v6808_v25 = vcombine.low %v427_v11, %v431_v13  ;;  %v6810_v26 = vcombine.low %v428_v14, %v432_v15  ;;  %v491_v11 = vld [vmem:[%s9912_s1 + $0x390] sm:$0xff] }
 0x259   : > { %v6819_v28 = vcombine.high %v436_v22, %v440_v24  ;;  %v495_v13 = vld [vmem:[%s9912_s1 + $0x3b0] sm:$0xff]  ;;  %v492_v14 = vld [vmem:[%s9912_s1 + $0x398] sm:$0xff] }
 0x25a   : > { %v496_v15 = vld [vmem:[%s9912_s1 + $0x3b8] sm:$0xff] }
 0x25b   : > { %5654 = vmatpush1.bf16.msra.mxu0 %v7132_v31  ;;  %5783 = vmatpush1.bf16.msra.mxu1 %v7134_v32  ;;  %v444_v31 = vld [vmem:[%s9912_s1 + $0x218] sm:$0xff] }
 0x25c   : > { %5795 = vmatprep.subr.bf16.mxu0 %v6761_v33  ;;  %5924 = vmatprep.subr.bf16.mxu1 %v6763_v35  ;;  %v448_v32 = vld [vmem:[%s9912_s1 + $0x238] sm:$0xff]  ;;  %v6816_v33 = vcombine.low %v435_v20, %v439_v21  ;;  %v6818_v35 = vcombine.low %v436_v22, %v440_v24  ;;  %v499_v20 = vld [vmem:[%s9912_s1 + $0x3d0] sm:$0xff] }
 0x25d   : > { %v6827_v37 = vcombine.high %v444_v31, %v448_v32  ;;  %v503_v21 = vld [vmem:[%s9912_s1 + $0x3f0] sm:$0xff]  ;;  %v500_v22 = vld [vmem:[%s9912_s1 + $0x3d8] sm:$0xff] }
 0x25e   : > { %5656 = vmatmul.mubr.bf16.vlgmr.msra.gmra.mrb[0].mxu0 %v7272_v38  ;;  %5785 = vmatmul.mubr.bf16.vlgmr.msra.gmra.mrb[0].mxu1 %v7272_v38  ;;  %v451_v38 = vld [vmem:[%s9912_s1 + $0x250] sm:$0xff]  ;;  %v504_v24 = vld [vmem:[%s9912_s1 + $0x3f8] sm:$0xff] }
 0x25f   : > { %5796 = vmatpush1.bf16.msra.mxu0 %v6760_v23  ;;  %5925 = vmatpush1.bf16.msra.mxu1 %v6762_v40  ;;  %v456_v23 = vld [vmem:[%s9912_s1 + $0x278] sm:$0xff]  ;;  %v6824_v40 = vcombine.low %v443_v29, %v447_v30  ;;  %v507_v29 = vld [vmem:[%s9912_s1 + $0x410] sm:$0xff] }
 0x260   : > { %5797 = vmatprep.subr.bf16.mxu0 %v6769_v41  ;;  %5926 = vmatprep.subr.bf16.mxu1 %v6771_v42  ;;  %v6826_v41 = vcombine.low %v444_v31, %v448_v32  ;;  %v6833_v42 = vcombine.high %v451_v38, %v455_v59  ;;  %v6835_v43 = vcombine.high %v452_v39, %v456_v23  ;;  %v511_v30 = vld [vmem:[%s9912_s1 + $0x430] sm:$0xff]  ;;  %v508_v31 = vld [vmem:[%s9912_s1 + $0x418] sm:$0xff] }
 0x261   : > { %5827 = vmatprep.mubr.bf16.mxu0 %v7337_v50  ;;  %5956 = vmatprep.mubr.bf16.mxu1 %v7337_v50  ;;  %v471_v50 = vld [vmem:[%s9912_s1 + $0x2f0] sm:$0xff]  ;;  %v512_v32 = vld [vmem:[%s9912_s1 + $0x438] sm:$0xff] }
 0x263   : > { %5798 = vmatpush1.bf16.msra.mxu0 %v6768_v46  ;;  %5927 = vmatpush1.bf16.msra.mxu1 %v6770_v12  ;;  %v464_v46 = vld [vmem:[%s9912_s1 + $0x2b8] sm:$0xff]  ;;  %v6832_v12 = vcombine.low %v451_v38, %v455_v59  ;;  %v515_v38 = vld [vmem:[%s9912_s1 + $0x450] sm:$0xff] }
 0x264   : > { %5799 = vmatprep.subr.bf16.mxu0 %v6777_v34  ;;  %5928 = vmatprep.subr.bf16.mxu1 %v6779_v47  ;;  %v6834_v34 = vcombine.low %v452_v39, %v456_v23  ;;  %v6841_v47 = vcombine.high %v459_v44, %v463_v51  ;;  %v6843_v48 = vcombine.high %v460_v45, %v464_v46  ;;  %v519_v59 = vld [vmem:[%s9912_s1 + $0x470] sm:$0xff]  ;;  %v516_v39 = vld [vmem:[%s9912_s1 + $0x458] sm:$0xff] }
 0x265   : > { %v520_v23 = vld [vmem:[%s9912_s1 + $0x478] sm:$0xff] }
 0x267   : > { %5800 = vmatpush1.bf16.msra.mxu0 %v6776_v53  ;;  %5929 = vmatpush1.bf16.msra.mxu1 %v6778_v54  ;;  %v6840_v53 = vcombine.low %v459_v44, %v463_v51  ;;  %v6842_v54 = vcombine.low %v460_v45, %v464_v46  ;;  %v523_v44 = vld [vmem:[%s9912_s1 + $0x490] sm:$0xff]  ;;  %v7338_v45 = vld [vmem:[%s7439_s16] ss:$24 sps:$4 sm:$0xff]  }
 0x268   : > { %5801 = vmatprep.subr.bf16.mxu0 %v6785_v55  ;;  %5930 = vmatprep.subr.bf16.mxu1 %v6787_v56  ;;  %v6849_v55 = vcombine.high %v467_v49, %v471_v50  ;;  %v6851_v56 = vcombine.high %v468_v63, %v472_v52  ;;  %v527_v51 = vld [vmem:[%s9912_s1 + $0x4b0] sm:$0xff]  ;;  %v524_v46 = vld [vmem:[%s9912_s1 + $0x498] sm:$0xff] }
 0x26b   : > { %5802 = vmatpush1.bf16.msra.mxu0 %v6784_v62  ;;  %5931 = vmatpush1.bf16.msra.mxu1 %v6786_v0  ;;  %v6848_v62 = vcombine.low %v467_v49, %v471_v50  ;;  %v6850_v0 = vcombine.low %v468_v63, %v472_v52  ;;  %v531_v50 = vld [vmem:[%s9912_s1 + $0x4d0] sm:$0xff]  ;;  %v7339_v52 = vld [vmem:[%s7439_s16 + $0xc] ss:$24 sps:$4 sm:$0xff]  }
 0x26c   : > { %5803 = vmatprep.subr.bf16.mxu0 %v6793_v1  ;;  %5932 = vmatprep.subr.bf16.mxu1 %v6795_v2  ;;  %v6857_v1 = vcombine.high %v475_v57, %v479_v58  ;;  %v6859_v2 = vcombine.high %v476_v60, %v480_v61  ;;  %v535_v63 = vld [vmem:[%s9912_s1 + $0x4f0] sm:$0xff] }
 0x26f   : > { %5804 = vmatpush1.bf16.msra.mxu0 %v6792_v7  ;;  %5933 = vmatpush1.bf16.msra.mxu1 %v6794_v8  ;;  %v6856_v7 = vcombine.low %v475_v57, %v479_v58  ;;  %v6858_v8 = vcombine.low %v476_v60, %v480_v61  ;;  %v6913_v57 = vcombine.high %v531_v50, %v535_v63  ;;  %v539_v60 = vld [vmem:[%s9912_s1 + $0x510] sm:$0xff] }
 0x270   : > { %5805 = vmatprep.subr.bf16.mxu0 %v6801_v9  ;;  %5934 = vmatprep.subr.bf16.mxu1 %v6803_v10  ;;  %v6865_v9 = vcombine.high %v483_v3, %v487_v4  ;;  %v6867_v10 = vcombine.high %v484_v5, %v488_v6  ;;  %v543_v61 = vld [vmem:[%s9912_s1 + $0x530] sm:$0xff] }
 0x273   : > { %5806 = vmatpush1.bf16.msra.mxu0 %v6800_v16  ;;  %5935 = vmatpush1.bf16.msra.mxu1 %v6802_v17  ;;  %v6864_v16 = vcombine.low %v483_v3, %v487_v4  ;;  %v6866_v17 = vcombine.low %v484_v5, %v488_v6  ;;  %v6921_v3 = vcombine.high %v539_v60, %v543_v61  ;;  %v547_v5 = vld [vmem:[%s9912_s1 + $0x550] sm:$0xff] }
 0x274   : > { %5807 = vmatprep.subr.bf16.mxu0 %v6809_v18  ;;  %5936 = vmatprep.subr.bf16.mxu1 %v6811_v19  ;;  %v6873_v18 = vcombine.high %v491_v11, %v495_v13  ;;  %v6875_v19 = vcombine.high %v492_v14, %v496_v15  ;;  %v551_v6 = vld [vmem:[%s9912_s1 + $0x570] sm:$0xff] }
 0x277   : > { %5808 = vmatpush1.bf16.msra.mxu0 %v6808_v25  ;;  %5937 = vmatpush1.bf16.msra.mxu1 %v6810_v26  ;;  %v6872_v25 = vcombine.low %v491_v11, %v495_v13  ;;  %v6874_v26 = vcombine.low %v492_v14, %v496_v15  ;;  %v6929_v11 = vcombine.high %v547_v5, %v551_v6  ;;  %v555_v14 = vld [vmem:[%s9912_s1 + $0x590] sm:$0xff] }
 0x278   : > { %5809 = vmatprep.subr.bf16.mxu0 %v6817_v27  ;;  %5938 = vmatprep.subr.bf16.mxu1 %v6819_v28  ;;  %v6881_v27 = vcombine.high %v499_v20, %v503_v21  ;;  %v6883_v28 = vcombine.high %v500_v22, %v504_v24  ;;  %v559_v15 = vld [vmem:[%s9912_s1 + $0x5b0] sm:$0xff] }
 0x27b   : > { %5810 = vmatpush1.bf16.msra.mxu0 %v6816_v33  ;;  %5939 = vmatpush1.bf16.msra.mxu1 %v6818_v35  ;;  %v6880_v33 = vcombine.low %v499_v20, %v503_v21  ;;  %v6882_v35 = vcombine.low %v500_v22, %v504_v24  ;;  %v6937_v20 = vcombine.high %v555_v14, %v559_v15  ;;  %v563_v22 = vld [vmem:[%s9912_s1 + $0x5d0] sm:$0xff] }
 0x27c   : > { %5811 = vmatprep.subr.bf16.mxu0 %v6825_v36  ;;  %5940 = vmatprep.subr.bf16.mxu1 %v6827_v37  ;;  %v6889_v36 = vcombine.high %v507_v29, %v511_v30  ;;  %v6891_v37 = vcombine.high %v508_v31, %v512_v32  ;;  %v567_v24 = vld [vmem:[%s9912_s1 + $0x5f0] sm:$0xff] }
 0x27f   : > { %5812 = vmatpush1.bf16.msra.mxu0 %v6824_v40  ;;  %5941 = vmatpush1.bf16.msra.mxu1 %v6826_v41  ;;  %v6888_v40 = vcombine.low %v507_v29, %v511_v30  ;;  %v6890_v41 = vcombine.low %v508_v31, %v512_v32  ;;  %v6945_v29 = vcombine.high %v563_v22, %v567_v24  ;;  %v571_v31 = vld [vmem:[%s9912_s1 + $0x610] sm:$0xff] }
 0x280   : > { %5813 = vmatprep.subr.bf16.mxu0 %v6833_v42  ;;  %5942 = vmatprep.subr.bf16.mxu1 %v6835_v43  ;;  %v6897_v42 = vcombine.high %v515_v38, %v519_v59  ;;  %v6899_v43 = vcombine.high %v516_v39, %v520_v23  ;;  %v575_v32 = vld [vmem:[%s9912_s1 + $0x630] sm:$0xff] }
 0x283   : > { %5814 = vmatpush1.bf16.msra.mxu0 %v6832_v12  ;;  %5943 = vmatpush1.bf16.msra.mxu1 %v6834_v34  ;;  %v528_v12 = vld [vmem:[%s9912_s1 + $0x4b8] sm:$0xff]  ;;  %v6896_v34 = vcombine.low %v515_v38, %v519_v59  ;;  %v6953_v38 = vcombine.high %v571_v31, %v575_v32 }
 0x284   : > { %5815 = vmatprep.subr.bf16.mxu0 %v6841_v47  ;;  %5944 = vmatprep.subr.bf16.mxu1 %v6843_v48  ;;  %v6898_v47 = vcombine.low %v516_v39, %v520_v23  ;;  %v6905_v48 = vcombine.high %v523_v44, %v527_v51  ;;  %v6907_v49 = vcombine.high %v524_v46, %v528_v12  ;;  %v579_v39 = vld [vmem:[%s9912_s1 + $0x650] sm:$0xff] }
 0x285   : > { %v583_v23 = vld [vmem:[%s9912_s1 + $0x670] sm:$0xff] }
 0x287   : > { %5816 = vmatpush1.bf16.msra.mxu0 %v6840_v53  ;;  %5945 = vmatpush1.bf16.msra.mxu1 %v6842_v54  ;;  %v532_v53 = vld [vmem:[%s9912_s1 + $0x4d8] sm:$0xff] }
 0x288   : > { %5817 = vmatprep.subr.bf16.mxu0 %v6849_v55  ;;  %5946 = vmatprep.subr.bf16.mxu1 %v6851_v56  ;;  %v536_v54 = vld [vmem:[%s9912_s1 + $0x4f8] sm:$0xff]  ;;  %v6904_v55 = vcombine.low %v523_v44, %v527_v51  ;;  %v6906_v56 = vcombine.low %v524_v46, %v528_v12  ;;  %v6961_v44 = vcombine.high %v579_v39, %v583_v23  ;;  %v591_v46 = vld [vmem:[%s9912_s1 + $0x6b0] sm:$0xff] }
 0x289   : > { %v6915_v58 = vcombine.high %v532_v53, %v536_v54  ;;  %v588_v12 = vld [vmem:[%s9912_s1 + $0x698] sm:$0xff] }
 0x28b   : > { %5818 = vmatpush1.bf16.msra.mxu0 %v6848_v62  ;;  %5947 = vmatpush1.bf16.msra.mxu1 %v6850_v0  ;;  %v540_v62 = vld [vmem:[%s9912_s1 + $0x518] sm:$0xff] }
 0x28c   : > { %5819 = vmatprep.subr.bf16.mxu0 %v6857_v1  ;;  %5948 = vmatprep.subr.bf16.mxu1 %v6859_v2  ;;  %v544_v0 = vld [vmem:[%s9912_s1 + $0x538] sm:$0xff]  ;;  %v6912_v1 = vcombine.low %v531_v50, %v535_v63  ;;  %v6914_v2 = vcombine.low %v532_v53, %v536_v54  ;;  %v595_v63 = vld [vmem:[%s9912_s1 + $0x6d0] sm:$0xff] }
 0x28d   : > { %v6923_v4 = vcombine.high %v540_v62, %v544_v0  ;;  %v596_v53 = vld [vmem:[%s9912_s1 + $0x6d8] sm:$0xff] }
 0x28e   : > { %v600_v54 = vld [vmem:[%s9912_s1 + $0x6f8] sm:$0xff] }
 0x28f   : > { %5820 = vmatpush1.bf16.msra.mxu0 %v6856_v7  ;;  %5949 = vmatpush1.bf16.msra.mxu1 %v6858_v8  ;;  %v548_v7 = vld [vmem:[%s9912_s1 + $0x558] sm:$0xff] }
 0x290   : > { %5821 = vmatprep.subr.bf16.mxu0 %v6865_v9  ;;  %5950 = vmatprep.subr.bf16.mxu1 %v6867_v10  ;;  %v552_v8 = vld [vmem:[%s9912_s1 + $0x578] sm:$0xff]  ;;  %v6920_v9 = vcombine.low %v539_v60, %v543_v61  ;;  %v6922_v10 = vcombine.low %v540_v62, %v544_v0  ;;  %v603_v60 = vld [vmem:[%s9912_s1 + $0x710] sm:$0xff] }
 0x291   : > { %v6931_v13 = vcombine.high %v548_v7, %v552_v8  ;;  %v607_v61 = vld [vmem:[%s9912_s1 + $0x730] sm:$0xff]  ;;  %v604_v62 = vld [vmem:[%s9912_s1 + $0x718] sm:$0xff] }
 0x292   : > { %v608_v0 = vld [vmem:[%s9912_s1 + $0x738] sm:$0xff] }
 0x293   : > { %5822 = vmatpush1.bf16.msra.mxu0 %v6864_v16  ;;  %5951 = vmatpush1.bf16.msra.mxu1 %v6866_v17  ;;  %v556_v16 = vld [vmem:[%s9912_s1 + $0x598] sm:$0xff] }
 0x294   : > { %5823 = vmatprep.subr.bf16.mxu0 %v6873_v18  ;;  %5952 = vmatprep.subr.bf16.mxu1 %v6875_v19  ;;  %v560_v17 = vld [vmem:[%s9912_s1 + $0x5b8] sm:$0xff]  ;;  %v6928_v18 = vcombine.low %v547_v5, %v551_v6  ;;  %v6930_v19 = vcombine.low %v548_v7, %v552_v8  ;;  %v611_v5 = vld [vmem:[%s9912_s1 + $0x750] sm:$0xff] }
 0x295   : > { %v6939_v21 = vcombine.high %v556_v16, %v560_v17  ;;  %v615_v6 = vld [vmem:[%s9912_s1 + $0x770] sm:$0xff]  ;;  %v612_v7 = vld [vmem:[%s9912_s1 + $0x758] sm:$0xff] }
 0x296   : > { %v616_v8 = vld [vmem:[%s9912_s1 + $0x778] sm:$0xff] }
 0x297   : > { %5824 = vmatpush1.bf16.msra.mxu0 %v6872_v25  ;;  %5953 = vmatpush1.bf16.msra.mxu1 %v6874_v26  ;;  %v564_v25 = vld [vmem:[%s9912_s1 + $0x5d8] sm:$0xff] }
 0x298   : > { %5825 = vmatprep.subr.bf16.mxu0 %v6881_v27  ;;  %5954 = vmatprep.subr.bf16.mxu1 %v6883_v28  ;;  %v568_v26 = vld [vmem:[%s9912_s1 + $0x5f8] sm:$0xff]  ;;  %v6936_v27 = vcombine.low %v555_v14, %v559_v15  ;;  %v6938_v28 = vcombine.low %v556_v16, %v560_v17  ;;  %v619_v14 = vld [vmem:[%s9912_s1 + $0x790] sm:$0xff] }
 0x299   : > { %v6947_v30 = vcombine.high %v564_v25, %v568_v26  ;;  %v623_v15 = vld [vmem:[%s9912_s1 + $0x7b0] sm:$0xff]  ;;  %v620_v16 = vld [vmem:[%s9912_s1 + $0x798] sm:$0xff] }
 0x29a   : > { %v624_v17 = vld [vmem:[%s9912_s1 + $0x7b8] sm:$0xff] }
 0x29b   : > { %5826 = vmatpush1.bf16.msra.mxu0 %v6880_v33  ;;  %5955 = vmatpush1.bf16.msra.mxu1 %v6882_v35  ;;  %v572_v33 = vld [vmem:[%s9912_s1 + $0x618] sm:$0xff] }
 0x29c   : > { %5838 = vmatprep.subr.bf16.mxu0 %v6889_v36  ;;  %5967 = vmatprep.subr.bf16.mxu1 %v6891_v37  ;;  %v576_v35 = vld [vmem:[%s9912_s1 + $0x638] sm:$0xff]  ;;  %v6944_v36 = vcombine.low %v563_v22, %v567_v24  ;;  %v6946_v37 = vcombine.low %v564_v25, %v568_v26  ;;  %v627_v22 = vld [vmem:[%s9912_s1 + $0x7d0] sm:$0xff] }
 0x29d   : > { %v6955_v59 = vcombine.high %v572_v33, %v576_v35  ;;  %v631_v24 = vld [vmem:[%s9912_s1 + $0x7f0] sm:$0xff]  ;;  %v628_v25 = vld [vmem:[%s9912_s1 + $0x7d8] sm:$0xff] }
 0x29e   : > { %5828 = vmatmul.mubr.bf16.vlgmr.msra.gmra.mrb[4].mxu0 %v7338_v45  ;;  %5957 = vmatmul.mubr.bf16.vlgmr.msra.gmra.mrb[4].mxu1 %v7338_v45  ;;  %v587_v45 = vld [vmem:[%s9912_s1 + $0x690] sm:$0xff]  ;;  %v632_v26 = vld [vmem:[%s9912_s1 + $0x7f8] sm:$0xff] }
 0x29f   : > { %5839 = vmatpush1.bf16.msra.mxu0 %v6888_v40  ;;  %5968 = vmatpush1.bf16.msra.mxu1 %v6890_v41  ;;  %v580_v40 = vld [vmem:[%s9912_s1 + $0x658] sm:$0xff] }
 0x2a0   : > { %5840 = vmatprep.subr.bf16.mxu0 %v6897_v42  ;;  %5969 = vmatprep.subr.bf16.mxu1 %v6899_v43  ;;  %v584_v41 = vld [vmem:[%s9912_s1 + $0x678] sm:$0xff]  ;;  %v6952_v42 = vcombine.low %v571_v31, %v575_v32  ;;  %v6954_v43 = vcombine.low %v572_v33, %v576_v35  ;;  %v635_v31 = vld [vmem:[%s9912_s1 + $0x810] sm:$0xff] }
 0x2a1   : > { %5870 = vmatprep.mubr.bf16.mxu0 %v7339_v52  ;;  %5999 = vmatprep.mubr.bf16.mxu1 %v7339_v52  ;;  %v6963_v51 = vcombine.high %v580_v40, %v584_v41  ;;  %v599_v52 = vld [vmem:[%s9912_s1 + $0x6f0] sm:$0xff]  ;;  %v636_v33 = vld [vmem:[%s9912_s1 + $0x818] sm:$0xff] }
 0x2a2   : > { %v639_v32 = vld [vmem:[%s9912_s1 + $0x830] sm:$0xff]  ;;  %v640_v35 = vld [vmem:[%s9912_s1 + $0x838] sm:$0xff] }
 0x2a3   : > { %5841 = vmatpush1.bf16.msra.mxu0 %v6896_v34  ;;  %5970 = vmatpush1.bf16.msra.mxu1 %v6898_v47  ;;  %v592_v34 = vld [vmem:[%s9912_s1 + $0x6b8] sm:$0xff]  ;;  %v6960_v47 = vcombine.low %v579_v39, %v583_v23  ;;  %v643_v39 = vld [vmem:[%s9912_s1 + $0x850] sm:$0xff] }
 0x2a4   : > { %5842 = vmatprep.subr.bf16.mxu0 %v6905_v48  ;;  %5971 = vmatprep.subr.bf16.mxu1 %v6907_v49  ;;  %v6962_v48 = vcombine.low %v580_v40, %v584_v41  ;;  %v6969_v49 = vcombine.high %v587_v45, %v591_v46  ;;  %v6971_v50 = vcombine.high %v588_v12, %v592_v34  ;;  %v647_v23 = vld [vmem:[%s9912_s1 + $0x870] sm:$0xff]  ;;  %v644_v40 = vld [vmem:[%s9912_s1 + $0x858] sm:$0xff] }
 0x2a5   : > { %v648_v41 = vld [vmem:[%s9912_s1 + $0x878] sm:$0xff] }
 0x2a7   : > { %5843 = vmatpush1.bf16.msra.mxu0 %v6904_v55  ;;  %5972 = vmatpush1.bf16.msra.mxu1 %v6906_v56  ;;  %v6968_v55 = vcombine.low %v587_v45, %v591_v46  ;;  %v6970_v56 = vcombine.low %v588_v12, %v592_v34  ;;  %v651_v45 = vld [vmem:[%s9912_s1 + $0x890] sm:$0xff]  ;;  %v7340_v12 = vld [vmem:[%s7439_s16 + $0x8] ss:$24 sps:$4 sm:$0xff]   ;;  %v652_v34 = vld [vmem:[%s9912_s1 + $0x898] sm:$0xff] }
 0x2a8   : > { %5844 = vmatprep.subr.bf16.mxu0 %v6913_v57  ;;  %5973 = vmatprep.subr.bf16.mxu1 %v6915_v58  ;;  %v6977_v57 = vcombine.high %v595_v63, %v599_v52  ;;  %v6979_v58 = vcombine.high %v596_v53, %v600_v54  ;;  %v655_v46 = vld [vmem:[%s9912_s1 + $0x8b0] sm:$0xff] }
 0x2ab   : > { %5845 = vmatpush1.bf16.msra.mxu0 %v6912_v1  ;;  %5974 = vmatpush1.bf16.msra.mxu1 %v6914_v2  ;;  %v6976_v1 = vcombine.low %v595_v63, %v599_v52  ;;  %v6978_v2 = vcombine.low %v596_v53, %v600_v54  ;;  %v659_v52 = vld [vmem:[%s9912_s1 + $0x8d0] sm:$0xff] }
 0x2ac   : > { %5846 = vmatprep.subr.bf16.mxu0 %v6921_v3  ;;  %5975 = vmatprep.subr.bf16.mxu1 %v6923_v4  ;;  %v6985_v3 = vcombine.high %v603_v60, %v607_v61  ;;  %v6987_v4 = vcombine.high %v604_v62, %v608_v0  ;;  %v663_v53 = vld [vmem:[%s9912_s1 + $0x8f0] sm:$0xff] }
 0x2ad   : > { %v7341_v54 = vld [vmem:[%s7439_s16 + $0x14] ss:$24 sps:$4 sm:$0xff]  }
 0x2af   : > { %5847 = vmatpush1.bf16.msra.mxu0 %v6920_v9  ;;  %5976 = vmatpush1.bf16.msra.mxu1 %v6922_v10  ;;  %v6984_v9 = vcombine.low %v603_v60, %v607_v61  ;;  %v6986_v10 = vcombine.low %v604_v62, %v608_v0  ;;  %v7041_v60 = vcombine.high %v659_v52, %v663_v53  ;;  %v667_v62 = vld [vmem:[%s9912_s1 + $0x910] sm:$0xff] }
 0x2b0   : > { %5848 = vmatprep.subr.bf16.mxu0 %v6929_v11  ;;  %5977 = vmatprep.subr.bf16.mxu1 %v6931_v13  ;;  %v6993_v11 = vcombine.high %v611_v5, %v615_v6  ;;  %v6995_v13 = vcombine.high %v612_v7, %v616_v8  ;;  %v671_v0 = vld [vmem:[%s9912_s1 + $0x930] sm:$0xff] }
 0x2b3   : > { %5849 = vmatpush1.bf16.msra.mxu0 %v6928_v18  ;;  %5978 = vmatpush1.bf16.msra.mxu1 %v6930_v19  ;;  %v6992_v18 = vcombine.low %v611_v5, %v615_v6  ;;  %v6994_v19 = vcombine.low %v612_v7, %v616_v8  ;;  %v7049_v5 = vcombine.high %v667_v62, %v671_v0  ;;  %v675_v7 = vld [vmem:[%s9912_s1 + $0x950] sm:$0xff] }
 0x2b4   : > { %5850 = vmatprep.subr.bf16.mxu0 %v6937_v20  ;;  %5979 = vmatprep.subr.bf16.mxu1 %v6939_v21  ;;  %v7001_v20 = vcombine.high %v619_v14, %v623_v15  ;;  %v7003_v21 = vcombine.high %v620_v16, %v624_v17  ;;  %v679_v8 = vld [vmem:[%s9912_s1 + $0x970] sm:$0xff] }
 0x2b7   : > { %5851 = vmatpush1.bf16.msra.mxu0 %v6936_v27  ;;  %5980 = vmatpush1.bf16.msra.mxu1 %v6938_v28  ;;  %v7000_v27 = vcombine.low %v619_v14, %v623_v15  ;;  %v7002_v28 = vcombine.low %v620_v16, %v624_v17  ;;  %v7057_v14 = vcombine.high %v675_v7, %v679_v8  ;;  %v683_v16 = vld [vmem:[%s9912_s1 + $0x990] sm:$0xff] }
 0x2b8   : > { %5852 = vmatprep.subr.bf16.mxu0 %v6945_v29  ;;  %5981 = vmatprep.subr.bf16.mxu1 %v6947_v30  ;;  %v7009_v29 = vcombine.high %v627_v22, %v631_v24  ;;  %v7011_v30 = vcombine.high %v628_v25, %v632_v26  ;;  %v687_v17 = vld [vmem:[%s9912_s1 + $0x9b0] sm:$0xff] }
 0x2bb   : > { %5853 = vmatpush1.bf16.msra.mxu0 %v6944_v36  ;;  %5982 = vmatpush1.bf16.msra.mxu1 %v6946_v37  ;;  %v7008_v36 = vcombine.low %v627_v22, %v631_v24  ;;  %v7010_v37 = vcombine.low %v628_v25, %v632_v26  ;;  %v7065_v22 = vcombine.high %v683_v16, %v687_v17  ;;  %v691_v25 = vld [vmem:[%s9912_s1 + $0x9d0] sm:$0xff] }
 0x2bc   : > { %5854 = vmatprep.subr.bf16.mxu0 %v6953_v38  ;;  %5983 = vmatprep.subr.bf16.mxu1 %v6955_v59  ;;  %v7017_v38 = vcombine.high %v635_v31, %v639_v32  ;;  %v7019_v59 = vcombine.high %v636_v33, %v640_v35  ;;  %v695_v26 = vld [vmem:[%s9912_s1 + $0x9f0] sm:$0xff] }
 0x2bf   : > { %5855 = vmatpush1.bf16.msra.mxu0 %v6952_v42  ;;  %5984 = vmatpush1.bf16.msra.mxu1 %v6954_v43  ;;  %v7016_v42 = vcombine.low %v635_v31, %v639_v32  ;;  %v7018_v43 = vcombine.low %v636_v33, %v640_v35  ;;  %v7073_v31 = vcombine.high %v691_v25, %v695_v26  ;;  %v699_v33 = vld [vmem:[%s9912_s1 + $0xa10] sm:$0xff] }
 0x2c0   : > { %5856 = vmatprep.subr.bf16.mxu0 %v6961_v44  ;;  %5985 = vmatprep.subr.bf16.mxu1 %v6963_v51  ;;  %v7025_v44 = vcombine.high %v643_v39, %v647_v23  ;;  %v7027_v51 = vcombine.high %v644_v40, %v648_v41  ;;  %v703_v35 = vld [vmem:[%s9912_s1 + $0xa30] sm:$0xff] }
 0x2c3   : > { %5857 = vmatpush1.bf16.msra.mxu0 %v6960_v47  ;;  %5986 = vmatpush1.bf16.msra.mxu1 %v6962_v48  ;;  %v656_v47 = vld [vmem:[%s9912_s1 + $0x8b8] sm:$0xff]  ;;  %v7024_v48 = vcombine.low %v643_v39, %v647_v23  ;;  %v7081_v39 = vcombine.high %v699_v33, %v703_v35 }
 0x2c4   : > { %5858 = vmatprep.subr.bf16.mxu0 %v6969_v49  ;;  %5987 = vmatprep.subr.bf16.mxu1 %v6971_v50  ;;  %v7026_v49 = vcombine.low %v644_v40, %v648_v41  ;;  %v7033_v50 = vcombine.high %v651_v45, %v655_v46  ;;  %v7035_v63 = vcombine.high %v652_v34, %v656_v47  ;;  %v707_v40 = vld [vmem:[%s9912_s1 + $0xa50] sm:$0xff] }
 0x2c5   : > { %v711_v41 = vld [vmem:[%s9912_s1 + $0xa70] sm:$0xff] }
 0x2c7   : > { %5859 = vmatpush1.bf16.msra.mxu0 %v6968_v55  ;;  %5988 = vmatpush1.bf16.msra.mxu1 %v6970_v56  ;;  %v660_v55 = vld [vmem:[%s9912_s1 + $0x8d8] sm:$0xff] }
 0x2c8   : > { %5860 = vmatprep.subr.bf16.mxu0 %v6977_v57  ;;  %5989 = vmatprep.subr.bf16.mxu1 %v6979_v58  ;;  %v664_v56 = vld [vmem:[%s9912_s1 + $0x8f8] sm:$0xff]  ;;  %v7032_v57 = vcombine.low %v651_v45, %v655_v46  ;;  %v7034_v58 = vcombine.low %v652_v34, %v656_v47  ;;  %v7089_v45 = vcombine.high %v707_v40, %v711_v41  ;;  %v719_v34 = vld [vmem:[%s9912_s1 + $0xab0] sm:$0xff] }
 0x2c9   : > { %v7043_v61 = vcombine.high %v660_v55, %v664_v56  ;;  %v716_v47 = vld [vmem:[%s9912_s1 + $0xa98] sm:$0xff] }
 0x2cb   : > { %5861 = vmatpush1.bf16.msra.mxu0 %v6976_v1  ;;  %5990 = vmatpush1.bf16.msra.mxu1 %v6978_v2  ;;  %v668_v1 = vld [vmem:[%s9912_s1 + $0x918] sm:$0xff] }
 0x2cc   : > { %5862 = vmatprep.subr.bf16.mxu0 %v6985_v3  ;;  %5991 = vmatprep.subr.bf16.mxu1 %v6987_v4  ;;  %v672_v2 = vld [vmem:[%s9912_s1 + $0x938] sm:$0xff]  ;;  %v7040_v3 = vcombine.low %v659_v52, %v663_v53  ;;  %v7042_v4 = vcombine.low %v660_v55, %v664_v56  ;;  %v723_v53 = vld [vmem:[%s9912_s1 + $0xad0] sm:$0xff] }
 0x2cd   : > { %v7051_v6 = vcombine.high %v668_v1, %v672_v2  ;;  %v724_v55 = vld [vmem:[%s9912_s1 + $0xad8] sm:$0xff] }
 0x2ce   : > { %v728_v56 = vld [vmem:[%s9912_s1 + $0xaf8] sm:$0xff] }
 0x2cf   : > { %5863 = vmatpush1.bf16.msra.mxu0 %v6984_v9  ;;  %5992 = vmatpush1.bf16.msra.mxu1 %v6986_v10  ;;  %v676_v9 = vld [vmem:[%s9912_s1 + $0x958] sm:$0xff] }
 0x2d0   : > { %5864 = vmatprep.subr.bf16.mxu0 %v6993_v11  ;;  %5993 = vmatprep.subr.bf16.mxu1 %v6995_v13  ;;  %v680_v10 = vld [vmem:[%s9912_s1 + $0x978] sm:$0xff]  ;;  %v7048_v11 = vcombine.low %v667_v62, %v671_v0  ;;  %v7050_v13 = vcombine.low %v668_v1, %v672_v2  ;;  %v731_v62 = vld [vmem:[%s9912_s1 + $0xb10] sm:$0xff] }
 0x2d1   : > { %v7059_v15 = vcombine.high %v676_v9, %v680_v10  ;;  %v735_v0 = vld [vmem:[%s9912_s1 + $0xb30] sm:$0xff]  ;;  %v732_v1 = vld [vmem:[%s9912_s1 + $0xb18] sm:$0xff] }
 0x2d2   : > { %v736_v2 = vld [vmem:[%s9912_s1 + $0xb38] sm:$0xff] }
 0x2d3   : > { %5865 = vmatpush1.bf16.msra.mxu0 %v6992_v18  ;;  %5994 = vmatpush1.bf16.msra.mxu1 %v6994_v19  ;;  %v684_v18 = vld [vmem:[%s9912_s1 + $0x998] sm:$0xff] }
 0x2d4   : > { %5866 = vmatprep.subr.bf16.mxu0 %v7001_v20  ;;  %5995 = vmatprep.subr.bf16.mxu1 %v7003_v21  ;;  %v688_v19 = vld [vmem:[%s9912_s1 + $0x9b8] sm:$0xff]  ;;  %v7056_v20 = vcombine.low %v675_v7, %v679_v8  ;;  %v7058_v21 = vcombine.low %v676_v9, %v680_v10  ;;  %v739_v7 = vld [vmem:[%s9912_s1 + $0xb50] sm:$0xff] }
 0x2d5   : > { %v7067_v24 = vcombine.high %v684_v18, %v688_v19  ;;  %v743_v8 = vld [vmem:[%s9912_s1 + $0xb70] sm:$0xff]  ;;  %v740_v9 = vld [vmem:[%s9912_s1 + $0xb58] sm:$0xff] }
 0x2d6   : > { %v744_v10 = vld [vmem:[%s9912_s1 + $0xb78] sm:$0xff] }
 0x2d7   : > { %5867 = vmatpush1.bf16.msra.mxu0 %v7000_v27  ;;  %5996 = vmatpush1.bf16.msra.mxu1 %v7002_v28  ;;  %v692_v27 = vld [vmem:[%s9912_s1 + $0x9d8] sm:$0xff] }
 0x2d8   : > { %5868 = vmatprep.subr.bf16.mxu0 %v7009_v29  ;;  %5997 = vmatprep.subr.bf16.mxu1 %v7011_v30  ;;  %v696_v28 = vld [vmem:[%s9912_s1 + $0x9f8] sm:$0xff]  ;;  %v7064_v29 = vcombine.low %v683_v16, %v687_v17  ;;  %v7066_v30 = vcombine.low %v684_v18, %v688_v19  ;;  %v747_v16 = vld [vmem:[%s9912_s1 + $0xb90] sm:$0xff] }
 0x2d9   : > { %v7075_v32 = vcombine.high %v692_v27, %v696_v28  ;;  %v751_v17 = vld [vmem:[%s9912_s1 + $0xbb0] sm:$0xff]  ;;  %v748_v18 = vld [vmem:[%s9912_s1 + $0xb98] sm:$0xff] }
 0x2da   : > { %v752_v19 = vld [vmem:[%s9912_s1 + $0xbb8] sm:$0xff] }
 0x2db   : > { %5869 = vmatpush1.bf16.msra.mxu0 %v7008_v36  ;;  %5998 = vmatpush1.bf16.msra.mxu1 %v7010_v37  ;;  %v700_v36 = vld [vmem:[%s9912_s1 + $0xa18] sm:$0xff] }
 0x2dc   : > { %5881 = vmatprep.subr.bf16.mxu0 %v7017_v38  ;;  %6010 = vmatprep.subr.bf16.mxu1 %v7019_v59  ;;  %v704_v37 = vld [vmem:[%s9912_s1 + $0xa38] sm:$0xff]  ;;  %v7072_v38 = vcombine.low %v691_v25, %v695_v26  ;;  %v7074_v59 = vcombine.low %v692_v27, %v696_v28  ;;  %v755_v25 = vld [vmem:[%s9912_s1 + $0xbd0] sm:$0xff] }
 0x2dd   : > { %v7083_v23 = vcombine.high %v700_v36, %v704_v37  ;;  %v759_v26 = vld [vmem:[%s9912_s1 + $0xbf0] sm:$0xff]  ;;  %v756_v27 = vld [vmem:[%s9912_s1 + $0xbd8] sm:$0xff] }
 0x2de   : > { %5871 = vmatmul.mubr.bf16.vlgmr.msra.gmra.mrb[4].mxu0 %v7340_v12  ;;  %6000 = vmatmul.mubr.bf16.vlgmr.msra.gmra.mrb[4].mxu1 %v7340_v12  ;;  %v715_v12 = vld [vmem:[%s9912_s1 + $0xa90] sm:$0xff]  ;;  %v760_v28 = vld [vmem:[%s9912_s1 + $0xbf8] sm:$0xff] }
 0x2df   : > { %5882 = vmatpush1.bf16.msra.mxu0 %v7016_v42  ;;  %6011 = vmatpush1.bf16.msra.mxu1 %v7018_v43  ;;  %v708_v42 = vld [vmem:[%s9912_s1 + $0xa58] sm:$0xff] }
 0x2e0   : > { %5883 = vmatprep.subr.bf16.mxu0 %v7025_v44  ;;  %6012 = vmatprep.subr.bf16.mxu1 %v7027_v51  ;;  %v712_v43 = vld [vmem:[%s9912_s1 + $0xa78] sm:$0xff]  ;;  %v7080_v44 = vcombine.low %v699_v33, %v703_v35  ;;  %v7082_v51 = vcombine.low %v700_v36, %v704_v37  ;;  %v7136_v33 = vcombine.low %v755_v25, %v759_v26  ;;  %v7342_v36 = vld [vmem:[%s7439_s16 + $0x10] ss:$24 sps:$4 sm:$0xff]  }
 0x2e1   : > { %5913 = vmatprep.mubr.bf16.mxu0 %v7341_v54  ;;  %6042 = vmatprep.mubr.bf16.mxu1 %v7341_v54  ;;  %v7091_v46 = vcombine.high %v708_v42, %v712_v43  ;;  %v727_v54 = vld [vmem:[%s9912_s1 + $0xaf0] sm:$0xff]  ;;  %v7138_v35 = vcombine.low %v756_v27, %v760_v28 }
 0x2e3   : > { %5884 = vmatpush1.bf16.msra.mxu0 %v7024_v48  ;;  %6013 = vmatpush1.bf16.msra.mxu1 %v7026_v49  ;;  %v720_v48 = vld [vmem:[%s9912_s1 + $0xab8] sm:$0xff]  ;;  %v7088_v49 = vcombine.low %v707_v40, %v711_v41 }
 0x2e4   : > { %5885 = vmatprep.subr.bf16.mxu0 %v7033_v50  ;;  %6014 = vmatprep.subr.bf16.mxu1 %v7035_v63  ;;  %v7090_v50 = vcombine.low %v708_v42, %v712_v43  ;;  %v7097_v63 = vcombine.high %v715_v12, %v719_v34  ;;  %v7099_v52 = vcombine.high %v716_v47, %v720_v48  ;;  %v6055_v43 = vlaneseq }
 0x2e7   : > { %5886 = vmatpush1.bf16.msra.mxu0 %v7032_v57  ;;  %6015 = vmatpush1.bf16.msra.mxu1 %v7034_v58  ;;  %v7096_v57 = vcombine.low %v715_v12, %v719_v34  ;;  %v7098_v58 = vcombine.low %v716_v47, %v720_v48  ;;  %v9816_v48 = vld [vmem:[#allocation3] sm:$0xff] }
 0x2e8   : > { %5887 = vmatprep.subr.bf16.mxu0 %v7041_v60  ;;  %6016 = vmatprep.subr.bf16.mxu1 %v7043_v61  ;;  %v7105_v60 = vcombine.high %v723_v53, %v727_v54  ;;  %v7107_v61 = vcombine.high %v724_v55, %v728_v56 }
 0x2eb   : > { %5888 = vmatpush1.bf16.msra.mxu0 %v7040_v3  ;;  %6017 = vmatpush1.bf16.msra.mxu1 %v7042_v4  ;;  %v7104_v3 = vcombine.low %v723_v53, %v727_v54  ;;  %v7106_v4 = vcombine.low %v724_v55, %v728_v56  ;;  %v9826_v53 = vld [vmem:[#allocation3 + $0x8] sm:$0xff] }
 0x2ec   : > { %5889 = vmatprep.subr.bf16.mxu0 %v7049_v5  ;;  %6018 = vmatprep.subr.bf16.mxu1 %v7051_v6  ;;  %v7113_v5 = vcombine.high %v731_v62, %v735_v0  ;;  %v7115_v6 = vcombine.high %v732_v1, %v736_v2  ;;  %v6116_v54 = vld [vmem:[%s9915_s4 + $0x8] sm:$0xff] }
 0x2ef   : > { %5890 = vmatpush1.bf16.msra.mxu0 %v7048_v11  ;;  %6019 = vmatpush1.bf16.msra.mxu1 %v7050_v13  ;;  %v7112_v11 = vcombine.low %v731_v62, %v735_v0  ;;  %v7114_v13 = vcombine.low %v732_v1, %v736_v2  ;;  %v9837_v62 = vld [vmem:[#allocation3 + $0x10] sm:$0xff]  ;;  %v6120_v2 = vmul.f32 %v6116_v54, %v9826_v53 }
 0x2f0   : > { %5891 = vmatprep.subr.bf16.mxu0 %v7057_v14  ;;  %6020 = vmatprep.subr.bf16.mxu1 %v7059_v15  ;;  %v7121_v14 = vcombine.high %v739_v7, %v743_v8  ;;  %v7123_v15 = vcombine.high %v740_v9, %v744_v10  ;;  %v6117_v0 = vld [vmem:[%s9915_s4 + $0x10] sm:$0xff] }
 0x2f3   : > { %5892 = vmatpush1.bf16.msra.mxu0 %v7056_v20  ;;  %6021 = vmatpush1.bf16.msra.mxu1 %v7058_v21  ;;  %v7120_v20 = vcombine.low %v739_v7, %v743_v8  ;;  %v7122_v21 = vcombine.low %v740_v9, %v744_v10  ;;  %v6118_v7 = vld [vmem:[%s9915_s4 + $0x18] sm:$0xff]  ;;  %v6121_v10 = vmul.f32 %v6117_v0, %v9837_v62 }
 0x2f4   : > { %5893 = vmatprep.subr.bf16.mxu0 %v7065_v22  ;;  %6022 = vmatprep.subr.bf16.mxu1 %v7067_v24  ;;  %v7129_v22 = vcombine.high %v747_v16, %v751_v17  ;;  %v7131_v24 = vcombine.high %v748_v18, %v752_v19 }
 0x2f7   : > { %5894 = vmatpush1.bf16.msra.mxu0 %v7064_v29  ;;  %6023 = vmatpush1.bf16.msra.mxu1 %v7066_v30  ;;  %v7128_v29 = vcombine.low %v747_v16, %v751_v17  ;;  %v7130_v30 = vcombine.low %v748_v18, %v752_v19 }
 0x2f8   : > { %5895 = vmatprep.subr.bf16.mxu0 %v7073_v31  ;;  %6024 = vmatprep.subr.bf16.mxu1 %v7075_v32  ;;  %v7137_v31 = vcombine.high %v755_v25, %v759_v26  ;;  %v7139_v32 = vcombine.high %v756_v27, %v760_v28 }
 0x2fb   : > { %5896 = vmatpush1.bf16.msra.mxu0 %v7072_v38  ;;  %6025 = vmatpush1.bf16.msra.mxu1 %v7074_v59 }
 0x2fc   : > { %5897 = vmatprep.subr.bf16.mxu0 %v7081_v39  ;;  %6026 = vmatprep.subr.bf16.mxu1 %v7083_v23 }
 0x2ff   : > { %5898 = vmatpush1.bf16.msra.mxu0 %v7080_v44  ;;  %6027 = vmatpush1.bf16.msra.mxu1 %v7082_v51  ;;  %v9804_v44 = vshrl.u32 %v6055_v43, 7 }
 0x300   : > { %5899 = vmatprep.subr.bf16.mxu0 %v7089_v45  ;;  %6028 = vmatprep.subr.bf16.mxu1 %v7091_v46  ;;  %v9810_v45 = vld [vmem:[%s9914_s3] sm:$0xff] }
 0x301   : > { %v6057_v51 = vsub.s32 0, %v9804_v44  ;;  %v6065_v46 = vsub.s32 2, %v9804_v44  ;;  %v6061_v12 = vsub.s32 1, %v9804_v44  ;;  %v6069_v34 = vsub.s32 3, %v9804_v44 }
 0x303   : > { %5900 = vmatpush1.bf16.msra.mxu0 %v7088_v49  ;;  %6029 = vmatpush1.bf16.msra.mxu1 %v7090_v50  ;;  %v6058_v47 = vrot.slane %v9810_v45, %v6057_v51  ;;  %v6115_v49 = vld [vmem:[%s9915_s4] sm:$0xff]  ;;  %v6066_v50 = vrot.slane %v9810_v45, %v6065_v46  ;;  %v6070_v55 = vrot.slane %v9810_v45, %v6069_v34  ;;  %v6081_v51 = vsub.s32 6, %v9804_v44 }
 0x304   : > { %5901 = vmatprep.subr.bf16.mxu0 %v7097_v63  ;;  %6030 = vmatprep.subr.bf16.mxu1 %v7099_v52  ;;  %v6151_v63 = vld [vmem:[%s9916_s5] sm:$0xff]  ;;  %v6062_v52 = vrot.slane %v9810_v45, %v6061_v12  ;;  %v6077_v46 = vsub.s32 5, %v9804_v44 }
 0x307   : > { %5902 = vmatpush1.bf16.msra.mxu0 %v7096_v57  ;;  %6031 = vmatpush1.bf16.msra.mxu1 %v7098_v58  ;;  %v6119_v57 = vmul.f32 %v6115_v49, %v9816_v48  ;;  %v6152_v58 = vld [vmem:[%s9916_s5 + $0x8] sm:$0xff] }
 0x308   : > { %5903 = vmatprep.subr.bf16.mxu0 %v7105_v60  ;;  %6032 = vmatprep.subr.bf16.mxu1 %v7107_v61  ;;  %v6155_v61 = vmul.f32 %v6151_v63, %v9816_v48  ;;  %v6203_v63 = vld [vmem:[%s9917_s6] sm:$0xff] }
 0x30b   : > { %5904 = vmatpush1.bf16.msra.mxu0 %v7104_v3  ;;  %6033 = vmatpush1.bf16.msra.mxu1 %v7106_v4  ;;  %v6153_v3 = vld [vmem:[%s9916_s5 + $0x10] sm:$0xff] }
 0x30c   : > { %5905 = vmatprep.subr.bf16.mxu0 %v7113_v5  ;;  %6034 = vmatprep.subr.bf16.mxu1 %v7115_v6  ;;  %v6156_v5 = vmul.f32 %v6152_v58, %v9826_v53  ;;  %v9847_v6 = vld [vmem:[#allocation3 + $0x18] sm:$0xff]  ;;  %v6205_v58 = vld [vmem:[%s9917_s6 + $0x10] sm:$0xff] }
 0x30d   : > { %v6122_v18 = vmul.f32 %v6118_v7, %v9847_v6 }
 0x30f   : > { %5906 = vmatpush1.bf16.msra.mxu0 %v7112_v11  ;;  %6035 = vmatpush1.bf16.msra.mxu1 %v7114_v13  ;;  %v6154_v11 = vld [vmem:[%s9916_s5 + $0x18] sm:$0xff] }
 0x310   : > { %5907 = vmatprep.subr.bf16.mxu0 %v7121_v14  ;;  %6036 = vmatprep.subr.bf16.mxu1 %v7123_v15  ;;  %v6157_v15 = vmul.f32 %v6153_v3, %v9837_v62 }
 0x313   : > { %5908 = vmatpush1.bf16.msra.mxu0 %v7120_v20  ;;  %6037 = vmatpush1.bf16.msra.mxu1 %v7122_v21  ;;  %v6158_v21 = vmul.f32 %v6154_v11, %v9847_v6 }
 0x314   : > { %5909 = vmatprep.subr.bf16.mxu0 %v7129_v22  ;;  %6038 = vmatprep.subr.bf16.mxu1 %v7131_v24 }
 0x317   : > { %5910 = vmatpush1.bf16.msra.mxu0 %v7128_v29  ;;  %6039 = vmatpush1.bf16.msra.mxu1 %v7130_v30 }
 0x318   : > { %5911 = vmatprep.subr.bf16.mxu0 %v7137_v31  ;;  %6040 = vmatprep.subr.bf16.mxu1 %v7139_v32 }
 0x31b   : > { %5912 = vmatpush1.bf16.msra.mxu0 %v7136_v33  ;;  %6041 = vmatpush1.bf16.msra.mxu1 %v7138_v35 }
 0x31e   : > { %5914 = vmatmul.mubr.bf16.vlgmr.msra.gmra.mrb[4].mxu0 %v7342_v36  ;;  %6043 = vmatmul.mubr.bf16.vlgmr.msra.gmra.mrb[4].mxu1 %v7342_v36 }
 0x331   : > { %v5657_v37 = vpop.f32.mrb[0].mxu0  ;;  %v5786_v38 = vpop.f32.mrb[0].mxu1 }
 0x332   : > { %v5659_v59 = vpop.f32.mrb[1].mxu0  ;;  %v5788_v39 = vpop.f32.mrb[1].mxu1  ;;  %v6095_v56 = vadd.f32 %v6058_v47, %v5657_v37  ;;  %v6097_v60 = vadd.f32 %v6066_v50, %v5786_v38 }
 0x333   : > { %v5661_v23 = vpop.f32.mrb[2].mxu0  ;;  %v5790_v40 = vpop.f32.mrb[2].mxu1  ;;  %v6096_v1 = vadd.f32 %v6062_v52, %v5659_v59  ;;  %v6098_v4 = vadd.f32 %v6070_v55, %v5788_v39 }
 0x334   : > { %v5663_v41 = vpop.f32.mrb[3].mxu0  ;;  %v5792_v42 = vpop.f32.mrb[3].mxu1  ;;  %v6123_v8 = vadd.f32 %v6119_v57, %v6095_v56  ;;  %v6103_v9 = vadd.f32 %v6058_v47, %v5661_v23  ;;  %v6159_v13 = vadd.f32 %v6155_v61, %v6097_v60  ;;  %v6105_v14 = vadd.f32 %v6066_v50, %v5790_v40 }
 0x335   : > { %v6124_v16 = vadd.f32 %v6120_v2, %v6096_v1  ;;  %v6104_v17 = vadd.f32 %v6062_v52, %v5663_v41  ;;  %v6160_v19 = vadd.f32 %v6156_v5, %v6098_v4  ;;  %v6106_v20 = vadd.f32 %v6070_v55, %v5792_v42  ;;  %v6204_v55 = vld [vmem:[%s9917_s6 + $0x8] sm:$0xff]  ;;  %v6206_v1 = vld [vmem:[%s9917_s6 + $0x18] sm:$0xff] }
 0x336   : > { %v7140_v22 = vmul.f32 -1.442695, %v6123_v8  ;;  %v6125_v24 = vadd.f32 %v6121_v10, %v6103_v9  ;;  %v7144_v25 = vmul.f32 -1.442695, %v6159_v13  ;;  %v6161_v26 = vadd.f32 %v6157_v15, %v6105_v14 }
 0x337   : > { %v7141_v27 = vmul.f32 -1.442695, %v6124_v16  ;;  %v6126_v28 = vadd.f32 %v6122_v18, %v6104_v17  ;;  %v7145_v29 = vmul.f32 -1.442695, %v6160_v19  ;;  %v6162_v30 = vadd.f32 %v6158_v21, %v6106_v20 }
 0x338   : > { %7273 = vpow2.f32 %v7140_v22  ;;  %v7142_v31 = vmul.f32 -1.442695, %v6125_v24  ;;  %v7146_v32 = vmul.f32 -1.442695, %v6161_v26  ;;  %v6073_v41 = vsub.s32 4, %v9804_v44 }
 0x339   : > { %7275 = vpow2.f32 %v7144_v25  ;;  %v7143_v33 = vmul.f32 -1.442695, %v6126_v28  ;;  %v7147_v35 = vmul.f32 -1.442695, %v6162_v30  ;;  %v6085_v47 = vsub.s32 7, %v9804_v44 }
 0x33a   : > { %7277 = vpow2.f32 %v7141_v27  ;;  %v6074_v54 = vrot.slane %v9810_v45, %v6073_v41  ;;  %v6082_v57 = vrot.slane %v9810_v45, %v6081_v51  ;;  %v6078_v44 = vrot.slane %v9810_v45, %v6077_v46 }
 0x33b   : > { %7279 = vpow2.f32 %v7145_v29  ;;  %v6207_v61 = vmul.f32 %v6203_v63, %v9816_v48  ;;  %v6086_v0 = vrot.slane %v9810_v45, %v6085_v47  ;;  %v6208_v3 = vmul.f32 %v6204_v55, %v9826_v53 }
 0x33c   : > { %7281 = vpow2.f32 %v7142_v31  ;;  %v6209_v8 = vmul.f32 %v6205_v58, %v9837_v62  ;;  %v6210_v45 = vmul.f32 %v6206_v1, %v9847_v6 }
 0x33d   : > { %7283 = vpow2.f32 %v7146_v32 }
 0x33e   : > { %7285 = vpow2.f32 %v7143_v33 }
 0x33f   : > { %7287 = vpow2.f32 %v7147_v35 }
 0x342   : > { %v7274_v36 = vpop.eup %7273 }
 0x343   : > { %v7276_v37 = vpop.eup %7275  ;;  %v6139_v39 = vadd.f32 1.0, %v7274_v36 }
 0x344   : > { %v7278_v38 = vpop.eup %7277  ;;  %v6175_v40 = vadd.f32 1.0, %v7276_v37 }
 0x345   : > { %v7280_v59 = vpop.eup %7279  ;;  %v6140_v43 = vadd.f32 1.0, %v7278_v38  ;;  %7289 = vrcp.f32 %v6139_v39 }
 0x346   : > { %v7282_v23 = vpop.eup %7281  ;;  %v6176_v34 = vadd.f32 1.0, %v7280_v59  ;;  %7291 = vrcp.f32 %v6175_v40 }
 0x347   : > { %v7284_v42 = vpop.eup %7283  ;;  %v6141_v50 = vadd.f32 1.0, %v7282_v23  ;;  %7293 = vrcp.f32 %v6140_v43 }
 0x348   : > { %v7286_v12 = vpop.eup %7285  ;;  %v6177_v52 = vadd.f32 1.0, %v7284_v42  ;;  %7295 = vrcp.f32 %v6176_v34 }
 0x349   : > { %v7288_v49 = vpop.eup %7287  ;;  %v6142_v56 = vadd.f32 1.0, %v7286_v12  ;;  %7297 = vrcp.f32 %v6141_v50 }
 0x34a   : > { %v6178_v60 = vadd.f32 1.0, %v7288_v49  ;;  %7299 = vrcp.f32 %v6177_v52 }
 0x34b   : > { %7301 = vrcp.f32 %v6142_v56 }
 0x34c   : > { %7303 = vrcp.f32 %v6178_v60 }
 0x34f   : > { %v7290_v26 = vpop.eup %7289 }
 0x350   : > { %v7292_v29 = vpop.eup %7291 }
 0x351   : > { %v7294_v32 = vpop.eup %7293  ;;  %v6187_v40 = vmul.f32 %v7292_v29, %v9816_v48 }
 0x352   : > { %v7296_v35 = vpop.eup %7295 }
 0x353   : > { %v7298_v36 = vpop.eup %7297  ;;  %v6188_v43 = vmul.f32 %v7296_v35, %v9826_v53 }
 0x354   : > { %v7300_v37 = vpop.eup %7299 }
 0x355   : > { %v7302_v38 = vpop.eup %7301  ;;  %v6189_v34 = vmul.f32 %v7300_v37, %v9837_v62 }
 0x356   : > { %v7304_v59 = vpop.eup %7303 }
 0x357   : > { %v6190_v62 = vmul.f32 %v7304_v59, %v9847_v6 }
 0x3f1   : > { %v5915_v2 = vpop.f32.mrb[4].mxu0  ;;  %v6044_v5 = vpop.f32.mrb[4].mxu1 }
 0x3f2   : > { %v6099_v4 = vadd.f32 %v6074_v54, %v5915_v2  ;;  %v5917_v7 = vpop.f32.mrb[5].mxu0  ;;  %v6101_v9 = vadd.f32 %v6082_v57, %v6044_v5  ;;  %v6046_v11 = vpop.f32.mrb[5].mxu1 }
 0x3f3   : > { %v6100_v10 = vadd.f32 %v6078_v44, %v5917_v7  ;;  %v5919_v13 = vpop.f32.mrb[6].mxu0  ;;  %v6102_v15 = vadd.f32 %v6086_v0, %v6046_v11  ;;  %v6048_v17 = vpop.f32.mrb[6].mxu1 }
 0x3f4   : > { %v6211_v14 = vadd.f32 %v6207_v61, %v6099_v4  ;;  %v6107_v16 = vadd.f32 %v6074_v54, %v5919_v13  ;;  %v5921_v18 = vpop.f32.mrb[7].mxu0  ;;  %7305 = vtanh.f32 %v6101_v9  ;;  %v6109_v20 = vadd.f32 %v6082_v57, %v6048_v17  ;;  %v6050_v22 = vpop.f32.mrb[7].mxu1 }
 0x3f5   : > { %v6212_v19 = vadd.f32 %v6208_v3, %v6100_v10  ;;  %v6108_v21 = vadd.f32 %v6078_v44, %v5921_v18  ;;  %7307 = vtanh.f32 %v6102_v15  ;;  %v6110_v31 = vadd.f32 %v6086_v0, %v6050_v22 }
 0x3f6   : > { %v7148_v24 = vmul.f32 -1.442695, %v6211_v14  ;;  %v6213_v25 = vadd.f32 %v6209_v8, %v6107_v16  ;;  %7309 = vtanh.f32 %v6109_v20 }
 0x3f7   : > { %v7149_v27 = vmul.f32 -1.442695, %v6212_v19  ;;  %v6214_v28 = vadd.f32 %v6210_v45, %v6108_v21 }
 0x3f8   : > { %7311 = vpow2.f32 %v7148_v24  ;;  %v7150_v30 = vmul.f32 -1.442695, %v6213_v25 }
 0x3f9   : > { %7313 = vpow2.f32 %v7149_v27  ;;  %v7151_v33 = vmul.f32 -1.442695, %v6214_v28 }
 0x3fa   : > { %7315 = vpow2.f32 %v7150_v30 }
 0x3fb   : > { %7317 = vpow2.f32 %v7151_v33 }
 0x3fc   : > { %7319 = vtanh.f32 %v6110_v31 }
 0x3fe   : > { %v7306_v39 = vpop.eup %7305 }
 0x3ff   : > { %v7308_v23 = vpop.eup %7307  ;;  %v6195_v41 = vmul.f32 %v7306_v39, %v7290_v26 }
 0x400   : > { %v7310_v42 = vpop.eup %7309  ;;  %v6196_v51 = vmul.f32 %v7308_v23, %v7294_v32 }
 0x401   : > { %v6199_v12 = vadd.f32 %v6195_v41, %v6187_v40  ;;  %v6197_v47 = vmul.f32 %v7310_v42, %v7298_v36 }
 0x402   : > { %v7312_v46 = vpop.eup %7311  ;;  %v6200_v63 = vadd.f32 %v6196_v51, %v6188_v43 }
 0x403   : > { %v7314_v49 = vpop.eup %7313  ;;  %v6227_v50 = vadd.f32 1.0, %v7312_v46  ;;  %7321 = vtanh.f32 %v6199_v12  ;;  %6247 = vst [vmem:[#allocation3] sm:$0xff] %v6199_v12  ;;  %v6201_v55 = vadd.f32 %v6197_v47, %v6189_v34 }
 0x404   : > { %v7316_v52 = vpop.eup %7315  ;;  %v6228_v54 = vadd.f32 1.0, %v7314_v49  ;;  %6248 = vst [vmem:[#allocation3 + $0x8] sm:$0xff] %v6200_v63 }
 0x405   : > { %v7318_v56 = vpop.eup %7317  ;;  %7323 = vrcp.f32 %v6227_v50  ;;  %v6229_v48 = vadd.f32 1.0, %v7316_v52  ;;  %6249 = vst [vmem:[#allocation3 + $0x10] sm:$0xff] %v6201_v55 }
 0x406   : > { %v7320_v57 = vpop.eup %7319  ;;  %7325 = vrcp.f32 %v6228_v54  ;;  %v6230_v53 = vadd.f32 1.0, %v7318_v56 }
 0x407   : > { %7327 = vtanh.f32 %v6200_v63  ;;  %v6198_v44 = vmul.f32 %v7320_v57, %v7302_v38 }
 0x408   : > { %7329 = vrcp.f32 %v6229_v48 }
 0x409   : > { %7331 = vtanh.f32 %v6201_v55  ;;  %v6202_v58 = vadd.f32 %v6198_v44, %v6190_v62 }
 0x40a   : > { %7333 = vrcp.f32 %v6230_v53 }
 0x40b   : > { %7335 = vtanh.f32 %v6202_v58  ;;  %6250 = vst [vmem:[#allocation3 + $0x18] sm:$0xff] %v6202_v58 }
 0x40d   : > { %v7322_v60 = vpop.eup %7321 }
 0x40f   : > { %v7324_v61 = vpop.eup %7323 }
 0x410   : > { %v7326_v0 = vpop.eup %7325  ;;  %v6243_v1 = vmul.f32 %v7324_v61, %v7322_v60 }
 0x411   : > { %v7328_v2 = vpop.eup %7327 }
 0x412   : > { %v7330_v3 = vpop.eup %7329  ;;  %v6255_v4 = vrot.slane %v6243_v1, 7  ;;  %6271 = vst [vmem:[%s7441_s17] sm:$0xff] %v6243_v1  ;;  %v6244_v5 = vmul.f32 %v7328_v2, %v7326_v0 }
 0x413   : > { %v7332_v7 = vpop.eup %7331 }
 0x414   : > { %v7334_v6 = vpop.eup %7333  ;;  %6263 = vst [vmem:[#allocation2] sm:$0xfe] %v6255_v4  ;;  %6265 = vst [vmem:[#allocation2 + $0x10] sm:$0x1] %v6255_v4  ;;  %v6256_v8 = vrot.slane %v6244_v5, 7  ;;  %v6245_v9 = vmul.f32 %v7332_v7, %v7330_v3  ;;  %6281 = sbr.rel (!%p7430_p4) target bundleno = 1058 (0x422), region = 56 }
 0x415   : > { %6272 = vst [vmem:[%s7441_s17 + $0x8] sm:$0xff] %v6244_v5  ;;  %v7336_v10 = vpop.eup %7335 }
 0x416   : > { %6264 = vst [vmem:[#allocation2 + $0x8] sm:$0xfe] %v6256_v8  ;;  %6266 = vst [vmem:[#allocation2 + $0x18] sm:$0x1] %v6256_v8  ;;  %v6257_v11 = vrot.slane %v6245_v9, 7  ;;  %v6246_v13 = vmul.f32 %v7336_v10, %v7334_v6 }
 0x417   : > { %6273 = vst [vmem:[%s7441_s17 + $0x10] sm:$0xff] %v6245_v9 }
 0x418   : > { %6267 = vst [vmem:[#allocation2 + $0x20] sm:$0xfe] %v6257_v11  ;;  %6269 = vst [vmem:[#allocation2 + $0x30] sm:$0x1] %v6257_v11  ;;  %v6258_v45 = vrot.slane %v6246_v13, 7 }
 0x419   : > { %6274 = vst [vmem:[%s7441_s17 + $0x18] sm:$0xff] %v6246_v13  ;;  %v6297_v14 = vld [vmem:[%s7441_s17] sm:$0xff] (%p7430_p4) }
 0x41a   : > { %6268 = vst [vmem:[#allocation2 + $0x28] sm:$0xfe] %v6258_v45  ;;  %6270 = vst [vmem:[#allocation2 + $0x38] sm:$0x1] %v6258_v45 }
 0x41b   : > { %6298 = vst [vmem:[%s6284_s11] sm:$0xff] %v6297_v14 }
 0x41c   : > { %v6299_v15 = vld [vmem:[%s7441_s17 + $0x8] sm:$0xff] }
 0x41d   : > { %6300 = vst [vmem:[%s6284_s11 + $0x8] sm:$0xff] %v6299_v15 }
 0x41e   : > { %v6301_v16 = vld [vmem:[%s7441_s17 + $0x10] sm:$0xff] }
 0x41f   : > { %6302 = vst [vmem:[%s6284_s11 + $0x40] sm:$0xff] %v6301_v16 }
 0x420   : > { %v6303_v17 = vld [vmem:[%s7441_s17 + $0x18] sm:$0xff] }
 0x421   : > { %6304 = vst [vmem:[%s6284_s11 + $0x48] sm:$0xff] %v6303_v17 }
 0x422 PF: > { %p14_p9 = scmp.ge.s32.totalorder %s7421_s28, 6   ;;  %s9920_s24 = smov %s7361_s25 }
 0x423   : > { %s9921_s25 = smov %s7428_s8  ;;  %s9922_s26 = smov %s7421_s28 }
 0x424   :  { %16 = sbr.rel (!%p14_p9) target bundleno = 2 (0x2), region = 105 }

</bundles_post_ra>
